<compile_context>
chip_gen: v6e
topology: v6e:2x2x1
jax: 0.10.0
libtpu: 0.0.40
codegen_flags: <defaults>
</compile_context>

<pallas_src>
import functools

import numpy as np
import jax
import jax.numpy as jnp
from jax.experimental import pallas as pl
from jax.experimental.pallas import tpu as pltpu


# HBM intermediate + MXU-operand dtype (review items 1 / 5).
INTER_DTYPE = jnp.bfloat16


def _round_up(x, m):
    return (x + m - 1) // m * m


def _bilinear_matrix(n_in, n_out):
    """1-D bilinear interpolation matrix (align_corners=True), shape (n_out, n_in)."""
    A = np.zeros((n_out, n_in), dtype=np.float32)
    if n_in == 1:
        A[:, 0] = 1.0
        return A
    scale = (n_in - 1) / (n_out - 1)
    for i in range(n_out):
        src = i * scale
        i0 = min(int(np.floor(src)), n_in - 2)
        f = src - i0
        A[i, i0] += 1.0 - f
        A[i, i0 + 1] += f
    return A


# ---------------------------------------------------------------------------
# Kernel 1: separable bilinear x2 upsample (align_corners=True)
#   x_ref  : (1, Cpad*H, W) f32        btp_ref: (W, Wp) f32 (zero-padded cols)
#   a_ref  : (Ho, H) f32               o_ref  : (1, Cpad, Ho, Wp) bf16
# Width interp is one big matmul; height interp is one batched matmul over
# channels.  Output stores are full 128-lane stores (Wp multiple of 128).
# ---------------------------------------------------------------------------
def _upsample_kernel(x_ref, btp_ref, a_ref, o_ref):
    Ho, H = a_ref.shape
    Wp = btp_ref.shape[1]
    Cpad = x_ref.shape[1] // H

    # width interpolation for all (channel, row) pairs at once
    z = jnp.dot(x_ref[0], btp_ref[...], preferred_element_type=jnp.float32)  # (Cpad*H, Wp)
    z3 = z.reshape(Cpad, H, Wp)  # layout no-op (H % 8 == 0, lane dim unchanged)

    # height interpolation, batched over channels
    ab = jnp.broadcast_to(a_ref[...], (Cpad, Ho, H))
    y = jax.lax.dot_general(
        ab, z3,
        dimension_numbers=(((2,), (1,)), ((0,), (0,))),
        preferred_element_type=jnp.float32)                                   # (Cpad, Ho, Wp)

    o_ref[0] = y.astype(o_ref.dtype)


# 3x3 conv taps, t = (dy+1)*3 + (dx+1)  (matches OIHW -> tap-major weight fold)
_TAPS = tuple((dy, dx) for dy in (-1, 0, 1) for dx in (-1, 0, 1))


# ---------------------------------------------------------------------------
# Kernel 2: (conv3x3 -> folded BN -> ReLU) * 2, lane-dense flat layout
#   u_ref   : (1, Cin_pad, P) bf16   (P = Ho*Wp, Wp multiple of 128)
#   row_ref : (1, P) int32  flat-pixel row index (p // Wp)
#   col_ref : (1, P) int32  flat-pixel col index (p %  Wp)
#   w1_ref  : (Cmid_pad, 9*Cin_pad)  bf16   b1_ref: (Cmid_pad, 1) f32
#   w2_ref  : (Cout_pad, 9*Cmid_pad) bf16   b2_ref: (Cout_pad, 1) f32
#   o_ref   : (1, Cout_pad, P) f32
# Each conv = one MXU matmul over the stacked (9*Cpad, P) shifted taps.
# ---------------------------------------------------------------------------
def _double_conv_kernel(u_ref, row_ref, col_ref, w1_ref, b1_ref, w2_ref, b2_ref,
                        o_ref, *, Ho, Wo, Wp):
    P = u_ref.shape[2]
    row = row_ref[...]                       # (1, P) int32
    col = col_ref[...]                       # (1, P) int32

    # factored border masks (3 row + 3 col conditions, built in-kernel)
    row_ok = {-1: row >= 1, 1: row <= Ho - 2}
    col_ok = {-1: col >= 1, 1: col <= Wo - 2}

    def stacked_taps(xf):
        """xf: (C, P) f32 -> (9*C, P) bf16 stacked, masked, shifted taps."""
        pieces = []
        for dy, dx in _TAPS:
            if dy == 0 and dx == 0:
                pieces.append(xf)            # center tap: no roll, no mask
                continue
            s = dy * Wp + dx                 # flat-lane shift of this neighbour
            sh = pltpu.roll(xf, shift=(-s) % P, axis=1)   # sh[p] = xf[p + s]
            m = None
            if dy != 0:
                m = row_ok[dy]
            if dx != 0:
                m = col_ok[dx] if m is None else jnp.logical_and(m, col_ok[dx])
            pieces.append(jnp.where(m, sh, 0.0))
        # channel counts are padded to multiples of 8 -> tile-aligned concat
        return jnp.concatenate(pieces, axis=0).astype(INTER_DTYPE)

    x0 = u_ref[0].astype(jnp.float32)                                   # (Cin_pad, P)

    s1 = stacked_taps(x0)                                               # (9*Cin_pad, P) bf16
    h = jnp.dot(w1_ref[...], s1, preferred_element_type=jnp.float32)    # (Cmid_pad, P) f32
    h = jnp.maximum(h + b1_ref[...], 0.0)

    s2 = stacked_taps(h)                                                # (9*Cmid_pad, P) bf16
    y = jnp.dot(w2_ref[...], s2, preferred_element_type=jnp.float32)    # (Cout_pad, P) f32
    o_ref[0] = jnp.maximum(y + b2_ref[...], 0.0)


# ---------------------------------------------------------------------------
# Wrapper
# ---------------------------------------------------------------------------
@functools.partial(jax.jit, static_argnames=("cout",))
def up_forward(x_nchw, A, B, w1p, b1p, w2p, b2p, *, cout):
    """x_nchw: (N, Cin, H, W) -> (N, cout, 2H, 2W), matching Up.forward (eval BN)."""
    N, Cin, H, W = x_nchw.shape
    Ho, Wo = A.shape[0], B.shape[0]
    assert A.shape[1] == H and B.shape[1] == W
    assert H % 8 == 0, "H must be a multiple of 8 for this kernel"

    Cin_pad = w1p.shape[1] // 9
    Cmid_pad = w1p.shape[0]
    Cout_pad = w2p.shape[0]

    Wp = _round_up(Wo, 128)        # lane-dense padded width
    P = Ho * Wp

    # pad channels to the tile-aligned count; free row-major reshape to 3-D
    x_p = jnp.pad(x_nchw.astype(jnp.float32),
                  ((0, 0), (0, Cin_pad - Cin), (0, 0), (0, 0)))
    x2 = x_p.reshape(N, Cin_pad * H, W)

    # width-interp matrix, transposed and zero-padded to Wp columns
    Btp = jnp.pad(jnp.transpose(B).astype(jnp.float32), ((0, 0), (0, Wp - Wo)))

    ups = pl.pallas_call(
        _upsample_kernel,
        out_shape=jax.ShapeDtypeStruct((N, Cin_pad, Ho, Wp), INTER_DTYPE),
        grid=(N,),
        in_specs=[
            pl.BlockSpec((1, Cin_pad * H, W), lambda n: (n, 0, 0)),
            pl.BlockSpec((W, Wp), lambda n: (0, 0)),
            pl.BlockSpec((Ho, H), lambda n: (0, 0)),
        ],
        out_specs=pl.BlockSpec((1, Cin_pad, Ho, Wp), lambda n: (n, 0, 0, 0)),
        compiler_params=pltpu.CompilerParams(dimension_semantics=("parallel",)),
    )(x2, Btp, A.astype(jnp.float32))

    # free row-major reshape to the lane-dense flat conv layout
    u = ups.reshape(N, Cin_pad, P)

    pidx = jnp.arange(P, dtype=jnp.int32)
    row_idx = (pidx // Wp).reshape(1, P)
    col_idx = (pidx % Wp).reshape(1, P)

    out = pl.pallas_call(
        functools.partial(_double_conv_kernel, Ho=Ho, Wo=Wo, Wp=Wp),
        out_shape=jax.ShapeDtypeStruct((N, Cout_pad, P), jnp.float32),
        grid=(N,),
        in_specs=[
            pl.BlockSpec((1, Cin_pad, P), lambda n: (n, 0, 0)),
            pl.BlockSpec((1, P), lambda n: (0, 0)),
            pl.BlockSpec((1, P), lambda n: (0, 0)),
            pl.BlockSpec((Cmid_pad, 9 * Cin_pad), lambda n: (0, 0)),
            pl.BlockSpec((Cmid_pad, 1), lambda n: (0, 0)),
            pl.BlockSpec((Cout_pad, 9 * Cmid_pad), lambda n: (0, 0)),
            pl.BlockSpec((Cout_pad, 1), lambda n: (0, 0)),
        ],
        out_specs=pl.BlockSpec((1, Cout_pad, P), lambda n: (n, 0, 0)),
        compiler_params=pltpu.CompilerParams(
            dimension_semantics=("parallel",),
            vmem_limit_bytes=48 * 1024 * 1024),
    )(u, row_idx, col_idx, w1p, b1p, w2p, b2p)

    # drop channel / width padding (free reshape + cheap slice in the wrapper)
    out = out.reshape(N, Cout_pad, Ho, Wp)[:, :cout, :, :Wo]
    return out


# ---------------------------------------------------------------------------
# Host-side parameter preparation:
#   fold inference BN into the conv weights and pack them tap-major with the
#   channel dims padded to multiples of 8 (tile-aligned tap blocks).
# ---------------------------------------------------------------------------
def fold_conv_bn_packed(w_oihw, conv_bias, gamma, beta, mean, var,
                        ci_pad, co_pad, eps=1e-5):
    w = np.asarray(w_oihw, np.float32)
    cb = np.asarray(conv_bias, np.float32)
    g = np.asarray(gamma, np.float32)
    be = np.asarray(beta, np.float32)
    mu = np.asarray(mean, np.float32)
    v = np.asarray(var, np.float32)

    scale = g / np.sqrt(v + eps)                              # (Co,)
    wf = w * scale[:, None, None, None]                       # (Co, Ci, 3, 3)
    bias = be + (cb - mu) * scale                             # (Co,)

    Co, Ci = w.shape[0], w.shape[1]
    wt = np.transpose(wf, (2, 3, 0, 1)).reshape(9, Co, Ci)    # (t, Co, Ci), t = ky*3+kx
    wk = np.zeros((co_pad, 9 * ci_pad), np.float32)
    for t in range(9):
        wk[:Co, t * ci_pad:t * ci_pad + Ci] = wt[t]
    bk = np.zeros((co_pad, 1), np.float32)
    bk[:Co, 0] = bias
    return jnp.asarray(wk, INTER_DTYPE), jnp.asarray(bk, jnp.float32)


# ---------------------------------------------------------------------------
# Pure-JAX f32 reference (independent of the folding / padding / tap layout)
# ---------------------------------------------------------------------------
def up_reference(x_nchw, A, B,
                 w1_oihw, cb1, g1, be1, mu1, v1,
                 w2_oihw, cb2, g2, be2, mu2, v2, eps=1e-5):
    hp = jax.lax.Precision.HIGHEST
    y = jnp.einsum('oh,pw,nchw->ncop', A, B, x_nchw.astype(jnp.float32),
                   precision=hp)

    def block(z, w, cb, g, be, mu, v):
        z = jax.lax.conv_general_dilated(
            z, w, (1, 1), 'SAME',
            dimension_numbers=('NCHW', 'OIHW', 'NCHW'), precision=hp)
        z = z + cb.reshape(1, -1, 1, 1)
        z = (z - mu.reshape(1, -1, 1, 1)) * (g.reshape(1, -1, 1, 1)
             / jnp.sqrt(v.reshape(1, -1, 1, 1) + eps)) + be.reshape(1, -1, 1, 1)
        return jnp.maximum(z, 0.0)

    y = block(y, w1_oihw, cb1, g1, be1, mu1, v1)
    y = block(y, w2_oihw, cb2, g2, be2, mu2, v2)
    return y


if __name__ == "__main__":
    # Up(in_channels=4, out_channels=8, bilinear=True)  => mid_channels = 2
    N, Cin, H, W = 2, 4, 16, 16
    Cout = 8
    Cmid = Cin // 2
    Ho, Wo = 2 * H, 2 * W

    key = jax.random.PRNGKey(0)
    ks = jax.random.split(key, 13)
    x = jax.random.normal(ks[0], (N, Cin, H, W), jnp.float32)

    # Conv / BN params (PyTorch OIHW conv weights).
    w1_oihw = 0.1 * jax.random.normal(ks[1], (Cmid, Cin, 3, 3), jnp.float32)
    cb1 = 0.1 * jax.random.normal(ks[2], (Cmid,), jnp.float32)
    g1 = 1.0 + 0.1 * jax.random.normal(ks[3], (Cmid,), jnp.float32)
    be1 = 0.1 * jax.random.normal(ks[4], (Cmid,), jnp.float32)
    mu1 = 0.1 * jax.random.normal(ks[5], (Cmid,), jnp.float32)
    v1 = jax.random.uniform(ks[6], (Cmid,), jnp.float32, 0.5, 1.5)

    w2_oihw = 0.1 * jax.random.normal(ks[7], (Cout, Cmid, 3, 3), jnp.float32)
    cb2 = 0.1 * jax.random.normal(ks[8], (Cout,), jnp.float32)
    g2 = 1.0 + 0.1 * jax.random.normal(ks[9], (Cout,), jnp.float32)
    be2 = 0.1 * jax.random.normal(ks[10], (Cout,), jnp.float32)
    mu2 = 0.1 * jax.random.normal(ks[11], (Cout,), jnp.float32)
    v2 = jax.random.uniform(ks[12], (Cout,), jnp.float32, 0.5, 1.5)

    # Separable interpolation matrices (align_corners=True, x2).
    A = jnp.asarray(_bilinear_matrix(H, Ho))   # (Ho, H)
    B = jnp.asarray(_bilinear_matrix(W, Wo))   # (Wo, W)

    # Fold BN scale into conv weights; packed tap-major with padded channels.
    Cin_pad = _round_up(Cin, 8)
    Cmid_pad = _round_up(Cmid, 8)
    Cout_pad = _round_up(Cout, 8)
    w1p, b1p = fold_conv_bn_packed(w1_oihw, cb1, g1, be1, mu1, v1, Cin_pad, Cmid_pad)
    w2p, b2p = fold_conv_bn_packed(w2_oihw, cb2, g2, be2, mu2, v2, Cmid_pad, Cout_pad)

    out = up_forward(x, A, B, w1p, b1p, w2p, b2p, cout=Cout)
    out = jax.block_until_ready(out)

    ref = jax.block_until_ready(
        up_reference(x, A, B,
                     w1_oihw, cb1, g1, be1, mu1, v1,
                     w2_oihw, cb2, g2, be2, mu2, v2))
    assert out.shape == (N, Cout, Ho, Wo), out.shape
    # Tolerance accounts for the bf16 intermediate + bf16 MXU operands
    # (review items 1/5); observed error is typically ~1e-3 vs the f32 reference.
    if not np.allclose(np.asarray(out), np.asarray(ref), rtol=5e-2, atol=5e-2):
        raise AssertionError("Pallas kernel does not match reference")

    print("KERNEL_OK")
</pallas_src>

<mosaic_0001>
module attributes {stable_mosaic.version = 11 : i64} {
  func.func @_upsample_kernel(%arg0: i32, %arg1: memref<1x128x16xf32, #tpu.memory_space<vmem>>, %arg2: memref<16x128xf32, #tpu.memory_space<vmem>>, %arg3: memref<32x16xf32, #tpu.memory_space<vmem>>, %arg4: memref<1x8x32x128xbf16, #tpu.memory_space<vmem>>) attributes {dimension_semantics = [#tpu.dimension_semantics<parallel>], iteration_bounds = array<i64: 2>, scalar_prefetch = 0 : i64, scratch_operands = 0 : i64, tpu.core_type = #tpu.core_type<tc>, window_params = [{transform_indices = @transform_0, window_bounds = array<i64: 1, 128, 16>}, {pipeline_mode = #tpu.pipeline_mode<synchronous>, transform_indices = @transform_1, window_bounds = array<i64: 16, 128>}, {pipeline_mode = #tpu.pipeline_mode<synchronous>, transform_indices = @transform_2, window_bounds = array<i64: 32, 16>}, {transform_indices = @transform_3, window_bounds = array<i64: 1, 8, 32, 128>}]} {
    %c0 = arith.constant 0 : index
    %c0_0 = arith.constant 0 : index
    %c0_1 = arith.constant 0 : index
    %0 = vector.load %arg1[%c0, %c0_0, %c0_1] : memref<1x128x16xf32, #tpu.memory_space<vmem>>, vector<1x128x16xf32>
    %1 = vector.shape_cast %0 : vector<1x128x16xf32> to vector<128x16xf32>
    %c0_2 = arith.constant 0 : index
    %c0_3 = arith.constant 0 : index
    %2 = vector.load %arg2[%c0_2, %c0_3] : memref<16x128xf32, #tpu.memory_space<vmem>>, vector<16x128xf32>
    %cst = arith.constant dense<0.000000e+00> : vector<128x128xf32>
    %3 = tpu.matmul %1, %2, %cst {dimension_numbers = #tpu.dot_dimension_numbers<[1], [0], [0], [1], [0, 0, 1, 1], [], []>} : vector<128x16xf32>, vector<16x128xf32>, vector<128x128xf32> -> vector<128x128xf32>
    %4 = vector.shape_cast %3 : vector<128x128xf32> to vector<8x16x128xf32>
    %c0_4 = arith.constant 0 : index
    %c0_5 = arith.constant 0 : index
    %5 = vector.load %arg3[%c0_4, %c0_5] : memref<32x16xf32, #tpu.memory_space<vmem>>, vector<32x16xf32>
    %6 = vector.shape_cast %5 : vector<32x16xf32> to vector<1x32x16xf32>
    %7 = vector.broadcast %6 : vector<1x32x16xf32> to vector<8x32x16xf32>
    %cst_6 = arith.constant dense<0.000000e+00> : vector<8x32x128xf32>
    %8 = tpu.matmul %7, %4, %cst_6 {dimension_numbers = #tpu.dot_dimension_numbers<[2], [1], [1], [2], [0, 0, 0, 1, 1, 2], [0], [0]>} : vector<8x32x16xf32>, vector<8x16x128xf32>, vector<8x32x128xf32> -> vector<8x32x128xf32>
    %9 = arith.truncf %8 : vector<8x32x128xf32> to vector<8x32x128xbf16>
    %c0_7 = arith.constant 0 : index
    %c0_8 = arith.constant 0 : index
    %c0_9 = arith.constant 0 : index
    %c0_10 = arith.constant 0 : index
    %10 = vector.load %arg4[%c0_7, %c0_8, %c0_9, %c0_10] : memref<1x8x32x128xbf16, #tpu.memory_space<vmem>>, vector<1x8x32x128xbf16>
    %11 = vector.shape_cast %10 : vector<1x8x32x128xbf16> to vector<8x32x128xbf16>
    %12 = vector.shape_cast %9 : vector<8x32x128xbf16> to vector<1x8x32x128xbf16>
    tpu.vector_store %arg4[%c0_7, %c0_8, %c0_9, %c0_10], %12 {strides = array<i32>} : memref<1x8x32x128xbf16, #tpu.memory_space<vmem>>, vector<1x8x32x128xbf16>,
    return
  }
  func.func @transform_0(%arg0: i32) -> (i32, i32, i32) {
    %c0_i32 = arith.constant 0 : i32
    %c0_i32_0 = arith.constant 0 : i32
    %c0_i32_1 = arith.constant 0 : i32
    return %arg0, %c0_i32, %c0_i32_0 : i32, i32, i32
  }
  func.func @transform_1(%arg0: i32) -> (i32, i32) {
    %c0_i32 = arith.constant 0 : i32
    %c0_i32_0 = arith.constant 0 : i32
    %c0_i32_1 = arith.constant 0 : i32
    return %c0_i32, %c0_i32_0 : i32, i32
  }
  func.func @transform_2(%arg0: i32) -> (i32, i32) {
    %c0_i32 = arith.constant 0 : i32
    %c0_i32_0 = arith.constant 0 : i32
    %c0_i32_1 = arith.constant 0 : i32
    return %c0_i32, %c0_i32_0 : i32, i32
  }
  func.func @transform_3(%arg0: i32) -> (i32, i32, i32, i32) {
    %c0_i32 = arith.constant 0 : i32
    %c0_i32_0 = arith.constant 0 : i32
    %c0_i32_1 = arith.constant 0 : i32
    %c0_i32_2 = arith.constant 0 : i32
    return %arg0, %c0_i32, %c0_i32_0, %c0_i32_1 : i32, i32, i32, i32
  }
}

module attributes {stable_mosaic.version = 11 : i64} {
  func.func @_double_conv_kernel(%arg0: i32, %arg1: memref<1x8x4096xbf16, #tpu.memory_space<vmem>>, %arg2: memref<1x4096xi32, #tpu.memory_space<vmem>>, %arg3: memref<1x4096xi32, #tpu.memory_space<vmem>>, %arg4: memref<8x72xbf16, #tpu.memory_space<vmem>>, %arg5: memref<8x1xf32, #tpu.memory_space<vmem>>, %arg6: memref<8x72xbf16, #tpu.memory_space<vmem>>, %arg7: memref<8x1xf32, #tpu.memory_space<vmem>>, %arg8: memref<1x8x4096xf32, #tpu.memory_space<vmem>>) attributes {dimension_semantics = [#tpu.dimension_semantics<parallel>], iteration_bounds = array<i64: 2>, scalar_prefetch = 0 : i64, scratch_operands = 0 : i64, tpu.core_type = #tpu.core_type<tc>, window_params = [{transform_indices = @transform_0, window_bounds = array<i64: 1, 8, 4096>}, {pipeline_mode = #tpu.pipeline_mode<synchronous>, transform_indices = @transform_1, window_bounds = array<i64: 1, 4096>}, {pipeline_mode = #tpu.pipeline_mode<synchronous>, transform_indices = @transform_2, window_bounds = array<i64: 1, 4096>}, {pipeline_mode = #tpu.pipeline_mode<synchronous>, transform_indices = @transform_3, window_bounds = array<i64: 8, 72>}, {pipeline_mode = #tpu.pipeline_mode<synchronous>, transform_indices = @transform_4, window_bounds = array<i64: 8, 1>}, {pipeline_mode = #tpu.pipeline_mode<synchronous>, transform_indices = @transform_5, window_bounds = array<i64: 8, 72>}, {pipeline_mode = #tpu.pipeline_mode<synchronous>, transform_indices = @transform_6, window_bounds = array<i64: 8, 1>}, {transform_indices = @transform_7, window_bounds = array<i64: 1, 8, 4096>}]} {
    %c0 = arith.constant 0 : index
    %c0_0 = arith.constant 0 : index
    %0 = vector.load %arg2[%c0, %c0_0] : memref<1x4096xi32, #tpu.memory_space<vmem>>, vector<1x4096xi32>
    %c0_1 = arith.constant 0 : index
    %c0_2 = arith.constant 0 : index
    %1 = vector.load %arg3[%c0_1, %c0_2] : memref<1x4096xi32, #tpu.memory_space<vmem>>, vector<1x4096xi32>
    %c1_i32 = arith.constant 1 : i32
    %2 = vector.broadcast %c1_i32 : i32 to vector<1x4096xi32>
    %3 = arith.cmpi sge, %0, %2 : vector<1x4096xi32>
    %c30_i32 = arith.constant 30 : i32
    %4 = vector.broadcast %c30_i32 : i32 to vector<1x4096xi32>
    %5 = arith.cmpi sle, %0, %4 : vector<1x4096xi32>
    %c1_i32_3 = arith.constant 1 : i32
    %6 = vector.broadcast %c1_i32_3 : i32 to vector<1x4096xi32>
    %7 = arith.cmpi sge, %1, %6 : vector<1x4096xi32>
    %c30_i32_4 = arith.constant 30 : i32
    %8 = vector.broadcast %c30_i32_4 : i32 to vector<1x4096xi32>
    %9 = arith.cmpi sle, %1, %8 : vector<1x4096xi32>
    %c0_5 = arith.constant 0 : index
    %c0_6 = arith.constant 0 : index
    %c0_7 = arith.constant 0 : index
    %10 = vector.load %arg1[%c0_5, %c0_6, %c0_7] : memref<1x8x4096xbf16, #tpu.memory_space<vmem>>, vector<1x8x4096xbf16>
    %11 = vector.shape_cast %10 : vector<1x8x4096xbf16> to vector<8x4096xbf16>
    %12 = arith.extf %11 : vector<8x4096xbf16> to vector<8x4096xf32>
    %c129_i32 = arith.constant 129 : i32
    %13 = tpu.dynamic_rotate %12 by %c129_i32 dim 1 : vector<8x4096xf32>, i32 -> vector<8x4096xf32>
    %14 = arith.andi %3, %7 : vector<1x4096xi1>
    %cst = arith.constant 0.000000e+00 : f32
    %15 = vector.shape_cast %14 : vector<1x4096xi1> to vector<1x4096xi1>
    %16 = vector.broadcast %15 : vector<1x4096xi1> to vector<8x4096xi1>
    %17 = vector.broadcast %cst : f32 to vector<8x4096xf32>
    %18 = arith.select %16, %13, %17 : vector<8x4096xi1>, vector<8x4096xf32>
    %c128_i32 = arith.constant 128 : i32
    %19 = tpu.dynamic_rotate %12 by %c128_i32 dim 1 : vector<8x4096xf32>, i32 -> vector<8x4096xf32>
    %cst_8 = arith.constant 0.000000e+00 : f32
    %20 = vector.shape_cast %3 : vector<1x4096xi1> to vector<1x4096xi1>
    %21 = vector.broadcast %20 : vector<1x4096xi1> to vector<8x4096xi1>
    %22 = vector.broadcast %cst_8 : f32 to vector<8x4096xf32>
    %23 = arith.select %21, %19, %22 : vector<8x4096xi1>, vector<8x4096xf32>
    %c127_i32 = arith.constant 127 : i32
    %24 = tpu.dynamic_rotate %12 by %c127_i32 dim 1 : vector<8x4096xf32>, i32 -> vector<8x4096xf32>
    %25 = arith.andi %3, %9 : vector<1x4096xi1>
    %cst_9 = arith.constant 0.000000e+00 : f32
    %26 = vector.shape_cast %25 : vector<1x4096xi1> to vector<1x4096xi1>
    %27 = vector.broadcast %26 : vector<1x4096xi1> to vector<8x4096xi1>
    %28 = vector.broadcast %cst_9 : f32 to vector<8x4096xf32>
    %29 = arith.select %27, %24, %28 : vector<8x4096xi1>, vector<8x4096xf32>
    %c1_i32_10 = arith.constant 1 : i32
    %30 = tpu.dynamic_rotate %12 by %c1_i32_10 dim 1 : vector<8x4096xf32>, i32 -> vector<8x4096xf32>
    %cst_11 = arith.constant 0.000000e+00 : f32
    %31 = vector.shape_cast %7 : vector<1x4096xi1> to vector<1x4096xi1>
    %32 = vector.broadcast %31 : vector<1x4096xi1> to vector<8x4096xi1>
    %33 = vector.broadcast %cst_11 : f32 to vector<8x4096xf32>
    %34 = arith.select %32, %30, %33 : vector<8x4096xi1>, vector<8x4096xf32>
    %c4095_i32 = arith.constant 4095 : i32
    %35 = tpu.dynamic_rotate %12 by %c4095_i32 dim 1 : vector<8x4096xf32>, i32 -> vector<8x4096xf32>
    %cst_12 = arith.constant 0.000000e+00 : f32
    %36 = vector.shape_cast %9 : vector<1x4096xi1> to vector<1x4096xi1>
    %37 = vector.broadcast %36 : vector<1x4096xi1> to vector<8x4096xi1>
    %38 = vector.broadcast %cst_12 : f32 to vector<8x4096xf32>
    %39 = arith.select %37, %35, %38 : vector<8x4096xi1>, vector<8x4096xf32>
    %c3969_i32 = arith.constant 3969 : i32
    %40 = tpu.dynamic_rotate %12 by %c3969_i32 dim 1 : vector<8x4096xf32>, i32 -> vector<8x4096xf32>
    %41 = arith.andi %5, %7 : vector<1x4096xi1>
    %cst_13 = arith.constant 0.000000e+00 : f32
    %42 = vector.shape_cast %41 : vector<1x4096xi1> to vector<1x4096xi1>
    %43 = vector.broadcast %42 : vector<1x4096xi1> to vector<8x4096xi1>
    %44 = vector.broadcast %cst_13 : f32 to vector<8x4096xf32>
    %45 = arith.select %43, %40, %44 : vector<8x4096xi1>, vector<8x4096xf32>
    %c3968_i32 = arith.constant 3968 : i32
    %46 = tpu.dynamic_rotate %12 by %c3968_i32 dim 1 : vector<8x4096xf32>, i32 -> vector<8x4096xf32>
    %cst_14 = arith.constant 0.000000e+00 : f32
    %47 = vector.shape_cast %5 : vector<1x4096xi1> to vector<1x4096xi1>
    %48 = vector.broadcast %47 : vector<1x4096xi1> to vector<8x4096xi1>
    %49 = vector.broadcast %cst_14 : f32 to vector<8x4096xf32>
    %50 = arith.select %48, %46, %49 : vector<8x4096xi1>, vector<8x4096xf32>
    %c3967_i32 = arith.constant 3967 : i32
    %51 = tpu.dynamic_rotate %12 by %c3967_i32 dim 1 : vector<8x4096xf32>, i32 -> vector<8x4096xf32>
    %52 = arith.andi %5, %9 : vector<1x4096xi1>
    %cst_15 = arith.constant 0.000000e+00 : f32
    %53 = vector.shape_cast %52 : vector<1x4096xi1> to vector<1x4096xi1>
    %54 = vector.broadcast %53 : vector<1x4096xi1> to vector<8x4096xi1>
    %55 = vector.broadcast %cst_15 : f32 to vector<8x4096xf32>
    %56 = arith.select %54, %51, %55 : vector<8x4096xi1>, vector<8x4096xf32>
    %57 = tpu.concatenate %18, %23, %29, %34, %12, %39, %45, %50, %56 in 0 : vector<8x4096xf32>, vector<8x4096xf32>, vector<8x4096xf32>, vector<8x4096xf32>, vector<8x4096xf32>, vector<8x4096xf32>, vector<8x4096xf32>, vector<8x4096xf32>, vector<8x4096xf32> -> vector<72x4096xf32>
    %58 = arith.truncf %57 : vector<72x4096xf32> to vector<72x4096xbf16>
    %c0_16 = arith.constant 0 : index
    %c0_17 = arith.constant 0 : index
    %59 = vector.load %arg4[%c0_16, %c0_17] : memref<8x72xbf16, #tpu.memory_space<vmem>>, vector<8x72xbf16>
    %cst_18 = arith.constant dense<0.000000e+00> : vector<8x4096xf32>
    %60 = tpu.matmul %59, %58, %cst_18 {dimension_numbers = #tpu.dot_dimension_numbers<[1], [0], [0], [1], [0, 0, 1, 1], [], []>} : vector<8x72xbf16>, vector<72x4096xbf16>, vector<8x4096xf32> -> vector<8x4096xf32>
    %c0_19 = arith.constant 0 : index
    %c0_20 = arith.constant 0 : index
    %61 = vector.load %arg5[%c0_19, %c0_20] : memref<8x1xf32, #tpu.memory_space<vmem>>, vector<8x1xf32>
    %62 = vector.broadcast %61 : vector<8x1xf32> to vector<8x4096xf32>
    %63 = arith.addf %60, %62 : vector<8x4096xf32>
    %cst_21 = arith.constant 0.000000e+00 : f32
    %64 = vector.broadcast %cst_21 : f32 to vector<8x4096xf32>
    %65 = arith.maximumf %63, %64 : vector<8x4096xf32>
    %c129_i32_22 = arith.constant 129 : i32
    %66 = tpu.dynamic_rotate %65 by %c129_i32_22 dim 1 : vector<8x4096xf32>, i32 -> vector<8x4096xf32>
    %67 = arith.andi %3, %7 : vector<1x4096xi1>
    %cst_23 = arith.constant 0.000000e+00 : f32
    %68 = vector.shape_cast %67 : vector<1x4096xi1> to vector<1x4096xi1>
    %69 = vector.broadcast %68 : vector<1x4096xi1> to vector<8x4096xi1>
    %70 = vector.broadcast %cst_23 : f32 to vector<8x4096xf32>
    %71 = arith.select %69, %66, %70 : vector<8x4096xi1>, vector<8x4096xf32>
    %c128_i32_24 = arith.constant 128 : i32
    %72 = tpu.dynamic_rotate %65 by %c128_i32_24 dim 1 : vector<8x4096xf32>, i32 -> vector<8x4096xf32>
    %cst_25 = arith.constant 0.000000e+00 : f32
    %73 = vector.shape_cast %3 : vector<1x4096xi1> to vector<1x4096xi1>
    %74 = vector.broadcast %73 : vector<1x4096xi1> to vector<8x4096xi1>
    %75 = vector.broadcast %cst_25 : f32 to vector<8x4096xf32>
    %76 = arith.select %74, %72, %75 : vector<8x4096xi1>, vector<8x4096xf32>
    %c127_i32_26 = arith.constant 127 : i32
    %77 = tpu.dynamic_rotate %65 by %c127_i32_26 dim 1 : vector<8x4096xf32>, i32 -> vector<8x4096xf32>
    %78 = arith.andi %3, %9 : vector<1x4096xi1>
    %cst_27 = arith.constant 0.000000e+00 : f32
    %79 = vector.shape_cast %78 : vector<1x4096xi1> to vector<1x4096xi1>
    %80 = vector.broadcast %79 : vector<1x4096xi1> to vector<8x4096xi1>
    %81 = vector.broadcast %cst_27 : f32 to vector<8x4096xf32>
    %82 = arith.select %80, %77, %81 : vector<8x4096xi1>, vector<8x4096xf32>
    %c1_i32_28 = arith.constant 1 : i32
    %83 = tpu.dynamic_rotate %65 by %c1_i32_28 dim 1 : vector<8x4096xf32>, i32 -> vector<8x4096xf32>
    %cst_29 = arith.constant 0.000000e+00 : f32
    %84 = vector.shape_cast %7 : vector<1x4096xi1> to vector<1x4096xi1>
    %85 = vector.broadcast %84 : vector<1x4096xi1> to vector<8x4096xi1>
    %86 = vector.broadcast %cst_29 : f32 to vector<8x4096xf32>
    %87 = arith.select %85, %83, %86 : vector<8x4096xi1>, vector<8x4096xf32>
    %c4095_i32_30 = arith.constant 4095 : i32
    %88 = tpu.dynamic_rotate %65 by %c4095_i32_30 dim 1 : vector<8x4096xf32>, i32 -> vector<8x4096xf32>
    %cst_31 = arith.constant 0.000000e+00 : f32
    %89 = vector.shape_cast %9 : vector<1x4096xi1> to vector<1x4096xi1>
    %90 = vector.broadcast %89 : vector<1x4096xi1> to vector<8x4096xi1>
    %91 = vector.broadcast %cst_31 : f32 to vector<8x4096xf32>
    %92 = arith.select %90, %88, %91 : vector<8x4096xi1>, vector<8x4096xf32>
    %c3969_i32_32 = arith.constant 3969 : i32
    %93 = tpu.dynamic_rotate %65 by %c3969_i32_32 dim 1 : vector<8x4096xf32>, i32 -> vector<8x4096xf32>
    %94 = arith.andi %5, %7 : vector<1x4096xi1>
    %cst_33 = arith.constant 0.000000e+00 : f32
    %95 = vector.shape_cast %94 : vector<1x4096xi1> to vector<1x4096xi1>
    %96 = vector.broadcast %95 : vector<1x4096xi1> to vector<8x4096xi1>
    %97 = vector.broadcast %cst_33 : f32 to vector<8x4096xf32>
    %98 = arith.select %96, %93, %97 : vector<8x4096xi1>, vector<8x4096xf32>
    %c3968_i32_34 = arith.constant 3968 : i32
    %99 = tpu.dynamic_rotate %65 by %c3968_i32_34 dim 1 : vector<8x4096xf32>, i32 -> vector<8x4096xf32>
    %cst_35 = arith.constant 0.000000e+00 : f32
    %100 = vector.shape_cast %5 : vector<1x4096xi1> to vector<1x4096xi1>
    %101 = vector.broadcast %100 : vector<1x4096xi1> to vector<8x4096xi1>
    %102 = vector.broadcast %cst_35 : f32 to vector<8x4096xf32>
    %103 = arith.select %101, %99, %102 : vector<8x4096xi1>, vector<8x4096xf32>
    %c3967_i32_36 = arith.constant 3967 : i32
    %104 = tpu.dynamic_rotate %65 by %c3967_i32_36 dim 1 : vector<8x4096xf32>, i32 -> vector<8x4096xf32>
    %105 = arith.andi %5, %9 : vector<1x4096xi1>
    %cst_37 = arith.constant 0.000000e+00 : f32
    %106 = vector.shape_cast %105 : vector<1x4096xi1> to vector<1x4096xi1>
    %107 = vector.broadcast %106 : vector<1x4096xi1> to vector<8x4096xi1>
    %108 = vector.broadcast %cst_37 : f32 to vector<8x4096xf32>
    %109 = arith.select %107, %104, %108 : vector<8x4096xi1>, vector<8x4096xf32>
    %110 = tpu.concatenate %71, %76, %82, %87, %65, %92, %98, %103, %109 in 0 : vector<8x4096xf32>, vector<8x4096xf32>, vector<8x4096xf32>, vector<8x4096xf32>, vector<8x4096xf32>, vector<8x4096xf32>, vector<8x4096xf32>, vector<8x4096xf32>, vector<8x4096xf32> -> vector<72x4096xf32>
    %111 = arith.truncf %110 : vector<72x4096xf32> to vector<72x4096xbf16>
    %c0_38 = arith.constant 0 : index
    %c0_39 = arith.constant 0 : index
    %112 = vector.load %arg6[%c0_38, %c0_39] : memref<8x72xbf16, #tpu.memory_space<vmem>>, vector<8x72xbf16>
    %cst_40 = arith.constant dense<0.000000e+00> : vector<8x4096xf32>
    %113 = tpu.matmul %112, %111, %cst_40 {dimension_numbers = #tpu.dot_dimension_numbers<[1], [0], [0], [1], [0, 0, 1, 1], [], []>} : vector<8x72xbf16>, vector<72x4096xbf16>, vector<8x4096xf32> -> vector<8x4096xf32>
    %c0_41 = arith.constant 0 : index
    %c0_42 = arith.constant 0 : index
    %114 = vector.load %arg7[%c0_41, %c0_42] : memref<8x1xf32, #tpu.memory_space<vmem>>, vector<8x1xf32>
    %115 = vector.broadcast %114 : vector<8x1xf32> to vector<8x4096xf32>
    %116 = arith.addf %113, %115 : vector<8x4096xf32>
    %cst_43 = arith.constant 0.000000e+00 : f32
    %117 = vector.broadcast %cst_43 : f32 to vector<8x4096xf32>
    %118 = arith.maximumf %116, %117 : vector<8x4096xf32>
    %c0_44 = arith.constant 0 : index
    %c0_45 = arith.constant 0 : index
    %c0_46 = arith.constant 0 : index
    %119 = vector.load %arg8[%c0_44, %c0_45, %c0_46] : memref<1x8x4096xf32, #tpu.memory_space<vmem>>, vector<1x8x4096xf32>
    %120 = vector.shape_cast %119 : vector<1x8x4096xf32> to vector<8x4096xf32>
    %121 = vector.shape_cast %118 : vector<8x4096xf32> to vector<1x8x4096xf32>
    tpu.vector_store %arg8[%c0_44, %c0_45, %c0_46], %121 {strides = array<i32>} : memref<1x8x4096xf32, #tpu.memory_space<vmem>>, vector<1x8x4096xf32>,
    return
  }
  func.func @transform_0(%arg0: i32) -> (i32, i32, i32) {
    %c0_i32 = arith.constant 0 : i32
    %c0_i32_0 = arith.constant 0 : i32
    %c0_i32_1 = arith.constant 0 : i32
    return %arg0, %c0_i32, %c0_i32_0 : i32, i32, i32
  }
  func.func @transform_1(%arg0: i32) -> (i32, i32) {
    %c0_i32 = arith.constant 0 : i32
    %c0_i32_0 = arith.constant 0 : i32
    %c0_i32_1 = arith.constant 0 : i32
    return %c0_i32, %c0_i32_0 : i32, i32
  }
  func.func @transform_2(%arg0: i32) -> (i32, i32) {
    %c0_i32 = arith.constant 0 : i32
    %c0_i32_0 = arith.constant 0 : i32
    %c0_i32_1 = arith.constant 0 : i32
    return %c0_i32, %c0_i32_0 : i32, i32
  }
  func.func @transform_3(%arg0: i32) -> (i32, i32) {
    %c0_i32 = arith.constant 0 : i32
    %c0_i32_0 = arith.constant 0 : i32
    %c0_i32_1 = arith.constant 0 : i32
    return %c0_i32, %c0_i32_0 : i32, i32
  }
  func.func @transform_4(%arg0: i32) -> (i32, i32) {
    %c0_i32 = arith.constant 0 : i32
    %c0_i32_0 = arith.constant 0 : i32
    %c0_i32_1 = arith.constant 0 : i32
    return %c0_i32, %c0_i32_0 : i32, i32
  }
  func.func @transform_5(%arg0: i32) -> (i32, i32) {
    %c0_i32 = arith.constant 0 : i32
    %c0_i32_0 = arith.constant 0 : i32
    %c0_i32_1 = arith.constant 0 : i32
    return %c0_i32, %c0_i32_0 : i32, i32
  }
  func.func @transform_6(%arg0: i32) -> (i32, i32) {
    %c0_i32 = arith.constant 0 : i32
    %c0_i32_0 = arith.constant 0 : i32
    %c0_i32_1 = arith.constant 0 : i32
    return %c0_i32, %c0_i32_0 : i32, i32
  }
  func.func @transform_7(%arg0: i32) -> (i32, i32, i32) {
    %c0_i32 = arith.constant 0 : i32
    %c0_i32_0 = arith.constant 0 : i32
    %c0_i32_1 = arith.constant 0 : i32
    return %arg0, %c0_i32, %c0_i32_0 : i32, i32, i32
  }
}

</mosaic_0001>

<bundles_post_ra>
// kernel: up_forward.2
= control target key start
LH: loop header
LB: loop body
LE: loop exit
PB: predicated region body
PF: predicated region fallthrough
CT: control target
= control target key end

     0   :  { %s1724_s12 = smov 0   ;;  %s1890_s0 = inlined_call_operand.vmem [shape: f32[2,128,16], index: 0, kind: input, shape index: {}]   ;;  %s1891_s1 = inlined_call_operand.vmem [shape: f32[16,128], index: 1, kind: input, shape index: {}]   ;;  %s1892_s2 = inlined_call_operand.vmem [shape: f32[32,16], index: 2, kind: input, shape index: {}]   ;;  %s1893_s3 = inlined_call_operand.vmem [shape: bf16[2,8,32,128], index: 3, kind: output, shape index: {}]  }
   0x1 LB: > { %s1294_s13 = sadd.s32 4294967295, %s1702_s12   ;;  %p1298_p0 = scmp.ge.s32.totalorder %s1702_s12, 1  ;;  %s1702_s12 = sphi %s1724_s12, %s13_s12  }
   0x2   : > { %p137_p1 = scmp.lt.s32.totalorder %s1702_s12, 3 }
   0x4   : > { %p138_p2 = pnand %p1298_p0, %p137_p1 }
   0x5   : > { %p161_p3 = scmp.lt.s32.totalorder (!%p138_p2), %s1294_s13, 1 }
   0x6   : > { %141 = sbr.rel (%p138_p2) target bundleno = 455 (0x1c7), region = 32 }
   0xb   : > { %v188_v0 = vld [vmem:[%s1891_s1 + $0x8] sm:$0xff]  ;;  %v187_v1 = vld [vmem:[%s1891_s1] sm:$0xff]  ;;  %s1895_s13 = smov (!%p161_p3, %s1294_s13), 1  ;;  %vm189_vm0 = vcmask 130048   ;;  %v1797_v22 = vld [vmem:[%s1892_s2 + $0x10] sm:$0xff] }
   0xc   : > { %1580 = vmatprep.subr.mxu0 %v188_v0  ;;  %s1385_s18 = sshll.u32 %s1895_s13, 7  ;;  %v1783_v18 = vld [vmem:[%s1892_s2] sm:$0xff]  ;;  %v1792_v21 = vld [vmem:[%s1892_s2 + $0x8] sm:$0xff]  ;;  %v1806_v25 = vld [vmem:[%s1892_s2 + $0x18] sm:$0xff] }
   0xd   : > { %1581 = vmatpush3.msra.mxu0 %v188_v0  ;;  %s1746_s21 = scalar_lea.vmem %s1890_s0, %s1385_s18  ;;  %1612 = vmatprep.mubr.msk.f32.mxu1 %vm189_vm0, %v1783_v18  ;;  %s1869_s5 = scalar_lea.vmem %s1893_s3, %s1385_s18 }
   0xe   : > { %1582 = vmatprep.subr.mxu0 %v187_v1  ;;  %v171_v2 = vld [vmem:[%s1746_s21] sm:$0xff]  ;;  %v172_v3 = vld [vmem:[%s1746_s21 + $0x8] sm:$0xff]  ;;  %v173_v4 = vld [vmem:[%s1746_s21 + $0x10] sm:$0xff] }
   0xf   : > { %1583 = vmatpush3.msra.mxu0 %v187_v1  ;;  %1584 = vmatprep.mubr.msk.f32.mxu0 %vm189_vm0, %v171_v2  ;;  %v174_v5 = vld [vmem:[%s1746_s21 + $0x18] sm:$0xff]  ;;  %v175_v6 = vld [vmem:[%s1746_s21 + $0x20] sm:$0xff]  ;;  %v176_v7 = vld [vmem:[%s1746_s21 + $0x28] sm:$0xff] }
  0x10   : > { %1585 = vmatmul.mubr.msk.f32.vlgmr.msra.gmra.mxu0 %vm189_vm0, %v172_v3  ;;  %v177_v8 = vld [vmem:[%s1746_s21 + $0x30] sm:$0xff]  ;;  %v178_v9 = vld [vmem:[%s1746_s21 + $0x38] sm:$0xff]  ;;  %v179_v10 = vld [vmem:[%s1746_s21 + $0x40] sm:$0xff] }
  0x11   : > { %1587 = vmatprep.mubr.msk.f32.mxu0 %vm189_vm0, %v173_v4  ;;  %v180_v11 = vld [vmem:[%s1746_s21 + $0x48] sm:$0xff]  ;;  %v181_v12 = vld [vmem:[%s1746_s21 + $0x50] sm:$0xff]  ;;  %v182_v13 = vld [vmem:[%s1746_s21 + $0x58] sm:$0xff] }
  0x12   : > { %v183_v14 = vld [vmem:[%s1746_s21 + $0x60] sm:$0xff]  ;;  %v184_v15 = vld [vmem:[%s1746_s21 + $0x68] sm:$0xff]  ;;  %v185_v16 = vld [vmem:[%s1746_s21 + $0x70] sm:$0xff] }
  0x13   : > { %v186_v17 = vld [vmem:[%s1746_s21 + $0x78] sm:$0xff] }
  0x14   : > { %1588 = vmatmul.mubr.msk.f32.gmra.mxu0 %vm189_vm0, %v174_v5 }
  0x15   : > { %1590 = vmatprep.mubr.msk.f32.mxu0 %vm189_vm0, %v175_v6 }
  0x18   : > { %1591 = vmatmul.mubr.msk.f32.gmra.mxu0 %vm189_vm0, %v176_v7 }
  0x19   : > { %1593 = vmatprep.mubr.msk.f32.mxu0 %vm189_vm0, %v177_v8 }
  0x1c   : > { %1594 = vmatmul.mubr.msk.f32.gmra.mxu0 %vm189_vm0, %v178_v9 }
  0x1d   : > { %1596 = vmatprep.mubr.msk.f32.mxu0 %vm189_vm0, %v179_v10 }
  0x20   : > { %1597 = vmatmul.mubr.msk.f32.gmra.mxu0 %vm189_vm0, %v180_v11 }
  0x21   : > { %1599 = vmatprep.mubr.msk.f32.mxu0 %vm189_vm0, %v181_v12 }
  0x24   : > { %1600 = vmatmul.mubr.msk.f32.gmra.mxu0 %vm189_vm0, %v182_v13 }
  0x25   : > { %1602 = vmatprep.mubr.msk.f32.mxu0 %vm189_vm0, %v183_v14 }
  0x28   : > { %1603 = vmatmul.mubr.msk.f32.gmra.mxu0 %vm189_vm0, %v184_v15 }
  0x29   : > { %1605 = vmatprep.mubr.msk.f32.mxu0 %vm189_vm0, %v185_v16 }
  0x2c   : > { %1606 = vmatmul.mubr.msk.f32.gmra.mxu0 %vm189_vm0, %v186_v17 }
  0x2d   : > { %1652 = vmatprep.mubr.msk.f32.mxu0 %vm189_vm0, %v1783_v18 }
  0xd0   : > { %v1586_v19 = vpop.f32.mrf.mxu0 }
  0xd1   : > { %1608 = vmatprep.subr.mxu1 %v1586_v19 }
  0xd2   : > { %v304_v20 = vpop.f32.mrf.mxu0  ;;  %1609 = vmatpush3.msra.mxu1 %v1586_v19 }
  0xd3   : > { %1610 = vmatprep.subr.mxu1 %v304_v20 }
  0xd4   : > { %v1589_v23 = vpop.f32.mrf.mxu0  ;;  %1611 = vmatpush3.msra.mxu1 %v304_v20 }
  0xd5   : > { %1613 = vmatmul.mubr.msk.f32.vlgmr.msra.gmra.mxu1 %vm189_vm0, %v1792_v21  ;;  %1618 = vmatprep.subr.mxu1 %v1589_v23 }
  0xd6   : > { %v314_v24 = vpop.f32.mrf.mxu0  ;;  %1619 = vmatpush3.msra.mxu1 %v1589_v23  ;;  %1615 = vmatprep.mubr.msk.f32.mxu1 %vm189_vm0, %v1797_v22 }
  0xd7   : > { %1620 = vmatprep.subr.mxu1 %v314_v24 }
  0xd8   : > { %v1592_v26 = vpop.f32.mrf.mxu0  ;;  %1621 = vmatpush3.msra.mxu1 %v314_v24 }
  0xd9   : > { %1616 = vmatmul.mubr.msk.f32.gmra.mxu1 %vm189_vm0, %v1806_v25  ;;  %1628 = vmatprep.subr.mxu1 %v1592_v26 }
  0xda   : > { %v324_v27 = vpop.f32.mrf.mxu0  ;;  %1622 = vmatprep.mubr.msk.f32.mxu1 %vm189_vm0, %v1783_v18 }
  0xdc   : > { %v1595_v28 = vpop.f32.mrf.mxu0 }
  0xdd   : > { %1623 = vmatmul.mubr.msk.f32.vlgmr.msra.gmra.mxu1 %vm189_vm0, %v1792_v21 }
  0xde   : > { %1629 = vmatpush3.msra.mxu1 %v1592_v26  ;;  %v334_v29 = vpop.f32.mrf.mxu0  ;;  %1625 = vmatprep.mubr.msk.f32.mxu1 %vm189_vm0, %v1797_v22 }
  0xdf   : > { %1630 = vmatprep.subr.mxu1 %v324_v27 }
  0xe0   : > { %1631 = vmatpush3.msra.mxu1 %v324_v27  ;;  %v1598_v30 = vpop.f32.mrf.mxu0 }
  0xe1   : > { %1638 = vmatprep.subr.mxu1 %v1595_v28  ;;  %1626 = vmatmul.mubr.msk.f32.gmra.mxu1 %vm189_vm0, %v1806_v25 }
  0xe2   : > { %1648 = vmatprep.subr.mxu0 %v1598_v30  ;;  %v344_v31 = vpop.f32.mrf.mxu0  ;;  %1632 = vmatprep.mubr.msk.f32.mxu1 %vm189_vm0, %v1783_v18 }
  0xe3   : > { %1649 = vmatpush3.msra.mxu0 %v1598_v30 }
  0xe4   : > { %1650 = vmatprep.subr.mxu0 %v344_v31  ;;  %v1601_v32 = vpop.f32.mrf.mxu0 }
  0xe5   : > { %1651 = vmatpush3.msra.mxu0 %v344_v31  ;;  %1633 = vmatmul.mubr.msk.f32.vlgmr.msra.gmra.mxu1 %vm189_vm0, %v1792_v21 }
  0xe6   : > { %1639 = vmatpush3.msra.mxu1 %v1595_v28  ;;  %1635 = vmatprep.mubr.msk.f32.mxu1 %vm189_vm0, %v1797_v22  ;;  %v354_v33 = vpop.f32.mrf.mxu0 }
  0xe7   : > { %1640 = vmatprep.subr.mxu1 %v334_v29  ;;  %1653 = vmatmul.mubr.msk.f32.vlgmr.msra.gmra.mxu0 %vm189_vm0, %v1792_v21 }
  0xe8   : > { %1641 = vmatpush3.msra.mxu1 %v334_v29  ;;  %v1604_v34 = vpop.f32.mrf.mxu0  ;;  %1655 = vmatprep.mubr.msk.f32.mxu0 %vm189_vm0, %v1797_v22 }
  0xe9   : > { %1636 = vmatmul.mubr.msk.f32.gmra.mxu1 %vm189_vm0, %v1806_v25  ;;  %1658 = vmatprep.subr.mxu1 %v1601_v32 }
  0xea   : > { %1642 = vmatprep.mubr.msk.f32.mxu1 %vm189_vm0, %v1783_v18  ;;  %1668 = vmatprep.subr.mxu0 %v1604_v34  ;;  %v364_v35 = vpop.f32.mrf.mxu0 }
  0xeb   : > { %1669 = vmatpush3.msra.mxu0 %v1604_v34 }
  0xec   : > { %1670 = vmatprep.subr.mxu0 %v364_v35  ;;  %1656 = vmatmul.mubr.msk.f32.gmra.mxu0 %vm189_vm0, %v1806_v25  ;;  %v1607_v36 = vpop.f32.mrf.mxu0 }
  0xed   : > { %1643 = vmatmul.mubr.msk.f32.vlgmr.msra.gmra.mxu1 %vm189_vm0, %v1792_v21  ;;  %1671 = vmatpush3.msra.mxu0 %v364_v35 }
  0xee   : > { %1659 = vmatpush3.msra.mxu1 %v1601_v32  ;;  %1645 = vmatprep.mubr.msk.f32.mxu1 %vm189_vm0, %v1797_v22  ;;  %v374_v37 = vpop.f32.mrf.mxu0 }
  0xef   : > { %1660 = vmatprep.subr.mxu1 %v354_v33  ;;  %1672 = vmatprep.mubr.msk.f32.mxu0 %vm189_vm0, %v1783_v18 }
  0xf0   : > { %1661 = vmatpush3.msra.mxu1 %v354_v33  ;;  %1673 = vmatmul.mubr.msk.f32.vlgmr.msra.gmra.mxu0 %vm189_vm0, %v1792_v21 }
  0xf1   : > { %1646 = vmatmul.mubr.msk.f32.gmra.mxu1 %vm189_vm0, %v1806_v25  ;;  %1678 = vmatprep.subr.mxu1 %v1607_v36 }
  0xf2   : > { %1662 = vmatprep.mubr.msk.f32.mxu1 %vm189_vm0, %v1783_v18  ;;  %1675 = vmatprep.mubr.msk.f32.mxu0 %vm189_vm0, %v1797_v22 }
  0xf4   : > { %1676 = vmatmul.mubr.msk.f32.gmra.mxu0 %vm189_vm0, %v1806_v25 }
  0xf5   : > { %1663 = vmatmul.mubr.msk.f32.vlgmr.msra.gmra.mxu1 %vm189_vm0, %v1792_v21 }
  0xf6   : > { %1679 = vmatpush3.msra.mxu1 %v1607_v36  ;;  %1665 = vmatprep.mubr.msk.f32.mxu1 %vm189_vm0, %v1797_v22 }
  0xf7   : > { %1680 = vmatprep.subr.mxu1 %v374_v37 }
  0xf8   : > { %1681 = vmatpush3.msra.mxu1 %v374_v37 }
  0xf9   : > { %1666 = vmatmul.mubr.msk.f32.gmra.mxu1 %vm189_vm0, %v1806_v25 }
  0xfa   : > { %1682 = vmatprep.mubr.msk.f32.mxu1 %vm189_vm0, %v1783_v18 }
  0xfd   : > { %1683 = vmatmul.mubr.msk.f32.vlgmr.msra.gmra.mxu1 %vm189_vm0, %v1792_v21 }
  0xfe   : > { %1685 = vmatprep.mubr.msk.f32.mxu1 %vm189_vm0, %v1797_v22 }
 0x101   : > { %1686 = vmatmul.mubr.msk.f32.gmra.mxu1 %vm189_vm0, %v1806_v25 }
 0x195   : > { %v1614_v38 = vpop.f32.mrf.mxu1 }
 0x197   : > { %v465_v39 = vpop.f32.mrf.mxu1 }
 0x198   : > { %v1422_v40 = vpack.c.bf16 %v1614_v38, %v465_v39 }
 0x199   : > { %v1617_v41 = vpop.f32.mrf.mxu1 }
 0x19a   : > { %1423 = vst [vmem:[%s1869_s5] sm:$0xff] %v1422_v40  }
 0x19b   : > { %v475_v42 = vpop.f32.mrf.mxu1 }
 0x19c   : > { %v1427_v43 = vpack.c.bf16 %v1617_v41, %v475_v42 }
 0x19d   : > { %v1624_v44 = vpop.f32.mrf.mxu1 }
 0x19e   : > { %1499 = vst [vmem:[%s1869_s5 + $0x8] sm:$0xff] %v1427_v43  }
 0x19f   : > { %v550_v45 = vpop.f32.mrf.mxu1 }
 0x1a0   : > { %v1432_v46 = vpack.c.bf16 %v1624_v44, %v550_v45 }
 0x1a1   : > { %v1627_v47 = vpop.f32.mrf.mxu1 }
 0x1a2   : > { %1500 = vst [vmem:[%s1869_s5 + $0x10] sm:$0xff] %v1432_v46  }
 0x1a3   : > { %v560_v48 = vpop.f32.mrf.mxu1 }
 0x1a4   : > { %v1437_v49 = vpack.c.bf16 %v1627_v47, %v560_v48 }
 0x1a5   : > { %v1634_v50 = vpop.f32.mrf.mxu1 }
 0x1a6   : > { %1501 = vst [vmem:[%s1869_s5 + $0x18] sm:$0xff] %v1437_v49  }
 0x1a7   : > { %v635_v51 = vpop.f32.mrf.mxu1  ;;  %v1654_v52 = vpop.f32.mrf.mxu0 }
 0x1a8   : > { %v1442_v53 = vpack.c.bf16 %v1634_v50, %v635_v51 }
 0x1a9   : > { %v1637_v54 = vpop.f32.mrf.mxu1  ;;  %v805_v55 = vpop.f32.mrf.mxu0 }
 0x1aa   : > { %1502 = vst [vmem:[%s1869_s5 + $0x20] sm:$0xff] %v1442_v53   ;;  %v1462_v56 = vpack.c.bf16 %v1654_v52, %v805_v55 }
 0x1ab   : > { %v645_v57 = vpop.f32.mrf.mxu1 }
 0x1ac   : > { %v1447_v58 = vpack.c.bf16 %v1637_v54, %v645_v57  ;;  %1506 = vst [vmem:[%s1869_s5 + $0x40] sm:$0xff] %v1462_v56   ;;  %v1657_v59 = vpop.f32.mrf.mxu0 }
 0x1ad   : > { %v1644_v60 = vpop.f32.mrf.mxu1 }
 0x1ae   : > { %1503 = vst [vmem:[%s1869_s5 + $0x28] sm:$0xff] %v1447_v58   ;;  %v815_v61 = vpop.f32.mrf.mxu0 }
 0x1af   : > { %v720_v62 = vpop.f32.mrf.mxu1  ;;  %v1467_v63 = vpack.c.bf16 %v1657_v59, %v815_v61 }
 0x1b0   : > { %v1452_v0 = vpack.c.bf16 %v1644_v60, %v720_v62  ;;  %v1674_v1 = vpop.f32.mrf.mxu0 }
 0x1b1   : > { %v1647_v2 = vpop.f32.mrf.mxu1  ;;  %1507 = vst [vmem:[%s1869_s5 + $0x48] sm:$0xff] %v1467_v63  }
 0x1b2   : > { %1504 = vst [vmem:[%s1869_s5 + $0x30] sm:$0xff] %v1452_v0   ;;  %v975_v3 = vpop.f32.mrf.mxu0 }
 0x1b3   : > { %v730_v4 = vpop.f32.mrf.mxu1  ;;  %v1482_v5 = vpack.c.bf16 %v1674_v1, %v975_v3 }
 0x1b4   : > { %v1457_v6 = vpack.c.bf16 %v1647_v2, %v730_v4  ;;  %v1677_v7 = vpop.f32.mrf.mxu0 }
 0x1b5   : > { %v1664_v8 = vpop.f32.mrf.mxu1  ;;  %1510 = vst [vmem:[%s1869_s5 + $0x60] sm:$0xff] %v1482_v5  }
 0x1b6   : > { %1505 = vst [vmem:[%s1869_s5 + $0x38] sm:$0xff] %v1457_v6   ;;  %v985_v9 = vpop.f32.mrf.mxu0 }
 0x1b7   : > { %v890_v10 = vpop.f32.mrf.mxu1  ;;  %v1487_v11 = vpack.c.bf16 %v1677_v7, %v985_v9 }
 0x1b8   : > { %v1472_v12 = vpack.c.bf16 %v1664_v8, %v890_v10 }
 0x1b9   : > { %v1667_v13 = vpop.f32.mrf.mxu1  ;;  %1511 = vst [vmem:[%s1869_s5 + $0x68] sm:$0xff] %v1487_v11  }
 0x1ba   : > { %1508 = vst [vmem:[%s1869_s5 + $0x50] sm:$0xff] %v1472_v12  }
 0x1bb   : > { %v900_v14 = vpop.f32.mrf.mxu1 }
 0x1bc   : > { %v1477_v15 = vpack.c.bf16 %v1667_v13, %v900_v14 }
 0x1bd   : > { %v1684_v16 = vpop.f32.mrf.mxu1 }
 0x1be   : > { %1509 = vst [vmem:[%s1869_s5 + $0x58] sm:$0xff] %v1477_v15  }
 0x1bf   : > { %v1060_v17 = vpop.f32.mrf.mxu1 }
 0x1c0   : > { %v1492_v18 = vpack.c.bf16 %v1684_v16, %v1060_v17 }
 0x1c1   : > { %v1687_v19 = vpop.f32.mrf.mxu1 }
 0x1c2   : > { %1512 = vst [vmem:[%s1869_s5 + $0x70] sm:$0xff] %v1492_v18  }
 0x1c3   : > { %v1070_v20 = vpop.f32.mrf.mxu1 }
 0x1c4   : > { %v1497_v21 = vpack.c.bf16 %v1687_v19, %v1070_v20 }
 0x1c6   : > { %1513 = vst [vmem:[%s1869_s5 + $0x78] sm:$0xff] %v1497_v21  }
 0x1c7 PF: > { %s13_s12 = sadd.s32 1, %s1702_s12  }
 0x1c8   : > { %p10_p4 = scmp.ge.s32.totalorder %s13_s12, 4  }
 0x1ca   :  { %12 = sbr.rel (!%p10_p4) target bundleno = 1 (0x1), region = 62 }

// kernel: up_forward.3
= control target key start
LH: loop header
LB: loop body
LE: loop exit
PB: predicated region body
PF: predicated region fallthrough
CT: control target
= control target key end

     0   :  { %s5735_s24 = smov 0   ;;  %s11570_s0 = inlined_call_operand.vmem [shape: bf16[2,8,4096], index: 0, kind: input, shape index: {}]   ;;  %s11571_s1 = inlined_call_operand.vmem [shape: s32[1,4096], index: 1, kind: input, shape index: {}]   ;;  %s11572_s2 = inlined_call_operand.vmem [shape: s32[1,4096], index: 2, kind: input, shape index: {}]   ;;  %s11573_s3 = inlined_call_operand.vmem [shape: bf16[8,72], index: 3, kind: input, shape index: {}]   ;;  %s11574_s4 = inlined_call_operand.vmem [shape: f32[8,1], index: 4, kind: input, shape index: {}]   ;;  %s11575_s5 = inlined_call_operand.vmem [shape: bf16[8,72], index: 5, kind: input, shape index: {}]   ;;  %s11576_s6 = inlined_call_operand.vmem [shape: f32[8,1], index: 6, kind: input, shape index: {}]   ;;  %s11577_s7 = inlined_call_operand.vmem [shape: f32[2,8,4096], index: 7, kind: output, shape index: {}]  }
   0x1 LB: > { %s4577_s25 = sadd.s32 4294967295, %s5689_s24   ;;  %p4581_p0 = scmp.ge.s32.totalorder %s5689_s24, 1  ;;  %s5689_s24 = sphi %s5735_s24, %s17_s24  }
   0x2   : > { %p237_p1 = scmp.lt.s32.totalorder %s5689_s24, 3 }
   0x4   : > { %p238_p2 = pnand %p4581_p0, %p237_p1 }
   0x6   : > { %241 = sbr.rel (%p238_p2) target bundleno = 1166 (0x48e), region = 48 }
   0xb   : > { %p269_p3 = scmp.lt.s32.totalorder %s4577_s25, 1  ;;  %v11578_v0 = vmov 0   ;;  %s5692_s30 = smov 1   ;;  %v2293_v61 = vld [vmem:[%s11574_s4] sm:$0xff]  ;;  %v416_v62 = vlaneseq }
   0xc   : > { %2473 = vmatprep.mubr.bf16.mxu1 %v11578_v0  ;;  %2432 = vmatprep.mubr.bf16.mxu0 %v11578_v0  ;;  %s5693_s8 = smov 127   ;;  %v5936_v63 = vld [vmem:[%s11571_s1] sm:$0xff] }
   0xd   : > { %s14779_s25 = smov (!%p269_p3, %s4577_s25), 1  ;;  %5529 = vset.pattern.permute.xlu1 %v11578_v0  ;;  %5680 = vset.pattern.permute.xlu0 %v11578_v0  ;;  %vm292_vm0 = vcmp.le.s32.totalorder %v5936_v63, 30  ;;  %vm288_vm9 = vcmp.ge.s32.totalorder %v5936_v63, 1  ;;  %v12549_v63 = vmov 0 }
   0xe   : > { %s5420_s26 = sshll.u32 %s14779_s25, 7  ;;  %s5421_s16 = sshll.u32 %s14779_s25, 8 }
   0xf   : > { %s5753_s29 = scalar_lea.vmem %s11570_s0, %s5420_s26  ;;  %s11502_s19 = scalar_lea.vmem %s11577_s7, %s5421_s16 }
  0x10   : > { %v305_v1 = vld [vmem:[%s5753_s29 + $0x8] sm:$0xff]  ;;  %v306_v2 = vld [vmem:[%s5753_s29 + $0x10] sm:$0xff]  ;;  %v304_v5 = vld [vmem:[%s5753_s29] sm:$0xff] }
  0x11   : > { %v5757_v3 = vunpack.c.h.bf16 %v305_v1  ;;  %v5759_v4 = vunpack.c.l.bf16 %v306_v2  ;;  %v5766_v7 = vunpack.c.h.bf16 %v306_v2  ;;  %v5768_v8 = vunpack.c.l.bf16 %v305_v1  ;;  %v307_v11 = vld [vmem:[%s5753_s29 + $0x18] sm:$0xff]  ;;  %v308_v12 = vld [vmem:[%s5753_s29 + $0x20] sm:$0xff]  ;;  %v309_v18 = vld [vmem:[%s5753_s29 + $0x28] sm:$0xff] }
  0x12   : > { %v5770_v9 = vunpack.c.l.bf16 %v304_v5  ;;  %v5772_v10 = vunpack.c.h.bf16 %v304_v5  ;;  %v5782_v14 = vunpack.c.h.bf16 %v307_v11  ;;  %v5784_v15 = vunpack.c.l.bf16 %v308_v12  ;;  %v310_v19 = vld [vmem:[%s5753_s29 + $0x30] sm:$0xff]  ;;  %v311_v25 = vld [vmem:[%s5753_s29 + $0x38] sm:$0xff]  ;;  %v312_v26 = vld [vmem:[%s5753_s29 + $0x40] sm:$0xff] }
  0x13   : > { %12462 = vst [vmem:[#allocation2_spill] sm:$0xff] %v5759_v4  ;;  %v5439_v6 = vpack.i.bf16 %v5759_v4, %v5757_v3  ;;  %12463 = vst [vmem:[#allocation3_spill] sm:$0xff] %v5766_v7  ;;  %v5794_v17 = vunpack.c.h.bf16 %v308_v12  ;;  %v5801_v20 = vunpack.c.l.bf16 %v307_v11  ;;  %v5803_v21 = vunpack.c.h.bf16 %v309_v18  ;;  %v313_v32 = vld [vmem:[%s5753_s29 + $0x48] sm:$0xff]  ;;  %v314_v33 = vld [vmem:[%s5753_s29 + $0x50] sm:$0xff] }
  0x14   : > { %12464 = vst [vmem:[#allocation4_spill] sm:$0xff] %v5770_v9  ;;  %v5444_v13 = vpack.i.bf16 %v5770_v9, %v5772_v10  ;;  %12465 = vst [vmem:[#allocation5_spill] sm:$0xff] %v5784_v15  ;;  %v5449_v16 = vpack.i.bf16 %v5784_v15, %v5782_v14  ;;  %v5805_v22 = vunpack.c.l.bf16 %v310_v19  ;;  %v5816_v24 = vunpack.c.h.bf16 %v310_v19  ;;  %v315_v39 = vld [vmem:[%s5753_s29 + $0x58] sm:$0xff]  ;;  %v316_v40 = vld [vmem:[%s5753_s29 + $0x60] sm:$0xff] }
  0x15   : > { %5440 = vrot.lane.b32.xlu1 %v5439_v6, %s5692_s30  ;;  %5435 = vrot.lane.b32.xlu0 %v5439_v6, %s5693_s8  ;;  %12466 = vst [vmem:[#allocation6_spill] sm:$0xff] %v5794_v17  ;;  %v5823_v27 = vunpack.c.l.bf16 %v309_v18  ;;  %v5825_v28 = vunpack.c.h.bf16 %v311_v25  ;;  %v5827_v29 = vunpack.c.l.bf16 %v312_v26  ;;  %v5838_v31 = vunpack.c.h.bf16 %v312_v26  ;;  %v319_v47 = vld [vmem:[%s5753_s29 + $0x78] sm:$0xff]  ;;  %v317_v48 = vld [vmem:[%s5753_s29 + $0x68] sm:$0xff] }
  0x16   : > { %12467 = vst [vmem:[#allocation7_spill] sm:$0xff] %v5805_v22  ;;  %v5459_v23 = vpack.i.bf16 %v5805_v22, %v5803_v21  ;;  %12468 = vst [vmem:[#allocation8_spill] sm:$0xff] %v5816_v24  ;;  %v5845_v34 = vunpack.c.l.bf16 %v311_v25  ;;  %v5847_v35 = vunpack.c.h.bf16 %v313_v32  ;;  %v5849_v36 = vunpack.c.l.bf16 %v314_v33  ;;  %v318_v51 = vld [vmem:[%s5753_s29 + $0x70] sm:$0xff]  ;;  %v5941_v1 = vld [vmem:[%s11572_s2] sm:$0xff] }
  0x17   : > { %12469 = vst [vmem:[#allocation9_spill] sm:$0xff] %v5823_v27  ;;  %12470 = vst [vmem:[#allocation10_spill] sm:$0xff] %v5825_v28  ;;  %v5469_v30 = vpack.i.bf16 %v5827_v29, %v5825_v28  ;;  %v5860_v38 = vunpack.c.h.bf16 %v314_v33  ;;  %v5867_v41 = vunpack.c.l.bf16 %v313_v32  ;;  %v5869_v42 = vunpack.c.h.bf16 %v315_v39 }
  0x18   : > { %12471 = vst [vmem:[#allocation11_spill] sm:$0xff] %v5827_v29  ;;  %12472 = vst [vmem:[#allocation12_spill] sm:$0xff] %v5838_v31  ;;  %v5479_v37 = vpack.i.bf16 %v5849_v36, %v5847_v35  ;;  %v5871_v43 = vunpack.c.l.bf16 %v316_v40  ;;  %v5882_v45 = vunpack.c.h.bf16 %v316_v40  ;;  %v5884_v46 = vunpack.c.l.bf16 %v315_v39 }
  0x19   : > { %857 = vrot.lane.b32.xlu0 %v5766_v7, %s5693_s8  ;;  %356 = vrot.lane.b32.xlu1 %v5768_v8, %s5692_s30  ;;  %12473 = vst [vmem:[#allocation13_spill] sm:$0xff] %v5845_v34  ;;  %12474 = vst [vmem:[#allocation14_spill] sm:$0xff] %v5847_v35  ;;  %v5888_v49 = vunpack.c.l.bf16 %v319_v47  ;;  %v5890_v50 = vunpack.c.h.bf16 %v319_v47  ;;  %v5900_v54 = vunpack.c.h.bf16 %v317_v48  ;;  %v5902_v55 = vunpack.c.l.bf16 %v318_v51 }
  0x1a   : > { %12475 = vst [vmem:[#allocation15_spill] sm:$0xff] %v5849_v36  ;;  %12476 = vst [vmem:[#allocation16_spill] sm:$0xff] %v5860_v38  ;;  %v5489_v44 = vpack.i.bf16 %v5871_v43, %v5869_v42  ;;  %v5499_v52 = vpack.i.bf16 %v5860_v38, %v5884_v46  ;;  %v5504_v53 = vpack.i.bf16 %v5770_v9, %v5884_v46  ;;  %v5908_v57 = vunpack.c.h.bf16 %v318_v51 }
  0x1b   : > { %12477 = vst [vmem:[#allocation17_spill] sm:$0xff] %v5867_v41  ;;  %12478 = vst [vmem:[#allocation18_spill] sm:$0xff] %v5869_v42  ;;  %v5509_v56 = vpack.i.bf16 %v5888_v49, %v5890_v50  ;;  %v5514_v58 = vpack.i.bf16 %v5902_v55, %v5900_v54  ;;  %v5917_v60 = vunpack.c.l.bf16 %v317_v48  ;;  %vm300_vm1 = vcmp.le.s32.totalorder %v5941_v1, 30 }
  0x1c   : > { %12479 = vst [vmem:[#allocation19_spill] sm:$0xff] %v5871_v43  ;;  %12480 = vst [vmem:[#allocation20_spill] sm:$0xff] %v5882_v45  ;;  %v5519_v59 = vpack.i.bf16 %v5890_v50, %v5908_v57  ;;  %v5945_v2 = vshrl.u32 %v416_v62, 7  ;;  %vm296_vm2 = vcmp.ge.s32.totalorder %v5941_v1, 1  ;;  %v5970_v18 = vsel %vm292_vm0, 1, %v11578_v0 }
  0x1d   : > { %851 = vrot.lane.b32.xlu0 %v5768_v8, %s5693_s8  ;;  %5445 = vrot.lane.b32.xlu1 %v5444_v13, %s5692_s30  ;;  %12481 = vst [vmem:[#allocation21_spill] sm:$0xff] %v5884_v46  ;;  %12482 = vst [vmem:[#allocation22_spill] sm:$0xff] %v5888_v49  ;;  %v5985_v32 = vsel %vm300_vm1, 1, %v11578_v0  ;;  %v12495_v39 = vmov 0  ;;  %v12498_v40 = vmov 0  ;;  %v12501_v47 = vmov 0 }
  0x1e   : > { %12483 = vst [vmem:[#allocation23_spill] sm:$0xff] %v5890_v50  ;;  %12484 = vst [vmem:[#allocation24_spill] sm:$0xff] %v5900_v54  ;;  %v5953_v5 = vsub.s32 3, %v5945_v2  ;;  %v5956_v6 = vsub.s32 2, %v5945_v2  ;;  %v5965_v13 = vsub.s32 1, %v5945_v2  ;;  %v5988_v33 = vsub.s32 0, %v5945_v2 }
  0x1f   : > { %12485 = vst [vmem:[#allocation25_spill] sm:$0xff] %v5902_v55  ;;  %12486 = vst [vmem:[#allocation26_spill] sm:$0xff] %v5908_v57  ;;  %v6060_v54 = vsub.s32 4, %v5945_v2  ;;  %v12557_v28 = vmov 0  ;;  %v12560_v29 = vmov 0 }
  0x20   : > { %12487 = vst [vmem:[#allocation27_spill] sm:$0xff] %v5917_v60  ;;  %vm1932_vm3 = vmand %vm292_vm0, %vm300_vm1  ;;  %v1755_v26 = vrot.slane %v5970_v18, %v5953_v5  ;;  %v1751_v48 = vrot.slane %v5970_v18, %v5956_v6  ;;  %v1359_v51 = vrot.slane %v5985_v32, %v5953_v5  ;;  %v1743_v35 = vrot.slane %v5970_v18, %v5988_v33 }
  0x21   : > { %849 = vrot.lane.b32.xlu0 %v5772_v10, %s5693_s8  ;;  %5450 = vrot.lane.b32.xlu1 %v5449_v16, %s5693_s8  ;;  %vm1536_vm4 = vmand %vm292_vm0, %vm296_vm2  ;;  %12488 = vst [vmem:[#allocation28_spill] sm:$0xff] %v5953_v5  ;;  %v5959_v11 = vsel %vm1932_vm3, 1, %v11578_v0 }
  0x22   : > { %12489 = vst [vmem:[#allocation29_spill] sm:$0xff] %v5956_v6  ;;  %12490 = vst [vmem:[#allocation30_spill] sm:$0xff] %v5959_v11  ;;  %v5962_v12 = vsel %vm1536_vm4, 1, %v11578_v0  ;;  %v1955_v19 = vrot.slane %v5959_v11, %v5953_v5  ;;  %vm6019_vm12 = vcmp.eq.s32.totalorder %v1755_v26, 1  ;;  %vm6049_vm0 = vcmp.eq.s32.totalorder %v1751_v48, 1 }
  0x23   : > { %12491 = vst [vmem:[#allocation31_spill] sm:$0xff] %v5962_v12  ;;  %12492 = vst [vmem:[#allocation32_spill] sm:$0xff] %v5965_v13  ;;  %v1559_v25 = vrot.slane %v5962_v12, %v5953_v5  ;;  %vm6053_vm3 = vcmp.eq.s32.totalorder %v1359_v51, 1  ;;  %v12522_v51 = vmov 0  ;;  %v1547_v42 = vrot.slane %v5962_v12, %v5988_v33 }
  0x24   : > { %12493 = vst [vmem:[#allocation33_spill] sm:$0xff] %v5970_v18  ;;  %12494 = vst [vmem:[#allocation34_spill] sm:$0xff] %v5988_v33  ;;  %vm5994_vm7 = vcmp.eq.s32.totalorder %v1955_v19, 1  ;;  %v12511_v19 = vmov 0 }
  0x25   : > { %865 = vrot.lane.b32.xlu0 %v5794_v17, %s5693_s8  ;;  %5455 = vrot.lane.b32.xlu1 %v5449_v16, %s5692_s30  ;;  %v5967_v16 = vand.u32 127, %v416_v62  ;;  %v12496_v39 = vsel %vm5994_vm7, 4294967295, %v12495_v39  ;;  %vm6008_vm11 = vcmp.eq.s32.totalorder %v1559_v25, 1  ;;  %v1747_v25 = vrot.slane %v5970_v18, %v5965_v13  ;;  %vm944_vm15 = vmand %vm288_vm9, %vm300_vm1  ;;  %12519 = vst [vmem:[#allocation43_spill] sm:$0xff] %v6060_v54 }
  0x26   : > { %12497 = vst [vmem:[#allocation35_spill] sm:$0xff] %v12496_v39  ;;  %v12502_v47 = vsel %vm6008_vm11, 4294967295, %v12501_v47  ;;  %v6139_v39 = vsub.s32 6, %v5945_v2 }
  0x27   : > { %vm11603_vm5 = vcmp.lt.s32.totalorder %v5967_v16, 1  ;;  %vm11623_vm6 = vcmp.lt.s32.totalorder %v5967_v16, 127  ;;  %12503 = vst [vmem:[#allocation37_spill] sm:$0xff] %v12502_v47 }
  0x28   : > { %12541 = vst [vmem:[#allocation54_spill] sm:$0xff] %v6139_v39 }
  0x29   : > { %364 = vrot.lane.b32.xlu0 %v5801_v20, %s5692_s30  ;;  %859 = vrot.lane.b32.xlu1 %v5801_v20, %s5693_s8 }
  0x2d   : > { %362 = vrot.lane.b32.xlu0 %v5766_v7, %s5692_s30  ;;  %5460 = vrot.lane.b32.xlu1 %v5459_v23, %s5693_s8 }
  0x31   : > { %873 = vrot.lane.b32.xlu0 %v5816_v24, %s5693_s8  ;;  %5465 = vrot.lane.b32.xlu1 %v5459_v23, %s5692_s30  ;;  %v1951_v23 = vrot.slane %v5959_v11, %v5956_v6 }
  0x33   : > { %vm5998_vm8 = vcmp.eq.s32.totalorder %v1951_v23, 1  ;;  %v1551_v23 = vrot.slane %v5962_v12, %v5965_v13 }
  0x34   : > { %v12499_v40 = vsel %vm5998_vm8, 4294967295, %v12498_v40 }
  0x35   : > { %372 = vrot.lane.b32.xlu0 %v5823_v27, %s5692_s30  ;;  %867 = vrot.lane.b32.xlu1 %v5823_v27, %s5693_s8  ;;  %12500 = vst [vmem:[#allocation36_spill] sm:$0xff] %v12499_v40  ;;  %vm6092_vm10 = vcmp.eq.s32.totalorder %v1551_v23, 1  ;;  %v12535_v23 = vmov 0 }
  0x39   : > { %370 = vrot.lane.b32.xlu0 %v5794_v17, %s5692_s30  ;;  %5470 = vrot.lane.b32.xlu1 %v5469_v30, %s5693_s8 }
  0x3d   : > { %881 = vrot.lane.b32.xlu0 %v5838_v31, %s5693_s8  ;;  %5475 = vrot.lane.b32.xlu1 %v5469_v30, %s5692_s30  ;;  %v1947_v30 = vrot.slane %v5959_v11, %v5965_v13 }
  0x3f   : > { %vm6023_vm13 = vcmp.eq.s32.totalorder %v1947_v30, 1 }
  0x41   : > { %380 = vrot.lane.b32.xlu0 %v5845_v34, %s5692_s30  ;;  %875 = vrot.lane.b32.xlu1 %v5845_v34, %s5693_s8 }
  0x45   : > { %378 = vrot.lane.b32.xlu0 %v5816_v24, %s5692_s30  ;;  %5480 = vrot.lane.b32.xlu1 %v5479_v37, %s5693_s8 }
  0x49   : > { %889 = vrot.lane.b32.xlu0 %v5860_v38, %s5693_s8  ;;  %5485 = vrot.lane.b32.xlu1 %v5479_v37, %s5692_s30  ;;  %v1555_v37 = vrot.slane %v5962_v12, %v5956_v6  ;;  %v12527_v38 = vmov 0  }
  0x4a   : > { %v6081_v46 = vsel %vm944_vm15, 1, %v12527_v38  ;;  %v6136_v34 = vsel %vm288_vm9, 1, %v12527_v38 }
  0x4b   : > { %vm6033_vm14 = vcmp.eq.s32.totalorder %v1555_v37, 1  ;;  %12540 = vst [vmem:[#allocation53_spill] sm:$0xff] %v6136_v34 }
  0x4c   : > { %v12512_v19 = vsel %vm6033_vm14, 4294967295, %v12511_v19 }
  0x4d   : > { %388 = vrot.lane.b32.xlu0 %v5867_v41, %s5692_s30  ;;  %883 = vrot.lane.b32.xlu1 %v5867_v41, %s5693_s8  ;;  %12513 = vst [vmem:[#allocation41_spill] sm:$0xff] %v12512_v19  ;;  %v12531_v41 = vmov 0 }
  0x51   : > { %386 = vrot.lane.b32.xlu0 %v5838_v31, %s5692_s30  ;;  %5490 = vrot.lane.b32.xlu1 %v5489_v44, %s5693_s8 }
  0x55   : > { %897 = vrot.lane.b32.xlu0 %v5882_v45, %s5693_s8  ;;  %5495 = vrot.lane.b32.xlu1 %v5489_v44, %s5692_s30  ;;  %v6006_v44 = vsel %vm296_vm2, 1, %v11578_v0 }
  0x56   : > { %v1163_v26 = vrot.slane %v6006_v44, %v5953_v5  ;;  %v1159_v36 = vrot.slane %v6006_v44, %v5956_v6 }
  0x58   : > { %vm6109_vm15 = vcmp.eq.s32.totalorder %v1163_v26, 1  ;;  %v963_v26 = vrot.slane %v6081_v46, %v5956_v6 }
  0x59   : > { %5500 = vrot.lane.b32.xlu0 %v5499_v52, %s5692_s30  ;;  %5505 = vrot.lane.b32.xlu1 %v5504_v53, %s5693_s8  ;;  %v6017_v52 = vsub.s32 7, %v5945_v2  ;;  %v12505_v53 = vmov 0  ;;  %v12536_v23 = vsel %vm6109_vm15, 4294967295, %v12535_v23  ;;  %vm12553_vm15 = vcmp.lt.s32.totalorder %v5967_v16, 1 }
  0x5a   : > { %v12506_v53 = vsel %vm6019_vm12, 4294967295, %v12505_v53  ;;  %12537 = vst [vmem:[#allocation50_spill] sm:$0xff] %v12536_v23 }
  0x5b   : > { %12504 = vst [vmem:[#allocation38_spill] sm:$0xff] %v6017_v52  ;;  %12507 = vst [vmem:[#allocation39_spill] sm:$0xff] %v12506_v53 }
  0x5d   : > { %5510 = vrot.lane.b32.xlu0 %v5509_v56, %s5692_s30  ;;  %5515 = vrot.lane.b32.xlu1 %v5514_v58, %s5693_s8  ;;  %v12508_v56 = vmov 0 }
  0x5e   : > { %v12509_v56 = vsel %vm6023_vm13, 4294967295, %v12508_v56 }
  0x5f   : > { %12510 = vst [vmem:[#allocation40_spill] sm:$0xff] %v12509_v56  ;;  %v12571_v56 = vmov 0 }
  0x61   : > { %5520 = vrot.lane.b32.xlu0 %v5519_v59, %s5693_s8  ;;  %5525 = vrot.lane.b32.xlu1 %v5514_v58, %s5692_s30  ;;  %v1943_v58 = vrot.slane %v5959_v11, %v5988_v33  ;;  %v1355_v59 = vrot.slane %v5985_v32, %v5956_v6 }
  0x63   : > { %vm6072_vm1 = vcmp.eq.s32.totalorder %v1943_v58, 1  ;;  %vm6076_vm4 = vcmp.eq.s32.totalorder %v1355_v59, 1  ;;  %v12528_v59 = vmov 0 }
  0x64   : > { %v12523_v51 = vsel %vm6072_vm1, 4294967295, %v12522_v51  ;;  %v12529_v59 = vsel %vm6092_vm10, 4294967295, %v12528_v59 }
  0x65   : > { %404 = vrot.lane.b32.xlu0 %v5917_v60, %s5692_s30  ;;  %899 = vrot.lane.b32.xlu1 %v5917_v60, %s5693_s8  ;;  %v1971_v60 = vrot.slane %v5959_v11, %v6017_v52  ;;  %12524 = vst [vmem:[#allocation46_spill] sm:$0xff] %v12523_v51  ;;  %12530 = vst [vmem:[#allocation47_spill] sm:$0xff] %v12529_v59  ;;  %v12589_v51 = vmov 0 }
  0x69   : > { %402 = vrot.lane.b32.xlu0 %v5882_v45, %s5692_s30  ;;  %907 = vrot.lane.b32.xlu1 %v5888_v49, %s5693_s8  ;;  %v12514_v49 = vmov 0 }
  0x6a   : > { %v12515_v49 = vsel %vm6049_vm0, 4294967295, %v12514_v49 }
  0x6b   : > { %12516 = vst [vmem:[#allocation42_spill] sm:$0xff] %v12515_v49  ;;  %v12586_v49 = vmov 0 }
  0x6d   : > { %410 = vrot.lane.b32.xlu0 %v5908_v57, %s5692_s30  ;;  %2296 = vperm.xlu1 %5529, %v2293_v61  }
  0x87   : > { %v6031_v61 = vpop.permute.xlu1 %5440  ;;  %v5436_v62 = vpop.permute.xlu0 %5435 }
  0x88   : > { %v11598_v30 = vunpack.i.h.bf16 %v6031_v61  ;;  %v5442_v37 = vunpack.i.l.bf16 %v6031_v61  ;;  %v5438_v0 = vunpack.i.h.bf16 %v5436_v62  ;;  %v5437_v57 = vunpack.i.l.bf16 %v5436_v62 }
  0x8a   : > { %v6066_v55 = vsel %vm11603_vm5, %v5442_v37, %v11598_v30  ;;  %v6070_v48 = vsel %vm11623_vm6, %v5437_v57, %v5438_v0  ;;  %vm6096_vm5 = vcmp.eq.s32.totalorder %v1747_v25, 1  ;;  %v6114_v25 = vsub.s32 5, %v5945_v2 }
  0x8b   : > { %12520 = vst [vmem:[#allocation44_spill] sm:$0xff] %v6066_v55  ;;  %12521 = vst [vmem:[#allocation45_spill] sm:$0xff] %v6070_v48  ;;  %v6085_v30 = vpop.permute.xlu0 %857  ;;  %v357_v43 = vpop.permute.xlu1 %356  ;;  %v2102_v58 = vsel %vm5998_vm8, %v6070_v48, 0.0  ;;  %v12532_v41 = vsel %vm6096_vm5, 4294967295, %v12531_v41  ;;  %v6131_v50 = vpack.c.bf16 %v5759_v4, %v6066_v55  ;;  %v12543_v55 = vmov 0 }
  0x8c   : > { %12533 = vst [vmem:[#allocation48_spill] sm:$0xff] %v12532_v41  ;;  %v6107_v40 = vsel %vm11623_vm6, %v5438_v0, %v6085_v30  ;;  %v2262_v31 = vpack.c.bf16 %v2102_v58, %v2102_v58  ;;  %12538 = vst [vmem:[#allocation51_spill] sm:$0xff] %v6114_v25  ;;  %v967_v0 = vrot.slane %v6081_v46, %v5953_v5  ;;  %vm6147_vm6 = vcmp.eq.s32.totalorder %v1547_v42, 1 }
  0x8d   : > { %12534 = vst [vmem:[#allocation49_spill] sm:$0xff] %v6107_v40  ;;  %vm451_vm8 = vmand %vm288_vm9, %vm296_vm2  ;;  %v2103_v24 = vsel %vm5994_vm7, %v6107_v40, 0.0  ;;  %v1351_v58 = vrot.slane %v5985_v32, %v5965_v13  ;;  %v12544_v55 = vsel %vm6147_vm6, 4294967295, %v12543_v55  ;;  %vm6151_vm7 = vcmp.eq.s32.totalorder %v1743_v35, 1 }
  0x8e   : > { %12539 = vst [vmem:[#allocation52_spill] sm:$0xff] %v6131_v50  ;;  %v2263_v1 = vpack.c.bf16 %v2103_v24, %v2103_v24  ;;  %12545 = vst [vmem:[#allocation56_spill] sm:$0xff] %v12544_v55  ;;  %v12546_v24 = vmov 0  ;;  %vm6155_vm9 = vcmp.eq.s32.totalorder %v1159_v36, 1  ;;  %v6160_v2 = vsel %vm451_vm8, 1, %v12527_v38 }
  0x8f   : > { %v852_v40 = vpop.permute.xlu0 %851  ;;  %v6141_v9 = vpop.permute.xlu1 %5445  ;;  %v12547_v24 = vsel %vm6151_vm7, 4294967295, %v12546_v24  ;;  %v12550_v63 = vsel %vm6155_vm9, 4294967295, %v12549_v63  ;;  %12552 = vst [vmem:[#allocation59_spill] sm:$0xff] %v6160_v2  ;;  %v6164_v4 = vsel %vm12553_vm15, %v357_v43, %v5442_v37  ;;  %vm12554_vm2 = vcmp.lt.s32.totalorder %v5967_v16, 127 }
  0x90   : > { %12542 = vst [vmem:[#allocation55_spill] sm:$0xff] %v6141_v9  ;;  %12548 = vst [vmem:[#allocation57_spill] sm:$0xff] %v12547_v24  ;;  %v6168_v42 = vsel %vm12554_vm2, %v852_v40, %v5437_v57  ;;  %v5447_v35 = vunpack.i.l.bf16 %v6141_v9  ;;  %vm12555_vm6 = vcmask 1043456   ;;  %vm6173_vm5 = vcmp.eq.s32.totalorder %v1971_v60, 1 }
  0x91   : > { %12551 = vst [vmem:[#allocation58_spill] sm:$0xff] %v12550_v63  ;;  %4612 = vmatprep.subr.msk.bf16.mxu1 %vm12555_vm6, %v2263_v1  ;;  %vm12556_vm7 = vmmov %vm12555_vm6  ;;  %v12558_v28 = vsel %vm6173_vm5, 4294967295, %v12557_v28  ;;  %v2101_v37 = vsel %vm6023_vm13, %v6168_v42, 0.0  ;;  %vm6180_vm8 = vcmp.eq.s32.totalorder %v967_v0, 1  ;;  %vm6184_vm15 = vcmp.eq.s32.totalorder %v963_v26, 1  ;;  %v6208_v26 = vld [vmem:[%s11571_s1 + $0x8] sm:$0xff] }
  0x92   : > { %v2311_v36 = vsel %vm12556_vm7, %v2262_v31, 0  ;;  %12559 = vst [vmem:[#allocation60_spill] sm:$0xff] %v12558_v28  ;;  %v12561_v29 = vsel %vm6180_vm8, 4294967295, %v12560_v29  ;;  %v12563_v57 = vmov 0  ;;  %vm6188_vm6 = vcmp.eq.s32.totalorder %v1351_v58, 1  ;;  %vm12568_vm7 = vmpackc.low %vm6019_vm12, %vm6008_vm11  ;;  %v6213_v58 = vld [vmem:[%s11572_s2 + $0x8] sm:$0xff] }
  0x93   : > { %2448 = vmatpush1.bf16.msra.mxu1 %v2311_v36  ;;  %12562 = vst [vmem:[#allocation61_spill] sm:$0xff] %v12561_v29  ;;  %v12564_v57 = vsel %vm6184_vm15, 4294967295, %v12563_v57  ;;  %v2261_v60 = vpack.c.bf16 %v2101_v37, %v2101_v37  ;;  %v474_v0 = vrot.slane %v6160_v2, %v5953_v5  ;;  %v1967_v36 = vrot.slane %v5959_v11, %v6139_v39  ;;  %v6223_v47 = vpop.permute.xlu0 %849  ;;  %v6225_v53 = vpop.permute.xlu1 %5450 }
  0x94   : > { %12565 = vst [vmem:[#allocation62_spill] sm:$0xff] %v12564_v57  ;;  %4615 = vmatprep.subr.msk.bf16.mxu1 %vm12568_vm7, %v6131_v50  ;;  %v6219_v37 = vpack.c.bf16 %v5757_v3, %v6164_v4  ;;  %v4620_v31 = vpack.c.bf16 %v6070_v48, %v5757_v3  ;;  %12570 = vst [vmem:[#allocation64_spill] sm:$0xff] %v6223_v47  ;;  %vm11646_vm7 = vmmov 1   ;;  %v670_v50 = vrot.slane %v6136_v34, %v5953_v5 }
  0x95   : > { %vm6230_vm2 = vmpackc.low %vm6053_vm3, %vm11646_vm7  ;;  %v470_v17 = vrot.slane %v6160_v2, %v5956_v6  ;;  %vm12574_vm11 = vcmp.lt.s32.totalorder %v5967_v16, 1  ;;  %vm12575_vm12 = vcmp.lt.s32.totalorder %v5967_v16, 127  ;;  %v5453_v27 = vunpack.i.h.bf16 %v6225_v53 }
  0x96   : > { %12569 = vst [vmem:[#allocation63_spill] sm:$0xff] %v6219_v37  ;;  %v12572_v56 = vsel %vm6230_vm2, 4294967295, %v12571_v56  ;;  %v448_v3 = vsel %vm12574_vm11, %v5447_v35, %v357_v43  ;;  %v941_v48 = vsel %vm12575_vm12, %v6223_v47, %v852_v40  ;;  %vm12576_vm3 = vcmask 1043456   ;;  %vm12577_vm7 = vmpackc.low %vm6049_vm0, %vm6033_vm14 }
  0x97   : > { %12573 = vst [vmem:[#allocation65_spill] sm:$0xff] %v12572_v56  ;;  %4586 = vmatprep.subr.msk.bf16.mxu0 %vm12576_vm3, %v2261_v60  ;;  %4618 = vmatpush1.bf16.msk.msra.mxu1 %vm12577_vm7, %v6219_v37  ;;  %v2100_v43 = vsel %vm6072_vm1, %v941_v48, 0.0  ;;  %vm12578_vm11 = vmmov 1   ;;  %v12579_v40 = vmov 0  ;;  %v666_v60 = vrot.slane %v6136_v34, %v5956_v6  ;;  %v6296_v56 = vpop.permute.xlu0 %865 }
  0x98   : > { %vm6257_vm12 = vmpackc.low %vm6076_vm4, %vm12578_vm11  ;;  %v12582_v45 = vunpack.i.h.bf16 %v6141_v9  ;;  %vm12583_vm7 = vcmp.lt.s32.totalorder %v5967_v16, 1  ;;  %4621 = vmatprep.subr.msk.bf16.mxu1 %vm6230_vm2, %v4620_v31  ;;  %v2260_v62 = vpack.c.bf16 %v2100_v43, %v2100_v43  ;;  %vm12585_vm4 = vnez %v12532_v41 }
  0x99   : > { %v12580_v40 = vsel %vm6257_vm12, 4294967295, %v12579_v40  ;;  %vm6277_vm0 = vcmp.eq.s32.totalorder %v474_v0, 1  ;;  %vm6281_vm3 = vcmp.eq.s32.totalorder %v1967_v36, 1  ;;  %v4626_v31 = vpack.c.bf16 %v6164_v4, %v6168_v42  ;;  %v6298_v36 = vpop.permute.xlu1 %5455 }
  0x9a   : > { %12581 = vst [vmem:[#allocation66_spill] sm:$0xff] %v12580_v40  ;;  %v6269_v19 = vsel %vm12583_vm7, %v12582_v45, %v5447_v35  ;;  %v12587_v49 = vsel %vm6277_vm0, 4294967295, %v12586_v49  ;;  %v12590_v51 = vsel %vm6281_vm3, 4294967295, %v12589_v51  ;;  %v4623_v35 = vpack.c.bf16 %v6168_v42, %v5768_v8  ;;  %vm12613_vm3 = vmpackc.low %vm12585_vm4, %vm6092_vm10 }
  0x9b   : > { %12584 = vst [vmem:[#allocation67_spill] sm:$0xff] %v6269_v19  ;;  %12588 = vst [vmem:[#allocation68_spill] sm:$0xff] %v12587_v49  ;;  %v4588_v45 = vpack.c.bf16 %v5768_v8, %v448_v3  ;;  %v12592_v43 = vunpack.i.l.bf16 %v6225_v53  ;;  %vm12593_vm7 = vcmp.lt.s32.totalorder %v5967_v16, 127  ;;  %vm12595_vm13 = vnez %v12536_v23  ;;  %v6372_v23 = vpop.permute.xlu0 %364 }
  0x9c   : > { %12591 = vst [vmem:[#allocation69_spill] sm:$0xff] %v12590_v51  ;;  %vm12596_vm2 = vmmov %vm12593_vm7  ;;  %v11663_v8 = vunpack.i.h.bf16 %v6298_v36  ;;  %vm12599_vm1 = vnez %v12544_v55  ;;  %vm12600_vm0 = vnez %v12547_v24  ;;  %v4591_v37 = vpack.c.bf16 %v5772_v10, %v6269_v19  ;;  %4624 = vmatpush1.bf16.msk.msra.mxu1 %vm6257_vm12, %v4623_v35 }
  0x9d   : > { %v6294_v0 = vsel %vm12593_vm7, %v12592_v43, %v5453_v27  ;;  %v6307_v4 = vsel %vm12596_vm2, %v5453_v27, %v6296_v56  ;;  %vm12598_vm7 = vcmask 1043456   ;;  %vm6323_vm2 = vmpackc.low %vm6188_vm6, %vm12578_vm11  ;;  %v12601_v27 = vmov 0 }
  0x9e   : > { %12594 = vst [vmem:[#allocation70_spill] sm:$0xff] %v6294_v0  ;;  %12597 = vst [vmem:[#allocation71_spill] sm:$0xff] %v6307_v4  ;;  %v2305_v43 = vsel %vm12598_vm7, %v2260_v62, 0  ;;  %v12602_v27 = vsel %vm6323_vm2, 4294967295, %v12601_v27  ;;  %vm6327_vm7 = vcmp.eq.s32.totalorder %v670_v50, 1  ;;  %v12604_v62 = vmov 0 }
  0x9f   : > { %2407 = vmatpush1.bf16.msra.mxu0 %v2305_v43  ;;  %12603 = vst [vmem:[#allocation72_spill] sm:$0xff] %v12602_v27  ;;  %v12605_v62 = vsel %vm6327_vm7, 4294967295, %v12604_v62  ;;  %vm6331_vm14 = vcmp.eq.s32.totalorder %v470_v17, 1  ;;  %v12607_v42 = vmov 0  ;;  %v1575_v43 = vrot.slane %v5962_v12, %v6017_v52  ;;  %vm12614_vm12 = vmpackc.low %vm12595_vm13, %vm6180_vm8 }
  0xa0   : > { %12606 = vst [vmem:[#allocation73_spill] sm:$0xff] %v12605_v62  ;;  %v12608_v42 = vsel %vm6331_vm14, 4294967295, %v12607_v42  ;;  %v12610_v35 = vunpack.i.l.bf16 %v6298_v36  ;;  %vm12611_vm6 = vcmp.lt.s32.totalorder %v5967_v16, 1  ;;  %4589 = vmatprep.subr.msk.bf16.mxu0 %vm12613_vm3, %v4588_v45  ;;  %4627 = vmatprep.subr.msk.bf16.mxu1 %vm12614_vm12, %v4626_v31  ;;  %vm6359_vm14 = vcmp.eq.s32.totalorder %v666_v60, 1  ;;  %v6374_v60 = vpop.permute.xlu1 %859 }
  0xa1   : > { %12609 = vst [vmem:[#allocation74_spill] sm:$0xff] %v12608_v42  ;;  %v12615_v17 = vmov 0  ;;  %v1771_v50 = vrot.slane %v5970_v18, %v6017_v52  ;;  %v2107_v31 = vsel %vm6173_vm5, %v6307_v4, 0.0  ;;  %vm12618_vm12 = vcmp.le.s32.totalorder %v6213_v58, 30 }
  0xa2   : > { %v6343_v1 = vsel %vm12611_vm6, %v12610_v35, %v11663_v8  ;;  %v12616_v17 = vsel %vm6359_vm14, 4294967295, %v12615_v17  ;;  %v1571_v35 = vrot.slane %v5962_v12, %v6139_v39  ;;  %v4629_v8 = vpack.c.bf16 %v448_v3, %v941_v48 }
  0xa3   : > { %12612 = vst [vmem:[#allocation75_spill] sm:$0xff] %v6343_v1  ;;  %12617 = vst [vmem:[#allocation76_spill] sm:$0xff] %v12616_v17  ;;  %vm12619_vm3 = vcmp.le.s32.totalorder %v6208_v26, 30  ;;  %vm12620_vm11 = vnez %v12590_v51  ;;  %v4594_v40 = vpack.c.bf16 %v941_v48, %v5772_v10  ;;  %vm12621_vm5 = vnez %v12587_v49 }
  0xa4   : > { %vm1933_vm6 = vmand %vm12619_vm3, %vm12618_vm12  ;;  %v2106_v3 = vsel %vm12620_vm11, %v6294_v0, 0.0  ;;  %v1767_v29 = vrot.slane %v5970_v18, %v6139_v39  ;;  %v1375_v10 = vrot.slane %v5985_v32, %v6017_v52  ;;  %v2267_v48 = vpack.c.bf16 %v2107_v31, %v2107_v31  ;;  %v6422_v31 = vpop.permute.xlu0 %362 }
  0xa5   : > { %vm12622_vm12 = vmpackc.low %vm12600_vm0, %vm12599_vm1  ;;  %vm12624_vm11 = vnez %v12608_v42  ;;  %v6413_v59 = vsel %vm1933_vm6, 1, %v12527_v38  ;;  %v2266_v28 = vpack.c.bf16 %v2106_v3, %v2106_v3  ;;  %v12627_v51 = vmov 0 }
  0xa6   : > { %4592 = vmatpush1.bf16.msk.msra.mxu0 %vm12622_vm12, %v4591_v37  ;;  %vm12623_vm3 = vmpackc.low %vm6155_vm9, %vm6184_vm15  ;;  %12625 = vst [vmem:[#allocation77_spill] sm:$0xff] %v6413_v59  ;;  %vm6430_vm6 = vcmp.eq.s32.totalorder %v1771_v50, 1  ;;  %v12630_v27 = vmov 0  ;;  %vm6434_vm8 = vcmp.eq.s32.totalorder %v1571_v35, 1  ;;  %v12633_v3 = vmov 0 }
  0xa7   : > { %4630 = vmatpush1.bf16.msk.msra.mxu1 %vm12623_vm3, %v4629_v8  ;;  %4595 = vmatprep.subr.msk.bf16.mxu0 %vm6323_vm2, %v4594_v40  ;;  %vm11678_vm1 = vmpackc.low %vm6359_vm14, %vm12624_vm11  ;;  %v1371_v8 = vrot.slane %v5985_v32, %v6139_v39  ;;  %v6424_v40 = vpop.permute.xlu1 %5460  ;;  %vm6426_vm3 = vcmp.eq.s32.totalorder %v1575_v43, 1  ;;  %v12631_v27 = vsel %vm6430_vm6, 4294967295, %v12630_v27  ;;  %v12634_v3 = vsel %vm6434_vm8, 4294967295, %v12633_v3  ;;  %v6456_v50 = vld [vmem:[%s11573_s3] sm:$0xf] }
  0xa8   : > { %vm12626_vm12 = vmpackc.low %vm6327_vm7, %vm12621_vm5  ;;  %v12628_v51 = vsel %vm6426_vm3, 4294967295, %v12627_v51  ;;  %12632 = vst [vmem:[#allocation79_spill] sm:$0xff] %v12631_v27  ;;  %v983_v55 = vrot.slane %v6081_v46, %v6017_v52  ;;  %v1987_v43 = vrot.slane %v6413_v59, %v5953_v5  ;;  %v12636_v49 = vmov 0 }
  0xa9   : > { %4633 = vmatprep.subr.msk.bf16.mxu1 %vm12626_vm12, %v4588_v45  ;;  %12629 = vst [vmem:[#allocation78_spill] sm:$0xff] %v12628_v51  ;;  %12635 = vst [vmem:[#allocation80_spill] sm:$0xff] %v12634_v3  ;;  %vm6444_vm12 = vcmp.eq.s32.totalorder %v1767_v29, 1  ;;  %vm6462_vm2 = vcmp.eq.s32.totalorder %v1375_v10, 1  ;;  %v1179_v45 = vrot.slane %v6006_v44, %v6017_v52  ;;  %vm6474_vm14 = vcmp.eq.s32.totalorder %v1371_v8, 1  ;;  %v6480_v29 = vpop.permute.xlu0 %873 }
  0xaa   : > { %v12637_v49 = vsel %vm6444_vm12, 4294967295, %v12636_v49  ;;  %12639 = vst [vmem:[#allocation82_spill] sm:$0xff] %v6456_v50  ;;  %v979_v10 = vrot.slane %v6081_v46, %v6139_v39  ;;  %12647 = vst [vmem:[#allocation84_spill] sm:$0xff] %v6480_v29  ;;  %vm6488_vm5 = vcmp.eq.s32.totalorder %v983_v55, 1  ;;  %v1175_v8 = vrot.slane %v6006_v44, %v6139_v39 }
  0xab   : > { %12638 = vst [vmem:[#allocation81_spill] sm:$0xff] %v12637_v49  ;;  %4636 = vmatpush1.bf16.msk.msra.mxu1 %vm11678_vm1, %v4591_v37  ;;  %v6470_v37 = vpack.c.bf16 %v5784_v15, %v6343_v1  ;;  %vm12643_vm1 = vcmask 1043456   ;;  %v6482_v17 = vpop.permute.xlu1 %5465  ;;  %v12652_v62 = vunpack.i.l.bf16 %v6298_v36  ;;  %v12654_v55 = vunpack.i.h.bf16 %v6424_v40 }
  0xac   : > { %4664 = vmatprep.subr.msk.bf16.mxu1 %vm12643_vm1, %v2267_v48  ;;  %vm12644_vm11 = vmmov %vm12643_vm1  ;;  %12648 = vst [vmem:[#allocation85_spill] sm:$0xff] %v6482_v17  ;;  %v12649_v48 = vmov 0  ;;  %v12655_v63 = vunpack.i.l.bf16 %v6424_v40  ;;  %vm12656_vm0 = vcmp.lt.s32.totalorder %v5967_v16, 127  ;;  %vm6512_vm7 = vcmp.eq.s32.totalorder %v1987_v43, 1 }
  0xad   : > { %12642 = vst [vmem:[#allocation83_spill] sm:$0xff] %v6470_v37  ;;  %v2323_v42 = vsel %vm12644_vm11, %v2266_v28, 0  ;;  %v12650_v48 = vsel %vm6488_vm5, 4294967295, %v12649_v48  ;;  %vm12653_vm11 = vcmp.lt.s32.totalorder %v5967_v16, 1  ;;  %v12658_v28 = vmov 0  ;;  %v6578_v27 = vpop.permute.xlu0 %372 }
  0xae   : > { %12651 = vst [vmem:[#allocation86_spill] sm:$0xff] %v12650_v48  ;;  %v6502_v57 = vsel %vm12653_vm11, %v6372_v23, %v12652_v62  ;;  %v6510_v41 = vsel %vm12656_vm0, %v12655_v63, %v12654_v55  ;;  %v12659_v28 = vsel %vm6512_vm7, 4294967295, %v12658_v28  ;;  %vm12661_vm1 = vcmask 588800   ;;  %v6523_v62 = vld [vmem:[%s11571_s1 + $0x10] sm:$0xff]  ;;  %vm12669_vm0 = vmpackc.low %vm6430_vm6, %vm6426_vm3 }
  0xaf   : > { %12657 = vst [vmem:[#allocation87_spill] sm:$0xff] %v6510_v41  ;;  %12660 = vst [vmem:[#allocation88_spill] sm:$0xff] %v12659_v28  ;;  %4637 = vmatmul.mubr.msk.bf16.vlgmr.msra.gmra.mxu1 %vm12661_vm1, %v6456_v50  ;;  %v6528_v63 = vld [vmem:[%s11572_s2 + $0x10] sm:$0xff]  ;;  %v6532_v43 = vpack.c.bf16 %v5782_v14, %v6502_v57  ;;  %vm6538_vm1 = vcmp.eq.s32.totalorder %v1179_v45, 1  ;;  %v12663_v55 = vmov 0  ;;  %v490_v4 = vrot.slane %v6160_v2, %v6017_v52  ;;  %v6580_v24 = vpop.permute.xlu1 %867 }
  0xb0   : > { %2530 = vmatpush1.bf16.msra.mxu1 %v2323_v42  ;;  %v12664_v55 = vsel %vm6538_vm1, 4294967295, %v12663_v55  ;;  %v686_v1 = vrot.slane %v6136_v34, %v6017_v52  ;;  %2555 = vmatprep.mubr.bf16.mxu1 %v12527_v38  ;;  %v12666_v15 = vunpack.i.h.bf16 %v6482_v17  ;;  %v12667_v42 = vunpack.i.l.bf16 %v6482_v17 }
  0xb1   : > { %12662 = vst [vmem:[#allocation89_spill] sm:$0xff] %v6532_v43  ;;  %12665 = vst [vmem:[#allocation90_spill] sm:$0xff] %v12664_v55  ;;  %4667 = vmatprep.subr.msk.bf16.mxu1 %vm12669_vm0, %v6470_v37  ;;  %vm12670_vm15 = vmmov 1   ;;  %v12671_v45 = vmov 0  ;;  %vm6568_vm13 = vcmp.eq.s32.totalorder %v979_v10, 1  ;;  %v12674_v19 = vmov 0  ;;  %v6669_v35 = vpop.permute.xlu0 %370 }
  0xb2   : > { %v6553_v9 = vsel %vm12653_vm11, %v12667_v42, %v12666_v15  ;;  %vm6564_vm9 = vmpackc.low %vm6462_vm2, %vm12670_vm15  ;;  %v12675_v19 = vsel %vm6568_vm13, 4294967295, %v12674_v19  ;;  %v486_v15 = vrot.slane %v6160_v2, %v6139_v39  ;;  %v682_v42 = vrot.slane %v6136_v34, %v6139_v39 }
  0xb3   : > { %12668 = vst [vmem:[#allocation91_spill] sm:$0xff] %v6553_v9  ;;  %v12672_v45 = vsel %vm6564_vm9, 4294967295, %v12671_v45  ;;  %12676 = vst [vmem:[#allocation93_spill] sm:$0xff] %v12675_v19  ;;  %v1983_v37 = vrot.slane %v6413_v59, %v5956_v6  ;;  %vm12677_vm11 = vcmp.ge.s32.totalorder %v6213_v58, 1  ;;  %vm12678_vm3 = vcmp.le.s32.totalorder %v6208_v26, 30 }
  0xb4   : > { %12673 = vst [vmem:[#allocation92_spill] sm:$0xff] %v12672_v45  ;;  %vm6590_vm6 = vmand %vm12678_vm3, %vm12677_vm11  ;;  %v12681_v51 = vunpack.i.l.bf16 %v6225_v53  ;;  %vm12682_vm10 = vcmp.lt.s32.totalorder %v5967_v16, 127  ;;  %v4672_v11 = vpack.c.bf16 %v6294_v0, %v5782_v14  ;;  %v12684_v18 = vmov 0  ;;  %v6671_v45 = vpop.permute.xlu1 %5470 }
  0xb5   : > { %vm6606_vm2 = vmpackc.low %vm6474_vm14, %vm12670_vm15  ;;  %vm6623_vm11 = vcmp.eq.s32.totalorder %v1175_v8, 1  ;;  %v12688_v14 = vmov 0  ;;  %vm6627_vm0 = vcmp.eq.s32.totalorder %v490_v4, 1  ;;  %v12691_v53 = vmov 0  ;;  %v6745_v55 = vpop.permute.xlu0 %881 }
  0xb6   : > { %v6599_v47 = vsel %vm12682_vm10, %v6374_v60, %v12681_v51  ;;  %v12685_v18 = vsel %vm6606_vm2, 4294967295, %v12684_v18  ;;  %vm12687_vm10 = vmpackc.low %vm6444_vm12, %vm6434_vm8  ;;  %v12689_v14 = vsel %vm6623_vm11, 4294967295, %v12688_v14  ;;  %v12692_v53 = vsel %vm6627_vm0, 4294967295, %v12691_v53  ;;  %12729 = vst [vmem:[#allocation110_spill] sm:$0xff] %v6745_v55 }
  0xb7   : > { %12683 = vst [vmem:[#allocation94_spill] sm:$0xff] %v6599_v47  ;;  %12686 = vst [vmem:[#allocation95_spill] sm:$0xff] %v12685_v18  ;;  %4670 = vmatpush1.bf16.msk.msra.mxu1 %vm12687_vm10, %v6532_v43  ;;  %vm6631_vm3 = vcmp.eq.s32.totalorder %v686_v1, 1  ;;  %v12694_v51 = vmov 0  ;;  %vm6639_vm10 = vcmp.eq.s32.totalorder %v486_v15, 1  ;;  %v12697_v12 = vmov 0 }
  0xb8   : > { %12690 = vst [vmem:[#allocation96_spill] sm:$0xff] %v12689_v14  ;;  %12693 = vst [vmem:[#allocation97_spill] sm:$0xff] %v12692_v53  ;;  %v12695_v51 = vsel %vm6631_vm3, 4294967295, %v12694_v51  ;;  %4673 = vmatprep.subr.msk.bf16.mxu1 %vm6564_vm9, %v4672_v11  ;;  %v12698_v12 = vsel %vm6639_vm10, 4294967295, %v12697_v12  ;;  %vm6643_vm14 = vcmp.eq.s32.totalorder %v682_v42, 1  ;;  %v12700_v8 = vmov 0  ;;  %v6747_v18 = vpop.permute.xlu1 %5475 }
  0xb9   : > { %12696 = vst [vmem:[#allocation98_spill] sm:$0xff] %v12695_v51  ;;  %12699 = vst [vmem:[#allocation99_spill] sm:$0xff] %v12698_v12  ;;  %v12701_v8 = vsel %vm6643_vm14, 4294967295, %v12700_v8  ;;  %vm12703_vm8 = vcmp.le.s32.totalorder %v6528_v63, 30  ;;  %vm12704_vm12 = vcmp.le.s32.totalorder %v6523_v62, 30  ;;  %v6658_v11 = vsel %vm6590_vm6, 1, %v12527_v38  ;;  %v6825_v53 = vpop.permute.xlu0 %380 }
  0xba   : > { %12702 = vst [vmem:[#allocation100_spill] sm:$0xff] %v12701_v8  ;;  %vm6651_vm4 = vmand %vm12704_vm12, %vm12703_vm8  ;;  %vm12708_vm9 = vcmp.le.s32.totalorder %v6208_v26, 30  ;;  %v4675_v15 = vpack.c.bf16 %v6599_v47, %v5801_v20  ;;  %v4678_v42 = vpack.c.bf16 %v6502_v57, %v6599_v47  ;;  %vm6673_vm8 = vcmp.eq.s32.totalorder %v1983_v37, 1 }
  0xbb   : > { %12707 = vst [vmem:[#allocation101_spill] sm:$0xff] %v6658_v11  ;;  %v6663_v1 = vsel %vm12708_vm9, 1, %v12527_v38  ;;  %v12710_v3 = vmov 0  ;;  %vm12713_vm6 = vcmp.le.s32.totalorder %v6213_v58, 30  ;;  %vm12716_vm12 = vcmp.ge.s32.totalorder %v6208_v26, 1  ;;  %12730 = vst [vmem:[#allocation111_spill] sm:$0xff] %v6747_v18 }
  0xbc   : > { %12709 = vst [vmem:[#allocation102_spill] sm:$0xff] %v6663_v1  ;;  %v12711_v3 = vsel %vm6673_vm8, 4294967295, %v12710_v3  ;;  %v6680_v10 = vsel %vm12713_vm6, 1, %v12527_v38  ;;  %vm12715_vm9 = vmmov %vm12713_vm6  ;;  %vm12717_vm14 = vcmp.lt.s32.totalorder %v5967_v16, 1  ;;  %v12718_v37 = vunpack.i.h.bf16 %v6424_v40  ;;  %4676 = vmatpush1.bf16.msk.msra.mxu1 %vm6606_vm2, %v4675_v15  ;;  %v6827_v51 = vpop.permute.xlu1 %875 }
  0xbd   : > { %12712 = vst [vmem:[#allocation103_spill] sm:$0xff] %v12711_v3  ;;  %12714 = vst [vmem:[#allocation104_spill] sm:$0xff] %v6680_v10  ;;  %v444_v57 = vsel %vm12717_vm14, %v6422_v31, %v6372_v23  ;;  %vm12719_vm10 = vcmp.lt.s32.totalorder %v5967_v16, 127  ;;  %v1591_v47 = vrot.slane %v6658_v11, %v5953_v5  ;;  %v1787_v23 = vrot.slane %v6663_v1, %v5953_v5 }
  0xbe   : > { %vm945_vm15 = vmand %vm12716_vm12, %vm12715_vm9  ;;  %v6695_v49 = vsel %vm12719_vm10, %v12718_v37, %v6480_v29  ;;  %v1587_v54 = vrot.slane %v6658_v11, %v5956_v6  ;;  %v1783_v37 = vrot.slane %v6663_v1, %v5956_v6  ;;  %v6727_v15 = vsel %vm6651_vm4, 1, %v12527_v38  ;;  %12751 = vst [vmem:[#allocation121_spill] sm:$0xff] %v6827_v51 }
  0xbf   : > { %12720 = vst [vmem:[#allocation105_spill] sm:$0xff] %v6695_v49  ;;  %vm12721_vm14 = vmmov %vm12719_vm10  ;;  %v12726_v43 = vunpack.i.h.bf16 %v6031_v61  ;;  %vm12727_vm9 = vcmp.lt.s32.totalorder %v5967_v16, 1  ;;  %v2111_v4 = vsel %vm6512_vm7, %v6695_v49, 0.0  ;;  %v2110_v61 = vsel %vm6673_vm8, %v6510_v41, 0.0 }
  0xc0   : > { %v6713_v0 = vsel %vm12721_vm14, %v6085_v30, %v6374_v60  ;;  %vm12723_vm10 = vmpackc.low %vm6538_vm1, %vm6488_vm5  ;;  %12724 = vst [vmem:[#allocation107_spill] sm:$0xff] %v6727_v15  ;;  %v1391_v30 = vrot.slane %v6680_v10, %v5953_v5  ;;  %v6732_v60 = vsel %vm945_vm15, 1, %v12527_v38  ;;  %v12733_v28 = vunpack.i.l.bf16 %v6671_v45 }
  0xc1   : > { %12722 = vst [vmem:[#allocation106_spill] sm:$0xff] %v6713_v0  ;;  %4679 = vmatprep.subr.msk.bf16.mxu1 %vm12723_vm10, %v4678_v42  ;;  %vm11736_vm6 = vmpackc.low %vm6623_vm11, %vm6568_vm13  ;;  %v6739_v42 = vsel %vm12727_vm9, %v12726_v43, %v6422_v31  ;;  %v4681_v48 = vpack.c.bf16 %v444_v57, %v6713_v0  ;;  %v6757_v31 = vpack.c.bf16 %v5801_v20, %v444_v57  ;;  %v12732_v43 = vunpack.i.h.bf16 %v6671_v45 }
  0xc2   : > { %12725 = vst [vmem:[#allocation108_spill] sm:$0xff] %v6732_v60  ;;  %12728 = vst [vmem:[#allocation109_spill] sm:$0xff] %v6739_v42  ;;  %v11737_v0 = vunpack.i.h.bf16 %v6747_v18  ;;  %vm6776_vm12 = vcmp.eq.s32.totalorder %v1787_v23, 1  ;;  %v12736_v57 = vmov 0  ;;  %vm12742_vm10 = vcmp.ge.s32.totalorder %v6213_v58, 1 }
  0xc3   : > { %vm11741_vm15 = vmpackc.low %vm6631_vm3, %vm6627_vm0  ;;  %12731 = vst [vmem:[#allocation112_spill] sm:$0xff] %v6757_v31  ;;  %4682 = vmatpush1.bf16.msk.msra.mxu1 %vm11736_vm6, %v4681_v48  ;;  %v12737_v57 = vsel %vm6776_vm12, 4294967295, %v12736_v57  ;;  %v2271_v29 = vpack.c.bf16 %v2111_v4, %v2111_v4  ;;  %v12744_v48 = vunpack.i.l.bf16 %v6747_v18  ;;  %v1387_v4 = vrot.slane %v6680_v10, %v5956_v6 }
  0xc4   : > { %vm12734_vm4 = vmmov %vm12721_vm14  ;;  %12738 = vst [vmem:[#allocation114_spill] sm:$0xff] %v12737_v57  ;;  %vm6780_vm14 = vcmp.eq.s32.totalorder %v1783_v37, 1  ;;  %4685 = vmatprep.subr.msk.bf16.mxu1 %vm11741_vm15, %v6757_v31  ;;  %v2270_v37 = vpack.c.bf16 %v2110_v61, %v2110_v61  ;;  %v6821_v20 = vpack.c.bf16 %v5766_v7, %v6739_v42  ;;  %v999_v3 = vrot.slane %v6732_v60, %v5953_v5  ;;  %v6879_v7 = vpop.permute.xlu1 %5480 }
  0xc5   : > { %v6765_v49 = vsel %vm12734_vm4, %v12733_v28, %v12732_v43  ;;  %v12739_v28 = vmov 0  ;;  %v6787_v43 = vsel %vm12742_vm10, 1, %v12527_v38  ;;  %v6795_v23 = vsel %vm12727_vm9, %v12744_v48, %v11737_v0  ;;  %v6812_v48 = vld [vmem:[%s11571_s1 + $0x18] sm:$0xff] }
  0xc6   : > { %12735 = vst [vmem:[#allocation113_spill] sm:$0xff] %v6765_v49  ;;  %v12740_v28 = vsel %vm6780_vm14, 4294967295, %v12739_v28  ;;  %12743 = vst [vmem:[#allocation116_spill] sm:$0xff] %v6787_v43  ;;  %vm12746_vm4 = vnez %v12698_v12  ;;  %vm12747_vm10 = vnez %v12701_v8  ;;  %v6817_v0 = vld [vmem:[%s11572_s2 + $0x18] sm:$0xff]  ;;  %vm12752_vm9 = vcmp.ge.s32.totalorder %v6213_v58, 1 }
  0xc7   : > { %12741 = vst [vmem:[#allocation115_spill] sm:$0xff] %v12740_v28  ;;  %12745 = vst [vmem:[#allocation117_spill] sm:$0xff] %v6795_v23  ;;  %vm12753_vm15 = vcmp.ge.s32.totalorder %v6208_v26, 1  ;;  %vm6840_vm3 = vcmp.eq.s32.totalorder %v1591_v47, 1  ;;  %v12756_v14 = vmov 0  ;;  %vm6844_vm8 = vcmp.eq.s32.totalorder %v1587_v54, 1 }
  0xc8   : > { %12748 = vst [vmem:[#allocation118_spill] sm:$0xff] %v6812_v48  ;;  %12749 = vst [vmem:[#allocation119_spill] sm:$0xff] %v6817_v0  ;;  %v12757_v14 = vsel %vm6840_vm3, 4294967295, %v12756_v14  ;;  %v12759_v61 = vmov 0  ;;  %vm6848_vm7 = vcmp.eq.s32.totalorder %v1391_v30, 1  ;;  %v1195_v58 = vrot.slane %v6787_v43, %v5953_v5 }
  0xc9   : > { %12750 = vst [vmem:[#allocation120_spill] sm:$0xff] %v6821_v20  ;;  %vm452_vm6 = vmand %vm12753_vm15, %vm12752_vm9  ;;  %v12760_v61 = vsel %vm6844_vm8, 4294967295, %v12759_v61  ;;  %v995_v54 = vrot.slane %v6732_v60, %v5956_v6  ;;  %v1191_v47 = vrot.slane %v6787_v43, %v5956_v6  ;;  %v6868_v26 = vpack.c.bf16 %v5805_v22, %v6553_v9 }
  0xca   : > { %vm12754_vm0 = vmmov %vm12753_vm15  ;;  %12758 = vst [vmem:[#allocation123_spill] sm:$0xff] %v12757_v14  ;;  %vm12766_vm13 = vcmask 1043456   ;;  %v6873_v12 = vsel %vm452_vm6, 1, %v12527_v38  ;;  %v12772_v22 = vmov 0  ;;  %v12775_v31 = vunpack.i.l.bf16 %v6482_v17 }
  0xcb   : > { %v6838_v19 = vsel %vm12754_vm0, 1, %v12527_v38  ;;  %12761 = vst [vmem:[#allocation124_spill] sm:$0xff] %v12760_v61  ;;  %vm12764_vm0 = vmpackc.low %vm12747_vm10, %vm12746_vm4  ;;  %vm12776_vm6 = vcmp.lt.s32.totalorder %v5967_v16, 1  ;;  %v12778_v51 = vmov 0  ;;  %vm12781_vm15 = vcmask 588800  }
  0xcc   : > { %12755 = vst [vmem:[#allocation122_spill] sm:$0xff] %v6838_v19  ;;  %4688 = vmatpush1.bf16.msk.msra.mxu1 %vm12764_vm0, %v6821_v20  ;;  %12765 = vst [vmem:[#allocation125_spill] sm:$0xff] %v6868_v26  ;;  %v702_v8 = vrot.slane %v6838_v19, %v5953_v5  ;;  %v6877_v20 = vpop.permute.xlu0 %378  ;;  %vm6913_vm9 = vcmp.eq.s32.totalorder %v1195_v58, 1  ;;  %vm12786_vm4 = vcmp.le.s32.totalorder %v6812_v48, 30  ;;  %v502_v58 = vrot.slane %v6873_v12, %v5956_v6 }
  0xcd   : > { %4716 = vmatprep.subr.msk.bf16.mxu1 %vm12766_vm13, %v2271_v29  ;;  %vm12767_vm11 = vmmov %vm12766_vm13  ;;  %12768 = vst [vmem:[#allocation126_spill] sm:$0xff] %v6873_v12  ;;  %vm6889_vm13 = vcmp.eq.s32.totalorder %v1387_v4, 1  ;;  %v12777_v29 = vrot.slane %v6413_v59, %v6017_v52  ;;  %v698_v4 = vrot.slane %v6838_v19, %v5956_v6  ;;  %vm6948_vm5 = vcmp.eq.s32.totalorder %v1191_v47, 1 }
  0xce   : > { %v2335_v30 = vsel %vm12767_vm11, %v2270_v37, 0  ;;  %12769 = vst [vmem:[#allocation127_spill] sm:$0xff] %v6877_v20  ;;  %vm6893_vm11 = vcmp.eq.s32.totalorder %v999_v3, 1  ;;  %v439_v20 = vsel %vm12776_vm6, %v6578_v27, %v12775_v31  ;;  %v12782_v37 = vmov 0 }
  0xcf   : > { %v12773_v22 = vsel %vm6893_vm11, 4294967295, %v12772_v22  ;;  %vm6905_vm0 = vcmp.eq.s32.totalorder %v12777_v29, 1  ;;  %4689 = vmatmul.mubr.msk.bf16.vlgmr.msra.gmra.mxu1 %vm12781_vm15, %v6456_v50  ;;  %v12783_v37 = vsel %vm6913_vm9, 4294967295, %v12782_v37  ;;  %vm12785_vm6 = vcmp.le.s32.totalorder %v6817_v0, 30 }
  0xd0   : > { %12774 = vst [vmem:[#allocation128_spill] sm:$0xff] %v12773_v22  ;;  %v12779_v51 = vsel %vm6905_vm0, 4294967295, %v12778_v51  ;;  %12784 = vst [vmem:[#allocation130_spill] sm:$0xff] %v12783_v37  ;;  %v6926_v29 = vpack.c.bf16 %v5803_v21, %v439_v20  ;;  %2612 = vmatpush1.bf16.msra.mxu1 %v2335_v30  ;;  %v506_v3 = vrot.slane %v6873_v12, %v5953_v5  ;;  %v12791_v30 = vmov 0  ;;  %2637 = vmatprep.mubr.bf16.mxu1 %v12527_v38  ;;  %v6959_v57 = vpop.permute.xlu0 %889 }
  0xd1   : > { %12780 = vst [vmem:[#allocation129_spill] sm:$0xff] %v12779_v51  ;;  %vm6921_vm10 = vmand %vm12786_vm4, %vm12785_vm6  ;;  %vm6944_vm6 = vcmp.eq.s32.totalorder %v995_v54, 1  ;;  %v12794_v48 = vmov 0  ;;  %vm6952_vm1 = vcmp.eq.s32.totalorder %v702_v8, 1  ;;  %v12797_v0 = vmov 0 }
  0xd2   : > { %12789 = vst [vmem:[#allocation131_spill] sm:$0xff] %v6926_v29  ;;  %vm12790_vm4 = vmpackc.low %vm6776_vm12, %vm6840_vm3  ;;  %v12792_v30 = vsel %vm6944_vm6, 4294967295, %v12791_v30  ;;  %v12795_v48 = vsel %vm6948_vm5, 4294967295, %v12794_v48  ;;  %v12798_v0 = vsel %vm6952_vm1, 4294967295, %v12797_v0  ;;  %v1999_v14 = vrot.slane %v6413_v59, %v6139_v39 }
  0xd3   : > { %4719 = vmatprep.subr.msk.bf16.mxu1 %vm12790_vm4, %v6868_v26  ;;  %12793 = vst [vmem:[#allocation132_spill] sm:$0xff] %v12792_v30  ;;  %12796 = vst [vmem:[#allocation133_spill] sm:$0xff] %v12795_v48  ;;  %v6961_v26 = vpop.permute.xlu1 %5485  ;;  %vm12802_vm4 = vmmov 1   ;;  %v12803_v54 = vmov 0  ;;  %v4724_v8 = vpack.c.bf16 %v6510_v41, %v5803_v21  ;;  %v1607_v47 = vrot.slane %v6658_v11, %v6017_v52 }
  0xd4   : > { %12799 = vst [vmem:[#allocation134_spill] sm:$0xff] %v12798_v0  ;;  %12800 = vst [vmem:[#allocation135_spill] sm:$0xff] %v6959_v57  ;;  %v1803_v59 = vrot.slane %v6663_v1, %v6017_v52  ;;  %v6979_v17 = vsel %vm6921_vm10, 1, %v12527_v38  ;;  %v12807_v42 = vunpack.i.l.bf16 %v6424_v40  ;;  %v12810_v21 = vunpack.i.h.bf16 %v6879_v7 }
  0xd5   : > { %12801 = vst [vmem:[#allocation136_spill] sm:$0xff] %v6961_v26  ;;  %vm6966_vm15 = vmpackc.low %vm6848_vm7, %vm12802_vm4  ;;  %vm12808_vm7 = vcmp.lt.s32.totalorder %v5967_v16, 127  ;;  %v12811_v41 = vunpack.i.l.bf16 %v6879_v7  ;;  %v11784_v5 = vunpack.i.h.bf16 %v6961_v26  ;;  %v11785_v31 = vunpack.i.l.bf16 %v6961_v26 }
  0xd6   : > { %v12804_v54 = vsel %vm6966_vm15, 4294967295, %v12803_v54  ;;  %12806 = vst [vmem:[#allocation138_spill] sm:$0xff] %v6979_v17  ;;  %v6986_v57 = vsel %vm12808_vm7, %v6580_v24, %v12807_v42  ;;  %vm12812_vm3 = vmmov %vm12808_vm7  ;;  %vm7004_vm7 = vcmp.eq.s32.totalorder %v506_v3, 1  ;;  %v12815_v40 = vmov 0 }
  0xd7   : > { %12805 = vst [vmem:[#allocation137_spill] sm:$0xff] %v12804_v54  ;;  %12809 = vst [vmem:[#allocation139_spill] sm:$0xff] %v6986_v57  ;;  %v6994_v50 = vsel %vm12812_vm3, %v12811_v41, %v12810_v21  ;;  %v12816_v40 = vsel %vm7004_vm7, 4294967295, %v12815_v40  ;;  %vm7010_vm3 = vcmp.eq.s32.totalorder %v502_v58, 1  ;;  %v12818_v41 = vmov 0  ;;  %v7047_v54 = vpop.permute.xlu0 %388  ;;  %v7049_v61 = vpop.permute.xlu1 %883 }
  0xd8   : > { %12813 = vst [vmem:[#allocation140_spill] sm:$0xff] %v6994_v50  ;;  %vm12814_vm10 = vmpackc.low %vm6780_vm14, %vm6844_vm8  ;;  %v12819_v41 = vsel %vm7010_vm3, 4294967295, %v12818_v41  ;;  %vm7014_vm12 = vcmp.eq.s32.totalorder %v698_v4, 1  ;;  %v12821_v21 = vmov 0  ;;  %v12826_v58 = vmov 0 }
  0xd9   : > { %4722 = vmatpush1.bf16.msk.msra.mxu1 %vm12814_vm10, %v6926_v29  ;;  %12817 = vst [vmem:[#allocation141_spill] sm:$0xff] %v12816_v40  ;;  %12820 = vst [vmem:[#allocation142_spill] sm:$0xff] %v12819_v41  ;;  %v12822_v21 = vsel %vm7014_vm12, 4294967295, %v12821_v21  ;;  %vm12824_vm10 = vcmp.lt.s32.totalorder %v5967_v16, 1  ;;  %vm7035_vm14 = vcmp.eq.s32.totalorder %v1999_v14, 1  ;;  %v12829_v4 = vmov 0 }
  0xda   : > { %12823 = vst [vmem:[#allocation143_spill] sm:$0xff] %v12822_v21  ;;  %v7024_v3 = vsel %vm12824_vm10, %v11785_v31, %v11784_v5  ;;  %4725 = vmatprep.subr.msk.bf16.mxu1 %vm6966_vm15, %v4724_v8  ;;  %vm7031_vm8 = vmpackc.low %vm6889_vm13, %vm12802_vm4  ;;  %v12830_v4 = vsel %vm7035_vm14, 4294967295, %v12829_v4  ;;  %v1347_v42 = vrot.slane %v5985_v32, %v5988_v33  ;;  %v12832_v31 = vld [vmem:[#allocation9_spill] sm:$0xff]  ;;  %v1603_v14 = vrot.slane %v6658_v11, %v6139_v39 }
  0xdb   : > { %12825 = vst [vmem:[#allocation144_spill] sm:$0xff] %v7024_v3  ;;  %v12827_v58 = vsel %vm7031_vm8, 4294967295, %v12826_v58  ;;  %12831 = vst [vmem:[#allocation146_spill] sm:$0xff] %v12830_v4  ;;  %v4727_v8 = vpack.c.bf16 %v6986_v57, %v12832_v31  ;;  %v1799_v5 = vrot.slane %v6663_v1, %v6139_v39  ;;  %v4730_v28 = vpack.c.bf16 %v439_v20, %v6986_v57  ;;  %v7120_v37 = vpop.permute.xlu0 %386  ;;  %v12966_v3 = vld [vmem:[#allocation64_spill] sm:$0xff] }
  0xdc   : > { %12828 = vst [vmem:[#allocation145_spill] sm:$0xff] %v12827_v58  ;;  %12833 = vst [vmem:[#allocation9_spill] sm:$0xff] %v7047_v54  ;;  %v440_v9 = vsel %vm12824_vm10, %v6669_v35, %v6578_v27  ;;  %v12835_v29 = vunpack.i.h.bf16 %v6671_v45  ;;  %vm12836_vm15 = vcmp.lt.s32.totalorder %v5967_v16, 127  ;;  %vm7071_vm13 = vcmp.eq.s32.totalorder %v1607_v47, 1 }
  0xdd   : > { %12834 = vst [vmem:[#allocation147_spill] sm:$0xff] %v7049_v61  ;;  %v12838_v61 = vmov 0  ;;  %vm7075_vm2 = vcmp.eq.s32.totalorder %v1803_v59, 1  ;;  %v12841_v1 = vmov 0  ;;  %v959_v20 = vrot.slane %v6081_v46, %v5965_v13  ;;  %4728 = vmatpush1.bf16.msk.msra.mxu1 %vm7031_vm8, %v4727_v8  ;;  %vm12845_vm10 = vmpackc.low %vm6913_vm9, %vm6893_vm11  ;;  %v12956_v8 = vld [vmem:[#allocation43_spill] sm:$0xff] }
  0xde   : > { %v7069_v17 = vsel %vm12836_vm15, %v12835_v29, %v6745_v55  ;;  %v12839_v61 = vsel %vm7071_vm13, 4294967295, %v12838_v61  ;;  %v12842_v1 = vsel %vm7075_vm2, 4294967295, %v12841_v1  ;;  %v1155_v27 = vrot.slane %v6006_v44, %v5965_v13  ;;  %4731 = vmatprep.subr.msk.bf16.mxu1 %vm12845_vm10, %v4730_v28  ;;  %12848 = vst [vmem:[#allocation152_spill] sm:$0xff] %v7120_v37 }
  0xdf   : > { %12837 = vst [vmem:[#allocation148_spill] sm:$0xff] %v7069_v17  ;;  %12840 = vst [vmem:[#allocation149_spill] sm:$0xff] %v12839_v61  ;;  %v1407_v29 = vrot.slane %v6680_v10, %v6017_v52  ;;  %v1403_v47 = vrot.slane %v6680_v10, %v6139_v39  ;;  %v1015_v59 = vrot.slane %v6732_v60, %v6017_v52  ;;  %vm7106_vm4 = vcmp.eq.s32.totalorder %v1347_v42, 1  ;;  %v7122_v42 = vpop.permute.xlu1 %5490  ;;  %v7203_v37 = vpop.permute.xlu0 %897 }
  0xe0   : > { %12843 = vst [vmem:[#allocation150_spill] sm:$0xff] %v12842_v1  ;;  %v7095_v57 = vsel %vm12836_vm15, %v6296_v56, %v6580_v24  ;;  %v1211_v58 = vrot.slane %v6787_v43, %v6017_v52  ;;  %v955_v56 = vrot.slane %v6081_v46, %v5988_v33  ;;  %v1151_v24 = vrot.slane %v6006_v44, %v5988_v33  ;;  %vm12860_vm15 = vmpackc.low %vm6948_vm5, %vm6944_vm6 }
  0xe1   : > { %12844 = vst [vmem:[#allocation151_spill] sm:$0xff] %v7095_v57  ;;  %v4733_v28 = vpack.c.bf16 %v440_v9, %v7095_v57  ;;  %v2115_v22 = vsel %vm6905_vm0, %v7069_v17, 0.0  ;;  %12849 = vst [vmem:[#allocation153_spill] sm:$0xff] %v7122_v42  ;;  %v2114_v55 = vsel %vm7035_vm14, %v6765_v49, 0.0  ;;  %vm7131_vm10 = vcmp.eq.s32.totalorder %v1603_v14, 1 }
  0xe2   : > { %v12850_v10 = vmov 0  ;;  %vm7135_vm8 = vcmp.eq.s32.totalorder %v1799_v5, 1  ;;  %v12853_v51 = vmov 0  ;;  %v12856_v17 = vunpack.i.h.bf16 %v6298_v36  ;;  %12878 = vst [vmem:[#allocation161_spill] sm:$0xff] %v7203_v37 }
  0xe3   : > { %v12851_v10 = vsel %vm7131_vm10, 4294967295, %v12850_v10  ;;  %v12854_v51 = vsel %vm7135_vm8, 4294967295, %v12853_v51  ;;  %vm12857_vm11 = vcmp.lt.s32.totalorder %v5967_v16, 1  ;;  %v7148_v4 = vpack.c.bf16 %v12832_v31, %v440_v9  ;;  %4734 = vmatpush1.bf16.msk.msra.mxu1 %vm12860_vm15, %v4733_v28  ;;  %vm12869_vm15 = vmpackc.low %vm6952_vm1, %vm7004_vm7  ;;  %v7205_v14 = vpop.permute.xlu1 %5495 }
  0xe4   : > { %12852 = vst [vmem:[#allocation154_spill] sm:$0xff] %v12851_v10  ;;  %12855 = vst [vmem:[#allocation155_spill] sm:$0xff] %v12854_v51  ;;  %v7145_v57 = vsel %vm12857_vm11, %v12856_v17, %v6669_v35  ;;  %vm7161_vm11 = vcmp.eq.s32.totalorder %v959_v20, 1  ;;  %v12861_v5 = vmov 0  ;;  %vm7165_vm14 = vcmp.eq.s32.totalorder %v1155_v27, 1  ;;  %v12997_v51 = vld [vmem:[#allocation13_spill] sm:$0xff] }
  0xe5   : > { %12858 = vst [vmem:[#allocation156_spill] sm:$0xff] %v7145_v57  ;;  %12859 = vst [vmem:[#allocation157_spill] sm:$0xff] %v7148_v4  ;;  %v12862_v5 = vsel %vm7161_vm11, 4294967295, %v12861_v5  ;;  %v12864_v36 = vmov 0  ;;  %vm7169_vm9 = vcmp.eq.s32.totalorder %v1407_v29, 1  ;;  %v1011_v35 = vrot.slane %v6732_v60, %v6139_v39  ;;  %4737 = vmatprep.subr.msk.bf16.mxu1 %vm12869_vm15, %v7148_v4  ;;  %v12904_v4 = vld [vmem:[#allocation11_spill] sm:$0xff] }
  0xe6   : > { %12863 = vst [vmem:[#allocation158_spill] sm:$0xff] %v12862_v5  ;;  %v12865_v36 = vsel %vm7165_vm14, 4294967295, %v12864_v36  ;;  %v1207_v31 = vrot.slane %v6787_v43, %v6139_v39  ;;  %v2275_v9 = vpack.c.bf16 %v2115_v22, %v2115_v22  ;;  %v2274_v20 = vpack.c.bf16 %v2114_v55, %v2114_v55  ;;  %v12876_v55 = vld [vmem:[#allocation6_spill] sm:$0xff]  ;;  %12879 = vst [vmem:[#allocation162_spill] sm:$0xff] %v7205_v14  ;;  %v13021_v5 = vld [vmem:[#allocation84_spill] sm:$0xff] }
  0xe7   : > { %12866 = vst [vmem:[#allocation159_spill] sm:$0xff] %v12865_v36  ;;  %vm7183_vm0 = vcmp.eq.s32.totalorder %v1403_v47, 1  ;;  %v466_v29 = vrot.slane %v6160_v2, %v5965_v13  ;;  %v662_v28 = vrot.slane %v6136_v34, %v5965_v13  ;;  %vm12872_vm6 = vcmp.ge.s32.totalorder %v6528_v63, 1  ;;  %v12937_v13 = vld [vmem:[#allocation82_spill] sm:$0xff] }
  0xe8   : > { %vm12873_vm5 = vcmp.le.s32.totalorder %v6523_v62, 30  ;;  %v7201_v47 = vpack.c.bf16 %v12876_v55, %v7145_v57  ;;  %vm7207_vm15 = vcmp.eq.s32.totalorder %v1015_v59, 1  ;;  %v12880_v40 = vmov 0 }
  0xe9   : > { %vm7195_vm14 = vmand %vm12873_vm5, %vm12872_vm6  ;;  %v12881_v40 = vsel %vm7207_vm15, 4294967295, %v12880_v40  ;;  %vm7211_vm7 = vcmp.eq.s32.totalorder %v1211_v58, 1  ;;  %v12883_v0 = vmov 0  ;;  %v522_v30 = vrot.slane %v6873_v12, %v6017_v52 }
  0xea   : > { %12877 = vst [vmem:[#allocation160_spill] sm:$0xff] %v7201_v47  ;;  %12882 = vst [vmem:[#allocation163_spill] sm:$0xff] %v12881_v40  ;;  %v12884_v0 = vsel %vm7211_vm7, 4294967295, %v12883_v0  ;;  %v718_v48 = vrot.slane %v6838_v19, %v6017_v52  ;;  %v12886_v57 = vunpack.i.h.bf16 %v7122_v42  ;;  %v12887_v55 = vunpack.i.l.bf16 %v7122_v42 }
  0xeb   : > { %12885 = vst [vmem:[#allocation164_spill] sm:$0xff] %v12884_v0  ;;  %vm12888_vm5 = vcmp.lt.s32.totalorder %v5967_v16, 127  ;;  %vm7229_vm6 = vcmp.eq.s32.totalorder %v955_v56, 1  ;;  %v12890_v43 = vmov 0  ;;  %vm7233_vm1 = vcmp.eq.s32.totalorder %v1151_v24, 1 }
  0xec   : > { %v7225_v59 = vsel %vm12888_vm5, %v12887_v55, %v12886_v57  ;;  %v12891_v43 = vsel %vm7229_vm6, 4294967295, %v12890_v43  ;;  %v12893_v60 = vmov 0  ;;  %v462_v37 = vrot.slane %v6160_v2, %v5988_v33  ;;  %vm12896_vm5 = vmpackc.low %vm7014_vm12, %vm7010_vm3 }
  0xed   : > { %12889 = vst [vmem:[#allocation165_spill] sm:$0xff] %v7225_v59  ;;  %12892 = vst [vmem:[#allocation166_spill] sm:$0xff] %v12891_v43  ;;  %v12894_v60 = vsel %vm7233_vm1, 4294967295, %v12893_v60  ;;  %4740 = vmatpush1.bf16.msk.msra.mxu1 %vm12896_vm5, %v7201_v47  ;;  %vm7245_vm7 = vcmp.eq.s32.totalorder %v1011_v35, 1  ;;  %v12897_v57 = vmov 0  ;;  %vm7249_vm15 = vcmp.eq.s32.totalorder %v1207_v31, 1 }
  0xee   : > { %12895 = vst [vmem:[#allocation167_spill] sm:$0xff] %v12894_v60  ;;  %v12898_v57 = vsel %vm7245_vm7, 4294967295, %v12897_v57  ;;  %v12900_v56 = vmov 0  ;;  %v658_v24 = vrot.slane %v6136_v34, %v5988_v33  ;;  %v518_v55 = vrot.slane %v6873_v12, %v6139_v39  ;;  %v12941_v33 = vld [vmem:[#allocation10_spill] sm:$0xff]  ;;  %v13113_v43 = vld [vmem:[#allocation53_spill] sm:$0xff] }
  0xef   : > { %12899 = vst [vmem:[#allocation168_spill] sm:$0xff] %v12898_v57  ;;  %v12901_v56 = vsel %vm7249_vm15, 4294967295, %v12900_v56  ;;  %v2015_v58 = vrot.slane %v6727_v15, %v5956_v6  ;;  %v7262_v35 = vsel %vm7195_vm14, 1, %v12527_v38  ;;  %v7266_v31 = vpack.c.bf16 %v12904_v4, %v6795_v23 }
  0xf0   : > { %12902 = vst [vmem:[#allocation169_spill] sm:$0xff] %v12901_v56  ;;  %12903 = vst [vmem:[#allocation170_spill] sm:$0xff] %v7262_v35  ;;  %v12906_v41 = vunpack.i.h.bf16 %v7205_v14  ;;  %v12907_v21 = vunpack.i.l.bf16 %v7205_v14  ;;  %vm12908_vm5 = vcmp.lt.s32.totalorder %v5967_v16, 1  ;;  %vm12910_vm3 = vcmask 1043456   ;;  %v12929_v14 = vld [vmem:[#allocation33_spill] sm:$0xff] }
  0xf1   : > { %12905 = vst [vmem:[#allocation171_spill] sm:$0xff] %v7266_v31  ;;  %4768 = vmatprep.subr.msk.bf16.mxu1 %vm12910_vm3, %v2275_v9  ;;  %vm12911_vm12 = vmmov %vm12910_vm3  ;;  %vm7278_vm15 = vcmp.eq.s32.totalorder %v466_v29, 1  ;;  %v12912_v22 = vmov 0  ;;  %vm7282_vm14 = vcmp.eq.s32.totalorder %v662_v28, 1  ;;  %v12915_v42 = vmov 0  ;;  %v7295_v9 = vpop.permute.xlu1 %5505 }
  0xf2   : > { %v7274_v47 = vsel %vm12908_vm5, %v12907_v21, %v12906_v41  ;;  %v2347_v12 = vsel %vm12911_vm12, %v2274_v20, 0  ;;  %v12913_v22 = vsel %vm7278_vm15, 4294967295, %v12912_v22  ;;  %v12916_v42 = vsel %vm7282_vm14, 4294967295, %v12915_v42  ;;  %v7293_v21 = vpop.permute.xlu0 %5500  ;;  %12921 = vst [vmem:[#allocation177_spill] sm:$0xff] %v7295_v9  ;;  %v12928_v41 = vld [vmem:[#allocation31_spill] sm:$0xff] }
  0xf3   : > { %12909 = vst [vmem:[#allocation172_spill] sm:$0xff] %v7274_v47  ;;  %12914 = vst [vmem:[#allocation173_spill] sm:$0xff] %v12913_v22  ;;  %vm12918_vm7 = vcmp.le.s32.totalorder %v6523_v62, 30  ;;  %vm7301_vm3 = vcmp.eq.s32.totalorder %v522_v30, 1  ;;  %v12922_v20 = vmov 0  ;;  %vm7305_vm5 = vcmp.eq.s32.totalorder %v718_v48, 1 }
  0xf4   : > { %12917 = vst [vmem:[#allocation174_spill] sm:$0xff] %v12916_v42  ;;  %v7289_v23 = vsel %vm12918_vm7, 1, %v12527_v38  ;;  %12920 = vst [vmem:[#allocation176_spill] sm:$0xff] %v7293_v21  ;;  %v12923_v20 = vsel %vm7301_vm3, 4294967295, %v12922_v20  ;;  %v12925_v29 = vmov 0  ;;  %v714_v28 = vrot.slane %v6838_v19, %v6139_v39  ;;  %v12932_v48 = vld [vmem:[#allocation28_spill] sm:$0xff] }
  0xf5   : > { %12919 = vst [vmem:[#allocation175_spill] sm:$0xff] %v7289_v23  ;;  %12924 = vst [vmem:[#allocation178_spill] sm:$0xff] %v12923_v20  ;;  %v12926_v29 = vsel %vm7305_vm5, 4294967295, %v12925_v29  ;;  %v1567_v4 = vrot.slane %v12928_v41, %v6114_v25  ;;  %v1763_v21 = vrot.slane %v12929_v14, %v6114_v25  ;;  %v12930_v47 = vunpack.i.l.bf16 %v6747_v18  ;;  %v13103_v22 = vld [vmem:[#allocation8_spill] sm:$0xff] }
  0xf6   : > { %12927 = vst [vmem:[#allocation179_spill] sm:$0xff] %v12926_v29  ;;  %vm12931_vm7 = vcmp.lt.s32.totalorder %v5967_v16, 1  ;;  %v12933_v59 = vrot.slane %v6727_v15, %v12932_v48  ;;  %v12934_v11 = vmov 0  ;;  %vm12938_vm5 = vcmask 588800  }
  0xf7   : > { %v7320_v30 = vsel %vm12931_vm7, %v6825_v53, %v12930_v47  ;;  %4741 = vmatmul.mubr.msk.bf16.vlgmr.msra.gmra.mxu1 %vm12938_vm5, %v12937_v13  ;;  %v1623_v18 = vrot.slane %v7262_v35, %v12932_v48  ;;  %vm12939_vm3 = vcmp.le.s32.totalorder %v6528_v63, 30  ;;  %vm12943_vm7 = vmmov 1  }
  0xf8   : > { %vm7325_vm12 = vcmp.eq.s32.totalorder %v12933_v59, 1  ;;  %v7337_v47 = vsel %vm12939_vm3, 1, %v12527_v38  ;;  %v7341_v39 = vpack.c.bf16 %v12941_v33, %v7320_v30  ;;  %2694 = vmatpush1.bf16.msra.mxu1 %v2347_v12  ;;  %v12944_v59 = vmov 0  ;;  %2719 = vmatprep.mubr.bf16.mxu1 %v12527_v38 }
  0xf9   : > { %v12935_v11 = vsel %vm7325_vm12, 4294967295, %v12934_v11  ;;  %12940 = vst [vmem:[#allocation33_spill] sm:$0xff] %v7337_v47  ;;  %vm7346_vm12 = vmpackc.low %vm7106_vm4, %vm12943_vm7  ;;  %vm7350_vm5 = vcmp.eq.s32.totalorder %v462_v37, 1  ;;  %v12947_v19 = vmov 0  ;;  %vm7354_vm14 = vcmp.eq.s32.totalorder %v658_v24, 1  ;;  %v12957_v37 = vld [vmem:[#allocation30_spill] sm:$0xff] }
  0xfa   : > { %12936 = vst [vmem:[#allocation31_spill] sm:$0xff] %v12935_v11  ;;  %12942 = vst [vmem:[#allocation28_spill] sm:$0xff] %v7341_v39  ;;  %v12945_v59 = vsel %vm7346_vm12, 4294967295, %v12944_v59  ;;  %v12948_v19 = vsel %vm7350_vm5, 4294967295, %v12947_v19  ;;  %v12950_v13 = vmov 0  ;;  %vm7359_vm3 = vcmp.eq.s32.totalorder %v2015_v58, 1 }
  0xfb   : > { %12946 = vst [vmem:[#allocation10_spill] sm:$0xff] %v12945_v59  ;;  %12949 = vst [vmem:[#allocation180_spill] sm:$0xff] %v12948_v19  ;;  %v12951_v13 = vsel %vm7354_vm14, 4294967295, %v12950_v13  ;;  %v12953_v52 = vmov 0  ;;  %v1819_v12 = vrot.slane %v7289_v23, %v12932_v48  ;;  %v1563_v15 = vrot.slane %v12928_v41, %v12956_v8 }
  0xfc   : > { %12952 = vst [vmem:[#allocation181_spill] sm:$0xff] %v12951_v13  ;;  %v12954_v52 = vsel %vm7359_vm3, 4294967295, %v12953_v52  ;;  %v12958_v54 = vrot.slane %v12957_v37, %v12956_v8  ;;  %v12959_v24 = vmov 0  ;;  %v12962_v26 = vrot.slane %v12957_v37, %v6114_v25 }
  0xfd   : > { %12955 = vst [vmem:[#allocation182_spill] sm:$0xff] %v12954_v52  ;;  %v12963_v58 = vmov 0  ;;  %v12967_v34 = vunpack.i.h.bf16 %v7295_v9  ;;  %vm12968_vm5 = vcmp.lt.s32.totalorder %v5967_v16, 127  ;;  %v12972_v37 = vmov 0 }
  0xfe   : > { %vm7370_vm4 = vcmp.eq.s32.totalorder %v12958_v54, 1  ;;  %vm7377_vm14 = vcmp.eq.s32.totalorder %v12962_v26, 1  ;;  %v1759_v26 = vrot.slane %v12929_v14, %v12956_v8  ;;  %v1619_v54 = vrot.slane %v7262_v35, %v5956_v6  ;;  %v12983_v35 = vld [vmem:[#allocation121_spill] sm:$0xff] }
  0xff   : > { %v12960_v24 = vsel %vm7370_vm4, 4294967295, %v12959_v24  ;;  %v12964_v58 = vsel %vm7377_vm14, 4294967295, %v12963_v58  ;;  %v7386_v41 = vsel %vm12968_vm5, %v12967_v34, %v12966_v3  ;;  %vm12970_vm4 = vmpackc.low %vm7075_vm2, %vm7071_vm13  ;;  %v1815_v34 = vrot.slane %v7289_v23, %v5956_v6  ;;  %v7404_v3 = vpop.permute.xlu0 %5510  ;;  %v7425_v23 = vpop.permute.xlu1 %5515 }
 0x100   : > { %12961 = vst [vmem:[#allocation43_spill] sm:$0xff] %v12960_v24  ;;  %12965 = vst [vmem:[#allocation30_spill] sm:$0xff] %v12964_v58  ;;  %4771 = vmatprep.subr.msk.bf16.mxu1 %vm12970_vm4, %v7266_v31  ;;  %vm7413_vm4 = vcmp.eq.s32.totalorder %v518_v55, 1  ;;  %v12975_v61 = vmov 0  ;;  %vm7417_vm3 = vcmp.eq.s32.totalorder %v714_v28, 1  ;;  %v12978_v14 = vmov 0 }
 0x101   : > { %12969 = vst [vmem:[#allocation64_spill] sm:$0xff] %v7386_v41  ;;  %12971 = vst [vmem:[#allocation183_spill] sm:$0xff] %v7404_v3  ;;  %v12976_v61 = vsel %vm7413_vm4, 4294967295, %v12975_v61  ;;  %v12979_v14 = vsel %vm7417_vm3, 4294967295, %v12978_v14  ;;  %v1367_v1 = vrot.slane %v5985_v32, %v6114_v25  ;;  %v12982_v55 = vunpack.i.l.bf16 %v6671_v45 }
 0x102   : > { %vm7409_vm5 = vmpackc.low %vm7169_vm9, %vm12943_vm7  ;;  %12977 = vst [vmem:[#allocation185_spill] sm:$0xff] %v12976_v61  ;;  %vm12984_vm13 = vcmp.lt.s32.totalorder %v5967_v16, 127  ;;  %vm12986_vm2 = vnez %v12865_v36  ;;  %v4776_v31 = vpack.c.bf16 %v6765_v49, %v12941_v33  ;;  %vm12987_vm9 = vcmp.ge.s32.totalorder %v6528_v63, 1  ;;  %v12991_v33 = vld [vmem:[#allocation67_spill] sm:$0xff] }
 0x103   : > { %v12973_v37 = vsel %vm7409_vm5, 4294967295, %v12972_v37  ;;  %12980 = vst [vmem:[#allocation186_spill] sm:$0xff] %v12979_v14  ;;  %12981 = vst [vmem:[#allocation187_spill] sm:$0xff] %v7425_v23  ;;  %v7435_v28 = vsel %vm12984_vm13, %v12983_v35, %v12982_v55  ;;  %v7448_v45 = vsel %vm12987_vm9, 1, %v12527_v38  ;;  %v5512_v2 = vunpack.i.l.bf16 %v7404_v3  ;;  %v12989_v55 = vld [vmem:[#allocation4_spill] sm:$0xff]  ;;  %v12998_v61 = vld [vmem:[#allocation127_spill] sm:$0xff] }
 0x104   : > { %12974 = vst [vmem:[#allocation184_spill] sm:$0xff] %v12973_v37  ;;  %12985 = vst [vmem:[#allocation121_spill] sm:$0xff] %v7435_v28  ;;  %v4597_v14 = vpack.c.bf16 %v7386_v41, %v12989_v55  ;;  %v4600_v17 = vpack.c.bf16 %v12991_v33, %v7386_v41  ;;  %v12992_v49 = vmov 0  ;;  %vm12996_vm3 = vnez %v12884_v0  ;;  %v7489_v37 = vpop.permute.xlu0 %5520  ;;  %v7505_v33 = vpop.permute.xlu1 %5525  ;;  %v13024_v36 = vld [vmem:[#allocation55_spill] sm:$0xff] }
 0x105   : > { %12988 = vst [vmem:[#allocation188_spill] sm:$0xff] %v7448_v45  ;;  %vm12990_vm13 = vmpackc.low %vm7135_vm8, %vm7131_vm10  ;;  %v4779_v6 = vpack.c.bf16 %v7435_v28, %v12997_v51  ;;  %v13001_v10 = vmov 0  ;;  %vm7499_vm8 = vcmp.eq.s32.totalorder %v1763_v21, 1  ;;  %v13004_v27 = vmov 0 }
 0x106   : > { %4774 = vmatpush1.bf16.msk.msra.mxu1 %vm12990_vm13, %v7341_v39  ;;  %vm7464_vm9 = vmpackc.low %vm7183_vm0, %vm12943_vm7  ;;  %vm12995_vm13 = vnez %v12881_v40  ;;  %vm12999_vm0 = vcmp.lt.s32.totalorder %v5967_v16, 1  ;;  %4598 = vmatpush1.bf16.msk.msra.mxu0 %vm7346_vm12, %v4597_v14  ;;  %13000 = vst [vmem:[#allocation67_spill] sm:$0xff] %v7489_v37  ;;  %v13005_v27 = vsel %vm7499_vm8, 4294967295, %v13004_v27  ;;  %v4782_v59 = vpack.c.bf16 %v7320_v30, %v7435_v28  ;;  %v13008_v39 = vld [vmem:[#allocation135_spill] sm:$0xff]  ;;  %v13064_v40 = vld [vmem:[#allocation85_spill] sm:$0xff] }
 0x107   : > { %v12993_v49 = vsel %vm7464_vm9, 4294967295, %v12992_v49  ;;  %4777 = vmatprep.subr.msk.bf16.mxu1 %vm7409_vm5, %v4776_v31  ;;  %v436_v31 = vsel %vm12999_vm0, %v12998_v61, %v6825_v53  ;;  %vm7495_vm5 = vcmp.eq.s32.totalorder %v1567_v4, 1  ;;  %13006 = vst [vmem:[#allocation127_spill] sm:$0xff] %v13005_v27  ;;  %13007 = vst [vmem:[#allocation189_spill] sm:$0xff] %v7505_v33  ;;  %v13009_v4 = vunpack.i.h.bf16 %v6879_v7 }
 0x108   : > { %12994 = vst [vmem:[#allocation4_spill] sm:$0xff] %v12993_v49  ;;  %v13002_v10 = vsel %vm7495_vm5, 4294967295, %v13001_v10  ;;  %vm13010_vm0 = vcmp.lt.s32.totalorder %v5967_v16, 127  ;;  %vm13012_vm10 = vmpackc.low %vm12986_vm2, %vm7161_vm11  ;;  %v5523_v53 = vunpack.i.h.bf16 %v7489_v37  ;;  %vm13013_vm12 = vnez %v12898_v57 }
 0x109   : > { %13003 = vst [vmem:[#allocation13_spill] sm:$0xff] %v13002_v10  ;;  %v7516_v21 = vsel %vm13010_vm0, %v13009_v4, %v13008_v39  ;;  %4601 = vmatprep.subr.msk.bf16.mxu0 %vm13012_vm10, %v4600_v17  ;;  %vm13014_vm7 = vnez %v12901_v56  ;;  %vm7528_vm5 = vcmp.eq.s32.totalorder %v1623_v18, 1  ;;  %v13015_v30 = vmov 0  ;;  %vm13022_vm10 = vmmov %vm13010_vm0 }
 0x10a   : > { %13011 = vst [vmem:[#allocation190_spill] sm:$0xff] %v7516_v21  ;;  %v13016_v30 = vsel %vm7528_vm5, 4294967295, %v13015_v30  ;;  %vm7532_vm4 = vcmp.eq.s32.totalorder %v1819_v12, 1  ;;  %v13018_v4 = vmov 0  ;;  %v7541_v17 = vsel %vm13022_vm10, %v13021_v5, %v12983_v35  ;;  %4780 = vmatpush1.bf16.msk.msra.mxu1 %vm7464_vm9, %v4779_v6  ;;  %vm13040_vm11 = vmmov %vm13022_vm10 }
 0x10b   : > { %13017 = vst [vmem:[#allocation191_spill] sm:$0xff] %v13016_v30  ;;  %v13019_v4 = vsel %vm7532_vm4, 4294967295, %v13018_v4  ;;  %13023 = vst [vmem:[#allocation84_spill] sm:$0xff] %v7541_v17  ;;  %v13025_v41 = vunpack.i.h.bf16 %v13024_v36  ;;  %vm13026_vm0 = vcmp.lt.s32.totalorder %v5967_v16, 1  ;;  %vm13027_vm8 = vnez %v12916_v42 }
 0x10c   : > { %13020 = vst [vmem:[#allocation192_spill] sm:$0xff] %v13019_v4  ;;  %vm7553_vm2 = vcmp.eq.s32.totalorder %v1563_v15, 1  ;;  %v13028_v12 = vmov 0  ;;  %vm7557_vm4 = vcmp.eq.s32.totalorder %v1759_v26, 1  ;;  %v13031_v5 = vmov 0 }
 0x10d   : > { %v450_v18 = vsel %vm13026_vm0, %v5512_v2, %v13025_v41  ;;  %v13029_v12 = vsel %vm7553_vm2, 4294967295, %v13028_v12  ;;  %v13032_v5 = vsel %vm7557_vm4, 4294967295, %v13031_v5  ;;  %v13034_v36 = vunpack.i.h.bf16 %v7425_v23 }
 0x10e   : > { %13030 = vst [vmem:[#allocation55_spill] sm:$0xff] %v13029_v12  ;;  %13033 = vst [vmem:[#allocation193_spill] sm:$0xff] %v13032_v5  ;;  %v13035_v35 = vunpack.i.l.bf16 %v7425_v23  ;;  %v4785_v14 = vpack.c.bf16 %v436_v31, %v7541_v17  ;;  %v13037_v15 = vunpack.i.h.bf16 %v7404_v3  ;;  %v13039_v49 = vunpack.i.h.bf16 %v7295_v9  ;;  %v13184_v17 = vld [vmem:[#allocation32_spill] sm:$0xff]  ;;  %v13219_v23 = vld [vmem:[#allocation3_spill] sm:$0xff] }
 0x10f   : > { %vm13043_vm9 = vnez %v12923_v20  ;;  %vm13044_vm4 = vnez %v12926_v29  ;;  %vm7592_vm5 = vcmp.eq.s32.totalorder %v1619_v54, 1  ;;  %vm7609_vm2 = vcmp.eq.s32.totalorder %v1367_v1, 1  ;;  %v7629_v1 = vpop.permute.xlu1 %899  ;;  %v13102_v20 = vld [vmem:[#allocation59_spill] sm:$0xff] }
 0x110   : > { %v7567_v6 = vsel %vm13022_vm10, %v13035_v35, %v13034_v36  ;;  %v7575_v26 = vsel %vm13026_vm0, %v13037_v15, %v5512_v2  ;;  %v7581_v28 = vsel %vm13040_vm11, %v5523_v53, %v13039_v49  ;;  %vm13042_vm10 = vmpackc.low %vm12996_vm3, %vm12995_vm13  ;;  %v13045_v2 = vmov 0  ;;  %13063 = vst [vmem:[#allocation200_spill] sm:$0xff] %v7629_v1 }
 0x111   : > { %13036 = vst [vmem:[#allocation194_spill] sm:$0xff] %v7567_v6  ;;  %13038 = vst [vmem:[#allocation195_spill] sm:$0xff] %v7575_v26  ;;  %4783 = vmatprep.subr.msk.bf16.mxu1 %vm13042_vm10, %v4782_v59  ;;  %v13046_v2 = vsel %vm7592_vm5, 4294967295, %v13045_v2  ;;  %vm7596_vm0 = vcmp.eq.s32.totalorder %v1815_v34, 1  ;;  %v13048_v36 = vmov 0  ;;  %v1167_v49 = vrot.slane %v6006_v44, %v12956_v8 }
 0x112   : > { %13041 = vst [vmem:[#allocation196_spill] sm:$0xff] %v7581_v28  ;;  %13047 = vst [vmem:[#allocation197_spill] sm:$0xff] %v13046_v2  ;;  %v13049_v36 = vsel %vm7596_vm0, 4294967295, %v13048_v36  ;;  %vm13051_vm11 = vnez %v12935_v11  ;;  %v4603_v35 = vpack.c.bf16 %v450_v18, %v7581_v28  ;;  %vm13052_vm10 = vnez %v12954_v52 }
 0x113   : > { %13050 = vst [vmem:[#allocation198_spill] sm:$0xff] %v13049_v36  ;;  %v2119_v59 = vsel %vm13051_vm11, %v7516_v21, 0.0  ;;  %v2118_v54 = vsel %vm13052_vm10, %v6994_v50, 0.0  ;;  %v13053_v15 = vmov 0  ;;  %vm13055_vm13 = vcmp.le.s32.totalorder %v6528_v63, 30 }
 0x114   : > { %v13054_v15 = vsel %vm7609_vm2, 4294967295, %v13053_v15  ;;  %vm13056_vm3 = vcmp.ge.s32.totalorder %v6523_v62, 1  ;;  %v13059_v41 = vunpack.i.h.bf16 %v7505_v33  ;;  %v13060_v11 = vunpack.i.l.bf16 %v7505_v33 }
 0x115   : > { %vm7617_vm0 = vmand %vm13056_vm3, %vm13055_vm13  ;;  %vm13061_vm11 = vcmp.lt.s32.totalorder %v5967_v16, 1  ;;  %v13065_v0 = vunpack.i.h.bf16 %v13064_v40  ;;  %v7639_v3 = vpack.c.bf16 %v12997_v51, %v436_v31  ;;  %v7642_v28 = vpack.c.bf16 %v12989_v55, %v450_v18  ;;  %v13075_v51 = vld [vmem:[#allocation106_spill] sm:$0xff]  ;;  %v13078_v18 = vld [vmem:[#allocation23_spill] sm:$0xff] }
 0x116   : > { %v7627_v52 = vsel %vm13061_vm11, %v13060_v11, %v13059_v41  ;;  %vm13066_vm10 = vmmov %vm13061_vm11  ;;  %vm13071_vm13 = vnez %v12951_v13  ;;  %v13072_v11 = vrot.slane %v7337_v47, %v12932_v48  ;;  %v13073_v40 = vmov 0  ;;  %v13077_v55 = vld [vmem:[#allocation94_spill] sm:$0xff] }
 0x117   : > { %13062 = vst [vmem:[#allocation199_spill] sm:$0xff] %v7627_v52  ;;  %v7636_v21 = vsel %vm13066_vm10, %v13065_v0, %v12998_v61  ;;  %13068 = vst [vmem:[#allocation201_spill] sm:$0xff] %v7639_v3  ;;  %vm13076_vm10 = vnez %v12960_v24  ;;  %v2105_v31 = vsel %vm7377_vm14, %v13077_v55, 0.0  ;;  %v7665_v41 = vpack.c.bf16 %v13078_v18, %v7575_v26  ;;  %v7749_v18 = vpop.permute.xlu1 %907  ;;  %v13167_v26 = vld [vmem:[#allocation14_spill] sm:$0xff]  ;;  %v13178_v52 = vld [vmem:[#allocation77_spill] sm:$0xff] }
 0x118   : > { %13067 = vst [vmem:[#allocation85_spill] sm:$0xff] %v7636_v21  ;;  %13069 = vst [vmem:[#allocation202_spill] sm:$0xff] %v7642_v28  ;;  %vm7651_vm2 = vcmp.eq.s32.totalorder %v13072_v11, 1  ;;  %v2104_v61 = vsel %vm13076_vm10, %v13075_v51, 0.0  ;;  %v13082_v11 = vrot.slane %v5985_v32, %v12956_v8  ;;  %vm13085_vm14 = vcmp.ge.s32.totalorder %v6528_v63, 1  ;;  %v13093_v32 = vld [vmem:[#allocation185_spill] sm:$0xff] }
 0x119   : > { %v13074_v40 = vsel %vm7651_vm2, 4294967295, %v13073_v40  ;;  %13079 = vst [vmem:[#allocation106_spill] sm:$0xff] %v7665_v41  ;;  %vm13080_vm11 = vmpackc.low %vm7233_vm1, %vm7229_vm6  ;;  %vm13086_vm5 = vcmp.ge.s32.totalorder %v6523_v62, 1  ;;  %v13095_v62 = vld [vmem:[#allocation186_spill] sm:$0xff]  ;;  %v2278_v63 = vpack.c.bf16 %v2118_v54, %v2118_v54  ;;  %v7723_v29 = vsel %vm7617_vm0, 1, %v12527_v38 }
 0x11a   : > { %4604 = vmatpush1.bf16.msk.msra.mxu0 %vm13080_vm11, %v4603_v35  ;;  %vm13081_vm2 = vmpackc.low %vm13014_vm7, %vm13013_vm12  ;;  %vm7680_vm10 = vcmp.eq.s32.totalorder %v13082_v11, 1  ;;  %v482_v56 = vrot.slane %v13102_v20, %v6114_v25  ;;  %v7729_v42 = vpack.c.bf16 %v13103_v22, %v7636_v21  ;;  %v13105_v54 = vrot.slane %v6081_v46, %v6114_v25  ;;  %13114 = vst [vmem:[#allocation53_spill] sm:$0xff] %v7749_v18 }
 0x11b   : > { %4786 = vmatpush1.bf16.msk.msra.mxu1 %vm13081_vm2, %v4785_v14  ;;  %vm7688_vm3 = vmand %vm13086_vm5, %vm13085_vm14  ;;  %v2279_v14 = vpack.c.bf16 %v2119_v59, %v2119_v59  ;;  %v13097_v59 = vld [vmem:[#allocation29_spill] sm:$0xff]  ;;  %v13109_v24 = vrot.slane %v6006_v44, %v6114_v25  ;;  %v13110_v34 = vmov 0  ;;  %v678_v60 = vrot.slane %v13113_v43, %v6114_v25 }
 0x11c   : > { %vm13089_vm11 = vmmov %vm13086_vm5  ;;  %vm13094_vm5 = vnez %v13093_v32  ;;  %v13098_v11 = vrot.slane %v7337_v47, %v13097_v59  ;;  %13101 = vst [vmem:[#allocation29_spill] sm:$0xff] %v7723_v29  ;;  %v1223_v58 = vrot.slane %v7448_v45, %v13097_v59  ;;  %v13115_v21 = vrot.slane %v7448_v45, %v12932_v48  ;;  %v13132_v32 = vld [vmem:[#allocation144_spill] sm:$0xff] }
 0x11d   : > { %v7695_v35 = vsel %vm13089_vm11, 1, %v12527_v38  ;;  %vm13091_vm2 = vmpackc.low %vm13027_vm8, %vm7278_vm15  ;;  %vm13096_vm11 = vnez %v13095_v62  ;;  %13104 = vst [vmem:[#allocation59_spill] sm:$0xff] %v7729_v42  ;;  %v13116_v1 = vmov 0  ;;  %v7761_v44 = vsel %vm7688_vm3, 1, %v12527_v38  ;;  %v13133_v62 = vld [vmem:[#allocation15_spill] sm:$0xff] }
 0x11e   : > { %13090 = vst [vmem:[#allocation94_spill] sm:$0xff] %v7695_v35  ;;  %4607 = vmatprep.subr.msk.bf16.mxu0 %vm13091_vm2, %v7642_v28  ;;  %vm13092_vm14 = vmpackc.low %vm13044_vm4, %vm13043_vm9  ;;  %vm7716_vm7 = vcmp.eq.s32.totalorder %v13098_v11, 1  ;;  %vm7734_vm2 = vcmp.eq.s32.totalorder %v13105_v54, 1  ;;  %v13106_v11 = vmov 0  ;;  %v2264_v28 = vpack.c.bf16 %v2104_v61, %v2104_v61 }
 0x11f   : > { %4789 = vmatprep.subr.msk.bf16.mxu1 %vm13092_vm14, %v7639_v3  ;;  %v13107_v11 = vsel %vm7734_vm2, 4294967295, %v13106_v11  ;;  %vm7741_vm14 = vcmp.eq.s32.totalorder %v13109_v24, 1  ;;  %v2265_v54 = vpack.c.bf16 %v2105_v31, %v2105_v31  ;;  %vm7754_vm0 = vcmp.eq.s32.totalorder %v13115_v21, 1  ;;  %13119 = vst [vmem:[#allocation206_spill] sm:$0xff] %v7761_v44  ;;  %vm13124_vm15 = vmpackc.low %vm13096_vm11, %vm13094_vm5 }
 0x120   : > { %13108 = vst [vmem:[#allocation203_spill] sm:$0xff] %v13107_v11  ;;  %v13111_v34 = vsel %vm7741_vm14, 4294967295, %v13110_v34  ;;  %v13117_v1 = vsel %vm7754_vm0, 4294967295, %v13116_v1  ;;  %vm13120_vm12 = vcmp.lt.s32.totalorder %v5967_v16, 127  ;;  %vm13122_vm9 = vnez %v12948_v19  ;;  %4792 = vmatpush1.bf16.msk.msra.mxu1 %vm13124_vm15, %v7729_v42  ;;  %v13153_v42 = vld [vmem:[#allocation38_spill] sm:$0xff] }
 0x121   : > { %13112 = vst [vmem:[#allocation204_spill] sm:$0xff] %v13111_v34  ;;  %13118 = vst [vmem:[#allocation205_spill] sm:$0xff] %v13117_v1  ;;  %v7766_v24 = vsel %vm13120_vm12, %v7749_v18, %v5523_v53  ;;  %v1031_v21 = vrot.slane %v7723_v29, %v12932_v48  ;;  %v13125_v53 = vrot.slane %v6081_v46, %v12956_v8  ;;  %v13126_v0 = vmov 0  ;;  %v13150_v18 = vld [vmem:[#allocation9_spill] sm:$0xff] }
 0x122   : > { %13121 = vst [vmem:[#allocation207_spill] sm:$0xff] %v7766_v24  ;;  %vm13123_vm4 = vmpackc.low %vm13071_vm13, %vm13122_vm9  ;;  %vm7789_vm3 = vcmp.eq.s32.totalorder %v1167_v49, 1  ;;  %v13129_v61 = vmov 0  ;;  %v734_v31 = vrot.slane %v7695_v35, %v12932_v48  ;;  %v7797_v19 = vpack.c.bf16 %v13133_v62, %v13132_v32  ;;  %v13148_v32 = vld [vmem:[#allocation136_spill] sm:$0xff] }
 0x123   : > { %4610 = vmatpush1.bf16.msk.msra.mxu0 %vm13123_vm4, %v7665_v41  ;;  %vm7785_vm12 = vcmp.eq.s32.totalorder %v13125_v53, 1  ;;  %v13130_v61 = vsel %vm7789_vm3, 4294967295, %v13129_v61  ;;  %vm13135_vm15 = vcmask 1043456   ;;  %vm13138_vm11 = vnez %v13002_v10  ;;  %v13152_v41 = vld [vmem:[#allocation107_spill] sm:$0xff]  ;;  %v13204_v10 = vld [vmem:[#allocation102_spill] sm:$0xff] }
 0x124   : > { %v13127_v0 = vsel %vm7785_vm12, 4294967295, %v13126_v0  ;;  %13131 = vst [vmem:[#allocation209_spill] sm:$0xff] %v13130_v61  ;;  %13134 = vst [vmem:[#allocation210_spill] sm:$0xff] %v7797_v19  ;;  %4638 = vmatprep.subr.msk.bf16.mxu0 %vm13135_vm15, %v2265_v54  ;;  %vm13139_vm9 = vnez %v13005_v27  ;;  %v1027_v49 = vrot.slane %v7723_v29, %v13097_v59  ;;  %vm7808_vm8 = vcmp.eq.s32.totalorder %v482_v56, 1 }
 0x125   : > { %13128 = vst [vmem:[#allocation208_spill] sm:$0xff] %v13127_v0  ;;  %vm13136_vm4 = vmmov %vm13135_vm15  ;;  %v13140_v53 = vmov 0  ;;  %v478_v13 = vrot.slane %v13102_v20, %v12956_v8  ;;  %vm13143_vm15 = vnez %v13016_v30  ;;  %vm7818_vm6 = vcmp.eq.s32.totalorder %v1223_v58, 1 }
 0x126   : > { %4820 = vmatprep.subr.msk.bf16.mxu1 %vm13136_vm4, %v2279_v14  ;;  %vm13137_vm5 = vmmov %vm13136_vm4  ;;  %v13141_v53 = vsel %vm7808_vm8, 4294967295, %v13140_v53  ;;  %vm13144_vm4 = vnez %v13019_v4  ;;  %v13145_v14 = vmov 0  ;;  %v674_v56 = vrot.slane %v13113_v43, %v12956_v8  ;;  %v13158_v43 = vld [vmem:[#allocation82_spill] sm:$0xff]  ;;  %v13203_v4 = vld [vmem:[#allocation101_spill] sm:$0xff] }
 0x127   : > { %v2359_v46 = vsel %vm13137_vm5, %v2278_v63, 0  ;;  %13142 = vst [vmem:[#allocation211_spill] sm:$0xff] %v13141_v53  ;;  %v13146_v14 = vsel %vm7818_vm6, 4294967295, %v13145_v14  ;;  %v538_v63 = vrot.slane %v7761_v44, %v12932_v48  ;;  %v730_v54 = vrot.slane %v7695_v35, %v13097_v59 }
 0x128   : > { %13147 = vst [vmem:[#allocation212_spill] sm:$0xff] %v13146_v14  ;;  %v13149_v62 = vunpack.i.l.bf16 %v13148_v32  ;;  %vm13151_vm5 = vcmp.lt.s32.totalorder %v5967_v16, 1  ;;  %v13154_v22 = vrot.slane %v13152_v41, %v13153_v42  ;;  %v13155_v3 = vmov 0  ;;  %v13179_v32 = vld [vmem:[#allocation34_spill] sm:$0xff] }
 0x129   : > { %vm13159_vm1 = vcmask 588800   ;;  %vm13161_vm8 = vcmask 1043456   ;;  %vm13162_vm3 = vnez %v13029_v12  ;;  %vm7853_vm0 = vcmp.eq.s32.totalorder %v678_v60, 1 }
 0x12a   : > { %v7835_v58 = vsel %vm13151_vm5, %v13150_v18, %v13149_v62  ;;  %vm7840_vm13 = vcmp.eq.s32.totalorder %v13154_v22, 1  ;;  %4611 = vmatmul.mubr.msk.bf16.vlgmr.msra.gmra.mxu0 %vm13159_vm1, %v13158_v43  ;;  %vm13160_vm6 = vmmov %vm13159_vm1  ;;  %v2317_v20 = vsel %vm13161_vm8, %v2264_v28, 0  ;;  %vm13163_vm5 = vnez %v13032_v5  ;;  %v13252_v5 = vld [vmem:[#allocation17_spill] sm:$0xff] }
 0x12b   : > { %v13156_v3 = vsel %vm7840_vm13, 4294967295, %v13155_v3  ;;  %4793 = vmatmul.mubr.msk.bf16.vlgmr.msra.gmra.mxu1 %vm13160_vm6, %v13158_v43  ;;  %v13164_v62 = vmov 0  ;;  %v534_v22 = vrot.slane %v7761_v44, %v13097_v59  ;;  %v7861_v24 = vpack.c.bf16 %v13167_v26, %v7835_v58  ;;  %2489 = vmatpush1.bf16.msra.mxu0 %v2317_v20  ;;  %v13177_v43 = vld [vmem:[#allocation54_spill] sm:$0xff] }
 0x12c   : > { %13157 = vst [vmem:[#allocation9_spill] sm:$0xff] %v13156_v3  ;;  %v13165_v62 = vsel %vm7853_vm0, 4294967295, %v13164_v62  ;;  %2776 = vmatpush1.bf16.msra.mxu1 %v2359_v46  ;;  %vm13169_vm1 = vnez %v13046_v2  ;;  %vm13170_vm8 = vnez %v13049_v36  ;;  %vm7867_vm13 = vcmp.eq.s32.totalorder %v1031_v21, 1  ;;  %2514 = vmatprep.mubr.bf16.mxu0 %v12527_v38  ;;  %v13249_v2 = vld [vmem:[#allocation2_spill] sm:$0xff]  ;;  %v13250_v36 = vld [vmem:[#allocation49_spill] sm:$0xff] }
 0x12d   : > { %13166 = vst [vmem:[#allocation82_spill] sm:$0xff] %v13165_v62  ;;  %13168 = vst [vmem:[#allocation14_spill] sm:$0xff] %v7861_v24  ;;  %v13171_v28 = vmov 0  ;;  %vm7871_vm12 = vcmp.eq.s32.totalorder %v734_v31, 1  ;;  %v13174_v60 = vmov 0  ;;  %v2031_v33 = vrot.slane %v13152_v41, %v13177_v43  ;;  %v13189_v31 = vld [vmem:[#allocation112_spill] sm:$0xff]  ;;  %2801 = vmatprep.mubr.bf16.mxu1 %v12527_v38 }
 0x12e   : > { %v13172_v28 = vsel %vm7867_vm13, 4294967295, %v13171_v28  ;;  %v13175_v60 = vsel %vm7871_vm12, 4294967295, %v13174_v60  ;;  %v13180_v20 = vrot.slane %v13178_v52, %v13179_v32  ;;  %v13181_v46 = vmov 0  ;;  %vm13190_vm12 = vmpackc.low %vm13139_vm9, %vm13138_vm11 }
 0x12f   : > { %13173 = vst [vmem:[#allocation213_spill] sm:$0xff] %v13172_v28  ;;  %13176 = vst [vmem:[#allocation214_spill] sm:$0xff] %v13175_v60  ;;  %v13185_v21 = vrot.slane %v13178_v52, %v13184_v17  ;;  %v13186_v6 = vmov 0  ;;  %4641 = vmatprep.subr.msk.bf16.mxu0 %vm13190_vm12, %v13189_v31  ;;  %vm13192_vm13 = vmmov 1   ;;  %vm13193_vm14 = vnez %v13054_v15 }
 0x130   : > { %vm7880_vm0 = vcmp.eq.s32.totalorder %v13180_v20, 1  ;;  %vm7906_vm2 = vmpackc.low %vm13193_vm14, %vm13192_vm13  ;;  %v13194_v20 = vmov 0  ;;  %vm7914_vm11 = vcmp.eq.s32.totalorder %v478_v13, 1  ;;  %v13200_v31 = vmov 0 }
 0x131   : > { %v13182_v46 = vsel %vm7880_vm0, 4294967295, %v13181_v46  ;;  %vm7887_vm6 = vcmp.eq.s32.totalorder %v13185_v21, 1  ;;  %vm13191_vm0 = vmpackc.low %vm13144_vm4, %vm13143_vm15  ;;  %v13195_v20 = vsel %vm7906_vm2, 4294967295, %v13194_v20  ;;  %v13197_v21 = vmov 0 }
 0x132   : > { %13183 = vst [vmem:[#allocation77_spill] sm:$0xff] %v13182_v46  ;;  %v13187_v6 = vsel %vm7887_vm6, 4294967295, %v13186_v6  ;;  %4823 = vmatprep.subr.msk.bf16.mxu1 %vm13191_vm0, %v7797_v19  ;;  %13196 = vst [vmem:[#allocation112_spill] sm:$0xff] %v13195_v20  ;;  %vm7910_vm6 = vcmp.eq.s32.totalorder %v1027_v49, 1  ;;  %v13201_v31 = vsel %vm7914_vm11, 4294967295, %v13200_v31  ;;  %v1583_v30 = vrot.slane %v13203_v4, %v13184_v17 }
 0x133   : > { %13188 = vst [vmem:[#allocation34_spill] sm:$0xff] %v13187_v6  ;;  %v13198_v21 = vsel %vm7910_vm6, 4294967295, %v13197_v21  ;;  %13202 = vst [vmem:[#allocation216_spill] sm:$0xff] %v13201_v31  ;;  %v1779_v27 = vrot.slane %v13204_v10, %v13184_v17  ;;  %vm13205_vm14 = vnez %v13074_v40  ;;  %v13206_v15 = vmov 0  ;;  %v13218_v40 = vld [vmem:[#allocation170_spill] sm:$0xff] }
 0x134   : > { %13199 = vst [vmem:[#allocation215_spill] sm:$0xff] %v13198_v21  ;;  %vm7925_vm0 = vmpackc.low %vm13205_vm14, %vm13192_vm13  ;;  %vm7929_vm12 = vcmp.eq.s32.totalorder %v538_v63, 1  ;;  %v13209_v49 = vmov 0  ;;  %vm7933_vm15 = vcmp.eq.s32.totalorder %v674_v56, 1  ;;  %v13212_v13 = vmov 0  ;;  %v13221_v56 = vld [vmem:[#allocation147_spill] sm:$0xff] }
 0x135   : > { %v13207_v15 = vsel %vm7925_vm0, 4294967295, %v13206_v15  ;;  %v13210_v49 = vsel %vm7929_vm12, 4294967295, %v13209_v49  ;;  %v13213_v13 = vsel %vm7933_vm15, 4294967295, %v13212_v13  ;;  %vm7937_vm4 = vcmp.eq.s32.totalorder %v730_v54, 1  ;;  %vm7959_vm9 = vmpackc.low %vm7680_vm10, %vm13192_vm13 }
 0x136   : > { %13208 = vst [vmem:[#allocation217_spill] sm:$0xff] %v13207_v15  ;;  %13211 = vst [vmem:[#allocation218_spill] sm:$0xff] %v13210_v49  ;;  %v13215_v19 = vmov 0  ;;  %v1639_v41 = vrot.slane %v13218_v40, %v13153_v42  ;;  %v4646_v63 = vpack.c.bf16 %v13075_v51, %v13219_v23  ;;  %v13220_v39 = vunpack.i.l.bf16 %v6879_v7  ;;  %v13230_v7 = vld [vmem:[#allocation120_spill] sm:$0xff] }
 0x137   : > { %13214 = vst [vmem:[#allocation219_spill] sm:$0xff] %v13213_v13  ;;  %v13216_v19 = vsel %vm7937_vm4, 4294967295, %v13215_v19  ;;  %vm13222_vm14 = vcmp.lt.s32.totalorder %v5967_v16, 127  ;;  %v4828_v54 = vpack.c.bf16 %v6994_v50, %v13167_v26  ;;  %v13224_v38 = vmov 0  ;;  %vm13232_vm10 = vmpackc.low %vm13170_vm8, %vm13169_vm1  ;;  %v13239_v26 = vld [vmem:[#allocation175_spill] sm:$0xff] }
 0x138   : > { %13217 = vst [vmem:[#allocation220_spill] sm:$0xff] %v13216_v19  ;;  %v7952_v37 = vsel %vm13222_vm14, %v13221_v56, %v13220_v39  ;;  %v13225_v38 = vsel %vm7959_vm9, 4294967295, %v13224_v38  ;;  %vm7963_vm4 = vcmp.eq.s32.totalorder %v534_v22, 1  ;;  %v13227_v9 = vmov 0  ;;  %vm13231_vm14 = vmpackc.low %vm13163_vm5, %vm13162_vm3  ;;  %4826 = vmatpush1.bf16.msk.msra.mxu1 %vm13232_vm10, %v7861_v24 }
 0x139   : > { %13223 = vst [vmem:[#allocation3_spill] sm:$0xff] %v7952_v37  ;;  %13226 = vst [vmem:[#allocation147_spill] sm:$0xff] %v13225_v38  ;;  %v13228_v9 = vsel %vm7963_vm4, 4294967295, %v13227_v9  ;;  %4644 = vmatpush1.bf16.msk.msra.mxu0 %vm13231_vm14, %v13230_v7  ;;  %v13233_v39 = vmov 0  ;;  %vm7986_vm4 = vcmp.eq.s32.totalorder %v2031_v33, 1  ;;  %v13236_v23 = vmov 0  ;;  %4829 = vmatprep.subr.msk.bf16.mxu1 %vm7925_vm0, %v4828_v54 }
 0x13a   : > { %13229 = vst [vmem:[#allocation221_spill] sm:$0xff] %v13228_v9  ;;  %vm7982_vm15 = vmpackc.low %vm7716_vm7, %vm13192_vm13  ;;  %v13237_v23 = vsel %vm7986_vm4, 4294967295, %v13236_v23  ;;  %v1835_v51 = vrot.slane %v13239_v26, %v13153_v42  ;;  %v1579_v55 = vrot.slane %v13203_v4, %v13179_v32  ;;  %v1775_v22 = vrot.slane %v13204_v10, %v13179_v32  ;;  %4647 = vmatprep.subr.msk.bf16.mxu0 %vm7906_vm2, %v4646_v63  ;;  %v13248_v54 = vld [vmem:[#allocation104_spill] sm:$0xff]  ;;  %v13264_v10 = vld [vmem:[#allocation153_spill] sm:$0xff] }
 0x13b   : > { %v13234_v39 = vsel %vm7982_vm15, 4294967295, %v13233_v39  ;;  %13238 = vst [vmem:[#allocation222_spill] sm:$0xff] %v13237_v23  ;;  %vm13240_vm7 = vnez %v13107_v11  ;;  %vm13241_vm14 = vnez %v13111_v34  ;;  %vm8004_vm1 = vcmp.eq.s32.totalorder %v1583_v30, 1  ;;  %v13251_v30 = vld [vmem:[#allocation109_spill] sm:$0xff]  ;;  %v13303_v38 = vld [vmem:[#allocation139_spill] sm:$0xff] }
 0x13c   : > { %13235 = vst [vmem:[#allocation120_spill] sm:$0xff] %v13234_v39  ;;  %v13242_v57 = vmov 0  ;;  %vm8008_vm8 = vcmp.eq.s32.totalorder %v1779_v27, 1  ;;  %v13245_v33 = vmov 0  ;;  %v1635_v7 = vrot.slane %v13218_v40, %v13177_v43  ;;  %v13263_v40 = vld [vmem:[#allocation161_spill] sm:$0xff]  ;;  %vm13281_vm11 = vmpackc.low %vm13241_vm14, %vm13240_vm7 }
 0x13d   : > { %v13243_v57 = vsel %vm8004_vm1, 4294967295, %v13242_v57  ;;  %v13246_v33 = vsel %vm8008_vm8, 4294967295, %v13245_v33  ;;  %v1831_v63 = vrot.slane %v13239_v26, %v13177_v43  ;;  %v1383_v15 = vrot.slane %v13248_v54, %v13184_v17  ;;  %v13261_v26 = vld [vmem:[#allocation152_spill] sm:$0xff] }
 0x13e   : > { %13244 = vst [vmem:[#allocation223_spill] sm:$0xff] %v13243_v57  ;;  %13247 = vst [vmem:[#allocation224_spill] sm:$0xff] %v13246_v33  ;;  %v4649_v20 = vpack.c.bf16 %v13250_v36, %v13249_v2  ;;  %v4652_v12 = vpack.c.bf16 %v13251_v30, %v13250_v36  ;;  %v4831_v27 = vpack.c.bf16 %v7952_v37, %v13252_v5  ;;  %vm13253_vm10 = vnez %v13172_v28  ;;  %v13258_v2 = vld [vmem:[#allocation110_spill] sm:$0xff]  ;;  %v13297_v28 = vld [vmem:[#allocation116_spill] sm:$0xff] }
 0x13f   : > { %vm13254_vm0 = vnez %v13117_v1  ;;  %vm8028_vm3 = vcmp.eq.s32.totalorder %v1639_v41, 1  ;;  %v13255_v24 = vmov 0  ;;  %v1439_v50 = vrot.slane %v7337_v47, %v13153_v42 }
 0x140   : > { %v13256_v24 = vsel %vm8028_vm3, 4294967295, %v13255_v24  ;;  %vm13259_vm5 = vcmp.lt.s32.totalorder %v5967_v16, 127  ;;  %v4834_v30 = vpack.c.bf16 %v7835_v58, %v7952_v37  ;;  %vm13262_vm2 = vcmp.lt.s32.totalorder %v5967_v16, 1  ;;  %4650 = vmatpush1.bf16.msk.msra.mxu0 %vm7959_vm9, %v4649_v20  ;;  %4832 = vmatpush1.bf16.msk.msra.mxu1 %vm7982_vm15, %v4831_v27  ;;  %vm13282_vm15 = vmpackc.low %vm13254_vm0, %vm13253_vm10 }
 0x141   : > { %13257 = vst [vmem:[#allocation104_spill] sm:$0xff] %v13256_v24  ;;  %v8038_v36 = vsel %vm13259_vm5, %v13258_v2, %v13221_v56  ;;  %v432_v41 = vsel %vm13262_vm2, %v13261_v26, %v13150_v18  ;;  %v13265_v4 = vunpack.i.h.bf16 %v13264_v10  ;;  %vm13266_vm13 = vmmov %vm13259_vm5  ;;  %vm13268_vm3 = vnez %v13127_v0  ;;  %4653 = vmatprep.subr.msk.bf16.mxu0 %vm13281_vm11, %v4652_v12 }
 0x142   : > { %13260 = vst [vmem:[#allocation2_spill] sm:$0xff] %v8038_v36  ;;  %vm13269_vm5 = vnez %v13130_v61  ;;  %vm13270_vm2 = vnez %v13141_v53  ;;  %vm13271_vm1 = vnez %v13165_v62  ;;  %vm8065_vm4 = vcmp.eq.s32.totalorder %v1835_v51, 1  ;;  %4835 = vmatprep.subr.msk.bf16.mxu1 %vm13282_vm15, %v4834_v30  ;;  %v13340_v62 = vld [vmem:[#allocation126_spill] sm:$0xff]  ;;  %v13341_v61 = vld [vmem:[#allocation63_spill] sm:$0xff] }
 0x143   : > { %v8051_v25 = vsel %vm13266_vm13, %v13265_v4, %v13263_v40  ;;  %v13272_v18 = vmov 0  ;;  %vm8069_vm13 = vcmp.eq.s32.totalorder %v1579_v55, 1  ;;  %v13275_v4 = vmov 0  ;;  %v13290_v55 = vld [vmem:[#allocation108_spill] sm:$0xff]  ;;  %vm13308_vm7 = vmpackc.low %vm13269_vm5, %vm13268_vm3 }
 0x144   : > { %13267 = vst [vmem:[#allocation49_spill] sm:$0xff] %v8051_v25  ;;  %v13273_v18 = vsel %vm8065_vm4, 4294967295, %v13272_v18  ;;  %v13276_v4 = vsel %vm8069_vm13, 4294967295, %v13275_v4  ;;  %vm8073_vm8 = vcmp.eq.s32.totalorder %v1775_v22, 1  ;;  %v13278_v58 = vmov 0 }
 0x145   : > { %13274 = vst [vmem:[#allocation109_spill] sm:$0xff] %v13273_v18  ;;  %13277 = vst [vmem:[#allocation17_spill] sm:$0xff] %v13276_v4  ;;  %v13279_v58 = vsel %vm8073_vm8, 4294967295, %v13278_v58  ;;  %v1379_v20 = vrot.slane %v13248_v54, %v13179_v32  ;;  %vm13283_vm9 = vnez %v13146_v14  ;;  %vm8093_vm13 = vcmp.eq.s32.totalorder %v1635_v7, 1  ;;  %v13293_v7 = vld [vmem:[#allocation165_spill] sm:$0xff]  ;;  %v13315_v14 = vld [vmem:[#allocation111_spill] sm:$0xff] }
 0x146   : > { %13280 = vst [vmem:[#allocation110_spill] sm:$0xff] %v13279_v58  ;;  %v13284_v56 = vmov 0  ;;  %vm8097_vm4 = vcmp.eq.s32.totalorder %v1831_v63, 1  ;;  %v13287_v51 = vmov 0  ;;  %v1435_v12 = vrot.slane %v7337_v47, %v13177_v43  ;;  %vm13309_vm14 = vmpackc.low %vm13283_vm9, %vm7910_vm6 }
 0x147   : > { %v13285_v56 = vsel %vm8093_vm13, 4294967295, %v13284_v56  ;;  %v13288_v51 = vsel %vm8097_vm4, 4294967295, %v13287_v51  ;;  %v991_v22 = vrot.slane %v13290_v55, %v13184_v17  ;;  %v4837_v27 = vpack.c.bf16 %v432_v41, %v8038_v36 }
 0x148   : > { %13286 = vst [vmem:[#allocation152_spill] sm:$0xff] %v13285_v56  ;;  %13289 = vst [vmem:[#allocation153_spill] sm:$0xff] %v13288_v51  ;;  %vm13291_vm11 = vnez %v13156_v3  ;;  %vm13292_vm15 = vnez %v13175_v60  ;;  %vm13294_vm10 = vnez %v13237_v23  ;;  %vm8116_vm0 = vcmp.eq.s32.totalorder %v1383_v15, 1  ;;  %v13301_v15 = vld [vmem:[#allocation151_spill] sm:$0xff]  ;;  %v13458_v51 = vld [vmem:[#allocation5_spill] sm:$0xff] }
 0x149   : > { %v2123_v2 = vsel %vm13291_vm11, %v8051_v25, 0.0  ;;  %v2122_v63 = vsel %vm13294_vm10, %v13293_v7, 0.0  ;;  %v13295_v30 = vmov 0  ;;  %v1187_v1 = vrot.slane %v13297_v28, %v13184_v17  ;;  %4838 = vmatpush1.bf16.msk.msra.mxu1 %vm13309_vm14, %v4837_v27  ;;  %vm13320_vm14 = vmpackc.low %vm13271_vm1, %vm13270_vm2  ;;  %v13455_v56 = vld [vmem:[#allocation67_spill] sm:$0xff] }
 0x14a   : > { %v13296_v30 = vsel %vm8116_vm0, 4294967295, %v13295_v30  ;;  %v8123_v39 = vpack.c.bf16 %v13252_v5, %v432_v41  ;;  %vm8125_vm11 = vcmp.eq.s32.totalorder %v1439_v50, 1  ;;  %v13299_v3 = vmov 0  ;;  %v13305_v5 = vld [vmem:[#allocation44_spill] sm:$0xff]  ;;  %v13306_v41 = vld [vmem:[#allocation45_spill] sm:$0xff] }
 0x14b   : > { %v13300_v3 = vsel %vm8125_vm11, 4294967295, %v13299_v3  ;;  %v1047_v11 = vrot.slane %v7723_v29, %v13153_v42  ;;  %v1243_v23 = vrot.slane %v7448_v45, %v13153_v42  ;;  %vm13302_vm8 = vnez %v13182_v46 }
 0x14c   : > { %13298 = vst [vmem:[#allocation108_spill] sm:$0xff] %v8123_v39  ;;  %v2108_v34 = vsel %vm13302_vm8, %v13301_v15, 0.0  ;;  %vm13304_vm10 = vnez %v13187_v6  ;;  %v13307_v50 = vpack.c.bf16 %v13305_v5, %v13306_v41  ;;  %vm13310_vm8 = vnez %v13201_v31  ;;  %v13314_v41 = vld [vmem:[#allocation138_spill] sm:$0xff]  ;;  %v13319_v6 = vld [vmem:[#allocation52_spill] sm:$0xff]  ;;  %v13352_v31 = vld [vmem:[#allocation19_spill] sm:$0xff] }
 0x14d   : > { %v2109_v25 = vsel %vm13304_vm10, %v13303_v38, 0.0  ;;  %vm13311_vm11 = vnez %v13213_v13  ;;  %vm8156_vm0 = vcmp.eq.s32.totalorder %v1379_v20, 1  ;;  %v987_v5 = vrot.slane %v13290_v55, %v13179_v32  ;;  %vm13321_vm10 = vmpackc.low %vm13292_vm15, %vm7929_vm12 }
 0x14e   : > { %4656 = vmatpush1.bf16.msk.msra.mxu0 %vm13308_vm7, %v13307_v50  ;;  %v13316_v21 = vunpack.i.h.bf16 %v13315_v14  ;;  %vm13317_vm7 = vcmp.lt.s32.totalorder %v5967_v16, 1  ;;  %v2283_v46 = vpack.c.bf16 %v2123_v2, %v2123_v2  ;;  %4841 = vmatprep.subr.msk.bf16.mxu1 %vm13321_vm10, %v8123_v39  ;;  %vm13322_vm6 = vnez %v13228_v9  ;;  %vm13342_vm15 = vmpackc.low %vm13311_vm11, %vm13310_vm8  ;;  %v13350_v9 = vld [vmem:[#allocation119_spill] sm:$0xff] }
 0x14f   : > { %4659 = vmatprep.subr.msk.bf16.mxu0 %vm13320_vm14, %v13319_v6  ;;  %v2282_v14 = vpack.c.bf16 %v2122_v63, %v2122_v63  ;;  %vm8187_vm3 = vcmp.eq.s32.totalorder %v1435_v12, 1  ;;  %vm8195_vm14 = vcmp.eq.s32.totalorder %v991_v22, 1  ;;  %v13328_v20 = vmov 0 }
 0x150   : > { %v8169_v27 = vsel %vm13317_vm7, %v13316_v21, %v13261_v26  ;;  %vm13323_vm7 = vnez %v13216_v19  ;;  %v13324_v21 = vmov 0  ;;  %v13326_v26 = vld [vmem:[#allocation12_spill] sm:$0xff]  ;;  %v13329_v20 = vsel %vm8195_vm14, 4294967295, %v13328_v20 }
 0x151   : > { %13318 = vst [vmem:[#allocation116_spill] sm:$0xff] %v8169_v27  ;;  %v13325_v21 = vsel %vm8187_vm3, 4294967295, %v13324_v21  ;;  %v8193_v6 = vpack.c.bf16 %v13326_v26, %v8169_v27  ;;  %13330 = vst [vmem:[#allocation139_spill] sm:$0xff] %v13329_v20  ;;  %vm8199_vm12 = vcmp.eq.s32.totalorder %v1187_v1, 1  ;;  %v13331_v2 = vmov 0  ;;  %v13351_v19 = vld [vmem:[#allocation172_spill] sm:$0xff] }
 0x152   : > { %v13332_v2 = vsel %vm8199_vm12, 4294967295, %v13331_v2  ;;  %v2051_v50 = vrot.slane %v13314_v41, %v12932_v48  ;;  %v1183_v12 = vrot.slane %v13297_v28, %v13179_v32  ;;  %v1043_v63 = vrot.slane %v7723_v29, %v13177_v43  ;;  %4662 = vmatpush1.bf16.msk.msra.mxu0 %vm13342_vm15, %v13341_v61  ;;  %vm13343_vm2 = vmpackc.low %vm13323_vm7, %vm13322_vm6  ;;  %v13385_v29 = vld [vmem:[#allocation118_spill] sm:$0xff] }
 0x153   : > { %13327 = vst [vmem:[#allocation151_spill] sm:$0xff] %v8193_v6  ;;  %13333 = vst [vmem:[#allocation44_spill] sm:$0xff] %v13332_v2  ;;  %v2268_v49 = vpack.c.bf16 %v2108_v34, %v2108_v34  ;;  %v2269_v60 = vpack.c.bf16 %v2109_v25, %v2109_v25  ;;  %vm8209_vm10 = vcmp.eq.s32.totalorder %v1047_v11, 1  ;;  %v13334_v22 = vmov 0  ;;  %4844 = vmatpush1.bf16.msk.msra.mxu1 %vm13343_vm2, %v8193_v6  ;;  %v13349_v11 = vld [vmem:[#allocation122_spill] sm:$0xff]  ;;  %v13354_v6 = vld [vmem:[#allocation176_spill] sm:$0xff] }
 0x154   : > { %v13335_v22 = vsel %vm8209_vm10, 4294967295, %v13334_v22  ;;  %vm8213_vm9 = vcmp.eq.s32.totalorder %v1243_v23, 1  ;;  %v13337_v1 = vmov 0  ;;  %v1239_v53 = vrot.slane %v7448_v45, %v13177_v43 }
 0x155   : > { %13336 = vst [vmem:[#allocation45_spill] sm:$0xff] %v13335_v22  ;;  %v13338_v1 = vsel %vm8213_vm9, 4294967295, %v13337_v1  ;;  %v498_v0 = vrot.slane %v13340_v62, %v13184_v17  ;;  %vm13344_vm1 = vnez %v13243_v57  ;;  %vm13345_vm5 = vnez %v13246_v33 }
 0x156   : > { %13339 = vst [vmem:[#allocation111_spill] sm:$0xff] %v13338_v1  ;;  %vm8237_vm10 = vcmp.eq.s32.totalorder %v987_v5, 1  ;;  %v13346_v25 = vmov 0  ;;  %v694_v34 = vrot.slane %v13349_v11, %v13184_v17  ;;  %v554_v61 = vrot.slane %v7761_v44, %v13153_v42 }
 0x157   : > { %v13347_v25 = vsel %vm8237_vm10, 4294967295, %v13346_v25  ;;  %v750_v23 = vrot.slane %v7695_v35, %v13153_v42  ;;  %v8250_v13 = vpack.c.bf16 %v13352_v31, %v13351_v19  ;;  %vm13355_vm15 = vcmask 1043456   ;;  %v13368_v19 = vld [vmem:[#allocation162_spill] sm:$0xff]  ;;  %v13403_v42 = vld [vmem:[#allocation177_spill] sm:$0xff] }
 0x158   : > { %13348 = vst [vmem:[#allocation52_spill] sm:$0xff] %v13347_v25  ;;  %4690 = vmatprep.subr.msk.bf16.mxu0 %vm13355_vm15, %v2269_v60  ;;  %vm13356_vm9 = vmmov %vm13355_vm15  ;;  %vm13358_vm7 = vnez %v13256_v24  ;;  %vm13359_vm8 = vnez %v13273_v18  ;;  %v494_v39 = vrot.slane %v13340_v62, %v13179_v32  ;;  %vm13361_vm10 = vnez %v13279_v58 }
 0x159   : > { %13353 = vst [vmem:[#allocation126_spill] sm:$0xff] %v8250_v13  ;;  %4872 = vmatprep.subr.msk.bf16.mxu1 %vm13356_vm9, %v2283_v46  ;;  %vm13357_vm6 = vmmov %vm13356_vm9  ;;  %vm8266_vm14 = vcmp.eq.s32.totalorder %v1183_v12, 1  ;;  %v13362_v5 = vmov 0  ;;  %vm8270_vm9 = vcmp.eq.s32.totalorder %v1043_v63, 1  ;;  %v13365_v60 = vmov 0 }
 0x15a   : > { %v2371_v27 = vsel %vm13357_vm6, %v2282_v14, 0  ;;  %v13363_v5 = vsel %vm8266_vm14, 4294967295, %v13362_v5  ;;  %v13366_v60 = vsel %vm8270_vm9, 4294967295, %v13365_v60  ;;  %v690_v46 = vrot.slane %v13349_v11, %v13179_v32  ;;  %v8289_v63 = vld [vmem:[%s11573_s3] sm:$0xf] }
 0x15b   : > { %13364 = vst [vmem:[#allocation63_spill] sm:$0xff] %v13363_v5  ;;  %13367 = vst [vmem:[#allocation122_spill] sm:$0xff] %v13366_v60  ;;  %v550_v14 = vrot.slane %v7761_v44, %v13177_v43  ;;  %v13369_v31 = vunpack.i.l.bf16 %v13368_v19  ;;  %v13370_v26 = vunpack.i.l.bf16 %v13354_v6  ;;  %vm13371_vm6 = vcmp.lt.s32.totalorder %v5967_v16, 1 }
 0x15c   : > { %vm13372_vm15 = vcmask 588800   ;;  %vm13374_vm11 = vcmask 1043456   ;;  %vm8296_vm9 = vcmp.eq.s32.totalorder %v2051_v50, 1  ;;  %v13375_v45 = vmov 0 }
 0x15d   : > { %v8284_v12 = vsel %vm13371_vm6, %v13370_v26, %v13369_v31  ;;  %4663 = vmatmul.mubr.msk.bf16.vlgmr.msra.gmra.mxu0 %vm13372_vm15, %v8289_v63  ;;  %vm13373_vm12 = vmmov %vm13372_vm15  ;;  %v2329_v44 = vsel %vm13374_vm11, %v2268_v49, 0  ;;  %v13376_v45 = vsel %vm8296_vm9, 4294967295, %v13375_v45  ;;  %vm8300_vm14 = vcmp.eq.s32.totalorder %v1239_v53, 1  ;;  %v13389_v49 = vld [vmem:[#allocation18_spill] sm:$0xff] }
 0x15e   : > { %4845 = vmatmul.mubr.msk.bf16.vlgmr.msra.gmra.mxu1 %vm13373_vm12, %v8289_v63  ;;  %13377 = vst [vmem:[#allocation119_spill] sm:$0xff] %v13376_v45  ;;  %v13378_v31 = vmov 0  ;;  %vm8304_vm6 = vcmp.eq.s32.totalorder %v498_v0, 1  ;;  %v13381_v26 = vmov 0  ;;  %vm13384_vm3 = vcmp.ge.s32.totalorder %v13350_v9, 1  ;;  %2571 = vmatpush1.bf16.msra.mxu0 %v2329_v44  ;;  %vm13405_vm12 = vmpackc.low %vm13345_vm5, %vm13344_vm1 }
 0x15f   : > { %v13379_v31 = vsel %vm8300_vm14, 4294967295, %v13378_v31  ;;  %v13382_v26 = vsel %vm8304_vm6, 4294967295, %v13381_v26  ;;  %vm13386_vm15 = vcmp.le.s32.totalorder %v13385_v29, 30  ;;  %v8318_v50 = vpack.c.bf16 %v13389_v49, %v8284_v12  ;;  %2858 = vmatpush1.bf16.msra.mxu1 %v2371_v27  ;;  %v13398_v27 = vld [vmem:[#allocation51_spill] sm:$0xff] }
 0x160   : > { %13380 = vst [vmem:[#allocation176_spill] sm:$0xff] %v13379_v31  ;;  %13383 = vst [vmem:[#allocation225_spill] sm:$0xff] %v13382_v26  ;;  %vm8324_vm11 = vcmp.eq.s32.totalorder %v694_v34, 1  ;;  %v13391_v0 = vmov 0  ;;  %v746_v53 = vrot.slane %v7695_v35, %v13177_v43  ;;  %v2047_v19 = vrot.slane %v13314_v41, %v13097_v59  ;;  %v13404_v35 = vld [vmem:[#allocation157_spill] sm:$0xff]  ;;  %v13469_v41 = vld [vmem:[#allocation187_spill] sm:$0xff] }
 0x161   : > { %vm8312_vm2 = vmand %vm13386_vm15, %vm13384_vm3  ;;  %13390 = vst [vmem:[#allocation118_spill] sm:$0xff] %v8318_v50  ;;  %v13392_v0 = vsel %vm8324_vm11, 4294967295, %v13391_v0  ;;  %v13394_v37 = vrot.slane %v13178_v52, %v12956_v8  ;;  %v13395_v44 = vmov 0  ;;  %v13399_v36 = vrot.slane %v13178_v52, %v13398_v27  ;;  %4693 = vmatprep.subr.msk.bf16.mxu0 %vm13405_vm12, %v13404_v35 }
 0x162   : > { %13393 = vst [vmem:[#allocation18_spill] sm:$0xff] %v13392_v0  ;;  %v13400_v34 = vmov 0  ;;  %v5507_v40 = vunpack.i.l.bf16 %v13403_v42  ;;  %vm13407_vm9 = vmmov 1   ;;  %vm13408_vm11 = vnez %v13296_v30 }
 0x163   : > { %vm8335_vm3 = vcmp.eq.s32.totalorder %v13394_v37, 1  ;;  %vm8342_vm15 = vcmp.eq.s32.totalorder %v13399_v36, 1  ;;  %v13409_v52 = vmov 0  ;;  %vm8366_vm6 = vcmp.eq.s32.totalorder %v554_v61, 1 }
 0x164   : > { %v13396_v44 = vsel %vm8335_vm3, 4294967295, %v13395_v44  ;;  %v13401_v34 = vsel %vm8342_vm15, 4294967295, %v13400_v34  ;;  %vm13406_vm3 = vmpackc.low %vm13359_vm8, %vm13358_vm7  ;;  %v13412_v42 = vmov 0  ;;  %vm8370_vm1 = vcmp.eq.s32.totalorder %v750_v23, 1 }
 0x165   : > { %13397 = vst [vmem:[#allocation226_spill] sm:$0xff] %v13396_v44  ;;  %13402 = vst [vmem:[#allocation51_spill] sm:$0xff] %v13401_v34  ;;  %4875 = vmatprep.subr.msk.bf16.mxu1 %vm13406_vm3, %v8250_v13  ;;  %v13413_v42 = vsel %vm8366_vm6, 4294967295, %v13412_v42  ;;  %v13415_v37 = vmov 0  ;;  %vm8374_vm12 = vcmp.eq.s32.totalorder %v494_v39, 1  ;;  %v13418_v35 = vmov 0 }
 0x166   : > { %vm8362_vm15 = vmpackc.low %vm13408_vm11, %vm13407_vm9  ;;  %13414 = vst [vmem:[#allocation157_spill] sm:$0xff] %v13413_v42  ;;  %v13416_v37 = vsel %vm8370_vm1, 4294967295, %v13415_v37  ;;  %v13419_v35 = vsel %vm8374_vm12, 4294967295, %v13418_v35  ;;  %vm13421_vm3 = vnez %v13300_v3  ;;  %v13422_v36 = vmov 0  ;;  %v13439_v13 = vld [vmem:[#allocation160_spill] sm:$0xff] }
 0x167   : > { %v13410_v52 = vsel %vm8362_vm15, 4294967295, %v13409_v52  ;;  %13417 = vst [vmem:[#allocation227_spill] sm:$0xff] %v13416_v37  ;;  %13420 = vst [vmem:[#allocation228_spill] sm:$0xff] %v13419_v35  ;;  %vm8385_vm11 = vcmp.eq.s32.totalorder %v690_v46, 1  ;;  %v13425_v30 = vmov 0  ;;  %vm8389_vm8 = vcmp.eq.s32.totalorder %v550_v14, 1 }
 0x168   : > { %13411 = vst [vmem:[#allocation177_spill] sm:$0xff] %v13410_v52  ;;  %vm8381_vm7 = vmpackc.low %vm13421_vm3, %vm13407_vm9  ;;  %v13426_v30 = vsel %vm8385_vm11, 4294967295, %v13425_v30  ;;  %v13428_v61 = vmov 0  ;;  %v13431_v23 = vmov 0   ;;  %vm13432_vm3 = vcmp.le.s32.totalorder %v13385_v29, 30  ;;  %v13433_v46 = vld [vmem:[#allocation6_spill] sm:$0xff] }
 0x169   : > { %v13423_v36 = vsel %vm8381_vm7, 4294967295, %v13422_v36  ;;  %13427 = vst [vmem:[#allocation230_spill] sm:$0xff] %v13426_v30  ;;  %v13429_v61 = vsel %vm8389_vm8, 4294967295, %v13428_v61  ;;  %2596 = vmatprep.mubr.bf16.mxu0 %v13431_v23  ;;  %2883 = vmatprep.mubr.bf16.mxu1 %v13431_v23  ;;  %v8398_v3 = vsel %vm8312_vm2, 1, %v13431_v23  ;;  %v8403_v39 = vsel %vm13432_vm3, 1, %v13431_v23  ;;  %vm8419_vm2 = vmpackc.low %vm8156_vm0, %vm13407_vm9  ;;  %v13459_v52 = vld [vmem:[#allocation71_spill] sm:$0xff] }
 0x16a   : > { %13424 = vst [vmem:[#allocation229_spill] sm:$0xff] %v13423_v36  ;;  %13430 = vst [vmem:[#allocation231_spill] sm:$0xff] %v13429_v61  ;;  %v4698_v14 = vpack.c.bf16 %v13301_v15, %v13433_v46  ;;  %v5503_v24 = vunpack.i.h.bf16 %v13354_v6  ;;  %v13434_v18 = vunpack.i.l.bf16 %v13264_v10  ;;  %vm13435_vm5 = vcmp.lt.s32.totalorder %v5967_v16, 127  ;;  %v13453_v15 = vld [vmem:[#allocation101_spill] sm:$0xff]  ;;  %v13460_v36 = vld [vmem:[#allocation156_spill] sm:$0xff] }
 0x16b   : > { %v4880_v47 = vpack.c.bf16 %v13293_v7, %v13389_v49  ;;  %v13436_v33 = vmov 0  ;;  %vm13440_vm3 = vnez %v13276_v4  ;;  %vm13443_vm0 = vnez %v13325_v21  ;;  %v13454_v49 = vld [vmem:[#allocation102_spill] sm:$0xff]  ;;  %v13461_v4 = vld [vmem:[#allocation21_spill] sm:$0xff] }
 0x16c   : > { %v8412_v57 = vsel %vm13435_vm5, %v5507_v40, %v13434_v18  ;;  %v13437_v33 = vsel %vm8419_vm2, 4294967295, %v13436_v33  ;;  %vm13441_vm8 = vmpackc.low %vm13361_vm10, %vm13440_vm3  ;;  %v13444_v10 = vmov 0  ;;  %vm8442_vm12 = vcmp.eq.s32.totalorder %v746_v53, 1 }
 0x16d   : > { %13438 = vst [vmem:[#allocation6_spill] sm:$0xff] %v13437_v33  ;;  %4696 = vmatpush1.bf16.msk.msra.mxu0 %vm13441_vm8, %v13439_v13  ;;  %vm13442_vm5 = vmpackc.low %vm8097_vm4, %vm8093_vm13  ;;  %v13447_v18 = vmov 0  ;;  %vm8446_vm3 = vcmp.eq.s32.totalorder %v2047_v19, 1  ;;  %v13450_v13 = vmov 0  ;;  %v1599_v38 = vrot.slane %v13453_v15, %v13398_v27 }
 0x16e   : > { %4878 = vmatpush1.bf16.msk.msra.mxu1 %vm13442_vm5, %v8318_v50  ;;  %vm8438_vm11 = vmpackc.low %vm13443_vm0, %vm13407_vm9  ;;  %v13448_v18 = vsel %vm8442_vm12, 4294967295, %v13447_v18  ;;  %v13451_v13 = vsel %vm8446_vm3, 4294967295, %v13450_v13  ;;  %v1795_v46 = vrot.slane %v13454_v49, %v13398_v27  ;;  %4699 = vmatprep.subr.msk.bf16.mxu0 %vm8362_vm15, %v4698_v14  ;;  %vm13456_vm8 = vnez %v13329_v20 }
 0x16f   : > { %v13445_v10 = vsel %vm8438_vm11, 4294967295, %v13444_v10  ;;  %13449 = vst [vmem:[#allocation232_spill] sm:$0xff] %v13448_v18  ;;  %13452 = vst [vmem:[#allocation233_spill] sm:$0xff] %v13451_v13  ;;  %4881 = vmatprep.subr.msk.bf16.mxu1 %vm8381_vm7, %v4880_v47  ;;  %vm13457_vm5 = vnez %v13332_v2  ;;  %v1655_v19 = vrot.slane %v8398_v3, %v12932_v48  ;;  %v1851_v53 = vrot.slane %v8403_v39, %v12932_v48 }
 0x170   : > { %13446 = vst [vmem:[#allocation160_spill] sm:$0xff] %v13445_v10  ;;  %v1595_v21 = vrot.slane %v13453_v15, %v12956_v8  ;;  %v4701_v14 = vpack.c.bf16 %v13459_v52, %v13458_v51  ;;  %v4704_v47 = vpack.c.bf16 %v13460_v36, %v13459_v52  ;;  %v4883_v58 = vpack.c.bf16 %v8412_v57, %v13461_v4  ;;  %v13466_v51 = vld [vmem:[#allocation135_spill] sm:$0xff] }
 0x171   : > { %vm13462_vm0 = vnez %v13335_v22  ;;  %vm13463_vm7 = vnez %v13338_v1  ;;  %v1791_v50 = vrot.slane %v13454_v49, %v12956_v8  ;;  %v13464_v7 = vunpack.i.l.bf16 %v13354_v6  ;;  %v13510_v22 = vld [vmem:[#allocation75_spill] sm:$0xff]  ;;  %v13511_v1 = vld [vmem:[#allocation70_spill] sm:$0xff] }
 0x172   : > { %vm13465_vm4 = vcmp.lt.s32.totalorder %v5967_v16, 1  ;;  %vm13467_vm15 = vcmp.lt.s32.totalorder %v5967_v16, 127  ;;  %v4886_v36 = vpack.c.bf16 %v8284_v12, %v8412_v57  ;;  %v13468_v43 = vunpack.i.l.bf16 %v13455_v56  ;;  %4702 = vmatpush1.bf16.msk.msra.mxu0 %vm8419_vm2, %v4701_v14  ;;  %4884 = vmatpush1.bf16.msk.msra.mxu1 %vm8438_vm11, %v4883_v58  ;;  %vm13481_vm11 = vmpackc.low %vm13457_vm5, %vm13456_vm8 }
 0x173   : > { %v428_v15 = vsel %vm13465_vm4, %v5503_v24, %v13464_v7  ;;  %v8488_v52 = vsel %vm13467_vm15, %v13466_v51, %v5507_v40  ;;  %v13470_v17 = vunpack.i.h.bf16 %v13469_v41  ;;  %vm13471_vm13 = vmmov %vm13467_vm15  ;;  %vm13473_vm10 = vnez %v13347_v25  ;;  %4705 = vmatprep.subr.msk.bf16.mxu0 %vm13481_vm11, %v4704_v47 }
 0x174   : > { %vm13474_vm4 = vnez %v13363_v5  ;;  %vm8512_vm3 = vcmp.eq.s32.totalorder %v1599_v38, 1  ;;  %v13476_v40 = vmov 0  ;;  %vm13482_vm12 = vmpackc.low %vm13463_vm7, %vm13462_vm0  ;;  %vm13483_vm2 = vnez %v13382_v26  ;;  %v405_v26 = vpop.permute.xlu0 %404 }
 0x175   : > { %v8498_v49 = vsel %vm13471_vm13, %v13470_v17, %v13468_v43  ;;  %v13477_v40 = vsel %vm8512_vm3, 4294967295, %v13476_v40  ;;  %v1651_v17 = vrot.slane %v8398_v3, %v13097_v59  ;;  %vm13479_vm13 = vcmp.le.s32.totalorder %v13350_v9, 30  ;;  %4887 = vmatprep.subr.msk.bf16.mxu1 %vm13482_vm12, %v4886_v36 }
 0x176   : > { %13472 = vst [vmem:[#allocation101_spill] sm:$0xff] %v8498_v49  ;;  %13478 = vst [vmem:[#allocation102_spill] sm:$0xff] %v13477_v40  ;;  %v8521_v43 = vsel %vm13479_vm13, 1, %v13431_v23  ;;  %vm13484_vm3 = vnez %v13392_v0  ;;  %vm8538_vm15 = vcmp.eq.s32.totalorder %v1795_v46, 1  ;;  %v13485_v58 = vmov 0  ;;  %v13558_v0 = vld [vmem:[#allocation189_spill] sm:$0xff] }
 0x177   : > { %13480 = vst [vmem:[#allocation67_spill] sm:$0xff] %v8521_v43  ;;  %v13486_v58 = vsel %vm8538_vm15, 4294967295, %v13485_v58  ;;  %vm8542_vm9 = vcmp.eq.s32.totalorder %v1655_v19, 1  ;;  %v13488_v7 = vmov 0  ;;  %vm8546_vm11 = vcmp.eq.s32.totalorder %v1851_v53, 1  ;;  %v13495_v19 = vld [vmem:[#allocation194_spill] sm:$0xff] }
 0x178   : > { %13487 = vst [vmem:[#allocation5_spill] sm:$0xff] %v13486_v58  ;;  %v13489_v7 = vsel %vm8542_vm9, 4294967295, %v13488_v7  ;;  %v13491_v6 = vmov 0  ;;  %v1847_v12 = vrot.slane %v8403_v39, %v13097_v59  ;;  %v4889_v38 = vpack.c.bf16 %v428_v15, %v8488_v52 }
 0x179   : > { %13490 = vst [vmem:[#allocation71_spill] sm:$0xff] %v13489_v7  ;;  %v13492_v6 = vsel %vm8546_vm11, 4294967295, %v13491_v6  ;;  %vm13494_vm12 = vnez %v13376_v45  ;;  %vm13496_vm0 = vnez %v13451_v13  ;;  %v1399_v14 = vrot.slane %v13248_v54, %v13398_v27  ;;  %v13543_v13 = vld [vmem:[#allocation89_spill] sm:$0xff] }
 0x17a   : > { %13493 = vst [vmem:[#allocation156_spill] sm:$0xff] %v13492_v6  ;;  %v2127_v46 = vsel %vm13494_vm12, %v8498_v49, 0.0  ;;  %v2126_v53 = vsel %vm13496_vm0, %v13495_v19, 0.0  ;;  %v8566_v47 = vpack.c.bf16 %v13461_v4, %v428_v15  ;;  %vm8568_vm7 = vcmp.eq.s32.totalorder %v1595_v21, 1  ;;  %v13506_v4 = vld [vmem:[#allocation84_spill] sm:$0xff]  ;;  %v13508_v15 = vld [vmem:[#allocation121_spill] sm:$0xff] }
 0x17b   : > { %v13497_v51 = vmov 0  ;;  %vm8572_vm12 = vcmp.eq.s32.totalorder %v1791_v50, 1  ;;  %v13500_v36 = vmov 0  ;;  %v1455_v45 = vrot.slane %v8521_v43, %v12932_v48  ;;  %v13576_v49 = vld [vmem:[#allocation105_spill] sm:$0xff] }
 0x17c   : > { %v13498_v51 = vsel %vm8568_vm7, 4294967295, %v13497_v51  ;;  %v13501_v36 = vsel %vm8572_vm12, 4294967295, %v13500_v36  ;;  %vm13503_vm0 = vcmp.ge.s32.totalorder %v13385_v29, 1  ;;  %vm13507_vm5 = vnez %v13396_v44  ;;  %vm13513_vm12 = vmpackc.low %vm13474_vm4, %vm13473_vm10 }
 0x17d   : > { %13499 = vst [vmem:[#allocation21_spill] sm:$0xff] %v13498_v51  ;;  %13502 = vst [vmem:[#allocation135_spill] sm:$0xff] %v13501_v36  ;;  %v2112_v21 = vsel %vm13507_vm5, %v13506_v4, 0.0  ;;  %vm13509_vm7 = vnez %v13401_v34  ;;  %v13512_v10 = vpack.c.bf16 %v13510_v22, %v13511_v1  ;;  %vm13516_vm5 = vnez %v13419_v35  ;;  %v13521_v1 = vld [vmem:[#allocation136_spill] sm:$0xff]  ;;  %v13549_v35 = vld [vmem:[#allocation25_spill] sm:$0xff] }
 0x17e   : > { %vm8582_vm8 = vmand %vm13503_vm0, %vm13479_vm13  ;;  %v2113_v50 = vsel %vm13509_vm7, %v13508_v15, 0.0  ;;  %vm13514_vm0 = vnez %v13366_v60  ;;  %vm13517_vm11 = vnez %v13426_v30  ;;  %vm8609_vm9 = vcmp.eq.s32.totalorder %v1651_v17, 1  ;;  %v13524_v60 = vld [vmem:[#allocation83_spill] sm:$0xff] }
 0x17f   : > { %4708 = vmatpush1.bf16.msk.msra.mxu0 %vm13513_vm12, %v13512_v10  ;;  %vm13515_vm13 = vmpackc.low %vm8300_vm14, %vm13514_vm0  ;;  %v13518_v15 = vmov 0  ;;  %v1395_v22 = vrot.slane %v13248_v54, %v12956_v8  ;;  %v13522_v10 = vunpack.i.h.bf16 %v13521_v1  ;;  %vm13523_vm12 = vcmp.lt.s32.totalorder %v5967_v16, 1 }
 0x180   : > { %4890 = vmatpush1.bf16.msk.msra.mxu1 %vm13515_vm13, %v4889_v38  ;;  %v13519_v15 = vsel %vm8609_vm9, 4294967295, %v13518_v15  ;;  %vm13525_vm13 = vmpackc.low %vm13484_vm3, %vm13483_vm2  ;;  %vm13527_vm0 = vnez %v13429_v61  ;;  %vm13528_vm14 = vnez %v13448_v18  ;;  %v2286_v54 = vpack.c.bf16 %v2126_v53, %v2126_v53 }
 0x181   : > { %13520 = vst [vmem:[#allocation187_spill] sm:$0xff] %v13519_v15  ;;  %v8619_v31 = vsel %vm13523_vm12, %v13522_v10, %v5503_v24  ;;  %4711 = vmatprep.subr.msk.bf16.mxu0 %vm13525_vm13, %v13524_v60  ;;  %vm13526_vm7 = vmpackc.low %vm8370_vm1, %vm8366_vm6  ;;  %v2287_v24 = vpack.c.bf16 %v2127_v46, %v2127_v46  ;;  %vm13529_vm10 = vcmp.ge.s32.totalorder %v13350_v9, 1  ;;  %v13531_v60 = vld [vmem:[#allocation16_spill] sm:$0xff]  ;;  %vm8646_vm13 = vcmp.eq.s32.totalorder %v1847_v12, 1  ;;  %v13641_v15 = vld [vmem:[#allocation85_spill] sm:$0xff] }
 0x182   : > { %4893 = vmatprep.subr.msk.bf16.mxu1 %vm13526_vm7, %v8566_v47  ;;  %v8640_v17 = vsel %vm13529_vm10, 1, %v13431_v23  ;;  %v8644_v38 = vpack.c.bf16 %v13531_v60, %v8619_v31  ;;  %v13532_v1 = vmov 0  ;;  %vm8650_vm7 = vcmp.eq.s32.totalorder %v1399_v14, 1 }
 0x183   : > { %13530 = vst [vmem:[#allocation84_spill] sm:$0xff] %v8640_v17  ;;  %v13533_v1 = vsel %vm8646_vm13, 4294967295, %v13532_v1  ;;  %v8657_v46 = vsel %vm8582_vm8, 1, %v13431_v23  ;;  %vm13538_vm12 = vcmp.ge.s32.totalorder %v13385_v29, 1  ;;  %v2272_v12 = vpack.c.bf16 %v2112_v21, %v2112_v21  ;;  %vm13544_vm8 = vmpackc.low %vm13517_vm11, %vm13516_vm5 }
 0x184   : > { %13534 = vst [vmem:[#allocation121_spill] sm:$0xff] %v13533_v1  ;;  %13537 = vst [vmem:[#allocation75_spill] sm:$0xff] %v8657_v46  ;;  %v2273_v42 = vpack.c.bf16 %v2113_v50, %v2113_v50  ;;  %vm8667_vm1 = vcmp.eq.s32.totalorder %v1455_v45, 1  ;;  %v1451_v37 = vrot.slane %v8521_v43, %v13097_v59  ;;  %4714 = vmatpush1.bf16.msk.msra.mxu0 %vm13544_vm8, %v13543_v13  ;;  %v13548_v13 = vld [vmem:[#allocation199_spill] sm:$0xff]  ;;  %vm13551_vm8 = vcmask 1043456  }
 0x185   : > { %vm8663_vm6 = vmand %vm13538_vm12, %vm13529_vm10  ;;  %vm8685_vm10 = vcmp.eq.s32.totalorder %v1395_v22, 1  ;;  %v1007_v45 = vrot.slane %v13290_v55, %v13398_v27  ;;  %v1203_v21 = vrot.slane %v13297_v28, %v13398_v27  ;;  %v1259_v50 = vrot.slane %v8640_v17, %v12932_v48 }
 0x186   : > { %vm13545_vm12 = vmpackc.low %vm13528_vm14, %vm13527_vm0  ;;  %v8697_v18 = vpack.c.bf16 %v13549_v35, %v13548_v13  ;;  %4742 = vmatprep.subr.msk.bf16.mxu0 %vm13551_vm8, %v2273_v42  ;;  %vm13554_vm14 = vnez %v13477_v40  ;;  %v1063_v61 = vrot.slane %v8657_v46, %v12932_v48  ;;  %v8711_v30 = vsel %vm8663_vm6, 1, %v13431_v23  ;;  %v13575_v13 = vld [vmem:[#allocation7_spill] sm:$0xff] }
 0x187   : > { %4896 = vmatpush1.bf16.msk.msra.mxu1 %vm13545_vm12, %v8644_v38  ;;  %vm13552_vm12 = vmmov %vm13551_vm8  ;;  %v1003_v42 = vrot.slane %v13290_v55, %v12956_v8  ;;  %v13559_v44 = vunpack.i.l.bf16 %v13558_v0  ;;  %vm13560_vm6 = vcmp.lt.s32.totalorder %v5967_v16, 1  ;;  %vm13561_vm11 = vcmask 588800  }
 0x188   : > { %13550 = vst [vmem:[#allocation70_spill] sm:$0xff] %v8697_v18  ;;  %4924 = vmatprep.subr.msk.bf16.mxu1 %vm13552_vm12, %v2287_v24  ;;  %vm13553_vm0 = vmmov %vm13551_vm8  ;;  %vm13555_vm8 = vnez %v13489_v7  ;;  %vm13556_vm12 = vnez %v13492_v6  ;;  %v1199_v24 = vrot.slane %v13297_v28, %v12956_v8  ;;  %4715 = vmatmul.mubr.msk.bf16.vlgmr.msra.gmra.mxu0 %vm13561_vm11, %v8289_v63  ;;  %vm13563_vm2 = vcmask 1043456   ;;  %v13607_v6 = vld [vmem:[#allocation200_spill] sm:$0xff] }
 0x189   : > { %v2383_v22 = vsel %vm13553_vm0, %v2286_v54, 0  ;;  %v1059_v54 = vrot.slane %v8657_v46, %v13097_v59  ;;  %vm13557_vm0 = vcmp.ge.s32.totalorder %v13385_v29, 1  ;;  %v8732_v34 = vsel %vm13560_vm6, %v405_v26, %v13559_v44  ;;  %vm13562_vm5 = vmmov %vm13561_vm11  ;;  %v13566_v44 = vld [vmem:[#allocation107_spill] sm:$0xff]  ;;  %2678 = vmatprep.mubr.bf16.mxu0 %v13431_v23 }
 0x18a   : > { %v8726_v53 = vsel %vm13557_vm0, 1, %v13431_v23  ;;  %4897 = vmatmul.mubr.msk.bf16.vlgmr.msra.gmra.mxu1 %vm13562_vm5, %v8289_v63  ;;  %v2341_v28 = vsel %vm13563_vm2, %v2272_v12, 0  ;;  %vm13564_vm3 = vnez %v13498_v51  ;;  %vm13565_vm4 = vnez %v13501_v36  ;;  %v13571_v12 = vld [vmem:[#allocation24_spill] sm:$0xff]  ;;  %vm13578_vm6 = vmpackc.low %vm8538_vm15, %vm13554_vm14  ;;  %v13643_v51 = vld [vmem:[#allocation161_spill] sm:$0xff] }
 0x18b   : > { %v1255_v29 = vrot.slane %v8640_v17, %v13097_v59  ;;  %v514_v55 = vrot.slane %v13340_v62, %v13398_v27  ;;  %v13567_v25 = vrot.slane %v13566_v44, %v13179_v32  ;;  %v13568_v5 = vmov 0  ;;  %2653 = vmatpush1.bf16.msra.mxu0 %v2341_v28  ;;  %2940 = vmatpush1.bf16.msra.mxu1 %v2383_v22  ;;  %v13577_v28 = vld [vmem:[#allocation201_spill] sm:$0xff]  ;;  %vm13579_vm2 = vmpackc.low %vm13556_vm12, %vm13555_vm8 }
 0x18c   : > { %v8756_v20 = vpack.c.bf16 %v13571_v12, %v8732_v34  ;;  %vm8762_vm5 = vcmp.eq.s32.totalorder %v1451_v37, 1  ;;  %v13573_v2 = vmov 0  ;;  %v570_v33 = vrot.slane %v8711_v30, %v12932_v48  ;;  %4745 = vmatprep.subr.msk.bf16.mxu0 %vm13578_vm6, %v13577_v28  ;;  %4927 = vmatprep.subr.msk.bf16.mxu1 %vm13579_vm2, %v8697_v18 }
 0x18d   : > { %vm8750_vm11 = vcmp.eq.s32.totalorder %v13567_v25, 1  ;;  %v13574_v2 = vsel %vm8762_vm5, 4294967295, %v13573_v2  ;;  %v710_v25 = vrot.slane %v13349_v11, %v13398_v27  ;;  %v4753_v35 = vpack.c.bf16 %v13576_v49, %v13575_v13  ;;  %2965 = vmatprep.mubr.bf16.mxu1 %v13431_v23 }
 0x18e   : > { %v13569_v5 = vsel %vm8750_vm11, 4294967295, %v13568_v5  ;;  %13572 = vst [vmem:[#allocation83_spill] sm:$0xff] %v8756_v20  ;;  %vm13580_vm0 = vmmov 1   ;;  %v13581_v37 = vmov 0  ;;  %vm8791_vm5 = vcmp.eq.s32.totalorder %v1007_v45, 1 }
 0x18f   : > { %13570 = vst [vmem:[#allocation136_spill] sm:$0xff] %v13569_v5  ;;  %vm8787_vm11 = vmpackc.low %vm8650_vm7, %vm13580_vm0  ;;  %v13584_v13 = vmov 0  ;;  %vm8795_vm14 = vcmp.eq.s32.totalorder %v1203_v21, 1  ;;  %v13587_v22 = vmov 0  ;;  %v766_v28 = vrot.slane %v8726_v53, %v12932_v48 }
 0x190   : > { %v13582_v37 = vsel %vm8787_vm11, 4294967295, %v13581_v37  ;;  %v13585_v13 = vsel %vm8791_vm5, 4294967295, %v13584_v13  ;;  %v13588_v22 = vsel %vm8795_vm14, 4294967295, %v13587_v22  ;;  %vm8804_vm2 = vmpackc.low %vm8667_vm1, %vm13580_vm0  ;;  %v13590_v10 = vmov 0 }
 0x191   : > { %13583 = vst [vmem:[#allocation16_spill] sm:$0xff] %v13582_v37  ;;  %13586 = vst [vmem:[#allocation89_spill] sm:$0xff] %v13585_v13  ;;  %v13591_v10 = vsel %vm8804_vm2, 4294967295, %v13590_v10  ;;  %vm8808_vm7 = vcmp.eq.s32.totalorder %v1063_v61, 1  ;;  %v13593_v7 = vmov 0  ;;  %vm8812_vm6 = vcmp.eq.s32.totalorder %v1259_v50, 1 }
 0x192   : > { %13589 = vst [vmem:[#allocation189_spill] sm:$0xff] %v13588_v22  ;;  %13592 = vst [vmem:[#allocation107_spill] sm:$0xff] %v13591_v10  ;;  %v13594_v7 = vsel %vm8808_vm7, 4294967295, %v13593_v7  ;;  %v13596_v45 = vmov 0  ;;  %vm8816_vm8 = vcmp.eq.s32.totalorder %v1003_v42, 1  ;;  %v13599_v21 = vmov 0 }
 0x193   : > { %13595 = vst [vmem:[#allocation24_spill] sm:$0xff] %v13594_v7  ;;  %v13597_v45 = vsel %vm8812_vm6, 4294967295, %v13596_v45  ;;  %v13600_v21 = vsel %vm8816_vm8, 4294967295, %v13599_v21  ;;  %vm8820_vm12 = vcmp.eq.s32.totalorder %v1199_v24, 1  ;;  %v13602_v48 = vmov 0  ;;  %v13605_v61 = vld [vmem:[#allocation8_spill] sm:$0xff]  ;;  %vm8840_vm15 = vmpackc.low %vm8685_vm10, %vm13580_vm0 }
 0x194   : > { %13598 = vst [vmem:[#allocation7_spill] sm:$0xff] %v13597_v45  ;;  %13601 = vst [vmem:[#allocation105_spill] sm:$0xff] %v13600_v21  ;;  %v13603_v48 = vsel %vm8820_vm12, 4294967295, %v13602_v48  ;;  %v4750_v14 = vpack.c.bf16 %v13506_v4, %v13605_v61  ;;  %v13606_v50 = vunpack.i.l.bf16 %v13469_v41  ;;  %vm13608_vm1 = vcmp.lt.s32.totalorder %v5967_v16, 127  ;;  %v403_v41 = vpop.permute.xlu0 %402  ;;  %v13615_v4 = vld [vmem:[#allocation59_spill] sm:$0xff]  ;;  %v13685_v7 = vld [vmem:[#allocation2_spill] sm:$0xff] }
 0x195   : > { %13604 = vst [vmem:[#allocation201_spill] sm:$0xff] %v13603_v48  ;;  %v4932_v24 = vpack.c.bf16 %v13495_v19, %v13571_v12  ;;  %v13609_v40 = vmov 0  ;;  %vm8844_vm12 = vcmp.eq.s32.totalorder %v1059_v54, 1  ;;  %v13612_v58 = vmov 0  ;;  %vm13617_vm10 = vmpackc.low %vm8646_vm13, %vm8609_vm9  ;;  %v13640_v10 = vld [vmem:[#allocation175_spill] sm:$0xff] }
 0x196   : > { %v8833_v42 = vsel %vm13608_vm1, %v13607_v6, %v13606_v50  ;;  %v13610_v40 = vsel %vm8840_vm15, 4294967295, %v13609_v40  ;;  %v13613_v58 = vsel %vm8844_vm12, 4294967295, %v13612_v58  ;;  %vm13616_vm1 = vmpackc.low %vm13565_vm4, %vm13564_vm3  ;;  %4930 = vmatpush1.bf16.msk.msra.mxu1 %vm13617_vm10, %v8756_v20  ;;  %vm13618_vm15 = vnez %v13574_v2  ;;  %v13689_v22 = vld [vmem:[#allocation91_spill] sm:$0xff] }
 0x197   : > { %13611 = vst [vmem:[#allocation8_spill] sm:$0xff] %v13610_v40  ;;  %13614 = vst [vmem:[#allocation200_spill] sm:$0xff] %v13613_v58  ;;  %4748 = vmatpush1.bf16.msk.msra.mxu0 %vm13616_vm1, %v13615_v4  ;;  %v13619_v9 = vmov 0  ;;  %vm8867_vm12 = vcmp.eq.s32.totalorder %v1255_v29, 1  ;;  %v13622_v54 = vmov 0  ;;  %vm8871_vm3 = vcmp.eq.s32.totalorder %v514_v55, 1  ;;  %4933 = vmatprep.subr.msk.bf16.mxu1 %vm8804_vm2, %v4932_v24 }
 0x198   : > { %vm8863_vm8 = vmpackc.low %vm13618_vm15, %vm13580_vm0  ;;  %v13623_v54 = vsel %vm8867_vm12, 4294967295, %v13622_v54  ;;  %v13625_v12 = vmov 0  ;;  %vm8875_vm1 = vcmp.eq.s32.totalorder %v710_v25, 1  ;;  %v13628_v61 = vmov 0  ;;  %4751 = vmatprep.subr.msk.bf16.mxu0 %vm8787_vm11, %v4750_v14  ;;  %v13637_v25 = vld [vmem:[#allocation27_spill] sm:$0xff]  ;;  %v13638_v24 = vld [vmem:[#allocation32_spill] sm:$0xff] }
 0x199   : > { %v13620_v9 = vsel %vm8863_vm8, 4294967295, %v13619_v9  ;;  %13624 = vst [vmem:[#allocation234_spill] sm:$0xff] %v13623_v54  ;;  %v13626_v12 = vsel %vm8871_vm3, 4294967295, %v13625_v12  ;;  %v13629_v61 = vsel %vm8875_vm1, 4294967295, %v13628_v61  ;;  %vm8879_vm10 = vcmp.eq.s32.totalorder %v570_v33, 1  ;;  %v13639_v4 = vld [vmem:[#allocation170_spill] sm:$0xff] }
 0x19a   : > { %13621 = vst [vmem:[#allocation59_spill] sm:$0xff] %v13620_v9  ;;  %13627 = vst [vmem:[#allocation235_spill] sm:$0xff] %v13626_v12  ;;  %v13631_v50 = vmov 0  ;;  %vm8891_vm9 = vcmp.eq.s32.totalorder %v766_v28, 1  ;;  %v13634_v2 = vmov 0  ;;  %v510_v33 = vrot.slane %v13340_v62, %v12956_v8  ;;  %v13687_v9 = vld [vmem:[#allocation3_spill] sm:$0xff] }
 0x19b   : > { %13630 = vst [vmem:[#allocation236_spill] sm:$0xff] %v13629_v61  ;;  %v13632_v50 = vsel %vm8879_vm10, 4294967295, %v13631_v50  ;;  %v13635_v2 = vsel %vm8891_vm9, 4294967295, %v13634_v2  ;;  %v706_v29 = vrot.slane %v13349_v11, %v12956_v8  ;;  %v566_v55 = vrot.slane %v8711_v30, %v13097_v59  ;;  %vm13664_vm9 = vmpackc.low %vm8795_vm14, %vm8791_vm5 }
 0x19c   : > { %13633 = vst [vmem:[#allocation237_spill] sm:$0xff] %v13632_v50  ;;  %13636 = vst [vmem:[#allocation238_spill] sm:$0xff] %v13635_v2  ;;  %v4935_v14 = vpack.c.bf16 %v8833_v42, %v13637_v25  ;;  %v762_v28 = vrot.slane %v8726_v53, %v13097_v59  ;;  %v1615_v62 = vrot.slane %v13639_v4, %v13638_v24  ;;  %vm13642_vm2 = vcmp.lt.s32.totalorder %v5967_v16, 1  ;;  %v13710_v50 = vld [vmem:[#allocation20_spill] sm:$0xff] }
 0x19d   : > { %v1811_v11 = vrot.slane %v13640_v10, %v13638_v24  ;;  %v4756_v1 = vpack.c.bf16 %v13641_v15, %v13576_v49  ;;  %v424_v37 = vsel %vm13642_vm2, %v403_v41, %v405_v26  ;;  %vm13644_vm13 = vcmp.lt.s32.totalorder %v5967_v16, 127  ;;  %v13653_v26 = vld [vmem:[#allocation138_spill] sm:$0xff] }
 0x19e   : > { %v8921_v36 = vsel %vm13644_vm13, %v13643_v51, %v13607_v6  ;;  %v4938_v59 = vpack.c.bf16 %v8732_v34, %v8833_v42  ;;  %vm13646_vm11 = vnez %v13603_v48  ;;  %v13647_v49 = vrot.slane %v13566_v44, %v13638_v24  ;;  %4936 = vmatpush1.bf16.msk.msra.mxu1 %vm8863_vm8, %v4935_v14  ;;  %v13654_v34 = vld [vmem:[#allocation38_spill] sm:$0xff]  ;;  %vm13665_vm8 = vmpackc.low %vm8812_vm6, %vm8808_vm7  ;;  %v13745_v48 = vld [vmem:[#allocation12_spill] sm:$0xff] }
 0x19f   : > { %v13648_v15 = vmov 0  ;;  %vm13651_vm2 = vnez %v13610_v40  ;;  %vm13652_vm13 = vnez %v13613_v58  ;;  %v13655_v6 = vrot.slane %v13653_v26, %v13654_v34  ;;  %v13690_v40 = vld [vmem:[#allocation87_spill] sm:$0xff] }
 0x1a0   : > { %vm8932_vm0 = vcmp.eq.s32.totalorder %v13647_v49, 1  ;;  %4754 = vmatpush1.bf16.msk.msra.mxu0 %vm13651_vm2, %v4753_v35  ;;  %v13656_v51 = vmov 0  ;;  %v13659_v49 = vld [vmem:[#allocation54_spill] sm:$0xff]  ;;  %v13661_v35 = vmov 0  ;;  %4939 = vmatprep.subr.msk.bf16.mxu1 %vm13665_vm8, %v4938_v59  ;;  %v1671_v59 = vrot.slane %v8398_v3, %v13654_v34 }
 0x1a1   : > { %v13649_v15 = vsel %vm8932_vm0, 4294967295, %v13648_v15  ;;  %vm8947_vm4 = vcmp.eq.s32.totalorder %v13655_v6, 1  ;;  %v13660_v20 = vrot.slane %v13653_v26, %v13659_v49  ;;  %4757 = vmatprep.subr.msk.bf16.mxu0 %vm13664_vm9, %v4756_v1  ;;  %v13669_v6 = vmov 0 }
 0x1a2   : > { %13650 = vst [vmem:[#allocation27_spill] sm:$0xff] %v13649_v15  ;;  %v13657_v51 = vsel %vm8947_vm4, 4294967295, %v13656_v51  ;;  %vm8978_vm4 = vcmp.eq.s32.totalorder %v706_v29, 1  ;;  %vm8982_vm9 = vcmp.eq.s32.totalorder %v566_v55, 1  ;;  %v13672_v1 = vmov 0 }
 0x1a3   : > { %13658 = vst [vmem:[#allocation32_spill] sm:$0xff] %v13657_v51  ;;  %vm8954_vm15 = vcmp.eq.s32.totalorder %v13660_v20, 1  ;;  %v13666_v20 = vmov 0  ;;  %v13670_v6 = vsel %vm8978_vm4, 4294967295, %v13669_v6  ;;  %v13673_v1 = vsel %vm8982_vm9, 4294967295, %v13672_v1 }
 0x1a4   : > { %v13662_v35 = vsel %vm8954_vm15, 4294967295, %v13661_v35  ;;  %vm8974_vm15 = vcmp.eq.s32.totalorder %v510_v33, 1  ;;  %13671 = vst [vmem:[#allocation85_spill] sm:$0xff] %v13670_v6  ;;  %13674 = vst [vmem:[#allocation161_spill] sm:$0xff] %v13673_v1  ;;  %v4941_v14 = vpack.c.bf16 %v424_v37, %v8921_v36  ;;  %vm13675_vm8 = vnez %v13635_v2 }
 0x1a5   : > { %13663 = vst [vmem:[#allocation170_spill] sm:$0xff] %v13662_v35  ;;  %v13667_v20 = vsel %vm8974_vm15, 4294967295, %v13666_v20  ;;  %vm8993_vm7 = vcmp.eq.s32.totalorder %v762_v28, 1  ;;  %v13676_v33 = vmov 0  ;;  %vm8997_vm6 = vcmp.eq.s32.totalorder %v1615_v62, 1 }
 0x1a6   : > { %13668 = vst [vmem:[#allocation175_spill] sm:$0xff] %v13667_v20  ;;  %v13677_v33 = vsel %vm8993_vm7, 4294967295, %v13676_v33  ;;  %v13679_v29 = vmov 0  ;;  %vm9001_vm5 = vcmp.eq.s32.totalorder %v1811_v11, 1  ;;  %v13682_v55 = vmov 0 }
 0x1a7   : > { %13678 = vst [vmem:[#allocation138_spill] sm:$0xff] %v13677_v33  ;;  %v13680_v29 = vsel %vm8997_vm6, 4294967295, %v13679_v29  ;;  %v13683_v55 = vsel %vm9001_vm5, 4294967295, %v13682_v55  ;;  %vm13686_vm14 = vnez %v13569_v5  ;;  %v2117_v13 = vsel %vm8932_vm0, %v13687_v9, 0.0  ;;  %v13703_v5 = vld [vmem:[#allocation125_spill] sm:$0xff]  ;;  %vm13705_vm0 = vmpackc.low %vm13675_vm8, %vm8879_vm10 }
 0x1a8   : > { %13681 = vst [vmem:[#allocation38_spill] sm:$0xff] %v13680_v29  ;;  %13684 = vst [vmem:[#allocation54_spill] sm:$0xff] %v13683_v55  ;;  %v2116_v45 = vsel %vm13686_vm14, %v13685_v7, 0.0  ;;  %v9012_v28 = vpack.c.bf16 %v13637_v25, %v424_v37  ;;  %v1867_v62 = vrot.slane %v8403_v39, %v13654_v34  ;;  %v13691_v11 = vpack.c.bf16 %v13689_v22, %v13690_v40  ;;  %v13695_v37 = vld [vmem:[#allocation64_spill] sm:$0xff] }
 0x1a9   : > { %vm13692_vm2 = vnez %v13600_v21  ;;  %vm13694_vm14 = vmpackc.low %vm8867_vm12, %vm13652_vm13  ;;  %vm13696_vm6 = vnez %v13657_v51  ;;  %v13697_v22 = vld [vmem:[#allocation196_spill] sm:$0xff]  ;;  %vm13698_vm7 = vnez %v13662_v35  ;;  %v1611_v25 = vrot.slane %v13639_v4, %v13179_v32  ;;  %v13712_v35 = vld [vmem:[#allocation33_spill] sm:$0xff] }
 0x1aa   : > { %13688 = vst [vmem:[#allocation2_spill] sm:$0xff] %v9012_v28  ;;  %vm13693_vm5 = vmpackc.low %vm13646_vm11, %vm13692_vm2  ;;  %4942 = vmatpush1.bf16.msk.msra.mxu1 %vm13694_vm14, %v4941_v14  ;;  %v2131_v40 = vsel %vm13696_vm6, %v13695_v37, 0.0  ;;  %v2130_v9 = vsel %vm13698_vm7, %v13697_v22, 0.0  ;;  %v13699_v14 = vld [vmem:[#allocation162_spill] sm:$0xff]  ;;  %vm13701_vm14 = vcmp.lt.s32.totalorder %v5967_v16, 1  ;;  %vm13706_vm7 = vnez %v13677_v33  ;;  %v13716_v21 = vld [vmem:[#allocation131_spill] sm:$0xff] }
 0x1ab   : > { %4760 = vmatpush1.bf16.msk.msra.mxu0 %vm13693_vm5, %v13691_v11  ;;  %v1807_v11 = vrot.slane %v13640_v10, %v13179_v32  ;;  %v13700_v58 = vunpack.i.h.bf16 %v13699_v14  ;;  %vm13704_vm5 = vmpackc.low %vm8875_vm1, %vm8871_vm3  ;;  %4945 = vmatprep.subr.msk.bf16.mxu1 %vm13705_vm0, %v9012_v28  ;;  %vm9065_vm6 = vcmp.eq.s32.totalorder %v1671_v59, 1  ;;  %v2276_v37 = vpack.c.bf16 %v2116_v45, %v2116_v45  ;;  %v13739_v33 = vld [vmem:[#allocation188_spill] sm:$0xff]  ;;  %v411_v28 = vpop.permute.xlu0 %410 }
 0x1ac   : > { %4763 = vmatprep.subr.msk.bf16.mxu0 %vm13704_vm5, %v13703_v5  ;;  %v1863_v5 = vrot.slane %v8403_v39, %v13659_v49  ;;  %v2277_v14 = vpack.c.bf16 %v2117_v13, %v2117_v13  ;;  %v1415_v51 = vrot.slane %v13712_v35, %v13638_v24  ;;  %v2291_v12 = vpack.c.bf16 %v2131_v40, %v2131_v40  ;;  %vm13717_vm5 = vmpackc.low %vm8978_vm4, %vm8974_vm15  ;;  %v13723_v40 = vld [vmem:[#allocation11_spill] sm:$0xff] }
 0x1ad   : > { %v9047_v54 = vsel %vm13701_vm14, %v13700_v58, %v403_v41  ;;  %vm12253_vm14 = vmpackc.low %vm13706_vm7, %vm8982_vm9  ;;  %v13707_v58 = vmov 0  ;;  %v1667_v41 = vrot.slane %v8398_v3, %v13659_v49  ;;  %v2290_v59 = vpack.c.bf16 %v2130_v9, %v2130_v9  ;;  %v13724_v9 = vld [vmem:[#allocation148_spill] sm:$0xff] }
 0x1ae   : > { %13702 = vst [vmem:[#allocation3_spill] sm:$0xff] %v9047_v54  ;;  %v13708_v58 = vsel %vm9065_vm6, 4294967295, %v13707_v58  ;;  %v9075_v2 = vpack.c.bf16 %v13710_v50, %v9047_v54  ;;  %vm9079_vm0 = vcmp.eq.s32.totalorder %v1867_v62, 1  ;;  %v13713_v61 = vmov 0  ;;  %v13748_v54 = vld [vmem:[#allocation108_spill] sm:$0xff] }
 0x1af   : > { %13709 = vst [vmem:[#allocation91_spill] sm:$0xff] %v13708_v58  ;;  %v13714_v61 = vsel %vm9079_vm0, 4294967295, %v13713_v61  ;;  %v1471_v15 = vrot.slane %v8521_v43, %v13654_v34  ;;  %4766 = vmatpush1.bf16.msk.msra.mxu0 %vm13717_vm5, %v13716_v21  ;;  %vm9097_vm10 = vcmp.eq.s32.totalorder %v1611_v25, 1  ;;  %v13718_v13 = vmov 0 }
 0x1b0   : > { %13711 = vst [vmem:[#allocation87_spill] sm:$0xff] %v9075_v2  ;;  %13715 = vst [vmem:[#allocation64_spill] sm:$0xff] %v13714_v61  ;;  %4948 = vmatpush1.bf16.msk.msra.mxu1 %vm12253_vm14, %v9075_v2  ;;  %v13719_v13 = vsel %vm9097_vm10, 4294967295, %v13718_v13  ;;  %vm9101_vm8 = vcmp.eq.s32.totalorder %v1807_v11, 1  ;;  %v13721_v45 = vmov 0  ;;  %v1411_v62 = vrot.slane %v13712_v35, %v13179_v32  ;;  %v13767_v61 = vld [vmem:[#allocation94_spill] sm:$0xff] }
 0x1b1   : > { %13720 = vst [vmem:[#allocation196_spill] sm:$0xff] %v13719_v13  ;;  %v13722_v45 = vsel %vm9101_vm8, 4294967295, %v13721_v45  ;;  %vm13725_vm5 = vcmask 1043456   ;;  %vm13727_vm9 = vnez %v13680_v29  ;;  %vm13728_vm7 = vnez %v13683_v55 }
 0x1b2   : > { %4794 = vmatprep.subr.msk.bf16.mxu0 %vm13725_vm5, %v2277_v14  ;;  %vm13726_vm14 = vmmov %vm13725_vm5  ;;  %vm9117_vm12 = vcmp.eq.s32.totalorder %v1667_v41, 1  ;;  %v13729_v25 = vmov 0  ;;  %vm9121_vm15 = vcmp.eq.s32.totalorder %v1863_v5, 1  ;;  %v13732_v11 = vmov 0  ;;  %v13738_v41 = vld [vmem:[#allocation29_spill] sm:$0xff] }
 0x1b3   : > { %4976 = vmatprep.subr.msk.bf16.mxu1 %vm13726_vm14, %v2291_v12  ;;  %v13730_v25 = vsel %vm9117_vm12, 4294967295, %v13729_v25  ;;  %v13733_v11 = vsel %vm9121_vm15, 4294967295, %v13732_v11  ;;  %v1467_v21 = vrot.slane %v8521_v43, %v13659_v49  ;;  %vm13735_vm4 = vmmov %vm13725_vm5  ;;  %vm9132_vm5 = vcmp.eq.s32.totalorder %v1415_v51, 1  ;;  %v13779_v43 = vld [vmem:[#allocation151_spill] sm:$0xff] }
 0x1b4   : > { %13731 = vst [vmem:[#allocation162_spill] sm:$0xff] %v13730_v25  ;;  %13734 = vst [vmem:[#allocation125_spill] sm:$0xff] %v13733_v11  ;;  %v2353_v14 = vsel %vm13735_vm4, %v2276_v37, 0  ;;  %v1023_v5 = vrot.slane %v13738_v41, %v13638_v24  ;;  %v1219_v1 = vrot.slane %v13739_v33, %v13638_v24  ;;  %vm13740_vm13 = vcmask 588800  }
 0x1b5   : > { %4767 = vmatmul.mubr.msk.bf16.vlgmr.msra.gmra.mxu0 %vm13740_vm13, %v8289_v63  ;;  %vm13741_vm4 = vmmov %vm13740_vm13  ;;  %vm9149_vm1 = vcmp.eq.s32.totalorder %v1471_v15, 1  ;;  %v1079_v20 = vrot.slane %v8657_v46, %v13654_v34  ;;  %v1275_v6 = vrot.slane %v8640_v17, %v13654_v34  ;;  %v4802_v18 = vpack.c.bf16 %v13685_v7, %v13745_v48  ;;  %v13750_v7 = vld [vmem:[#allocation202_spill] sm:$0xff]  ;;  %v13776_v15 = vld [vmem:[#allocation116_spill] sm:$0xff] }
 0x1b6   : > { %4949 = vmatmul.mubr.msk.bf16.vlgmr.msra.gmra.mxu1 %vm13741_vm4, %v8289_v63  ;;  %vm13742_vm3 = vmmov %vm13726_vm14  ;;  %2735 = vmatpush1.bf16.msra.mxu0 %v2353_v14  ;;  %vm9163_vm13 = vcmp.eq.s32.totalorder %v1411_v62, 1  ;;  %v1215_v19 = vrot.slane %v13739_v33, %v13179_v32  ;;  %vm13752_vm14 = vmmov 1   ;;  %v13753_v48 = vmov 0  ;;  %v13756_v62 = vld [vmem:[#allocation23_spill] sm:$0xff] }
 0x1b7   : > { %v2395_v37 = vsel %vm13742_vm3, %v2290_v59, 0  ;;  %v1019_v59 = vrot.slane %v13738_v41, %v13179_v32  ;;  %vm13749_vm4 = vmpackc.low %vm13728_vm7, %vm13727_vm9  ;;  %v4984_v14 = vpack.c.bf16 %v13697_v22, %v13756_v62  ;;  %vm9192_vm11 = vcmp.eq.s32.totalorder %v1467_v21, 1  ;;  %v13766_v21 = vld [vmem:[#allocation206_spill] sm:$0xff]  ;;  %2760 = vmatprep.mubr.bf16.mxu0 %v13431_v23  ;;  %3047 = vmatprep.mubr.bf16.mxu1 %v13431_v23 }
 0x1b8   : > { %3022 = vmatpush1.bf16.msra.mxu1 %v2395_v37  ;;  %4797 = vmatprep.subr.msk.bf16.mxu0 %vm13749_vm4, %v13748_v54  ;;  %vm13751_vm3 = vmpackc.low %vm9079_vm0, %vm9065_vm6  ;;  %v1075_v54 = vrot.slane %v8657_v46, %v13659_v49  ;;  %v13759_v12 = vmov 0  ;;  %v13762_v58 = vmov 0  ;;  %vm9211_vm4 = vcmp.eq.s32.totalorder %v1219_v1, 1  ;;  %v13778_v46 = vld [vmem:[#allocation207_spill] sm:$0xff] }
 0x1b9   : > { %4979 = vmatprep.subr.msk.bf16.mxu1 %vm13751_vm3, %v13750_v7  ;;  %vm9186_vm2 = vmpackc.low %vm9132_vm5, %vm13752_vm14  ;;  %v1271_v7 = vrot.slane %v8640_v17, %v13659_v49  ;;  %vm9207_vm3 = vcmp.eq.s32.totalorder %v1023_v5, 1  ;;  %v13764_v22 = vmov 0  ;;  %v530_v62 = vrot.slane %v13766_v21, %v13638_v24  ;;  %v13777_v17 = vld [vmem:[#allocation22_spill] sm:$0xff] }
 0x1ba   : > { %v13754_v48 = vsel %vm9186_vm2, 4294967295, %v13753_v48  ;;  %vm9203_vm5 = vmpackc.low %vm9149_vm1, %vm13752_vm14  ;;  %v13763_v58 = vsel %vm9207_vm3, 4294967295, %v13762_v58  ;;  %v13765_v22 = vsel %vm9211_vm4, 4294967295, %v13764_v22  ;;  %v726_v29 = vrot.slane %v13767_v61, %v13638_v24 }
 0x1bb   : > { %13755 = vst [vmem:[#allocation33_spill] sm:$0xff] %v13754_v48  ;;  %v13760_v12 = vsel %vm9203_vm5, 4294967295, %v13759_v12  ;;  %vm9224_vm1 = vmpackc.low %vm9163_vm13, %vm13752_vm14  ;;  %v13768_v5 = vmov 0  ;;  %vm9228_vm6 = vcmp.eq.s32.totalorder %v1079_v20, 1  ;;  %v13770_v1 = vmov 0  ;;  %v13804_v48 = vld [vmem:[#allocation53_spill] sm:$0xff] }
 0x1bc   : > { %13761 = vst [vmem:[#allocation131_spill] sm:$0xff] %v13760_v12  ;;  %v13769_v5 = vsel %vm9224_vm1, 4294967295, %v13768_v5  ;;  %v13771_v1 = vsel %vm9228_vm6, 4294967295, %v13770_v1  ;;  %vm9232_vm0 = vcmp.eq.s32.totalorder %v1275_v6, 1  ;;  %v13773_v51 = vmov 0  ;;  %vm13780_vm13 = vmpackc.low %vm9101_vm8, %vm9097_vm10  ;;  %v13781_v6 = vld [vmem:[#allocation106_spill] sm:$0xff] }
 0x1bd   : > { %13772 = vst [vmem:[#allocation11_spill] sm:$0xff] %v13771_v1  ;;  %v13774_v51 = vsel %vm9232_vm0, 4294967295, %v13773_v51  ;;  %v586_v55 = vrot.slane %v8711_v30, %v13654_v34  ;;  %v782_v2 = vrot.slane %v8726_v53, %v13654_v34  ;;  %v4808_v50 = vpack.c.bf16 %v13776_v15, %v13724_v9  ;;  %4800 = vmatpush1.bf16.msk.msra.mxu0 %vm13780_vm13, %v13779_v43  ;;  %vm13782_vm9 = vmpackc.low %vm9121_vm15, %vm9117_vm12  ;;  %v13801_v12 = vld [vmem:[#allocation183_spill] sm:$0xff] }
 0x1be   : > { %13775 = vst [vmem:[#allocation148_spill] sm:$0xff] %v13774_v51  ;;  %v4987_v20 = vpack.c.bf16 %v13778_v46, %v13777_v17  ;;  %4982 = vmatpush1.bf16.msk.msra.mxu1 %vm13782_vm9, %v13781_v6  ;;  %vm9259_vm7 = vmpackc.low %vm9192_vm11, %vm13752_vm14  ;;  %v13783_v34 = vmov 0  ;;  %vm9263_vm1 = vcmp.eq.s32.totalorder %v1019_v59, 1  ;;  %v13786_v15 = vmov 0  ;;  %4803 = vmatprep.subr.msk.bf16.mxu0 %vm9186_vm2, %v4802_v18 }
 0x1bf   : > { %v13784_v34 = vsel %vm9259_vm7, 4294967295, %v13783_v34  ;;  %v13787_v15 = vsel %vm9263_vm1, 4294967295, %v13786_v15  ;;  %vm9267_vm10 = vcmp.eq.s32.totalorder %v1215_v19, 1  ;;  %4985 = vmatprep.subr.msk.bf16.mxu1 %vm9203_vm5, %v4984_v14  ;;  %vm9279_vm9 = vcmp.eq.s32.totalorder %v1075_v54, 1 }
 0x1c0   : > { %13785 = vst [vmem:[#allocation29_spill] sm:$0xff] %v13784_v34  ;;  %v13790_v59 = vmov 0  ;;  %vm9283_vm13 = vcmp.eq.s32.totalorder %v1271_v7, 1  ;;  %v13793_v19 = vmov 0  ;;  %v526_v37 = vrot.slane %v13766_v21, %v13179_v32 }
 0x1c1   : > { %v13791_v59 = vsel %vm9279_vm9, 4294967295, %v13790_v59  ;;  %v13794_v19 = vsel %vm9283_vm13, 4294967295, %v13793_v19  ;;  %v722_v18 = vrot.slane %v13767_v61, %v13179_v32  ;;  %vm9295_vm11 = vcmp.eq.s32.totalorder %v530_v62, 1 }
 0x1c2   : > { %13792 = vst [vmem:[#allocation188_spill] sm:$0xff] %v13791_v59  ;;  %13795 = vst [vmem:[#allocation12_spill] sm:$0xff] %v13794_v19  ;;  %v13796_v14 = vmov 0  ;;  %vm9299_vm12 = vcmp.eq.s32.totalorder %v726_v29, 1  ;;  %v13799_v54 = vmov 0  ;;  %v582_v7 = vrot.slane %v8711_v30, %v13659_v49  ;;  %4988 = vmatpush1.bf16.msk.msra.mxu1 %vm9259_vm7, %v4987_v20 }
 0x1c3   : > { %v13797_v14 = vsel %vm9295_vm11, 4294967295, %v13796_v14  ;;  %v13800_v54 = vsel %vm9299_vm12, 4294967295, %v13799_v54  ;;  %v778_v6 = vrot.slane %v8726_v53, %v13659_v49  ;;  %v13802_v25 = vunpack.i.h.bf16 %v13801_v12 }
 0x1c4   : > { %13798 = vst [vmem:[#allocation108_spill] sm:$0xff] %v13797_v14  ;;  %vm13803_vm15 = vcmp.lt.s32.totalorder %v5967_v16, 1  ;;  %v13805_v62 = vunpack.i.l.bf16 %v13455_v56  ;;  %vm13806_vm5 = vcmp.lt.s32.totalorder %v5967_v16, 127  ;;  %vm9322_vm8 = vcmp.eq.s32.totalorder %v586_v55, 1 }
 0x1c5   : > { %v420_v11 = vsel %vm13803_vm15, %v411_v28, %v13802_v25  ;;  %v13807_v13 = vmov 0  ;;  %vm9326_vm14 = vcmp.eq.s32.totalorder %v782_v2, 1  ;;  %v13810_v49 = vmov 0 }
 0x1c6   : > { %v9316_v29 = vsel %vm13806_vm5, %v13805_v62, %v13804_v48  ;;  %v13808_v13 = vsel %vm9322_vm8, 4294967295, %v13807_v13  ;;  %v13811_v49 = vsel %vm9326_vm14, 4294967295, %v13810_v49  ;;  %v13813_v56 = vpack.c.bf16 %v13724_v9, %v13723_v40  ;;  %v13819_v40 = vld [vmem:[#allocation195_spill] sm:$0xff]  ;;  %vm13821_vm5 = vmpackc.low %vm9232_vm0, %vm9228_vm6 }
 0x1c7   : > { %13809 = vst [vmem:[#allocation202_spill] sm:$0xff] %v13808_v13  ;;  %13812 = vst [vmem:[#allocation23_spill] sm:$0xff] %v13811_v49  ;;  %vm13814_vm15 = vnez %v13769_v5  ;;  %v13815_v2 = vrot.slane %v13566_v44, %v13398_v27  ;;  %v13816_v55 = vmov 0  ;;  %v13820_v9 = vpack.c.bf16 %v13819_v40, %v13778_v46  ;;  %v13838_v40 = vld [vmem:[#allocation113_spill] sm:$0xff]  ;;  %v13855_v13 = vld [vmem:[#allocation28_spill] sm:$0xff] }
 0x1c8   : > { %4806 = vmatpush1.bf16.msk.msra.mxu0 %vm13814_vm15, %v13813_v56  ;;  %vm13818_vm15 = vmpackc.low %vm9211_vm4, %vm9207_vm3  ;;  %vm9365_vm9 = vcmp.eq.s32.totalorder %v526_v37, 1  ;;  %v13822_v25 = vmov 0  ;;  %vm9369_vm3 = vcmp.eq.s32.totalorder %v722_v18, 1  ;;  %v13828_v48 = vrot.slane %v13566_v44, %v12956_v8 }
 0x1c9   : > { %vm9344_vm2 = vcmp.eq.s32.totalorder %v13815_v2, 1  ;;  %4809 = vmatprep.subr.msk.bf16.mxu0 %vm13818_vm15, %v4808_v50  ;;  %4991 = vmatprep.subr.msk.bf16.mxu1 %vm13821_vm5, %v13820_v9  ;;  %v13823_v25 = vsel %vm9365_vm9, 4294967295, %v13822_v25  ;;  %v13825_v50 = vmov 0  ;;  %v4993_v20 = vpack.c.bf16 %v420_v11, %v9316_v29  ;;  %v13837_v2 = vld [vmem:[#allocation117_spill] sm:$0xff]  ;;  %vm13840_vm5 = vmpackc.low %vm9267_vm10, %vm9263_vm1 }
 0x1ca   : > { %v13817_v55 = vsel %vm9344_vm2, 4294967295, %v13816_v55  ;;  %13824 = vst [vmem:[#allocation206_spill] sm:$0xff] %v13823_v25  ;;  %v13826_v50 = vsel %vm9369_vm3, 4294967295, %v13825_v50  ;;  %vm9376_vm15 = vcmp.eq.s32.totalorder %v13828_v48, 1  ;;  %vm9385_vm7 = vcmp.eq.s32.totalorder %v582_v7, 1  ;;  %vm12313_vm4 = vmpackc.low %vm9369_vm3, %vm9365_vm9  ;;  %v14154_v25 = vld [vmem:[#allocation180_spill] sm:$0xff] }
 0x1cb   : > { %13827 = vst [vmem:[#allocation94_spill] sm:$0xff] %v13826_v50  ;;  %v13831_v37 = vmov 0  ;;  %vm9389_vm6 = vcmp.eq.s32.totalorder %v778_v6, 1  ;;  %v13834_v18 = vmov 0  ;;  %v9394_v44 = vpack.c.bf16 %v13777_v17, %v420_v11  ;;  %v13845_v6 = vld [vmem:[#allocation171_spill] sm:$0xff]  ;;  %v14184_v50 = vld [vmem:[#allocation92_spill] sm:$0xff] }
 0x1cc   : > { %v13832_v37 = vsel %vm9385_vm7, 4294967295, %v13831_v37  ;;  %v13835_v18 = vsel %vm9389_vm6, 4294967295, %v13834_v18  ;;  %v2121_v62 = vsel %vm9344_vm2, %v8412_v57, 0.0  ;;  %v1631_v56 = vrot.slane %v13639_v4, %v13398_v27 }
 0x1cd   : > { %13833 = vst [vmem:[#allocation116_spill] sm:$0xff] %v13832_v37  ;;  %13836 = vst [vmem:[#allocation22_spill] sm:$0xff] %v13835_v18  ;;  %v1827_v7 = vrot.slane %v13640_v10, %v13398_v27  ;;  %v13839_v9 = vpack.c.bf16 %v13837_v2, %v13838_v40  ;;  %vm13841_vm0 = vnez %v13791_v59  ;;  %v2120_v57 = vsel %vm9376_vm15, %v8488_v52, 0.0  ;;  %v13919_v59 = vld [vmem:[#allocation14_spill] sm:$0xff] }
 0x1ce   : > { %vm13842_vm2 = vmpackc.low %vm9283_vm13, %vm13841_vm0  ;;  %v13843_v17 = vunpack.i.h.bf16 %v13558_v0  ;;  %vm13844_vm1 = vcmp.lt.s32.totalorder %v5967_v16, 1  ;;  %v13848_v0 = vld [vmem:[#allocation26_spill] sm:$0xff]  ;;  %v2281_v48 = vpack.c.bf16 %v2121_v62, %v2121_v62  ;;  %v1823_v2 = vrot.slane %v13640_v10, %v12956_v8 }
 0x1cf   : > { %4812 = vmatpush1.bf16.msk.msra.mxu0 %vm13840_vm5, %v13839_v9  ;;  %4994 = vmatpush1.bf16.msk.msra.mxu1 %vm13842_vm2, %v4993_v20  ;;  %vm13846_vm2 = vmpackc.low %vm9299_vm12, %vm9295_vm11  ;;  %v1627_v20 = vrot.slane %v13639_v4, %v12956_v8  ;;  %v2280_v40 = vpack.c.bf16 %v2120_v57, %v2120_v57  ;;  %v13849_v9 = vmov 0  ;;  %v13857_v10 = vmov 0 }
 0x1d0   : > { %v9427_v11 = vsel %vm13844_vm1, %v13843_v17, %v411_v28  ;;  %4815 = vmatprep.subr.msk.bf16.mxu0 %vm13846_vm2, %v13845_v6  ;;  %vm13847_vm5 = vmpackc.low %vm9326_vm14, %vm9322_vm8  ;;  %vm9453_vm2 = vcmp.eq.s32.totalorder %v1631_v56, 1  ;;  %v13852_v17 = vmov 0  ;;  %v1431_v6 = vrot.slane %v13712_v35, %v13398_v27 }
 0x1d1   : > { %4997 = vmatprep.subr.msk.bf16.mxu1 %vm13847_vm5, %v9394_v44  ;;  %vm12312_vm1 = vmpackc.low %vm9389_vm6, %vm9385_vm7  ;;  %v9447_v28 = vpack.c.bf16 %v13848_v0, %v9427_v11  ;;  %v13850_v9 = vsel %vm9453_vm2, 4294967295, %v13849_v9  ;;  %vm9457_vm5 = vcmp.eq.s32.totalorder %v1827_v7, 1  ;;  %vm13856_vm8 = vcmask 1043456  }
 0x1d2   : > { %13851 = vst [vmem:[#allocation207_spill] sm:$0xff] %v13850_v9  ;;  %v13853_v17 = vsel %vm9457_vm5, 4294967295, %v13852_v17  ;;  %vm9480_vm0 = vcmp.eq.s32.totalorder %v1627_v20, 1  ;;  %vm9484_vm13 = vcmp.eq.s32.totalorder %v1823_v2, 1  ;;  %v13860_v4 = vmov 0 }
 0x1d3   : > { %13854 = vst [vmem:[#allocation151_spill] sm:$0xff] %v13853_v17  ;;  %4818 = vmatpush1.bf16.msk.msra.mxu0 %vm12313_vm4, %v13855_v13  ;;  %5000 = vmatpush1.bf16.msk.msra.mxu1 %vm12312_vm1, %v9447_v28  ;;  %v13858_v10 = vsel %vm9480_vm0, 4294967295, %v13857_v10  ;;  %v13861_v4 = vsel %vm9484_vm13, 4294967295, %v13860_v4  ;;  %v1427_v13 = vrot.slane %v13712_v35, %v12956_v8  ;;  %vm13863_vm1 = vcmask 588800  }
 0x1d4   : > { %4846 = vmatprep.subr.msk.bf16.mxu0 %vm13856_vm8, %v2281_v48  ;;  %13859 = vst [vmem:[#allocation106_spill] sm:$0xff] %v13858_v10  ;;  %13862 = vst [vmem:[#allocation183_spill] sm:$0xff] %v13861_v4  ;;  %vm13865_vm4 = vcmask 1043456   ;;  %vm1493_vm14 = vcmp.eq.s32.totalorder %v1431_v6, 1  ;;  %v1039_v56 = vrot.slane %v13738_v41, %v13398_v27  ;;  %v1235_v7 = vrot.slane %v13739_v33, %v13398_v27 }
 0x1d5   : > { %vm13864_vm8 = vmmov %vm13863_vm1  ;;  %v2365_v62 = vsel %vm13865_vm4, %v2280_v40, 0  ;;  %v13868_v35 = vmov 0  ;;  %v4854_v57 = vpack.c.bf16 %v8488_v52, %v13531_v60  ;;  %vm1492_vm6 = vcmp.eq.s32.totalorder %v1427_v13, 1 }
 0x1d6   : > { %4819 = vmatmul.mubr.msk.bf16.vlgmr.msra.gmra.mxu0 %vm13863_vm1, %v8289_v63  ;;  %5001 = vmatmul.mubr.msk.bf16.vlgmr.msra.gmra.mxu1 %vm13864_vm8, %v8289_v63  ;;  %vm13866_vm1 = vmpackc.low %vm9457_vm5, %vm9453_vm2  ;;  %vm13867_vm8 = vmmov 1   ;;  %v1035_v48 = vrot.slane %v13738_v41, %v12956_v8  ;;  %v13871_v20 = vmov 0  ;;  %vm9526_vm4 = vcmp.eq.s32.totalorder %v1235_v7, 1  ;;  %v13879_v41 = vld [vmem:[#allocation190_spill] sm:$0xff] }
 0x1d7   : > { %2817 = vmatpush1.bf16.msra.mxu0 %v2365_v62  ;;  %2842 = vmatprep.mubr.bf16.mxu0 %v13431_v23  ;;  %vm9512_vm7 = vmpackc.low %vm1493_vm14, %vm13867_vm8  ;;  %v13874_v2 = vmov 0  ;;  %v546_v40 = vrot.slane %v13766_v21, %v13398_v27  ;;  %v742_v52 = vrot.slane %v13767_v61, %v13398_v27  ;;  %v2043_v60 = vrot.slane %v13653_v26, %v13638_v24 }
 0x1d8   : > { %4849 = vmatprep.subr.msk.bf16.mxu0 %vm13866_vm1, %v8566_v47  ;;  %3875 = vmatprep.mubr.bf16.mxu1 %v13431_v23  ;;  %v13869_v35 = vsel %vm9512_vm7, 4294967295, %v13868_v35  ;;  %v1231_v47 = vrot.slane %v13739_v33, %v12956_v8  ;;  %vm9522_vm1 = vcmp.eq.s32.totalorder %v1039_v56, 1  ;;  %v13875_v2 = vsel %vm9526_vm4, 4294967295, %v13874_v2  ;;  %vm13877_vm14 = vmpackc.low %vm9484_vm13, %vm9480_vm0  ;;  %v13878_v33 = vld [vmem:[#allocation15_spill] sm:$0xff] }
 0x1d9   : > { %13870 = vst [vmem:[#allocation53_spill] sm:$0xff] %v13869_v35  ;;  %v13872_v20 = vsel %vm9522_vm1, 4294967295, %v13871_v20  ;;  %13876 = vst [vmem:[#allocation117_spill] sm:$0xff] %v13875_v2  ;;  %v4857_v6 = vpack.c.bf16 %v13879_v41, %v13878_v33  ;;  %v2039_v13 = vrot.slane %v13653_v26, %v13179_v32  ;;  %v13880_v62 = vmov 0 }
 0x1da   : > { %13873 = vst [vmem:[#allocation195_spill] sm:$0xff] %v13872_v20  ;;  %vm9549_vm2 = vmpackc.low %vm1492_vm6, %vm13867_vm8  ;;  %vm9561_vm13 = vcmp.eq.s32.totalorder %v1231_v47, 1  ;;  %v13886_v56 = vmov 0  ;;  %v542_v7 = vrot.slane %v13766_v21, %v12956_v8  ;;  %v4860_v33 = vpack.c.bf16 %v8619_v31, %v13879_v41 }
 0x1db   : > { %4852 = vmatpush1.bf16.msk.msra.mxu0 %vm13877_vm14, %v8644_v38  ;;  %v13881_v62 = vsel %vm9549_vm2, 4294967295, %v13880_v62  ;;  %vm9557_vm14 = vcmp.eq.s32.totalorder %v1035_v48, 1  ;;  %v13883_v38 = vmov 0  ;;  %v13887_v56 = vsel %vm9561_vm13, 4294967295, %v13886_v56  ;;  %vm13901_vm9 = vmpackc.low %vm9526_vm4, %vm9522_vm1 }
 0x1dc   : > { %4855 = vmatprep.subr.msk.bf16.mxu0 %vm9512_vm7, %v4854_v57  ;;  %13882 = vst [vmem:[#allocation113_spill] sm:$0xff] %v13881_v62  ;;  %v13884_v38 = vsel %vm9557_vm14, 4294967295, %v13883_v38  ;;  %13888 = vst [vmem:[#allocation26_spill] sm:$0xff] %v13887_v56  ;;  %v738_v57 = vrot.slane %v13767_v61, %v12956_v8  ;;  %vm9571_vm6 = vcmp.eq.s32.totalorder %v546_v40, 1  ;;  %v13889_v37 = vmov 0 }
 0x1dd   : > { %13885 = vst [vmem:[#allocation171_spill] sm:$0xff] %v13884_v38  ;;  %v13890_v37 = vsel %vm9571_vm6, 4294967295, %v13889_v37  ;;  %vm9575_vm0 = vcmp.eq.s32.totalorder %v742_v52, 1  ;;  %v13892_v48 = vmov 0  ;;  %vm9579_vm7 = vcmp.eq.s32.totalorder %v2043_v60, 1  ;;  %vm12327_vm3 = vmpackc.low %vm9561_vm13, %vm9557_vm14 }
 0x1de   : > { %13891 = vst [vmem:[#allocation28_spill] sm:$0xff] %v13890_v37  ;;  %v13893_v48 = vsel %vm9575_vm0, 4294967295, %v13892_v48  ;;  %v13895_v47 = vmov 0  ;;  %vm9585_vm5 = vcmp.eq.s32.totalorder %v2039_v13, 1  ;;  %v13898_v61 = vmov 0  ;;  %v13909_v13 = vld [vmem:[#allocation140_spill] sm:$0xff] }
 0x1df   : > { %13894 = vst [vmem:[#allocation15_spill] sm:$0xff] %v13893_v48  ;;  %v13896_v47 = vsel %vm9579_vm7, 4294967295, %v13895_v47  ;;  %4858 = vmatpush1.bf16.msk.msra.mxu0 %vm9549_vm2, %v4857_v6  ;;  %v13899_v61 = vsel %vm9585_vm5, 4294967295, %v13898_v61  ;;  %vm12332_vm2 = vmpackc.low %vm9575_vm0, %vm9571_vm6  ;;  %vm9602_vm11 = vcmp.eq.s32.totalorder %v542_v7, 1  ;;  %v13902_v31 = vmov 0  ;;  %v13908_v6 = vld [vmem:[#allocation144_spill] sm:$0xff] }
 0x1e0   : > { %13897 = vst [vmem:[#allocation190_spill] sm:$0xff] %v13896_v47  ;;  %13900 = vst [vmem:[#allocation239_spill] sm:$0xff] %v13899_v61  ;;  %4861 = vmatprep.subr.msk.bf16.mxu0 %vm13901_vm9, %v4860_v33  ;;  %v13903_v31 = vsel %vm9602_vm11, 4294967295, %v13902_v31  ;;  %vm9606_vm12 = vcmp.eq.s32.totalorder %v738_v57, 1  ;;  %v13905_v21 = vmov 0  ;;  %v2125_v40 = vsel %vm9579_vm7, %v8833_v42, 0.0 }
 0x1e1   : > { %13904 = vst [vmem:[#allocation240_spill] sm:$0xff] %v13903_v31  ;;  %v13906_v21 = vsel %vm9606_vm12, 4294967295, %v13905_v21  ;;  %v1647_v52 = vrot.slane %v8398_v3, %v13638_v24  ;;  %v1843_v60 = vrot.slane %v8403_v39, %v13638_v24  ;;  %v2124_v41 = vsel %vm9585_vm5, %v8921_v36, 0.0  ;;  %v13911_v42 = vld [vmem:[#allocation210_spill] sm:$0xff]  ;;  %vm12336_vm9 = vmpackc.low %vm9606_vm12, %vm9602_vm11 }
 0x1e2   : > { %13907 = vst [vmem:[#allocation241_spill] sm:$0xff] %v13906_v21  ;;  %v13910_v7 = vpack.c.bf16 %v13908_v6, %v13909_v13  ;;  %v2285_v57 = vpack.c.bf16 %v2125_v40, %v2125_v40  ;;  %v1643_v33 = vrot.slane %v8398_v3, %v13179_v32  ;;  %v1839_v6 = vrot.slane %v8403_v39, %v13179_v32 }
 0x1e3   : > { %v2284_v13 = vpack.c.bf16 %v2124_v41, %v2124_v41  ;;  %vm9646_vm5 = vcmp.eq.s32.totalorder %v1843_v60, 1  ;;  %v13915_v18 = vmov 0  ;;  %v13921_v40 = vmov 0  ;;  %v13928_v41 = vld [vmem:[#allocation75_spill] sm:$0xff] }
 0x1e4   : > { %4864 = vmatpush1.bf16.msk.msra.mxu0 %vm12327_vm3, %v13910_v7  ;;  %vm9642_vm3 = vcmp.eq.s32.totalorder %v1647_v52, 1  ;;  %v13912_v7 = vmov 0  ;;  %v13916_v18 = vsel %vm9646_vm5, 4294967295, %v13915_v18  ;;  %vm9663_vm0 = vcmp.eq.s32.totalorder %v1643_v33, 1  ;;  %v13929_v33 = vld [vmem:[#allocation84_spill] sm:$0xff] }
 0x1e5   : > { %4867 = vmatprep.subr.msk.bf16.mxu0 %vm12332_vm2, %v13911_v42  ;;  %v13913_v7 = vsel %vm9642_vm3, 4294967295, %v13912_v7  ;;  %13917 = vst [vmem:[#allocation140_spill] sm:$0xff] %v13916_v18  ;;  %v13918_v42 = vld [vmem:[#allocation67_spill] sm:$0xff]  ;;  %vm13920_vm2 = vcmask 1043456   ;;  %vm12341_vm6 = vmpackc.low %vm9646_vm5, %vm9642_vm3  ;;  %v13922_v40 = vsel %vm9663_vm0, 4294967295, %v13921_v40  ;;  %vm9667_vm7 = vcmp.eq.s32.totalorder %v1839_v6, 1 }
 0x1e6   : > { %13914 = vst [vmem:[#allocation144_spill] sm:$0xff] %v13913_v7  ;;  %v1447_v49 = vrot.slane %v13918_v42, %v13638_v24  ;;  %13923 = vst [vmem:[#allocation210_spill] sm:$0xff] %v13922_v40  ;;  %v13924_v52 = vmov 0  ;;  %v1443_v60 = vrot.slane %v13918_v42, %v13179_v32  ;;  %v1251_v19 = vrot.slane %v13929_v33, %v13638_v24  ;;  %v13930_v6 = vld [vmem:[#allocation2_spill] sm:$0xff]  ;;  %v13941_v7 = vld [vmem:[#allocation87_spill] sm:$0xff] }
 0x1e7   : > { %v13925_v52 = vsel %vm9667_vm7, 4294967295, %v13924_v52  ;;  %v1051_v1 = vrot.slane %v13928_v41, %v13179_v32  ;;  %v13935_v51 = vmov 0  ;;  %v13938_v34 = vmov 0 }
 0x1e8   : > { %4870 = vmatpush1.bf16.msk.msra.mxu0 %vm12336_vm9, %v13919_v59  ;;  %13926 = vst [vmem:[#allocation67_spill] sm:$0xff] %v13925_v52  ;;  %vm13927_vm9 = vcmask 588800   ;;  %v2377_v59 = vsel %vm13920_vm2, %v2284_v13, 0  ;;  %vm1497_vm11 = vcmp.eq.s32.totalorder %v1447_v49, 1  ;;  %v13931_v49 = vld [vmem:[#allocation20_spill] sm:$0xff]  ;;  %vm1496_vm12 = vcmp.eq.s32.totalorder %v1443_v60, 1 }
 0x1e9   : > { %4898 = vmatprep.subr.msk.bf16.mxu0 %vm13920_vm2, %v2285_v57  ;;  %v1055_v57 = vrot.slane %v13928_v41, %v13638_v24  ;;  %v4906_v13 = vpack.c.bf16 %v8921_v36, %v13931_v49  ;;  %vm9694_vm2 = vmpackc.low %vm1497_vm11, %vm13867_vm8  ;;  %v562_v36 = vrot.slane %v8711_v30, %v13638_v24  ;;  %v758_v60 = vrot.slane %v8726_v53, %v13638_v24 }
 0x1ea   : > { %v2055_v49 = vrot.slane %v13653_v26, %v12956_v8  ;;  %vm13942_vm11 = vmpackc.low %vm9667_vm7, %vm9663_vm0  ;;  %v2059_v31 = vrot.slane %v13653_v26, %v13398_v27  ;;  %v13945_v24 = vmov 0  ;;  %v558_v26 = vrot.slane %v8711_v30, %v13179_v32 }
 0x1eb   : > { %4871 = vmatmul.mubr.msk.bf16.vlgmr.msra.gmra.mxu0 %vm13927_vm9, %v8289_v63  ;;  %vm9706_vm9 = vcmp.eq.s32.totalorder %v1251_v19, 1  ;;  %v13943_v19 = vld [vmem:[#allocation19_spill] sm:$0xff]  ;;  %vm9729_vm3 = vmpackc.low %vm1496_vm12, %vm13867_vm8  ;;  %vm9751_vm12 = vcmp.eq.s32.totalorder %v562_v36, 1  ;;  %v13955_v52 = vmov 0  ;;  %vm9755_vm0 = vcmp.eq.s32.totalorder %v758_v60, 1 }
 0x1ec   : > { %2899 = vmatpush1.bf16.msra.mxu0 %v2377_v59  ;;  %2924 = vmatprep.mubr.bf16.mxu0 %v13431_v23  ;;  %v13932_v59 = vmov 0  ;;  %v13939_v34 = vsel %vm9706_vm9, 4294967295, %v13938_v34  ;;  %v13946_v24 = vsel %vm9729_vm3, 4294967295, %v13945_v24  ;;  %v13956_v52 = vsel %vm9751_vm12, 4294967295, %v13955_v52 }
 0x1ed   : > { %4901 = vmatprep.subr.msk.bf16.mxu0 %vm12341_vm6, %v13930_v6  ;;  %v13933_v59 = vsel %vm9694_vm2, 4294967295, %v13932_v59  ;;  %v1247_v6 = vrot.slane %v13929_v33, %v13179_v32  ;;  %vm9702_vm6 = vcmp.eq.s32.totalorder %v1055_v57, 1  ;;  %13940 = vst [vmem:[#allocation84_spill] sm:$0xff] %v13939_v34  ;;  %v13944_v57 = vld [vmem:[#allocation49_spill] sm:$0xff]  ;;  %13947 = vst [vmem:[#allocation2_spill] sm:$0xff] %v13946_v24  ;;  %vm9765_vm5 = vcmp.eq.s32.totalorder %v2059_v31, 1 }
 0x1ee   : > { %13934 = vst [vmem:[#allocation14_spill] sm:$0xff] %v13933_v59  ;;  %v13936_v51 = vsel %vm9702_vm6, 4294967295, %v13935_v51  ;;  %v4909_v18 = vpack.c.bf16 %v13944_v57, %v13943_v19  ;;  %v13951_v19 = vmov 0  ;;  %v13954_v59 = vld [vmem:[#allocation3_spill] sm:$0xff]  ;;  %13957 = vst [vmem:[#allocation19_spill] sm:$0xff] %v13956_v52  ;;  %vm9782_vm1 = vcmp.eq.s32.totalorder %v558_v26, 1 }
 0x1ef   : > { %13937 = vst [vmem:[#allocation75_spill] sm:$0xff] %v13936_v51  ;;  %vm9741_vm7 = vcmp.eq.s32.totalorder %v1247_v6, 1  ;;  %v4912_v40 = vpack.c.bf16 %v13954_v59, %v13944_v57  ;;  %v13961_v6 = vmov 0  ;;  %vm13967_vm14 = vmpackc.low %vm9706_vm9, %vm9702_vm6  ;;  %v13971_v31 = vmov 0  ;;  %v13975_v57 = vld [vmem:[#allocation165_spill] sm:$0xff] }
 0x1f0   : > { %4904 = vmatpush1.bf16.msk.msra.mxu0 %vm13942_vm11, %v13941_v7  ;;  %vm9737_vm11 = vcmp.eq.s32.totalorder %v1051_v1, 1  ;;  %v13948_v7 = vmov 0  ;;  %v13952_v19 = vsel %vm9741_vm7, 4294967295, %v13951_v19  ;;  %v13958_v1 = vmov 0 }
 0x1f1   : > { %4907 = vmatprep.subr.msk.bf16.mxu0 %vm9694_vm2, %v4906_v13  ;;  %v13949_v7 = vsel %vm9737_vm11, 4294967295, %v13948_v7  ;;  %13953 = vst [vmem:[#allocation87_spill] sm:$0xff] %v13952_v19  ;;  %v754_v13 = vrot.slane %v8726_v53, %v13179_v32  ;;  %v13959_v1 = vsel %vm9755_vm0, 4294967295, %v13958_v1  ;;  %vm9759_vm2 = vcmp.eq.s32.totalorder %v2055_v49, 1  ;;  %vm12360_vm13 = vmpackc.low %vm9741_vm7, %vm9737_vm11  ;;  %v13974_v49 = vld [vmem:[#allocation172_spill] sm:$0xff] }
 0x1f2   : > { %13950 = vst [vmem:[#allocation20_spill] sm:$0xff] %v13949_v7  ;;  %13960 = vst [vmem:[#allocation49_spill] sm:$0xff] %v13959_v1  ;;  %v13962_v6 = vsel %vm9759_vm2, 4294967295, %v13961_v6  ;;  %v13964_v32 = vmov 0  ;;  %v1663_v59 = vrot.slane %v8398_v3, %v13398_v27  ;;  %v1859_v36 = vrot.slane %v8403_v39, %v13398_v27  ;;  %v13984_v1 = vld [vmem:[#allocation118_spill] sm:$0xff] }
 0x1f3   : > { %13963 = vst [vmem:[#allocation3_spill] sm:$0xff] %v13962_v6  ;;  %v13965_v32 = vsel %vm9765_vm5, 4294967295, %v13964_v32  ;;  %vm9786_vm4 = vcmp.eq.s32.totalorder %v754_v13, 1  ;;  %v2129_v60 = vsel %vm9765_vm5, %v13778_v46, 0.0  ;;  %v13976_v26 = vpack.c.bf16 %v13974_v49, %v13975_v57  ;;  %v13977_v13 = vld [vmem:[#allocation126_spill] sm:$0xff] }
 0x1f4   : > { %4910 = vmatpush1.bf16.msk.msra.mxu0 %vm9729_vm3, %v4909_v18  ;;  %13966 = vst [vmem:[#allocation242_spill] sm:$0xff] %v13965_v32  ;;  %vm12365_vm3 = vmpackc.low %vm9755_vm0, %vm9751_vm12  ;;  %v13968_v18 = vmov 0  ;;  %v13972_v31 = vsel %vm9786_vm4, 4294967295, %v13971_v31  ;;  %v1659_v49 = vrot.slane %v8398_v3, %v12956_v8  ;;  %v1855_v57 = vrot.slane %v8403_v39, %v12956_v8 }
 0x1f5   : > { %4913 = vmatprep.subr.msk.bf16.mxu0 %vm13967_vm14, %v4912_v40  ;;  %v13969_v18 = vsel %vm9782_vm1, 4294967295, %v13968_v18  ;;  %13973 = vst [vmem:[#allocation244_spill] sm:$0xff] %v13972_v31  ;;  %v2128_v40 = vsel %vm9759_vm2, %v9316_v29, 0.0  ;;  %vm12369_vm14 = vmpackc.low %vm9786_vm4, %vm9782_vm1  ;;  %v13978_v6 = vmov 0  ;;  %vm9826_vm2 = vcmp.eq.s32.totalorder %v1859_v36, 1 }
 0x1f6   : > { %13970 = vst [vmem:[#allocation243_spill] sm:$0xff] %v13969_v18  ;;  %v2288_v46 = vpack.c.bf16 %v2128_v40, %v2128_v40  ;;  %v13981_v52 = vmov 0  ;;  %vm9843_vm0 = vcmp.eq.s32.totalorder %v1659_v49, 1  ;;  %v13986_v3 = vmov 0 }
 0x1f7   : > { %v13982_v52 = vsel %vm9826_vm2, 4294967295, %v13981_v52  ;;  %v13987_v3 = vsel %vm9843_vm0, 4294967295, %v13986_v3  ;;  %vm9847_vm11 = vcmp.eq.s32.totalorder %v1855_v57, 1  ;;  %v13989_v39 = vmov 0 }
 0x1f8   : > { %4916 = vmatpush1.bf16.msk.msra.mxu0 %vm12360_vm13, %v13976_v26  ;;  %v2289_v26 = vpack.c.bf16 %v2129_v60, %v2129_v60  ;;  %vm9822_vm13 = vcmp.eq.s32.totalorder %v1663_v59, 1  ;;  %13983 = vst [vmem:[#allocation165_spill] sm:$0xff] %v13982_v52  ;;  %13988 = vst [vmem:[#allocation126_spill] sm:$0xff] %v13987_v3  ;;  %v13990_v39 = vsel %vm9847_vm11, 4294967295, %v13989_v39  ;;  %v1459_v40 = vrot.slane %v13918_v42, %v12956_v8 }
 0x1f9   : > { %4919 = vmatprep.subr.msk.bf16.mxu0 %vm12365_vm3, %v13977_v13  ;;  %v13979_v6 = vsel %vm9822_vm13, 4294967295, %v13978_v6  ;;  %v1463_v13 = vrot.slane %v13918_v42, %v13398_v27  ;;  %vm13985_vm3 = vcmask 1043456   ;;  %vm12372_vm12 = vmpackc.low %vm9826_vm2, %vm9822_vm13  ;;  %13991 = vst [vmem:[#allocation118_spill] sm:$0xff] %v13990_v39  ;;  %v1071_v59 = vrot.slane %v13928_v41, %v13398_v27 }
 0x1fa   : > { %13980 = vst [vmem:[#allocation172_spill] sm:$0xff] %v13979_v6  ;;  %v1267_v36 = vrot.slane %v13929_v33, %v13398_v27  ;;  %v13993_v42 = vmov 0  ;;  %vm1500_vm4 = vcmp.eq.s32.totalorder %v1459_v40, 1  ;;  %v1067_v60 = vrot.slane %v13928_v41, %v12956_v8  ;;  %v14003_v41 = vld [vmem:[#allocation25_spill] sm:$0xff] }
 0x1fb   : > { %vm1501_vm1 = vcmp.eq.s32.totalorder %v1463_v13, 1  ;;  %v13999_v49 = vmov 0  ;;  %vm9905_vm13 = vmpackc.low %vm1500_vm4, %vm13867_vm8  ;;  %v574_v13 = vrot.slane %v8711_v30, %v12956_v8  ;;  %v770_v40 = vrot.slane %v8726_v53, %v12956_v8 }
 0x1fc   : > { %4922 = vmatpush1.bf16.msk.msra.mxu0 %vm12369_vm14, %v13984_v1  ;;  %vm13992_vm14 = vcmask 588800   ;;  %v2389_v1 = vsel %vm13985_vm3, %v2288_v46, 0  ;;  %v13996_v46 = vmov 0  ;;  %vm9913_vm7 = vcmp.eq.s32.totalorder %v1067_v60, 1 }
 0x1fd   : > { %4950 = vmatprep.subr.msk.bf16.mxu0 %vm13985_vm3, %v2289_v26  ;;  %vm9874_vm3 = vmpackc.low %vm1501_vm1, %vm13867_vm8  ;;  %v14005_v26 = vmov 0 }
 0x1fe   : > { %v13994_v42 = vsel %vm9874_vm3, 4294967295, %v13993_v42  ;;  %vm14002_vm1 = vmpackc.low %vm9847_vm11, %vm9843_vm0  ;;  %v14006_v26 = vsel %vm9905_vm13, 4294967295, %v14005_v26  ;;  %vm9950_vm11 = vcmp.eq.s32.totalorder %v574_v13, 1 }
 0x1ff   : > { %4923 = vmatmul.mubr.msk.bf16.vlgmr.msra.gmra.mxu0 %vm13992_vm14, %v8289_v63  ;;  %v4958_v63 = vpack.c.bf16 %v9316_v29, %v13848_v0  ;;  %13995 = vst [vmem:[#allocation245_spill] sm:$0xff] %v13994_v42  ;;  %vm9886_vm14 = vcmp.eq.s32.totalorder %v1267_v36, 1  ;;  %v578_v29 = vrot.slane %v8711_v30, %v13398_v27  ;;  %v774_v0 = vrot.slane %v8726_v53, %v13398_v27  ;;  %v2475_v53 = vpop.f32.mrf.mxu1 }
 0x200   : > { %2981 = vmatpush1.bf16.msra.mxu0 %v2389_v1  ;;  %3006 = vmatprep.mubr.bf16.mxu0 %v13431_v23  ;;  %v14000_v49 = vsel %vm9886_vm14, 4294967295, %v13999_v49  ;;  %14007 = vst [vmem:[#allocation25_spill] sm:$0xff] %v14006_v26  ;;  %v14008_v27 = vmov 0  ;;  %v14017_v36 = vmov 0  ;;  %v14023_v30 = vmov 0 }
 0x201   : > { %4953 = vmatprep.subr.msk.bf16.mxu0 %vm12372_vm12, %v9394_v44  ;;  %v1263_v44 = vrot.slane %v13929_v33, %v12956_v8  ;;  %vm9882_vm12 = vcmp.eq.s32.totalorder %v1071_v59, 1  ;;  %14001 = vst [vmem:[#allocation247_spill] sm:$0xff] %v14000_v49  ;;  %v14004_v33 = vld [vmem:[#allocation101_spill] sm:$0xff]  ;;  %v14009_v27 = vsel %vm9913_vm7, 4294967295, %v14008_v27  ;;  %vm9927_vm4 = vcmp.eq.s32.totalorder %v578_v29, 1  ;;  %v14029_v29 = vld [vmem:[#allocation70_spill] sm:$0xff] }
 0x202   : > { %v13997_v46 = vsel %vm9882_vm12, 4294967295, %v13996_v46  ;;  %v4961_v57 = vpack.c.bf16 %v14004_v33, %v14003_v41  ;;  %vm12380_vm2 = vmpackc.low %vm9886_vm14, %vm9882_vm12  ;;  %14010 = vst [vmem:[#allocation101_spill] sm:$0xff] %v14009_v27  ;;  %v4964_v1 = vpack.c.bf16 %v9427_v11, %v14004_v33  ;;  %v14014_v59 = vmov 0  ;;  %v14026_v11 = vld [vmem:[#allocation199_spill] sm:$0xff] }
 0x203   : > { %13998 = vst [vmem:[#allocation246_spill] sm:$0xff] %v13997_v46  ;;  %v14015_v59 = vsel %vm9927_vm4, 4294967295, %v14014_v59  ;;  %vm9931_vm8 = vcmp.eq.s32.totalorder %v774_v0, 1  ;;  %v14020_v8 = vmov 0  ;;  %v14030_v41 = vld [vmem:[#allocation83_spill] sm:$0xff] }
 0x204   : > { %4956 = vmatpush1.bf16.msk.msra.mxu0 %vm14002_vm1, %v9447_v28  ;;  %vm9917_vm1 = vcmp.eq.s32.totalorder %v1263_v44, 1  ;;  %v14011_v28 = vmov 0  ;;  %14016 = vst [vmem:[#allocation249_spill] sm:$0xff] %v14015_v59  ;;  %v14018_v36 = vsel %vm9931_vm8, 4294967295, %v14017_v36  ;;  %vm12418_vm0 = vmpackc.low %vm9931_vm8, %vm9927_vm4  ;;  %v14021_v8 = vsel %vm9950_vm11, 4294967295, %v14020_v8  ;;  %v2477_v44 = vpop.f32.mrf.mxu1 }
 0x205   : > { %4959 = vmatprep.subr.msk.bf16.mxu0 %vm9874_vm3, %v4958_v63  ;;  %v14012_v28 = vsel %vm9917_vm1, 4294967295, %v14011_v28  ;;  %14019 = vst [vmem:[#allocation250_spill] sm:$0xff] %v14018_v36  ;;  %vm12381_vm3 = vmpackc.low %vm9917_vm1, %vm9913_vm7  ;;  %v14027_v63 = vld [vmem:[#allocation194_spill] sm:$0xff] }
 0x206   : > { %14013 = vst [vmem:[#allocation248_spill] sm:$0xff] %v14012_v28  ;;  %14022 = vst [vmem:[#allocation251_spill] sm:$0xff] %v14021_v8  ;;  %v14028_v60 = vpack.c.bf16 %v14026_v11, %v14027_v63  ;;  %v2479_v0 = vpop.f32.mrf.mxu1 }
 0x208   : > { %4962 = vmatpush1.bf16.msk.msra.mxu0 %vm9905_vm13, %v4961_v57  ;;  %vm9954_vm13 = vcmp.eq.s32.totalorder %v770_v40, 1  ;;  %v2480_v33 = vpop.f32.mrf.mxu1  ;;  %v5682_v57 = vld [vmem:[%s11573_s3] sm:$0xf] }
 0x209   : > { %4965 = vmatprep.subr.msk.bf16.mxu0 %vm12380_vm2, %v4964_v1  ;;  %v14024_v30 = vsel %vm9954_vm13, 4294967295, %v14023_v30  ;;  %vm12413_vm2 = vmpackc.low %vm9954_vm13, %vm9950_vm11  ;;  %v2434_v33 = vpop.f32.mrf.mxu0 }
 0x20a   : > { %14025 = vst [vmem:[#allocation252_spill] sm:$0xff] %v14024_v30  ;;  %v2557_v13 = vpop.f32.mrf.mxu1 }
 0x20c   : > { %4968 = vmatpush1.bf16.msk.msra.mxu0 %vm12381_vm3, %v14028_v60  ;;  %vm14031_vm3 = vcmask 588800   ;;  %v2559_v40 = vpop.f32.mrf.mxu1 }
 0x20d   : > { %4971 = vmatprep.subr.msk.bf16.mxu0 %vm12418_vm0, %v14029_v29 }
 0x20e   : > { %v2561_v1 = vpop.f32.mrf.mxu1 }
 0x210   : > { %4974 = vmatpush1.bf16.msk.msra.mxu0 %vm12413_vm2, %v14030_v41  ;;  %v2562_v11 = vpop.f32.mrf.mxu1  ;;  %v9991_v41 = vpop.permute.xlu1 %2296 }
 0x211   : > { %v2476_v30 = vadd.f32 %v2475_v53, %v9991_v41  ;;  %v2478_v53 = vadd.f32 %v2477_v44, %v9991_v41  ;;  %v2435_v34 = vadd.f32 %v2434_v33, %v9991_v41  ;;  %v2558_v24 = vadd.f32 %v2557_v13, %v9991_v41 }
 0x212   : > { %v9987_v63 = vpop.f32.mrf.mxu1 }
 0x213   : > { %4975 = vmatmul.mubr.msk.bf16.vlgmr.msra.gmra.mxu0 %vm14031_vm3, %v5682_v57  ;;  %v2436_v57 = vpop.f32.mrf.mxu0  ;;  %v10001_v28 = vmax.f32 %v2476_v30, 0.0  ;;  %vm14041_vm3 = vcmp.lt.s32.totalorder %v5967_v16, 127 }
 0x214   : > { %3834 = vmatprep.mubr.bf16.mxu0 %v13431_v23  ;;  %v9989_v60 = vpop.f32.mrf.mxu1  ;;  %v2437_v36 = vadd.f32 %v2436_v57, %v9991_v41  ;;  %vm14044_vm0 = vmmov %vm14041_vm3 }
 0x215   : > { %v2438_v11 = vpop.f32.mrf.mxu0  ;;  %vm14045_vm11 = vmmov %vm14044_vm0 }
 0x216   : > { %v2643_v29 = vpop.f32.mrf.mxu1  ;;  %v9999_v27 = vmax.f32 %v2437_v36, 0.0  ;;  %v10012_v36 = vmax.f32 %v2478_v53, 0.0 }
 0x218   : > { %v2644_v0 = vpop.f32.mrf.mxu1  ;;  %v5530_v46 = vpack.i.bf16 %v10001_v28, %v9999_v27 }
 0x219   : > { %v2439_v0 = vpop.f32.mrf.mxu0 }
 0x21a   : > { %v9993_v8 = vpop.f32.mrf.mxu1  ;;  %5531 = vrot.lane.b32.xlu0 %v5530_v46, %s5693_s8 }
 0x21c   : > { %v9996_v59 = vpop.f32.mrf.mxu1 }
 0x21d   : > { %v2516_v49 = vpop.f32.mrf.mxu0 }
 0x21e   : > { %v2725_v1 = vpop.f32.mrf.mxu1  ;;  %v2517_v57 = vadd.f32 %v2516_v49, %v9991_v41 }
 0x21f   : > { %v2518_v1 = vpop.f32.mrf.mxu0 }
 0x220   : > { %v2726_v29 = vpop.f32.mrf.mxu1  ;;  %v10014_v30 = vmax.f32 %v2517_v57, 0.0 }
 0x221   : > { %v2519_v29 = vadd.f32 %v2518_v1, %v9991_v41  ;;  %v2520_v42 = vpop.f32.mrf.mxu0 }
 0x222   : > { %v10007_v26 = vpop.f32.mrf.mxu1  ;;  %v5535_v44 = vpack.i.bf16 %v10014_v30, %v10012_v36 }
 0x223   : > { %v10017_v3 = vmax.f32 %v2519_v29, 0.0  ;;  %v2521_v6 = vpop.f32.mrf.mxu0 }
 0x224   : > { %v10010_v11 = vpop.f32.mrf.mxu1  ;;  %5536 = vrot.lane.b32.xlu1 %v5535_v44, %s5693_s8 }
 0x225   : > { %3258 = vrot.lane.b32.xlu0 %v10017_v3, %s5693_s8 }
 0x226   : > { %v2807_v0 = vpop.f32.mrf.mxu1 }
 0x228   : > { %v2808_v39 = vpop.f32.mrf.mxu1  ;;  %5541 = vrot.lane.b32.xlu1 %v5530_v46, %s5692_s30 }
 0x229   : > { %5546 = vrot.lane.b32.xlu0 %v5535_v44, %s5692_s30 }
 0x248   : > { %v2598_v49 = vpop.f32.mrf.mxu0 }
 0x24a   : > { %v10026_v53 = vpop.f32.mrf.mxu1  ;;  %v2600_v42 = vpop.f32.mrf.mxu0 }
 0x24c   : > { %v10028_v57 = vpop.f32.mrf.mxu1  ;;  %v2602_v29 = vpop.f32.mrf.mxu0 }
 0x24e   : > { %v2889_v1 = vpop.f32.mrf.mxu1  ;;  %v2603_v39 = vpop.f32.mrf.mxu0 }
 0x24f   : > { %v2560_v1 = vadd.f32 %v2559_v40, %v9991_v41  ;;  %v2599_v40 = vadd.f32 %v2598_v49, %v9991_v41 }
 0x250   : > { %v2890_v0 = vpop.f32.mrf.mxu1 }
 0x275   : > { %v2680_v6 = vpop.f32.mrf.mxu0 }
 0x276   : > { %v10030_v52 = vpop.f32.mrf.mxu1 }
 0x277   : > { %v2682_v18 = vpop.f32.mrf.mxu0 }
 0x278   : > { %v10032_v31 = vpop.f32.mrf.mxu1 }
 0x279   : > { %v2684_v46 = vpop.f32.mrf.mxu0 }
 0x27a   : > { %v2971_v7 = vpop.f32.mrf.mxu1  ;;  %v10043_v46 = vmax.f32 %v2558_v24, 0.0  ;;  %v10061_v24 = vmax.f32 %v2599_v40, 0.0 }
 0x27b   : > { %v2685_v44 = vpop.f32.mrf.mxu0  ;;  %v10039_v7 = vmax.f32 %v2435_v34, 0.0 }
 0x27c   : > { %v2972_v19 = vpop.f32.mrf.mxu1  ;;  %v10045_v44 = vmax.f32 %v2560_v1, 0.0 }
 0x27e   : > { %v5565_v34 = vpack.i.bf16 %v10045_v44, %v10043_v46 }
 0x296   : > { %v2762_v32 = vpop.f32.mrf.mxu0  ;;  %v3049_v51 = vpop.f32.mrf.mxu1 }
 0x297   : > { %v3050_v39 = vadd.f32 %v3049_v51, %v9991_v41 }
 0x298   : > { %v2764_v29 = vpop.f32.mrf.mxu0  ;;  %v3051_v0 = vpop.f32.mrf.mxu1 }
 0x299   : > { %v3052_v21 = vadd.f32 %v3051_v0, %v9991_v41  ;;  %v10048_v61 = vmax.f32 %v3050_v39, 0.0  ;;  %v2683_v39 = vadd.f32 %v2682_v18, %v9991_v41 }
 0x29a   : > { %v3053_v37 = vpop.f32.mrf.mxu1  ;;  %v2766_v48 = vpop.f32.mrf.mxu0 }
 0x29b   : > { %v10041_v19 = vmax.f32 %v3052_v21, 0.0  ;;  %14033 = vst [vmem:[#allocation194_spill] sm:$0xff] %v10048_v61  ;;  %v2601_v37 = vadd.f32 %v2600_v42, %v9991_v41  ;;  %v2640_v48 = vadd.f32 %v9987_v63, %v9991_v41  ;;  %v2642_v21 = vadd.f32 %v9989_v60, %v9991_v41 }
 0x29c   : > { %v3054_v33 = vpop.f32.mrf.mxu1  ;;  %v2767_v13 = vpop.f32.mrf.mxu0  ;;  %v5560_v49 = vpack.i.bf16 %v10017_v3, %v10048_v61  ;;  %v2681_v60 = vadd.f32 %v2680_v6, %v9991_v41 }
 0x29d   : > { %14032 = vst [vmem:[#allocation199_spill] sm:$0xff] %v10041_v19  ;;  %v5555_v51 = vpack.i.bf16 %v10041_v19, %v10039_v7  ;;  %v10065_v1 = vmax.f32 %v2601_v37, 0.0  ;;  %v10069_v42 = vmax.f32 %v2640_v48, 0.0  ;;  %v10071_v0 = vmax.f32 %v2642_v21, 0.0 }
 0x29e   : > { %v2722_v33 = vadd.f32 %v9993_v8, %v9991_v41  ;;  %v2724_v13 = vadd.f32 %v9996_v59, %v9991_v41  ;;  %v10085_v37 = vmax.f32 %v2681_v60, 0.0  ;;  %v10087_v48 = vmax.f32 %v2683_v39, 0.0 }
 0x29f   : > { %5556 = vrot.lane.b32.xlu0 %v5555_v51, %s5693_s8  ;;  %5551 = vrot.lane.b32.xlu1 %v5555_v51, %s5692_s30  ;;  %v5570_v63 = vpack.i.bf16 %v10065_v1, %v10061_v24  ;;  %v5580_v40 = vpack.i.bf16 %v10071_v0, %v10069_v42  ;;  %v2765_v59 = vadd.f32 %v2764_v29, %v9991_v41 }
 0x2a0   : > { %v10092_v18 = vmax.f32 %v2722_v33, 0.0  ;;  %v10094_v8 = vmax.f32 %v2724_v13, 0.0  ;;  %v5585_v21 = vpack.i.bf16 %v10087_v48, %v10085_v37  ;;  %v2804_v60 = vadd.f32 %v10007_v26, %v9991_v41 }
 0x2a1   : > { %v2806_v29 = vadd.f32 %v10010_v11, %v9991_v41  ;;  %v10108_v33 = vmax.f32 %v2765_v59, 0.0 }
 0x2a2   : > { %v5600_v13 = vpack.i.bf16 %v10094_v8, %v10092_v18  ;;  %v5610_v59 = vpack.i.bf16 %v10092_v18, %v10087_v48 }
 0x2a3   : > { %5566 = vrot.lane.b32.xlu0 %v5565_v34, %s5693_s8  ;;  %5561 = vrot.lane.b32.xlu1 %v5560_v49, %s5692_s30  ;;  %v10120_v26 = vmax.f32 %v2806_v29, 0.0 }
 0x2a7   : > { %5576 = vrot.lane.b32.xlu0 %v5565_v34, %s5692_s30  ;;  %5571 = vrot.lane.b32.xlu1 %v5570_v63, %s5693_s8  ;;  %v5590_v34 = vpack.i.bf16 %v10069_v42, %v10065_v1  ;;  %v2763_v63 = vadd.f32 %v2762_v32, %v9991_v41 }
 0x2a9   : > { %v10114_v32 = vmax.f32 %v2763_v63, 0.0  ;;  %v2886_v63 = vadd.f32 %v10026_v53, %v9991_v41 }
 0x2ab   : > { %v2844_v51 = vpop.f32.mrf.mxu0  ;;  %5581 = vrot.lane.b32.xlu0 %v5580_v40, %s5693_s8  ;;  %3104 = vrot.lane.b32.xlu1 %v10061_v24, %s5692_s30  ;;  %v5595_v40 = vpack.i.bf16 %v10085_v37, %v10071_v0  ;;  %v5615_v29 = vpack.i.bf16 %v10114_v32, %v10094_v8 }
 0x2ad   : > { %v2846_v6 = vpop.f32.mrf.mxu0 }
 0x2ae   : > { %v2847_v11 = vadd.f32 %v2846_v6, %v9991_v41 }
 0x2af   : > { %v2848_v49 = vpop.f32.mrf.mxu0  ;;  %5591 = vrot.lane.b32.xlu0 %v5590_v34, %s5692_s30  ;;  %5586 = vrot.lane.b32.xlu1 %v5585_v21, %s5693_s8  ;;  %v10118_v34 = vmax.f32 %v2804_v60, 0.0  ;;  %v5605_v21 = vpack.i.bf16 %v10108_v33, %v10114_v32  ;;  %v2888_v60 = vadd.f32 %v10028_v57, %v9991_v41 }
 0x2b0   : > { %v2845_v49 = vadd.f32 %v2844_v51, %v9991_v41  ;;  %v10144_v51 = vmax.f32 %v2886_v63, 0.0  ;;  %v2968_v63 = vadd.f32 %v10030_v52, %v9991_v41 }
 0x2b1   : > { %v2849_v39 = vpop.f32.mrf.mxu0  ;;  %v5620_v6 = vpack.i.bf16 %v10120_v26, %v10118_v34  ;;  %v10146_v53 = vmax.f32 %v2888_v60, 0.0  ;;  %v5630_v57 = vpack.i.bf16 %v10118_v34, %v10108_v33  ;;  %v2970_v60 = vadd.f32 %v10032_v31, %v9991_v41 }
 0x2b2   : > { %v10134_v39 = vmax.f32 %v2847_v11, 0.0  ;;  %14035 = vst [vmem:[#allocation83_spill] sm:$0xff] %v10144_v51  ;;  %v10170_v38 = vmax.f32 %v2968_v63, 0.0  ;;  %v10184_v63 = vpop.permute.xlu0 %5531 }
 0x2b3   : > { %5601 = vrot.lane.b32.xlu0 %v5600_v13, %s5693_s8  ;;  %5596 = vrot.lane.b32.xlu1 %v5595_v40, %s5692_s30  ;;  %v10140_v13 = vmax.f32 %v2845_v49, 0.0  ;;  %14036 = vst [vmem:[#allocation253_spill] sm:$0xff] %v10146_v53  ;;  %v5640_v49 = vpack.i.bf16 %v10146_v53, %v10144_v51  ;;  %v10172_v52 = vmax.f32 %v2970_v60, 0.0  ;;  %v5534_v60 = vunpack.i.h.bf16 %v10184_v63 }
 0x2b4   : > { %14034 = vst [vmem:[#allocation70_spill] sm:$0xff] %v10134_v39  ;;  %14039 = vst [vmem:[#allocation256_spill] sm:$0xff] %v10170_v38  ;;  %v5650_v31 = vpack.i.bf16 %v10144_v51, %v10134_v39  ;;  %v14063_v51 = vld [vmem:[#allocation47_spill] sm:$0xff] }
 0x2b5   : > { %v5625_v40 = vpack.i.bf16 %v10134_v39, %v10140_v13  ;;  %14040 = vst [vmem:[#allocation257_spill] sm:$0xff] %v10172_v52  ;;  %vm14064_vm4 = vnez %v14063_v51  ;;  %v14073_v51 = vld [vmem:[#allocation41_spill] sm:$0xff] }
 0x2b7   : > { %5611 = vrot.lane.b32.xlu0 %v5610_v59, %s5692_s30  ;;  %5606 = vrot.lane.b32.xlu1 %v5605_v21, %s5693_s8 }
 0x2bb   : > { %5621 = vrot.lane.b32.xlu0 %v5620_v6, %s5693_s8  ;;  %5616 = vrot.lane.b32.xlu1 %v5615_v29, %s5692_s30  ;;  %v5635_v29 = vpack.i.bf16 %v10140_v13, %v10120_v26 }
 0x2bf   : > { %v2926_v11 = vpop.f32.mrf.mxu0  ;;  %5631 = vrot.lane.b32.xlu0 %v5630_v57, %s5692_s30  ;;  %5626 = vrot.lane.b32.xlu1 %v5625_v40, %s5693_s8 }
 0x2c0   : > { %v2927_v59 = vadd.f32 %v2926_v11, %v9991_v41 }
 0x2c1   : > { %v2928_v21 = vpop.f32.mrf.mxu0 }
 0x2c2   : > { %v2929_v6 = vadd.f32 %v2928_v21, %v9991_v41  ;;  %v10164_v47 = vmax.f32 %v2927_v59, 0.0  ;;  %v5660_v59 = vpack.i.bf16 %v10172_v52, %v10170_v38 }
 0x2c3   : > { %v2930_v11 = vpop.f32.mrf.mxu0  ;;  %5641 = vrot.lane.b32.xlu0 %v5640_v49, %s5693_s8  ;;  %5636 = vrot.lane.b32.xlu1 %v5635_v29, %s5692_s30 }
 0x2c4   : > { %14037 = vst [vmem:[#allocation254_spill] sm:$0xff] %v10164_v47  ;;  %v10166_v57 = vmax.f32 %v2929_v6, 0.0  ;;  %v5655_v49 = vpack.i.bf16 %v10164_v47, %v10146_v53  ;;  %v12417_v6 = vunpack.i.l.bf16 %v10184_v63  ;;  %v14061_v53 = vld [vmem:[#allocation48_spill] sm:$0xff] }
 0x2c5   : > { %v2931_v40 = vpop.f32.mrf.mxu0 }
 0x2c6   : > { %14038 = vst [vmem:[#allocation255_spill] sm:$0xff] %v10166_v57  ;;  %v5645_v21 = vpack.i.bf16 %v10166_v57, %v10164_v47  ;;  %v5670_v29 = vpack.i.bf16 %v10170_v38, %v10166_v57  ;;  %v10197_v11 = vsel %vm14041_vm3, %v12417_v6, %v5534_v60  ;;  %v14152_v47 = vld [vmem:[#allocation181_spill] sm:$0xff] }
 0x2c7   : > { %5651 = vrot.lane.b32.xlu0 %v5650_v31, %s5692_s30 }
 0x2c8   : > { %5646 = vrot.lane.b32.xlu1 %v5645_v21, %s5693_s8  ;;  %v5537_v21 = vpop.permute.xlu1 %5536 }
 0x2c9   : > { %v5538_v56 = vunpack.i.l.bf16 %v5537_v21 }
 0x2cb   : > { %5661 = vrot.lane.b32.xlu0 %v5660_v59, %s5693_s8  ;;  %v10200_v59 = vpop.permute.xlu0 %3258 }
 0x2cc   : > { %5656 = vrot.lane.b32.xlu1 %v5655_v49, %s5692_s30  ;;  %v5539_v49 = vunpack.i.h.bf16 %v5537_v21 }
 0x2ce   : > { %v10210_v6 = vsel %vm14041_vm3, %v5538_v56, %v5539_v49  ;;  %vm14054_vm3 = vcmp.lt.s32.totalorder %v5967_v16, 1 }
 0x2cf   : > { %5671 = vrot.lane.b32.xlu0 %v5670_v29, %s5692_s30  ;;  %v14042_v29 = vld [vmem:[#allocation46_spill] sm:$0xff]  ;;  %v10226_v35 = vpop.permute.xlu0 %5546 }
 0x2d0   : > { %vm14043_vm2 = vnez %v14042_v29  ;;  %v14047_v29 = vld [vmem:[#allocation35_spill] sm:$0xff]  ;;  %v12432_v39 = vunpack.i.h.bf16 %v10226_v35 }
 0x2d1   : > { %v3504_v38 = vsel %vm14043_vm2, %v10197_v11, 0.0  ;;  %vm14048_vm2 = vnez %v14047_v29  ;;  %v14052_v29 = vld [vmem:[#allocation36_spill] sm:$0xff] }
 0x2d2   : > { %v3664_v10 = vpack.c.bf16 %v3504_v38, %v3504_v38 }
 0x2d3   : > { %v3008_v40 = vpop.f32.mrf.mxu0  ;;  %3308 = vrot.lane.b32.xlu0 %v10048_v61, %s5693_s8  ;;  %v10217_v61 = vsel %vm14045_vm11, %v5539_v49, %v10200_v59  ;;  %vm14053_vm11 = vnez %v14052_v29 }
 0x2d4   : > { %v3009_v31 = vadd.f32 %v3008_v40, %v9991_v41  ;;  %v3340_v40 = vsel %vm14044_vm0, %v5534_v60, %v5538_v56  ;;  %v3507_v62 = vsel %vm14048_vm2, %v10217_v61, 0.0  ;;  %vm14055_vm2 = vcmask 1043456  }
 0x2d5   : > { %v3010_v57 = vpop.f32.mrf.mxu0  ;;  %v3667_v4 = vpack.c.bf16 %v3507_v62, %v3507_v62 }
 0x2d6   : > { %v3011_v20 = vadd.f32 %v3010_v57, %v9991_v41  ;;  %v10219_v2 = vmax.f32 %v3009_v31, 0.0  ;;  %v5542_v57 = vpop.permute.xlu1 %5541  ;;  %v14050_v31 = vld [vmem:[#allocation40_spill] sm:$0xff] }
 0x2d7   : > { %v3012_v21 = vpop.f32.mrf.mxu0  ;;  %v5544_v56 = vunpack.i.h.bf16 %v5542_v57  ;;  %v5543_v60 = vunpack.i.l.bf16 %v5542_v57  ;;  %vm14051_vm0 = vnez %v14050_v31  ;;  %5028 = vmatprep.subr.msk.bf16.mxu1 %vm14055_vm2, %v3667_v4 }
 0x2d8   : > { %14046 = vst [vmem:[#allocation46_spill] sm:$0xff] %v10219_v2  ;;  %v10224_v41 = vmax.f32 %v3011_v20, 0.0  ;;  %v5548_v21 = vunpack.i.l.bf16 %v10226_v35  ;;  %v3505_v9 = vsel %vm14051_vm0, %v3340_v40, 0.0  ;;  %v3506_v20 = vsel %vm14053_vm11, %v10210_v6, 0.0  ;;  %vm14056_vm0 = vmmov %vm14054_vm3 }
 0x2d9   : > { %v3013_v49 = vpop.f32.mrf.mxu0  ;;  %v3181_v62 = vsel %vm14054_vm3, %v5543_v60, %v5544_v56  ;;  %v3665_v38 = vpack.c.bf16 %v3505_v9, %v3505_v9  ;;  %v3666_v57 = vpack.c.bf16 %v3506_v20, %v3506_v20  ;;  %vm14057_vm11 = vmmov %vm14055_vm2  ;;  %v14107_v9 = vld [vmem:[#allocation74_spill] sm:$0xff] }
 0x2da   : > { %14049 = vst [vmem:[#allocation35_spill] sm:$0xff] %v10224_v41  ;;  %v5665_v17 = vpack.i.bf16 %v10224_v41, %v10219_v2  ;;  %v5004_v49 = vpack.c.bf16 %v10001_v28, %v3181_v62  ;;  %v10245_v31 = vsel %vm14056_vm0, %v5548_v21, %v12432_v39  ;;  %vm14058_vm3 = vmmov %vm14055_vm2 }
 0x2db   : > { %v10250_v29 = vpack.c.bf16 %v10014_v30, %v10245_v31  ;;  %5002 = vmatprep.subr.msk.bf16.mxu0 %vm14057_vm11, %v3665_v38  ;;  %v3707_v4 = vsel %vm14058_vm3, %v3664_v10, 0  ;;  %vm14059_vm2 = vmmov %vm14056_vm0  ;;  %vm14062_vm0 = vnez %v14061_v53  ;;  %v14066_v38 = vld [vmem:[#allocation39_spill] sm:$0xff]  ;;  %v14068_v10 = vld [vmem:[#allocation37_spill] sm:$0xff] }
 0x2dc   : > { %5666 = vrot.lane.b32.xlu1 %v5665_v17, %s5693_s8  ;;  %v3180_v20 = vsel %vm14059_vm2, %v5544_v56, %v5548_v21  ;;  %3809 = vmatpush1.bf16.msra.mxu0 %v3707_v4  ;;  %vm14060_vm13 = vmmov %vm14058_vm3  ;;  %v5675_v17 = vpack.i.bf16 %v10219_v2, %v10172_v52  ;;  %vm14067_vm11 = vnez %v14066_v38  ;;  %vm14069_vm3 = vnez %v14068_v10  ;;  %v14071_v53 = vld [vmem:[#allocation42_spill] sm:$0xff]  ;;  %v14076_v21 = vld [vmem:[#allocation65_spill] sm:$0xff] }
 0x2dd   : > { %v3713_v39 = vsel %vm14060_vm13, %v3666_v57, 0  ;;  %vm14065_vm8 = vmpackc.low %vm14062_vm0, %vm14064_vm4  ;;  %v10274_v56 = vpack.c.bf16 %v10012_v36, %v3180_v20  ;;  %vm14072_vm13 = vnez %v14071_v53  ;;  %vm14074_vm4 = vnez %v14073_v51  ;;  %v14082_v38 = vld [vmem:[#allocation61_spill] sm:$0xff]  ;;  %v14085_v53 = vld [vmem:[#allocation58_spill] sm:$0xff] }
 0x2de   : > { %3850 = vmatpush1.bf16.msra.mxu1 %v3713_v39  ;;  %5005 = vmatprep.subr.msk.bf16.mxu0 %vm14065_vm8, %v5004_v49  ;;  %vm14070_vm7 = vmpackc.low %vm14067_vm11, %vm14069_vm3  ;;  %v5036_v39 = vpack.c.bf16 %v10210_v6, %v10012_v36  ;;  %vm14077_vm2 = vnez %v14076_v21  ;;  %v5039_v57 = vpack.c.bf16 %v3340_v40, %v10001_v28  ;;  %v5042_v4 = vpack.c.bf16 %v3180_v20, %v3340_v40  ;;  %v14080_v36 = vld [vmem:[#allocation50_spill] sm:$0xff]  ;;  %v14090_v51 = vld [vmem:[#allocation73_spill] sm:$0xff] }
 0x2df   : > { %5031 = vmatprep.subr.msk.bf16.mxu1 %vm14070_vm7, %v10250_v29  ;;  %vm14075_vm8 = vmpackc.low %vm14072_vm13, %vm14074_vm4  ;;  %vm14081_vm0 = vnez %v14080_v36  ;;  %vm14083_vm11 = vnez %v14082_v38  ;;  %v5045_v10 = vpack.c.bf16 %v3181_v62, %v10197_v11  ;;  %vm14086_vm13 = vnez %v14085_v53  ;;  %v14092_v28 = vld [vmem:[#allocation68_spill] sm:$0xff]  ;;  %v3697_v40 = vld [vmem:[%s11576_s6] sm:$0xff] }
 0x2e0   : > { %5676 = vrot.lane.b32.xlu1 %v5675_v17, %s5692_s30  ;;  %v14078_v17 = vld [vmem:[#allocation66_spill] sm:$0xff]  ;;  %vm14084_vm3 = vmpackc.low %vm14081_vm0, %vm14083_vm11  ;;  %vm14093_vm1 = vnez %v14092_v28  ;;  %3700 = vperm.xlu0 %5680, %v3697_v40   ;;  %v14100_v28 = vld [vmem:[#allocation57_spill] sm:$0xff] }
 0x2e1   : > { %vm14079_vm7 = vnez %v14078_v17  ;;  %v14105_v40 = vld [vmem:[#allocation76_spill] sm:$0xff]  ;;  %v14139_v52 = vld [vmem:[#allocation43_spill] sm:$0xff] }
 0x2e2   : > { %5034 = vmatpush1.bf16.msk.msra.mxu1 %vm14075_vm8, %v10274_v56 }
 0x2e3   : > { %5037 = vmatprep.subr.msk.bf16.mxu1 %vm14077_vm2, %v5036_v39  ;;  %v14087_v39 = vld [vmem:[#allocation62_spill] sm:$0xff]  ;;  %vm14091_vm2 = vnez %v14090_v51  ;;  %v5010_v51 = vpack.c.bf16 %v10197_v11, %v9999_v27 }
 0x2e4   : > { %3146 = vrot.lane.b32.xlu1 %v10224_v41, %s5692_s30  ;;  %vm14088_vm4 = vnez %v14087_v39  ;;  %vm14094_vm12 = vmpackc.low %vm14091_vm2, %vm14093_vm1  ;;  %vm14101_vm1 = vnez %v14100_v28 }
 0x2e5   : > { %vm14089_vm8 = vmpackc.low %vm14086_vm13, %vm14088_vm4  ;;  %vm14108_vm13 = vnez %v14107_v9 }
 0x2e6   : > { %5040 = vmatpush1.bf16.msk.msra.mxu1 %vm14079_vm7, %v5039_v57  ;;  %vm14095_vm7 = vcmp.lt.s32.totalorder %v5967_v16, 1 }
 0x2e7   : > { %5043 = vmatprep.subr.msk.bf16.mxu1 %vm14084_vm3, %v5042_v4  ;;  %vm14106_vm3 = vnez %v14105_v40 }
 0x2e8   : > { %vm14109_vm4 = vmpackc.low %vm14106_vm3, %vm14108_vm13 }
 0x2ea   : > { %5046 = vmatpush1.bf16.msk.msra.mxu1 %vm14089_vm8, %v5045_v10  ;;  %v14097_v10 = vunpack.i.l.bf16 %v10184_v63  ;;  %v10340_v63 = vld [vmem:[%s11575_s5] sm:$0xf] }
 0x2eb   : > { %5049 = vmatprep.subr.msk.bf16.mxu1 %vm14094_vm12, %v5004_v49  ;;  %vm14098_vm12 = vcmp.lt.s32.totalorder %v5967_v16, 127 }
 0x2ec   : > { %vm14112_vm2 = vmmov %vm14098_vm12 }
 0x311   : > { %v10310_v20 = vpop.permute.xlu0 %5556  ;;  %v5552_v62 = vpop.permute.xlu1 %5551 }
 0x312   : > { %v5558_v21 = vunpack.i.l.bf16 %v10310_v20  ;;  %v5553_v57 = vunpack.i.l.bf16 %v5552_v62  ;;  %v12442_v17 = vunpack.i.h.bf16 %v10310_v20  ;;  %v5554_v39 = vunpack.i.h.bf16 %v5552_v62 }
 0x314   : > { %v3182_v4 = vsel %vm14095_vm7, %v5553_v57, %v5543_v60  ;;  %v10323_v53 = vsel %vm14098_vm12, %v5558_v21, %v14097_v10  ;;  %v14102_v60 = vld [vmem:[#allocation56_spill] sm:$0xff]  ;;  %v10348_v11 = vsel %vm14112_vm2, %v12442_v17, %v5558_v21  ;;  %vm14114_vm12 = vcmask 588800  }
 0x315   : > { %v5007_v36 = vpack.c.bf16 %v9999_v27, %v3182_v4  ;;  %v5567_v38 = vpop.permute.xlu0 %5566  ;;  %v10317_v49 = vpop.permute.xlu1 %5561  ;;  %14099 = vst [vmem:[#allocation36_spill] sm:$0xff] %v10323_v53  ;;  %vm14103_vm0 = vnez %v14102_v60  ;;  %v14110_v27 = vld [vmem:[#allocation72_spill] sm:$0xff]  ;;  %14113 = vst [vmem:[#allocation48_spill] sm:$0xff] %v10348_v11  ;;  %v5013_v9 = vpack.c.bf16 %v10323_v53, %v10039_v7  ;;  %v3183_v60 = vsel %vm14095_vm7, %v5554_v39, %v5553_v57 }
 0x316   : > { %14096 = vst [vmem:[#allocation40_spill] sm:$0xff] %v10317_v49  ;;  %vm14104_vm11 = vmpackc.low %vm14101_vm1, %vm14103_vm0  ;;  %v5569_v62 = vunpack.i.h.bf16 %v5567_v38  ;;  %v5568_v10 = vunpack.i.l.bf16 %v5567_v38  ;;  %vm14111_vm8 = vnez %v14110_v27  ;;  %v5016_v38 = vpack.c.bf16 %v3182_v4, %v10323_v53  ;;  %v14115_v27 = vld [vmem:[#allocation10_spill] sm:$0xff]  ;;  %v14119_v4 = vld [vmem:[#allocation159_spill] sm:$0xff] }
 0x317   : > { %5008 = vmatpush1.bf16.msk.msra.mxu0 %vm14104_vm11, %v5007_v36  ;;  %5052 = vmatpush1.bf16.msk.msra.mxu1 %vm14109_vm4, %v5007_v36  ;;  %vm14116_vm1 = vnez %v14115_v27  ;;  %vm14117_vm0 = vmmov %vm14112_vm2  ;;  %vm14120_vm3 = vnez %v14119_v4  ;;  %v5019_v27 = vpack.c.bf16 %v3183_v60, %v10348_v11  ;;  %v14125_v41 = vunpack.i.l.bf16 %v10317_v49  ;;  %v14132_v11 = vld [vmem:[#allocation166_spill] sm:$0xff] }
 0x318   : > { %5011 = vmatprep.subr.msk.bf16.mxu0 %vm14111_vm8, %v5010_v51  ;;  %v10367_v17 = vsel %vm14117_vm0, %v5568_v10, %v5569_v62  ;;  %vm14118_vm11 = vmmov %vm14117_vm0  ;;  %v14121_v51 = vld [vmem:[#allocation158_spill] sm:$0xff] }
 0x319   : > { %v5577_v36 = vpop.permute.xlu0 %5576  ;;  %v10352_v28 = vpop.permute.xlu1 %5571  ;;  %v10372_v57 = vsel %vm14118_vm11, %v10200_v59, %v5568_v10  ;;  %vm14122_vm13 = vnez %v14121_v51  ;;  %vm14126_vm8 = vmmov %vm14095_vm7 }
 0x31a   : > { %5053 = vmatmul.mubr.msk.bf16.vlgmr.msra.gmra.mxu1 %vm14114_vm12, %v10340_v63  ;;  %v5573_v21 = vunpack.i.l.bf16 %v10352_v28  ;;  %vm14123_vm4 = vmpackc.low %vm14120_vm3, %vm14122_vm13  ;;  %v10389_v53 = vsel %vm14126_vm8, %v14125_v41, %v5554_v39  ;;  %v5579_v59 = vunpack.i.h.bf16 %v5577_v36  ;;  %v5578_v10 = vunpack.i.l.bf16 %v5577_v36  ;;  %v14135_v41 = vld [vmem:[#allocation60_spill] sm:$0xff]  ;;  %v14137_v36 = vld [vmem:[#allocation30_spill] sm:$0xff] }
 0x31b   : > { %5014 = vmatpush1.bf16.msk.msra.mxu0 %vm14116_vm1, %v5013_v9  ;;  %3957 = vmatprep.mubr.bf16.mxu1 %v13431_v23  ;;  %v10381_v9 = vpack.c.bf16 %v10039_v7, %v3183_v60  ;;  %v14127_v4 = vunpack.i.h.bf16 %v10352_v28  ;;  %vm14128_vm2 = vmmov %vm14117_vm0  ;;  %v14130_v60 = vld [vmem:[#allocation167_spill] sm:$0xff]  ;;  %vm14133_vm1 = vnez %v14132_v11  ;;  %vm14136_vm11 = vnez %v14135_v41  ;;  %v14143_v11 = vld [vmem:[#allocation173_spill] sm:$0xff] }
 0x31c   : > { %5017 = vmatprep.subr.msk.bf16.mxu0 %vm14123_vm4, %v5016_v38  ;;  %vm14129_vm7 = vmmov %vm14117_vm0  ;;  %vm14131_vm12 = vnez %v14130_v60  ;;  %vm14138_vm3 = vnez %v14137_v36  ;;  %vm14140_vm13 = vnez %v14139_v52  ;;  %vm14144_vm8 = vnez %v14143_v11  ;;  %v14148_v36 = vld [vmem:[#allocation69_spill] sm:$0xff] }
 0x31d   : > { %14124 = vst [vmem:[#allocation47_spill] sm:$0xff] %v10381_v9  ;;  %v10383_v40 = vpop.permute.xlu0 %5581  ;;  %v10395_v38 = vsel %vm14128_vm2, %v5573_v21, %v14127_v4  ;;  %v10397_v51 = vpop.permute.xlu1 %3104  ;;  %v10401_v7 = vsel %vm14129_vm7, %v5569_v62, %v5573_v21  ;;  %vm14134_vm0 = vmpackc.low %vm14131_vm12, %vm14133_vm1  ;;  %v3509_v4 = vsel %vm14138_vm3, %v10367_v17, 0.0  ;;  %v3508_v2 = vsel %vm14140_vm13, %v10372_v57, 0.0  ;;  %v14141_v21 = vld [vmem:[#allocation174_spill] sm:$0xff] }
 0x31e   : > { %v3511_v39 = vsel %vm14136_vm11, %v10395_v38, 0.0  ;;  %v5564_v62 = vunpack.i.h.bf16 %v10317_v49  ;;  %vm14142_vm4 = vnez %v14141_v21  ;;  %vm14147_vm7 = vcmp.lt.s32.totalorder %v5967_v16, 1 }
 0x31f   : > { %5020 = vmatpush1.bf16.msk.msra.mxu0 %vm14134_vm0, %v5019_v27  ;;  %vm14145_vm2 = vmpackc.low %vm14142_vm4, %vm14144_vm8  ;;  %v10426_v27 = vpack.c.bf16 %v10041_v19, %v10389_v53  ;;  %v10431_v60 = vsel %vm14147_vm7, %v5579_v59, %v10397_v51  ;;  %v3671_v52 = vpack.c.bf16 %v3511_v39, %v3511_v39  ;;  %vm14149_vm12 = vnez %v14148_v36 }
 0x320   : > { %5023 = vmatprep.subr.msk.bf16.mxu0 %vm14145_vm2, %v10381_v9  ;;  %v3510_v21 = vsel %vm14149_vm12, %v10401_v7, 0.0  ;;  %v3669_v49 = vpack.c.bf16 %v3509_v4, %v3509_v4  ;;  %v3668_v11 = vpack.c.bf16 %v3508_v2, %v3508_v2  ;;  %vm14150_vm1 = vmmov %vm14147_vm7  ;;  %vm14151_vm0 = vcmask 1043456  }
 0x321   : > { %14146 = vst [vmem:[#allocation39_spill] sm:$0xff] %v10426_v27  ;;  %v10433_v41 = vpop.permute.xlu0 %5591  ;;  %v3177_v9 = vsel %vm14150_vm1, %v5564_v62, %v5578_v10  ;;  %5080 = vmatprep.subr.msk.bf16.mxu1 %vm14151_vm0, %v3671_v52  ;;  %v3670_v19 = vpack.c.bf16 %v3510_v21, %v3510_v21  ;;  %vm14153_vm11 = vnez %v14152_v47  ;;  %vm14155_vm3 = vnez %v14154_v25  ;;  %vm14157_vm4 = vmmov %vm14151_vm0 }
 0x322   : > { %vm14156_vm13 = vmpackc.low %vm14153_vm11, %vm14155_vm3  ;;  %v10449_v39 = vpack.c.bf16 %v10061_v24, %v10431_v60  ;;  %v14158_v2 = vunpack.i.h.bf16 %v10226_v35  ;;  %v5056_v25 = vpack.c.bf16 %v10043_v46, %v3177_v9  ;;  %vm14162_vm12 = vcmask 588800   ;;  %v14164_v35 = vld [vmem:[#allocation79_spill] sm:$0xff] }
 0x323   : > { %5026 = vmatpush1.bf16.msk.msra.mxu0 %vm14156_vm13, %v10426_v27  ;;  %vm14159_vm8 = vmmov %vm14150_vm1 }
 0x324   : > { %5054 = vmatprep.subr.msk.bf16.mxu0 %vm14157_vm4, %v3669_v49  ;;  %v3178_v4 = vsel %vm14159_vm8, %v14158_v2, %v5564_v62  ;;  %vm14160_vm2 = vmmov %vm14150_vm1  ;;  %v14166_v49 = vld [vmem:[#allocation78_spill] sm:$0xff]  ;;  %v14169_v62 = vld [vmem:[#allocation127_spill] sm:$0xff] }
 0x325   : > { %v10456_v52 = vpop.permute.xlu0 %5601  ;;  %v3176_v47 = vsel %vm14160_vm2, %v5578_v10, %v5579_v59  ;;  %vm14161_vm7 = vmmov %vm14151_vm0  ;;  %vm14167_vm11 = vnez %v14166_v49  ;;  %vm14170_vm13 = vnez %v14169_v62  ;;  %v14171_v59 = vld [vmem:[#allocation13_spill] sm:$0xff]  ;;  %v14176_v49 = vld [vmem:[#allocation80_spill] sm:$0xff]  ;;  %v5068_v27 = vpack.c.bf16 %v3178_v4, %v10217_v61 }
 0x326   : > { %v3725_v36 = vsel %vm14161_vm7, %v3670_v19, 0  ;;  %5027 = vmatmul.mubr.msk.bf16.vlgmr.msra.gmra.mxu0 %vm14162_vm12, %v10340_v63  ;;  %vm14163_vm1 = vmmov %vm14151_vm0  ;;  %vm14165_vm0 = vnez %v14164_v35  ;;  %vm14172_vm4 = vnez %v14171_v59  ;;  %v5059_v19 = vpack.c.bf16 %v10017_v3, %v3178_v4  ;;  %v14174_v35 = vld [vmem:[#allocation81_spill] sm:$0xff]  ;;  %v14181_v59 = vld [vmem:[#allocation55_spill] sm:$0xff] }
 0x327   : > { %v3719_v21 = vsel %vm14163_vm1, %v3668_v11, 0  ;;  %3932 = vmatpush1.bf16.msra.mxu1 %v3725_v36  ;;  %vm14168_vm3 = vmpackc.low %vm14165_vm0, %vm14167_vm11  ;;  %v10478_v10 = vpack.c.bf16 %v10045_v44, %v3176_v47  ;;  %v10480_v11 = vpop.permute.xlu1 %5586  ;;  %3916 = vmatprep.mubr.bf16.mxu0 %v13431_v23  ;;  %v5088_v36 = vpack.c.bf16 %v10401_v7, %v10045_v44  ;;  %vm14175_vm2 = vnez %v14174_v35  ;;  %v14179_v62 = vld [vmem:[#allocation193_spill] sm:$0xff]  ;;  %v14200_v4 = vld [vmem:[#allocation204_spill] sm:$0xff] }
 0x328   : > { %3891 = vmatpush1.bf16.msra.mxu0 %v3719_v21  ;;  %5083 = vmatprep.subr.msk.bf16.mxu1 %vm14168_vm3, %v10449_v39  ;;  %vm14173_vm8 = vmpackc.low %vm14170_vm13, %vm14172_vm4  ;;  %v5062_v21 = vpack.c.bf16 %v10372_v57, %v10017_v3  ;;  %vm14177_vm7 = vnez %v14176_v49  ;;  %vm14180_vm1 = vnez %v14179_v62  ;;  %vm14182_vm0 = vnez %v14181_v59  ;;  %v14186_v3 = vld [vmem:[#allocation112_spill] sm:$0xff] }
 0x329   : > { %5057 = vmatprep.subr.msk.bf16.mxu0 %vm14173_vm8, %v5056_v25  ;;  %v10482_v2 = vpop.permute.xlu0 %5611  ;;  %vm14178_vm12 = vmpackc.low %vm14175_vm2, %vm14177_vm7  ;;  %v5588_v44 = vunpack.i.l.bf16 %v10480_v11  ;;  %vm14185_vm3 = vnez %v14184_v50  ;;  %vm14187_vm13 = vnez %v14186_v3  ;;  %v5065_v35 = vpack.c.bf16 %v10217_v61, %v10014_v30  ;;  %v14195_v61 = vld [vmem:[#allocation90_spill] sm:$0xff] }
 0x32a   : > { %vm14183_vm11 = vmpackc.low %vm14180_vm1, %vm14182_vm0  ;;  %v5091_v49 = vpack.c.bf16 %v10367_v17, %v10043_v46  ;;  %v5584_v62 = vunpack.i.h.bf16 %v10383_v40  ;;  %v5583_v59 = vunpack.i.l.bf16 %v10383_v40  ;;  %v5094_v50 = vpack.c.bf16 %v3176_v47, %v10367_v17  ;;  %v14197_v17 = vld [vmem:[#allocation86_spill] sm:$0xff]  ;;  %v14202_v47 = vld [vmem:[#allocation203_spill] sm:$0xff] }
 0x32b   : > { %5086 = vmatpush1.bf16.msk.msra.mxu1 %vm14178_vm12, %v10478_v10  ;;  %v14192_v30 = vunpack.i.h.bf16 %v10480_v11  ;;  %vm14193_vm2 = vcmp.lt.s32.totalorder %v5967_v16, 127  ;;  %v10530_v3 = vpop.permute.xlu1 %5596  ;;  %vm14196_vm12 = vnez %v14195_v61  ;;  %vm14198_vm1 = vnez %v14197_v17  ;;  %v14208_v61 = vld [vmem:[#allocation96_spill] sm:$0xff]  ;;  %v14219_v17 = vld [vmem:[#allocation97_spill] sm:$0xff] }
 0x32c   : > { %5060 = vmatpush1.bf16.msk.msra.mxu0 %vm14183_vm11, %v5059_v19  ;;  %5089 = vmatprep.subr.msk.bf16.mxu1 %vm14185_vm3, %v5088_v36  ;;  %v14188_v36 = vld [vmem:[#allocation95_spill] sm:$0xff]  ;;  %vm14194_vm7 = vmmov %vm14193_vm2  ;;  %vm14201_vm11 = vnez %v14200_v4  ;;  %vm14203_vm3 = vnez %v14202_v47  ;;  %v14222_v4 = vpack.c.bf16 %v10245_v31, %v10210_v6  ;;  %v14223_v47 = vld [vmem:[#allocation209_spill] sm:$0xff] }
 0x32d   : > { %5063 = vmatprep.subr.msk.bf16.mxu0 %vm14187_vm13, %v5062_v21  ;;  %v10512_v14 = vpop.permute.xlu0 %5621  ;;  %vm14189_vm4 = vnez %v14188_v36  ;;  %v14190_v21 = vld [vmem:[#allocation147_spill] sm:$0xff]  ;;  %v10524_v46 = vsel %vm14193_vm2, %v5588_v44, %v14192_v30  ;;  %v10528_v40 = vsel %vm14194_vm7, %v5584_v62, %v5588_v44  ;;  %vm14199_vm0 = vmpackc.low %vm14196_vm12, %vm14198_vm1  ;;  %v14206_v36 = vunpack.i.h.bf16 %v10352_v28  ;;  %v14235_v31 = vld [vmem:[#allocation77_spill] sm:$0xff] }
 0x32e   : > { %vm14191_vm8 = vnez %v14190_v21  ;;  %vm14204_vm13 = vmpackc.low %vm14201_vm11, %vm14203_vm3  ;;  %v5598_v30 = vunpack.i.l.bf16 %v10530_v3  ;;  %v14215_v28 = vld [vmem:[#allocation103_spill] sm:$0xff]  ;;  %vm14220_vm3 = vnez %v14219_v17 }
 0x32f   : > { %5092 = vmatpush1.bf16.msk.msra.mxu1 %vm14189_vm4, %v5091_v49  ;;  %vm14205_vm4 = vmmov %vm14193_vm2 }
 0x330   : > { %5066 = vmatpush1.bf16.msk.msra.mxu0 %vm14191_vm8, %v5065_v35  ;;  %5095 = vmatprep.subr.msk.bf16.mxu1 %vm14199_vm0, %v5094_v50  ;;  %v5097_v35 = vpack.c.bf16 %v3177_v9, %v10372_v57  ;;  %v10545_v44 = vsel %vm14205_vm4, %v5583_v59, %v5584_v62  ;;  %vm14207_vm8 = vmmov %vm14193_vm2  ;;  %v12461_v50 = vunpack.i.h.bf16 %v10530_v3  ;;  %vm14209_vm2 = vnez %v14208_v61  ;;  %v14213_v57 = vld [vmem:[#allocation88_spill] sm:$0xff] }
 0x331   : > { %5069 = vmatprep.subr.msk.bf16.mxu0 %vm14204_vm13, %v5068_v27  ;;  %v10547_v49 = vpop.permute.xlu0 %5631  ;;  %v10553_v21 = vsel %vm14207_vm8, %v14206_v36, %v5583_v59  ;;  %v14210_v27 = vld [vmem:[#allocation93_spill] sm:$0xff]  ;;  %vm14214_vm1 = vnez %v14213_v57  ;;  %vm14216_vm0 = vnez %v14215_v28  ;;  %v14217_v59 = vld [vmem:[#allocation98_spill] sm:$0xff]  ;;  %vm14224_vm4 = vnez %v14223_v47  ;;  %v14238_v47 = vld [vmem:[#allocation100_spill] sm:$0xff] }
 0x332   : > { %vm14211_vm7 = vnez %v14210_v27  ;;  %v3515_v9 = vsel %vm14214_vm1, %v10524_v46, 0.0  ;;  %v3514_v62 = vsel %vm14216_vm0, %v10528_v40, 0.0  ;;  %vm14218_vm11 = vnez %v14217_v59  ;;  %v14228_v36 = vld [vmem:[#allocation34_spill] sm:$0xff] }
 0x333   : > { %vm14212_vm12 = vmpackc.low %vm14209_vm2, %vm14211_vm7  ;;  %vm14229_vm7 = vnez %v14228_v36  ;;  %v5594_v27 = vunpack.i.h.bf16 %v10433_v41  ;;  %v5593_v57 = vunpack.i.l.bf16 %v10433_v41  ;;  %v14230_v28 = vld [vmem:[#allocation82_spill] sm:$0xff]  ;;  %v3675_v17 = vpack.c.bf16 %v3515_v9, %v3515_v9  ;;  %v14244_v36 = vld [vmem:[#allocation219_spill] sm:$0xff] }
 0x334   : > { %5098 = vmatpush1.bf16.msk.msra.mxu1 %vm14212_vm12, %v5097_v35  ;;  %vm14221_vm13 = vmpackc.low %vm14218_vm11, %vm14220_vm3  ;;  %v14225_v35 = vld [vmem:[#allocation208_spill] sm:$0xff]  ;;  %v3513_v61 = vsel %vm14229_vm7, %v10545_v44, 0.0  ;;  %vm14231_vm12 = vnez %v14230_v28  ;;  %vm14236_vm11 = vnez %v14235_v31  ;;  %vm14237_vm3 = vcmp.lt.s32.totalorder %v5967_v16, 1 }
 0x335   : > { %5101 = vmatprep.subr.msk.bf16.mxu1 %vm14221_vm13, %v5056_v25  ;;  %vm14226_vm8 = vnez %v14225_v35  ;;  %v14232_v25 = vld [vmem:[#allocation211_spill] sm:$0xff]  ;;  %v10592_v6 = vpop.permute.xlu0 %5641  ;;  %v3512_v59 = vsel %vm14236_vm11, %v10553_v21, 0.0  ;;  %v10601_v41 = vsel %vm14237_vm3, %v5598_v30, %v12461_v50  ;;  %vm14239_vm13 = vnez %v14238_v47  ;;  %v14246_v9 = vld [vmem:[#allocation216_spill] sm:$0xff]  ;;  %v10645_v47 = vpop.permute.xlu1 %5606 }
 0x336   : > { %vm14227_vm2 = vmpackc.low %vm14224_vm4, %vm14226_vm8  ;;  %vm14233_vm1 = vnez %v14232_v25  ;;  %v14240_v35 = vld [vmem:[#allocation99_spill] sm:$0xff]  ;;  %vm14245_vm7 = vnez %v14244_v36  ;;  %v5603_v50 = vunpack.i.l.bf16 %v10456_v52 }
 0x337   : > { %5072 = vmatpush1.bf16.msk.msra.mxu0 %vm14227_vm2, %v14222_v4  ;;  %vm14234_vm0 = vmpackc.low %vm14231_vm12, %vm14233_vm1  ;;  %v3674_v4 = vpack.c.bf16 %v3514_v62, %v3514_v62  ;;  %vm14241_vm4 = vnez %v14240_v35  ;;  %vm14243_vm2 = vcmask 1043456   ;;  %vm14247_vm12 = vnez %v14246_v9  ;;  %v14267_v9 = vld [vmem:[#allocation115_spill] sm:$0xff] }
 0x338   : > { %5075 = vmatprep.subr.msk.bf16.mxu0 %vm14234_vm0, %v10250_v29  ;;  %vm14242_vm8 = vmpackc.low %vm14239_vm13, %vm14241_vm4  ;;  %v3673_v29 = vpack.c.bf16 %v3513_v61, %v3513_v61  ;;  %v3672_v62 = vpack.c.bf16 %v3512_v59, %v3512_v59  ;;  %v10624_v61 = vpack.c.bf16 %v10085_v37, %v10601_v41  ;;  %vm14252_vm13 = vcmask 588800  }
 0x339   : > { %5104 = vmatpush1.bf16.msk.msra.mxu1 %vm14242_vm8, %v5059_v19  ;;  %vm14248_vm1 = vmpackc.low %vm14245_vm7, %vm14247_vm12  ;;  %v10618_v25 = vpop.permute.xlu0 %5651 }
 0x33a   : > { %5132 = vmatprep.subr.msk.bf16.mxu1 %vm14243_vm2, %v3675_v17  ;;  %vm14249_vm0 = vmmov %vm14237_vm3 }
 0x33b   : > { %5078 = vmatpush1.bf16.msk.msra.mxu0 %vm14248_vm1, %v10274_v56  ;;  %v3173_v28 = vsel %vm14249_vm0, %v5593_v57, %v5594_v27  ;;  %vm14250_vm11 = vmmov %vm14243_vm2 }
 0x33c   : > { %5106 = vmatprep.subr.msk.bf16.mxu0 %vm14250_vm11, %v3673_v29  ;;  %vm14251_vm3 = vmmov %vm14249_vm0  ;;  %5105 = vmatmul.mubr.msk.bf16.vlgmr.msra.gmra.mxu1 %vm14252_vm13, %v10340_v63  ;;  %v5108_v59 = vpack.c.bf16 %v10069_v42, %v3173_v28  ;;  %v14264_v29 = vld [vmem:[#allocation223_spill] sm:$0xff] }
 0x33d   : > { %v3172_v19 = vsel %vm14251_vm3, %v5594_v27, %v5598_v30  ;;  %vm14253_vm4 = vmmov %vm14243_vm2  ;;  %v14256_v30 = vld [vmem:[#allocation114_spill] sm:$0xff]  ;;  %v14258_v27 = vld [vmem:[#allocation123_spill] sm:$0xff]  ;;  %v10647_v35 = vpop.permute.xlu0 %5661  ;;  %4039 = vmatprep.mubr.bf16.mxu1 %v13431_v23  ;;  %vm14265_vm3 = vnez %v14264_v29 }
 0x33e   : > { %v3737_v56 = vsel %vm14253_vm4, %v3674_v4, 0  ;;  %vm14254_vm8 = vmmov %vm14252_vm13  ;;  %vm14257_vm7 = vnez %v14256_v30  ;;  %vm14259_vm12 = vnez %v14258_v27  ;;  %v10643_v4 = vpack.c.bf16 %v10071_v0, %v3172_v19  ;;  %v14272_v30 = vld [vmem:[#allocation137_spill] sm:$0xff] }
 0x33f   : > { %4014 = vmatpush1.bf16.msra.mxu1 %v3737_v56  ;;  %5079 = vmatmul.mubr.msk.bf16.vlgmr.msra.gmra.mxu0 %vm14254_vm8, %v10340_v63  ;;  %vm14255_vm2 = vmmov %vm14249_vm0  ;;  %v5609_v56 = vunpack.i.h.bf16 %v10645_v47  ;;  %v5114_v27 = vpack.c.bf16 %v10553_v21, %v10065_v1  ;;  %v14276_v29 = vld [vmem:[#allocation17_spill] sm:$0xff] }
 0x340   : > { %v3174_v31 = vsel %vm14255_vm2, %v10397_v51, %v5593_v57  ;;  %vm14260_vm1 = vmpackc.low %vm14257_vm7, %vm14259_vm12  ;;  %v5140_v51 = vpack.c.bf16 %v10528_v40, %v10071_v0  ;;  %v14262_v57 = vld [vmem:[#allocation224_spill] sm:$0xff]  ;;  %3998 = vmatprep.mubr.bf16.mxu0 %v13431_v23  ;;  %v5608_v0 = vunpack.i.l.bf16 %v10645_v47  ;;  %vm14273_vm7 = vnez %v14272_v30  ;;  %v14279_v30 = vld [vmem:[#allocation177_spill] sm:$0xff] }
 0x341   : > { %5135 = vmatprep.subr.msk.bf16.mxu1 %vm14260_vm1, %v10624_v61  ;;  %vm14261_vm0 = vmmov %vm14253_vm4  ;;  %vm14263_vm11 = vnez %v14262_v57  ;;  %v5111_v36 = vpack.c.bf16 %v10065_v1, %v3174_v31  ;;  %vm14268_vm4 = vnez %v14267_v9  ;;  %v14274_v57 = vld [vmem:[#allocation110_spill] sm:$0xff]  ;;  %vm14277_vm1 = vnez %v14276_v29  ;;  %v10678_v9 = vpop.permute.xlu0 %5671  ;;  %v14398_v47 = vld [vmem:[#allocation31_spill] sm:$0xff] }
 0x342   : > { %v3731_v17 = vsel %vm14261_vm0, %v3672_v62, 0  ;;  %vm14266_vm13 = vmpackc.low %vm14263_vm11, %vm14265_vm3  ;;  %v14269_v62 = vld [vmem:[#allocation124_spill] sm:$0xff]  ;;  %vm14275_vm12 = vnez %v14274_v57  ;;  %vm14280_vm11 = vnez %v14279_v30  ;;  %v5117_v1 = vpack.c.bf16 %v10395_v38, %v10061_v24 }
 0x343   : > { %3973 = vmatpush1.bf16.msra.mxu0 %v3731_v17  ;;  %vm14270_vm8 = vnez %v14269_v62  ;;  %v5143_v17 = vpack.c.bf16 %v10545_v44, %v10069_v42  ;;  %vm14278_vm0 = vmpackc.low %vm14275_vm12, %vm14277_vm1  ;;  %v5604_v62 = vunpack.i.h.bf16 %v10456_v52  ;;  %v14281_v42 = vld [vmem:[#allocation145_spill] sm:$0xff]  ;;  %v5120_v57 = vpack.c.bf16 %v3174_v31, %v10395_v38  ;;  %v14287_v24 = vld [vmem:[#allocation128_spill] sm:$0xff] }
 0x344   : > { %5109 = vmatprep.subr.msk.bf16.mxu0 %vm14266_vm13, %v5108_v59  ;;  %vm14271_vm2 = vmpackc.low %vm14268_vm4, %vm14270_vm8  ;;  %vm14282_vm3 = vnez %v14281_v42  ;;  %vm14283_vm13 = vcmp.lt.s32.totalorder %v5967_v16, 127  ;;  %v5149_v38 = vpack.c.bf16 %v3173_v28, %v10553_v21  ;;  %v14290_v31 = vld [vmem:[#allocation6_spill] sm:$0xff]  ;;  %v14293_v30 = vunpack.i.h.bf16 %v10480_v11  ;;  %v14297_v21 = vld [vmem:[#allocation139_spill] sm:$0xff] }
 0x345   : > { %5138 = vmatpush1.bf16.msk.msra.mxu1 %vm14271_vm2, %v10643_v4  ;;  %v10694_v29 = vsel %vm14283_vm13, %v5608_v0, %v5609_v56  ;;  %vm14284_vm4 = vmmov %vm14283_vm13  ;;  %vm14288_vm2 = vnez %v14287_v24  ;;  %vm14291_vm12 = vnez %v14290_v31  ;;  %v14300_v28 = vunpack.i.h.bf16 %v10310_v20  ;;  %v14309_v20 = vld [vmem:[#allocation146_spill] sm:$0xff]  ;;  %v14313_v31 = vld [vmem:[#allocation141_spill] sm:$0xff] }
 0x346   : > { %5141 = vmatprep.subr.msk.bf16.mxu1 %vm14273_vm7, %v5140_v51  ;;  %v5146_v51 = vpack.c.bf16 %v3172_v19, %v10545_v44  ;;  %v10698_v52 = vsel %vm14284_vm4, %v5604_v62, %v5608_v0  ;;  %v10700_v44 = vpop.permute.xlu1 %5616  ;;  %v14285_v19 = vld [vmem:[#allocation130_spill] sm:$0xff]  ;;  %vm14292_vm1 = vmmov %vm14284_vm4 }
 0x347   : > { %5112 = vmatpush1.bf16.msk.msra.mxu0 %vm14278_vm0, %v5111_v36  ;;  %vm14286_vm8 = vnez %v14285_v19  ;;  %v10716_v0 = vsel %vm14292_vm1, %v5603_v50, %v5604_v62  ;;  %vm14294_vm0 = vmmov %vm14292_vm1  ;;  %v5618_v11 = vunpack.i.l.bf16 %v10700_v44  ;;  %v14302_v62 = vld [vmem:[#allocation133_spill] sm:$0xff]  ;;  %vm14310_vm1 = vnez %v14309_v20  ;;  %v14311_v24 = vld [vmem:[#allocation134_spill] sm:$0xff] }
 0x348   : > { %5115 = vmatprep.subr.msk.bf16.mxu0 %vm14280_vm11, %v5114_v27  ;;  %vm14289_vm7 = vmpackc.low %vm14286_vm8, %vm14288_vm2  ;;  %v10710_v27 = vpop.permute.xlu0 %3308  ;;  %v10722_v42 = vsel %vm14294_vm0, %v14293_v30, %v5603_v50  ;;  %vm14303_vm8 = vnez %v14302_v62  ;;  %v14304_v50 = vld [vmem:[#allocation132_spill] sm:$0xff]  ;;  %v3518_v19 = vsel %vm14310_vm1, %v10698_v52, 0.0  ;;  %v14321_v62 = vld [vmem:[#allocation51_spill] sm:$0xff] }
 0x349   : > { %5144 = vmatpush1.bf16.msk.msra.mxu1 %vm14282_vm3, %v5143_v17  ;;  %v5123_v17 = vpack.c.bf16 %v10431_v60, %v10401_v7  ;;  %vm14298_vm3 = vnez %v14297_v21  ;;  %vm14301_vm4 = vmmov %vm14294_vm0  ;;  %v5619_v60 = vunpack.i.h.bf16 %v10700_v44  ;;  %vm14305_vm2 = vnez %v14304_v50  ;;  %v14316_v21 = vld [vmem:[#allocation63_spill] sm:$0xff] }
 0x34a   : > { %5147 = vmatprep.subr.msk.bf16.mxu1 %vm14289_vm7, %v5146_v51  ;;  %v14295_v51 = vld [vmem:[#allocation44_spill] sm:$0xff]  ;;  %v10734_v7 = vsel %vm14301_vm4, %v10710_v27, %v14300_v28  ;;  %vm14306_vm7 = vmpackc.low %vm14303_vm8, %vm14305_vm2  ;;  %vm14312_vm0 = vnez %v14311_v24  ;;  %vm14322_vm2 = vnez %v14321_v62  ;;  %v14325_v24 = vld [vmem:[#allocation18_spill] sm:$0xff] }
 0x34b   : > { %5118 = vmatpush1.bf16.msk.msra.mxu0 %vm14291_vm12, %v5117_v1  ;;  %vm14296_vm11 = vnez %v14295_v51  ;;  %v14307_v1 = vld [vmem:[#allocation129_spill] sm:$0xff]  ;;  %v5406_v30 = vpack.c.bf16 %v10389_v53, %v10734_v7  ;;  %v5614_v51 = vunpack.i.h.bf16 %v10482_v2  ;;  %v14318_v28 = vld [vmem:[#allocation52_spill] sm:$0xff]  ;;  %v3517_v50 = vsel %vm14322_vm2, %v10716_v0, 0.0 }
 0x34c   : > { %vm14299_vm13 = vmpackc.low %vm14296_vm11, %vm14298_vm3  ;;  %vm14308_vm12 = vnez %v14307_v1  ;;  %vm14314_vm11 = vnez %v14313_v31  ;;  %vm14319_vm4 = vnez %v14318_v28  ;;  %v14323_v1 = vld [vmem:[#allocation226_spill] sm:$0xff]  ;;  %v14327_v31 = vld [vmem:[#allocation225_spill] sm:$0xff] }
 0x34d   : > { %5121 = vmatprep.subr.msk.bf16.mxu0 %vm14299_vm13, %v5120_v57  ;;  %5150 = vmatpush1.bf16.msk.msra.mxu1 %vm14306_vm7, %v5149_v38  ;;  %v3519_v57 = vsel %vm14308_vm12, %v10694_v29, 0.0  ;;  %vm14315_vm3 = vmpackc.low %vm14312_vm0, %vm14314_vm11  ;;  %v5613_v38 = vunpack.i.l.bf16 %v10482_v2  ;;  %vm14317_vm13 = vnez %v14316_v21  ;;  %vm14324_vm7 = vnez %v14323_v1  ;;  %v14331_v21 = vld [vmem:[#allocation143_spill] sm:$0xff]  ;;  %v14333_v28 = vld [vmem:[#allocation142_spill] sm:$0xff] }
 0x34e   : > { %5153 = vmatprep.subr.msk.bf16.mxu1 %vm14315_vm3, %v5108_v59  ;;  %vm14320_vm8 = vmpackc.low %vm14317_vm13, %vm14319_vm4  ;;  %v3516_v59 = vsel %vm14324_vm7, %v10722_v42, 0.0  ;;  %v3679_v20 = vpack.c.bf16 %v3519_v57, %v3519_v57  ;;  %vm14326_vm12 = vnez %v14325_v24  ;;  %vm14328_vm1 = vnez %v14327_v31  ;;  %v14340_v1 = vld [vmem:[#allocation228_spill] sm:$0xff] }
 0x34f   : > { %5124 = vmatpush1.bf16.msk.msra.mxu0 %vm14320_vm8, %v5123_v17  ;;  %vm14329_vm0 = vmpackc.low %vm14326_vm12, %vm14328_vm1  ;;  %v3678_v2 = vpack.c.bf16 %v3518_v19, %v3518_v19  ;;  %vm14330_vm11 = vcmp.lt.s32.totalorder %v5967_v16, 1  ;;  %vm14332_vm3 = vnez %v14331_v21  ;;  %vm14334_vm13 = vnez %v14333_v28  ;;  %v14338_v19 = vld [vmem:[#allocation230_spill] sm:$0xff]  ;;  %v14356_v21 = vld [vmem:[#allocation5_spill] sm:$0xff] }
 0x350   : > { %5127 = vmatprep.subr.msk.bf16.mxu0 %vm14329_vm0, %v10449_v39  ;;  %v10779_v17 = vsel %vm14330_vm11, %v5618_v11, %v5619_v60  ;;  %vm14335_vm4 = vmpackc.low %vm14332_vm3, %vm14334_vm13  ;;  %vm14336_vm8 = vcmask 1043456   ;;  %v3677_v57 = vpack.c.bf16 %v3517_v50, %v3517_v50  ;;  %v3676_v62 = vpack.c.bf16 %v3516_v59, %v3516_v59  ;;  %v14358_v28 = vld [vmem:[#allocation102_spill] sm:$0xff]  ;;  %v14746_v53 = vld [vmem:[#allocation12_spill] sm:$0xff] }
 0x351   : > { %5156 = vmatpush1.bf16.msk.msra.mxu1 %vm14335_vm4, %v5111_v36  ;;  %vm14337_vm2 = vmmov %vm14330_vm11  ;;  %vm14339_vm7 = vnez %v14338_v19  ;;  %vm14341_vm12 = vnez %v14340_v1  ;;  %v10799_v36 = vpack.c.bf16 %v10114_v32, %v10779_v17  ;;  %vm14344_vm11 = vcmask 588800   ;;  %v14363_v19 = vld [vmem:[#allocation154_spill] sm:$0xff] }
 0x352   : > { %5184 = vmatprep.subr.msk.bf16.mxu1 %vm14336_vm8, %v3679_v20  ;;  %v3169_v39 = vsel %vm14337_vm2, %v5613_v38, %v5614_v51  ;;  %vm14342_vm1 = vmpackc.low %vm14339_vm7, %vm14341_vm12  ;;  %v14347_v59 = vunpack.i.h.bf16 %v10530_v3  ;;  %v14351_v20 = vld [vmem:[#allocation149_spill] sm:$0xff]  ;;  %v10823_v3 = vpop.permute.xlu1 %5626 }
 0x353   : > { %5130 = vmatpush1.bf16.msk.msra.mxu0 %vm14342_vm1, %v10478_v10  ;;  %vm14343_vm0 = vmmov %vm14337_vm2  ;;  %vm14352_vm2 = vnez %v14351_v20  ;;  %v5629_v1 = vunpack.i.h.bf16 %v10823_v3  ;;  %v14368_v20 = vld [vmem:[#allocation135_spill] sm:$0xff] }
 0x354   : > { %v3168_v24 = vsel %vm14343_vm0, %v5614_v51, %v5618_v11  ;;  %5157 = vmatmul.mubr.msk.bf16.vlgmr.msra.gmra.mxu1 %vm14344_vm11, %v10340_v63  ;;  %vm14345_vm3 = vmmov %vm14336_vm8  ;;  %v5160_v11 = vpack.c.bf16 %v10092_v18, %v3169_v39  ;;  %v14349_v51 = vld [vmem:[#allocation150_spill] sm:$0xff] }
 0x355   : > { %v3749_v50 = vsel %vm14345_vm3, %v3678_v2, 0  ;;  %vm14346_vm13 = vmmov %vm14345_vm3  ;;  %4121 = vmatprep.mubr.bf16.mxu1 %v13431_v23  ;;  %vm14350_vm8 = vnez %v14349_v51  ;;  %v10821_v2 = vpack.c.bf16 %v10094_v8, %v3168_v24  ;;  %v5195_v51 = vpack.c.bf16 %v10716_v0, %v10092_v18 }
 0x356   : > { %5158 = vmatprep.subr.msk.bf16.mxu0 %vm14346_vm13, %v3677_v57  ;;  %4096 = vmatpush1.bf16.msra.mxu1 %v3749_v50  ;;  %vm14348_vm4 = vmmov %vm14343_vm0  ;;  %vm14357_vm0 = vnez %v14356_v21  ;;  %v5628_v50 = vunpack.i.l.bf16 %v10823_v3  ;;  %v5624_v21 = vunpack.i.h.bf16 %v10512_v14  ;;  %v14484_v3 = vld [vmem:[#allocation9_spill] sm:$0xff] }
 0x357   : > { %v3170_v10 = vsel %vm14348_vm4, %v14347_v59, %v5613_v38  ;;  %vm14353_vm7 = vmpackc.low %vm14350_vm8, %vm14352_vm2  ;;  %v5192_v38 = vpack.c.bf16 %v10698_v52, %v10094_v8  ;;  %vm14364_vm4 = vnez %v14363_v19  ;;  %v14366_v8 = vld [vmem:[#allocation184_spill] sm:$0xff]  ;;  %v5166_v59 = vpack.c.bf16 %v10722_v42, %v10087_v48 }
 0x358   : > { %5187 = vmatprep.subr.msk.bf16.mxu1 %vm14353_vm7, %v10799_v36  ;;  %vm14354_vm12 = vmmov %vm14344_vm11  ;;  %vm14359_vm11 = vnez %v14358_v28  ;;  %v5163_v57 = vpack.c.bf16 %v10087_v48, %v3170_v10  ;;  %vm14367_vm2 = vnez %v14366_v8  ;;  %vm14369_vm7 = vnez %v14368_v20  ;;  %v14373_v19 = vld [vmem:[#allocation16_spill] sm:$0xff]  ;;  %v14388_v20 = vld [vmem:[#allocation189_spill] sm:$0xff] }
 0x359   : > { %5131 = vmatmul.mubr.msk.bf16.vlgmr.msra.gmra.mxu0 %vm14354_vm12, %v10340_v63  ;;  %vm14355_vm1 = vmmov %vm14345_vm3  ;;  %v5623_v28 = vunpack.i.l.bf16 %v10512_v14  ;;  %v5169_v48 = vpack.c.bf16 %v10524_v46, %v10085_v37  ;;  %v5172_v18 = vpack.c.bf16 %v3170_v10, %v10524_v46  ;;  %v14381_v37 = vld [vmem:[#allocation163_spill] sm:$0xff]  ;;  %v5201_v46 = vpack.c.bf16 %v3169_v39, %v10722_v42  ;;  %v14384_v10 = vld [vmem:[#allocation8_spill] sm:$0xff] }
 0x35a   : > { %v3743_v31 = vsel %vm14355_vm1, %v3676_v62, 0  ;;  %4080 = vmatprep.mubr.bf16.mxu0 %v13431_v23  ;;  %vm14360_vm3 = vmpackc.low %vm14357_vm0, %vm14359_vm11  ;;  %v14361_v62 = vld [vmem:[#allocation155_spill] sm:$0xff]  ;;  %vm14374_vm0 = vnez %v14373_v19  ;;  %v14404_v19 = vld [vmem:[#allocation178_spill] sm:$0xff] }
 0x35b   : > { %4055 = vmatpush1.bf16.msra.mxu0 %v3743_v31  ;;  %vm14362_vm13 = vnez %v14361_v62  ;;  %v14370_v31 = vld [vmem:[#allocation21_spill] sm:$0xff]  ;;  %v5198_v62 = vpack.c.bf16 %v3168_v24, %v10716_v0  ;;  %v10873_v0 = vpop.permute.xlu1 %5636  ;;  %v14379_v24 = vld [vmem:[#allocation164_spill] sm:$0xff] }
 0x35c   : > { %5161 = vmatprep.subr.msk.bf16.mxu0 %vm14360_vm3, %v5160_v11  ;;  %vm14365_vm8 = vmpackc.low %vm14362_vm13, %vm14364_vm4  ;;  %vm14371_vm12 = vnez %v14370_v31  ;;  %vm14377_vm3 = vcmp.lt.s32.totalorder %v5967_v16, 127  ;;  %vm14380_vm4 = vnez %v14379_v24  ;;  %v14390_v31 = vld [vmem:[#allocation89_spill] sm:$0xff]  ;;  %v5639_v42 = vunpack.i.h.bf16 %v10873_v0 }
 0x35d   : > { %5190 = vmatpush1.bf16.msk.msra.mxu1 %vm14365_vm8, %v10821_v2  ;;  %vm14372_vm1 = vmpackc.low %vm14369_vm7, %vm14371_vm12  ;;  %v10867_v8 = vsel %vm14377_vm3, %v5628_v50, %v5629_v1  ;;  %vm14382_vm8 = vnez %v14381_v37  ;;  %vm14385_vm7 = vnez %v14384_v10  ;;  %v5638_v39 = vunpack.i.l.bf16 %v10873_v0  ;;  %v14409_v24 = vld [vmem:[#allocation105_spill] sm:$0xff]  ;;  %v14412_v37 = vld [vmem:[#allocation27_spill] sm:$0xff] }
 0x35e   : > { %5193 = vmatprep.subr.msk.bf16.mxu1 %vm14367_vm2, %v5192_v38  ;;  %v14375_v38 = vld [vmem:[#allocation4_spill] sm:$0xff]  ;;  %vm14378_vm13 = vmmov %vm14377_vm3 }
 0x35f   : > { %5164 = vmatpush1.bf16.msk.msra.mxu0 %vm14372_vm1, %v5163_v57  ;;  %vm14376_vm11 = vnez %v14375_v38  ;;  %v10871_v14 = vsel %vm14378_vm13, %v5624_v21, %v5628_v50  ;;  %vm14383_vm2 = vmpackc.low %vm14380_vm4, %vm14382_vm8  ;;  %v5633_v38 = vunpack.i.l.bf16 %v10547_v49  ;;  %v14414_v10 = vld [vmem:[#allocation136_spill] sm:$0xff]  ;;  %v10982_v44 = vpop.permute.xlu1 %5646 }
 0x360   : > { %5167 = vmatprep.subr.msk.bf16.mxu0 %vm14374_vm0, %v5166_v59  ;;  %v5175_v59 = vpack.c.bf16 %v10601_v41, %v10528_v40  ;;  %vm14386_vm12 = vmmov %vm14377_vm3  ;;  %vm14389_vm0 = vnez %v14388_v20  ;;  %v14393_v40 = vld [vmem:[#allocation169_spill] sm:$0xff]  ;;  %v14395_v41 = vld [vmem:[#allocation168_spill] sm:$0xff] }
 0x361   : > { %5196 = vmatpush1.bf16.msk.msra.mxu1 %vm14376_vm11, %v5195_v51  ;;  %v3324_v50 = vsel %vm14386_vm12, %v5623_v28, %v5624_v21  ;;  %vm14387_vm1 = vmmov %vm14377_vm3  ;;  %vm14391_vm11 = vnez %v14390_v31  ;;  %vm14394_vm13 = vnez %v14393_v40  ;;  %vm14396_vm4 = vnez %v14395_v41  ;;  %v14400_v21 = vld [vmem:[#allocation182_spill] sm:$0xff]  ;;  %v14418_v40 = vld [vmem:[#allocation235_spill] sm:$0xff] }
 0x362   : > { %5199 = vmatprep.subr.msk.bf16.mxu1 %vm14383_vm2, %v5198_v62  ;;  %v10891_v51 = vsel %vm14387_vm1, %v5609_v56, %v5623_v28  ;;  %vm14392_vm3 = vmpackc.low %vm14389_vm0, %vm14391_vm11  ;;  %vm14399_vm2 = vnez %v14398_v47  ;;  %v14402_v62 = vld [vmem:[#allocation179_spill] sm:$0xff]  ;;  %vm14405_vm1 = vnez %v14404_v19  ;;  %v14422_v41 = vld [vmem:[#allocation186_spill] sm:$0xff] }
 0x363   : > { %5170 = vmatpush1.bf16.msk.msra.mxu0 %vm14385_vm7, %v5169_v48  ;;  %vm14397_vm8 = vmpackc.low %vm14394_vm13, %vm14396_vm4  ;;  %v3523_v56 = vsel %vm14399_vm2, %v10867_v8, 0.0  ;;  %vm14401_vm7 = vnez %v14400_v21  ;;  %vm14403_vm12 = vnez %v14402_v62  ;;  %v5634_v48 = vunpack.i.h.bf16 %v10547_v49  ;;  %v14424_v47 = vld [vmem:[#allocation185_spill] sm:$0xff]  ;;  %v14431_v62 = vld [vmem:[#allocation175_spill] sm:$0xff] }
 0x364   : > { %5173 = vmatprep.subr.msk.bf16.mxu0 %vm14392_vm3, %v5172_v18  ;;  %v3522_v28 = vsel %vm14401_vm7, %v10871_v14, 0.0  ;;  %vm14406_vm0 = vmpackc.low %vm14403_vm12, %vm14405_vm1  ;;  %v14407_v18 = vld [vmem:[#allocation201_spill] sm:$0xff]  ;;  %vm14410_vm3 = vnez %v14409_v24  ;;  %vm14413_vm4 = vnez %v14412_v37  ;;  %v3683_v31 = vpack.c.bf16 %v3523_v56, %v3523_v56  ;;  %v14441_v24 = vld [vmem:[#allocation191_spill] sm:$0xff] }
 0x365   : > { %5202 = vmatpush1.bf16.msk.msra.mxu1 %vm14397_vm8, %v5201_v46  ;;  %vm14408_vm11 = vnez %v14407_v18  ;;  %v3521_v46 = vsel %vm14413_vm4, %v3324_v50, 0.0  ;;  %vm14415_vm8 = vnez %v14414_v10  ;;  %vm14419_vm7 = vnez %v14418_v40  ;;  %v14448_v10 = vld [vmem:[#allocation38_spill] sm:$0xff] }
 0x366   : > { %5205 = vmatprep.subr.msk.bf16.mxu1 %vm14406_vm0, %v5160_v11  ;;  %vm14411_vm13 = vmpackc.low %vm14408_vm11, %vm14410_vm3  ;;  %v3520_v20 = vsel %vm14415_vm8, %v10891_v51, 0.0  ;;  %v14416_v11 = vld [vmem:[#allocation236_spill] sm:$0xff]  ;;  %v3682_v49 = vpack.c.bf16 %v3522_v28, %v3522_v28  ;;  %vm14421_vm1 = vcmp.lt.s32.totalorder %v5967_v16, 1  ;;  %vm14423_vm0 = vnez %v14422_v41  ;;  %v14429_v28 = vld [vmem:[#allocation85_spill] sm:$0xff] }
 0x367   : > { %5176 = vmatpush1.bf16.msk.msra.mxu0 %vm14411_vm13, %v5175_v59  ;;  %vm14417_vm2 = vnez %v14416_v11  ;;  %v10938_v59 = vsel %vm14421_vm1, %v5638_v39, %v5639_v42  ;;  %vm14425_vm11 = vnez %v14424_v47  ;;  %vm14427_vm13 = vcmask 1043456   ;;  %vm14428_vm4 = vmmov %vm14421_vm1  ;;  %v14453_v11 = vld [vmem:[#allocation197_spill] sm:$0xff] }
 0x368   : > { %vm14420_vm12 = vmpackc.low %vm14417_vm2, %vm14419_vm7  ;;  %v3681_v56 = vpack.c.bf16 %v3521_v46, %v3521_v46  ;;  %v3680_v21 = vpack.c.bf16 %v3520_v20, %v3520_v20  ;;  %vm14430_vm8 = vnez %v14429_v28  ;;  %vm14432_vm2 = vnez %v14431_v62 }
 0x369   : > { %5179 = vmatprep.subr.msk.bf16.mxu0 %vm14420_vm12, %v10624_v61  ;;  %vm14426_vm3 = vmpackc.low %vm14423_vm0, %vm14425_vm11  ;;  %v3165_v61 = vsel %vm14428_vm4, %v5633_v38, %v5634_v48  ;;  %v5649_v40 = vunpack.i.h.bf16 %v10982_v44  ;;  %v5218_v41 = vpack.c.bf16 %v10891_v51, %v10108_v33  ;;  %v5247_v47 = vpack.c.bf16 %v3324_v50, %v10118_v34 }
 0x36a   : > { %5208 = vmatpush1.bf16.msk.msra.mxu1 %vm14426_vm3, %v5163_v57  ;;  %vm14433_vm7 = vmpackc.low %vm14430_vm8, %vm14432_vm2  ;;  %v10958_v57 = vpack.c.bf16 %v10140_v13, %v10938_v59  ;;  %v5643_v28 = vunpack.i.l.bf16 %v10592_v6 }
 0x36b   : > { %5236 = vmatprep.subr.msk.bf16.mxu1 %vm14427_vm13, %v3683_v31  ;;  %5182 = vmatpush1.bf16.msk.msra.mxu0 %vm14433_vm7, %v10643_v4  ;;  %vm14434_vm12 = vmmov %vm14421_vm1  ;;  %vm14435_vm1 = vcmask 588800   ;;  %v14451_v31 = vld [vmem:[#allocation198_spill] sm:$0xff] }
 0x36c   : > { %v3164_v19 = vsel %vm14434_vm12, %v5634_v48, %v5638_v39  ;;  %vm14436_vm0 = vmmov %vm14427_vm13  ;;  %v5212_v39 = vpack.c.bf16 %v10118_v34, %v3165_v61  ;;  %v14439_v48 = vld [vmem:[#allocation192_spill] sm:$0xff] }
 0x36d   : > { %5209 = vmatmul.mubr.msk.bf16.vlgmr.msra.gmra.mxu1 %vm14435_vm1, %v10340_v63  ;;  %v3761_v18 = vsel %vm14436_vm0, %v3682_v49, 0  ;;  %vm14437_vm11 = vmmov %vm14436_vm0  ;;  %vm14440_vm13 = vnez %v14439_v48  ;;  %v10980_v46 = vpack.c.bf16 %v10120_v26, %v3164_v19  ;;  %v5648_v49 = vunpack.i.l.bf16 %v10982_v44  ;;  %v14570_v44 = vld [vmem:[#allocation122_spill] sm:$0xff] }
 0x36e   : > { %5210 = vmatprep.subr.msk.bf16.mxu0 %vm14437_vm11, %v3681_v56  ;;  %4178 = vmatpush1.bf16.msra.mxu1 %v3761_v18  ;;  %vm14438_vm3 = vmmov %vm14428_vm4  ;;  %vm14442_vm4 = vnez %v14441_v24  ;;  %vm14452_vm11 = vnez %v14451_v31  ;;  %v14459_v56 = vld [vmem:[#allocation196_spill] sm:$0xff]  ;;  %v5250_v62 = vpack.c.bf16 %v3164_v19, %v3324_v50  ;;  %v14462_v18 = vld [vmem:[#allocation33_spill] sm:$0xff]  ;;  %v5221_v48 = vpack.c.bf16 %v10694_v29, %v10114_v32  ;;  %v11030_v50 = vpop.permute.xlu1 %5656 }
 0x36f   : > { %4203 = vmatprep.mubr.bf16.mxu1 %v13431_v23  ;;  %v3166_v4 = vsel %vm14438_vm3, %v5619_v60, %v5633_v38  ;;  %vm14443_vm8 = vmpackc.low %vm14440_vm13, %vm14442_vm4  ;;  %v5244_v60 = vpack.c.bf16 %v10871_v14, %v10120_v26  ;;  %v14446_v38 = vld [vmem:[#allocation54_spill] sm:$0xff]  ;;  %vm14454_vm3 = vnez %v14453_v11  ;;  %v14456_v26 = vld [vmem:[#allocation217_spill] sm:$0xff] }
 0x370   : > { %5239 = vmatprep.subr.msk.bf16.mxu1 %vm14443_vm8, %v10958_v57  ;;  %vm14444_vm2 = vmmov %vm14435_vm1  ;;  %vm14447_vm12 = vnez %v14446_v38  ;;  %vm14449_vm1 = vnez %v14448_v10  ;;  %v5215_v20 = vpack.c.bf16 %v10108_v33, %v3166_v4  ;;  %vm14457_vm4 = vnez %v14456_v26  ;;  %v14464_v33 = vld [vmem:[#allocation120_spill] sm:$0xff]  ;;  %v14468_v19 = vld [vmem:[#allocation205_spill] sm:$0xff] }
 0x371   : > { %5183 = vmatmul.mubr.msk.bf16.vlgmr.msra.gmra.mxu0 %vm14444_vm2, %v10340_v63  ;;  %vm14445_vm7 = vmmov %vm14436_vm0  ;;  %vm14458_vm8 = vnez %v13722_v45  ;;  %vm14460_vm2 = vnez %v14459_v56  ;;  %v5224_v45 = vpack.c.bf16 %v3166_v4, %v10694_v29  ;;  %v14470_v32 = vld [vmem:[#allocation213_spill] sm:$0xff]  ;;  %v5253_v29 = vpack.c.bf16 %v3165_v61, %v10891_v51  ;;  %v14488_v61 = vld [vmem:[#allocation214_spill] sm:$0xff] }
 0x372   : > { %v3755_v37 = vsel %vm14445_vm7, %v3680_v21, 0  ;;  %4162 = vmatprep.mubr.bf16.mxu0 %v13431_v23  ;;  %vm14450_vm0 = vmpackc.low %vm14447_vm12, %vm14449_vm1  ;;  %v5644_v21 = vunpack.i.h.bf16 %v10592_v6  ;;  %vm14463_vm12 = vnez %v14462_v18  ;;  %vm14465_vm1 = vnez %v14464_v33  ;;  %v14508_v26 = vld [vmem:[#allocation94_spill] sm:$0xff]  ;;  %v14520_v18 = vld [vmem:[#allocation109_spill] sm:$0xff]  ;;  %v11139_v0 = vpop.permute.xlu1 %5666 }
 0x373   : > { %4137 = vmatpush1.bf16.msra.mxu0 %v3755_v37  ;;  %vm14455_vm13 = vmpackc.low %vm14452_vm11, %vm14454_vm3  ;;  %vm14469_vm3 = vnez %v14468_v19  ;;  %v5227_v4 = vpack.c.bf16 %v10779_v17, %v10698_v52  ;;  %v5658_v51 = vunpack.i.l.bf16 %v11030_v50  ;;  %v14479_v52 = vld [vmem:[#allocation212_spill] sm:$0xff]  ;;  %v14481_v17 = vld [vmem:[#allocation215_spill] sm:$0xff]  ;;  %v5654_v38 = vunpack.i.h.bf16 %v10618_v25 }
 0x374   : > { %5213 = vmatprep.subr.msk.bf16.mxu0 %vm14450_vm0, %v5212_v39  ;;  %5242 = vmatpush1.bf16.msk.msra.mxu1 %vm14455_vm13, %v10980_v46  ;;  %vm14461_vm7 = vmpackc.low %vm14458_vm8, %vm14460_vm2  ;;  %vm14466_vm0 = vcmp.lt.s32.totalorder %v5967_v16, 127  ;;  %vm14471_vm13 = vnez %v14470_v32  ;;  %vm14473_vm8 = vnez %v13769_v5  ;;  %v5659_v5 = vunpack.i.h.bf16 %v11030_v50  ;;  %v14514_v56 = vld [vmem:[#allocation254_spill] sm:$0xff]  ;;  %v14528_v32 = vld [vmem:[#allocation151_spill] sm:$0xff] }
 0x375   : > { %5245 = vmatprep.subr.msk.bf16.mxu1 %vm14457_vm4, %v5244_v60  ;;  %v11024_v34 = vsel %vm14466_vm0, %v5648_v49, %v5649_v40  ;;  %vm14467_vm11 = vmmov %vm14466_vm0  ;;  %v14490_v60 = vld [vmem:[#allocation218_spill] sm:$0xff]  ;;  %v5653_v10 = vunpack.i.l.bf16 %v10618_v25  ;;  %v14503_v25 = vld [vmem:[#allocation221_spill] sm:$0xff] }
 0x376   : > { %v11028_v6 = vsel %vm14467_vm11, %v5644_v21, %v5648_v49  ;;  %vm14472_vm4 = vmpackc.low %vm14469_vm3, %vm14471_vm13  ;;  %vm14480_vm11 = vnez %v14479_v52  ;;  %vm14482_vm3 = vnez %v14481_v17  ;;  %v14534_v52 = vld [vmem:[#allocation153_spill] sm:$0xff]  ;;  %v14536_v17 = vld [vmem:[#allocation152_spill] sm:$0xff] }
 0x377   : > { %5216 = vmatpush1.bf16.msk.msra.mxu0 %vm14461_vm7, %v5215_v20  ;;  %vm14474_vm2 = vmmov %vm14466_vm0 }
 0x378   : > { %5219 = vmatprep.subr.msk.bf16.mxu0 %vm14463_vm12, %v5218_v41  ;;  %5248 = vmatpush1.bf16.msk.msra.mxu1 %vm14465_vm1, %v5247_v47  ;;  %v3320_v24 = vsel %vm14474_vm2, %v5643_v28, %v5644_v21  ;;  %vm14475_vm7 = vmmov %vm14466_vm0  ;;  %vm14476_vm12 = vnez %v13765_v22  ;;  %vm14477_vm1 = vnez %v13763_v58  ;;  %v14486_v22 = vld [vmem:[#allocation222_spill] sm:$0xff]  ;;  %vm14489_vm2 = vnez %v14488_v61 }
 0x379   : > { %5251 = vmatprep.subr.msk.bf16.mxu1 %vm14472_vm4, %v5250_v62  ;;  %v11048_v37 = vsel %vm14475_vm7, %v5629_v1, %v5643_v28  ;;  %vm14478_vm0 = vmpackc.low %vm14476_vm12, %vm14477_vm1  ;;  %vm14485_vm4 = vnez %v14484_v3  ;;  %vm14491_vm7 = vnez %v14490_v60  ;;  %vm14493_vm1 = vnez %v13787_v15  ;;  %v14510_v41 = vld [vmem:[#allocation206_spill] sm:$0xff]  ;;  %v14519_v28 = vld [vmem:[#allocation83_spill] sm:$0xff] }
 0x37a   : > { %vm14483_vm13 = vmpackc.low %vm14480_vm11, %vm14482_vm3  ;;  %v3527_v1 = vsel %vm14485_vm4, %v11024_v34, 0.0  ;;  %vm14495_vm11 = vnez %v13817_v55  ;;  %v3524_v11 = vsel %vm9376_vm15, %v11048_v37, 0.0  ;;  %vm14496_vm3 = vnez %v13800_v54  ;;  %v14501_v55 = vld [vmem:[#allocation220_spill] sm:$0xff]  ;;  %v14541_v60 = vld [vmem:[#allocation183_spill] sm:$0xff] }
 0x37b   : > { %5222 = vmatpush1.bf16.msk.msra.mxu0 %vm14473_vm8, %v5221_v48  ;;  %vm14487_vm8 = vnez %v14486_v22  ;;  %vm14492_vm12 = vmpackc.low %vm14489_vm2, %vm14491_vm7  ;;  %v3525_v31 = vsel %vm14495_vm11, %v3320_v24, 0.0  ;;  %v3687_v49 = vpack.c.bf16 %v3527_v1, %v3527_v1  ;;  %vm14504_vm2 = vnez %v14503_v25  ;;  %v14522_v48 = vld [vmem:[#allocation104_spill] sm:$0xff]  ;;  %v14539_v22 = vld [vmem:[#allocation229_spill] sm:$0xff] }
 0x37c   : > { %5225 = vmatprep.subr.msk.bf16.mxu0 %vm14478_vm0, %v5224_v45  ;;  %5254 = vmatpush1.bf16.msk.msra.mxu1 %vm14483_vm13, %v5253_v29  ;;  %v3526_v58 = vsel %vm14487_vm8, %v11028_v6, 0.0  ;;  %vm14494_vm0 = vmpackc.low %vm9267_vm10, %vm14493_vm1  ;;  %vm14500_vm10 = vcmp.lt.s32.totalorder %v5967_v16, 1  ;;  %vm14502_vm8 = vnez %v14501_v55  ;;  %vm14506_vm7 = vcmask 1043456   ;;  %v14527_v45 = vld [vmem:[#allocation253_spill] sm:$0xff]  ;;  %v14530_v29 = vld [vmem:[#allocation207_spill] sm:$0xff] }
 0x37d   : > { %5257 = vmatprep.subr.msk.bf16.mxu1 %vm14492_vm12, %v5212_v39  ;;  %v14497_v39 = vld [vmem:[#allocation108_spill] sm:$0xff]  ;;  %v3686_v43 = vpack.c.bf16 %v3526_v58, %v3526_v58  ;;  %v11095_v15 = vsel %vm14500_vm10, %v5658_v51, %v5659_v5  ;;  %vm14505_vm15 = vmpackc.low %vm14502_vm8, %vm14504_vm2  ;;  %v3685_v54 = vpack.c.bf16 %v3525_v31, %v3525_v31  ;;  %v3684_v12 = vpack.c.bf16 %v3524_v11, %v3524_v11 }
 0x37e   : > { %vm14498_vm13 = vnez %v14497_v39  ;;  %vm14507_vm12 = vmmov %vm14500_vm10  ;;  %vm14509_vm1 = vnez %v14508_v26  ;;  %vm14521_vm2 = vnez %v14520_v18  ;;  %v5669_v3 = vunpack.i.h.bf16 %v11139_v0 }
 0x37f   : > { %5228 = vmatpush1.bf16.msk.msra.mxu0 %vm14494_vm0, %v5227_v4  ;;  %vm14499_vm4 = vmpackc.low %vm14496_vm3, %vm14498_vm13  ;;  %vm14511_vm0 = vnez %v14510_v41  ;;  %vm14515_vm13 = vcmask 588800   ;;  %v14533_v4 = vld [vmem:[#allocation70_spill] sm:$0xff]  ;;  %v5668_v1 = vunpack.i.l.bf16 %v11139_v0  ;;  %v5299_v61 = vpack.c.bf16 %v3320_v24, %v14519_v28  ;;  %v14661_v0 = vld [vmem:[#allocation32_spill] sm:$0xff] }
 0x380   : > { %5231 = vmatprep.subr.msk.bf16.mxu0 %vm14499_vm4, %v10799_v36  ;;  %5260 = vmatpush1.bf16.msk.msra.mxu1 %vm14505_vm15, %v5215_v20  ;;  %v3161_v36 = vsel %vm14507_vm12, %v5653_v10, %v5654_v38  ;;  %vm14512_vm11 = vmpackc.low %vm14509_vm1, %vm14511_vm0  ;;  %v11115_v20 = vpack.c.bf16 %v14514_v56, %v11095_v15  ;;  %vm14523_vm15 = vnez %v14522_v48  ;;  %vm14529_vm0 = vnez %v14528_v32  ;;  %v14575_v48 = vld [vmem:[#allocation227_spill] sm:$0xff]  ;;  %v14580_v32 = vld [vmem:[#allocation26_spill] sm:$0xff] }
 0x381   : > { %5288 = vmatprep.subr.msk.bf16.mxu1 %vm14506_vm7, %v3687_v49  ;;  %vm14513_vm3 = vmmov %vm14500_vm10  ;;  %v5264_v62 = vpack.c.bf16 %v14519_v28, %v3161_v36  ;;  %v5270_v58 = vpack.c.bf16 %v11048_v37, %v14533_v4  ;;  %v5663_v31 = vunpack.i.l.bf16 %v10647_v35  ;;  %v14546_v49 = vld [vmem:[#allocation53_spill] sm:$0xff]  ;;  %v5273_v39 = vpack.c.bf16 %v10867_v8, %v10140_v13  ;;  %v14568_v28 = vld [vmem:[#allocation176_spill] sm:$0xff] }
 0x382   : > { %v3160_v47 = vsel %vm14513_vm3, %v5654_v38, %v5658_v51  ;;  %vm14516_vm4 = vmmov %vm14506_vm7  ;;  %v14543_v38 = vld [vmem:[#allocation106_spill] sm:$0xff]  ;;  %v14554_v13 = vld [vmem:[#allocation45_spill] sm:$0xff]  ;;  %v5279_v26 = vpack.c.bf16 %v10938_v59, %v10871_v14 }
 0x383   : > { %5234 = vmatpush1.bf16.msk.msra.mxu0 %vm14512_vm11, %v10821_v2  ;;  %5261 = vmatmul.mubr.msk.bf16.vlgmr.msra.gmra.mxu1 %vm14515_vm13, %v10340_v63  ;;  %v3773_v21 = vsel %vm14516_vm4, %v3686_v43, 0  ;;  %vm14517_vm10 = vmmov %vm14516_vm4  ;;  %v11137_v19 = vpack.c.bf16 %v14527_v45, %v3160_v47  ;;  %vm14531_vm11 = vnez %v14530_v29  ;;  %v5302_v11 = vpack.c.bf16 %v3160_v47, %v3320_v24  ;;  %v14548_v43 = vld [vmem:[#allocation160_spill] sm:$0xff]  ;;  %v14552_v24 = vld [vmem:[#allocation111_spill] sm:$0xff] }
 0x384   : > { %5262 = vmatprep.subr.msk.bf16.mxu0 %vm14517_vm10, %v3685_v54  ;;  %4260 = vmatpush1.bf16.msra.mxu1 %v3773_v21  ;;  %vm14518_vm8 = vmmov %vm14513_vm3  ;;  %v11181_v54 = vpop.permute.xlu1 %5676  ;;  %v14561_v21 = vld [vmem:[#allocation117_spill] sm:$0xff]  ;;  %v14566_v14 = vld [vmem:[#allocation119_spill] sm:$0xff] }
 0x385   : > { %4285 = vmatprep.mubr.bf16.mxu1 %v13431_v23  ;;  %v3162_v2 = vsel %vm14518_vm8, %v5639_v42, %v5653_v10  ;;  %vm14524_vm7 = vmpackc.low %vm14521_vm2, %vm14523_vm15  ;;  %v5296_v42 = vpack.c.bf16 %v11028_v6, %v14527_v45  ;;  %vm14540_vm8 = vnez %v14539_v22  ;;  %vm14542_vm2 = vnez %v14541_v60  ;;  %v14582_v29 = vld [vmem:[#allocation171_spill] sm:$0xff]  ;;  %v14595_v60 = vld [vmem:[#allocation232_spill] sm:$0xff] }
 0x386   : > { %5291 = vmatprep.subr.msk.bf16.mxu1 %vm14524_vm7, %v11115_v20  ;;  %vm14525_vm12 = vmmov %vm14515_vm13  ;;  %v5267_v51 = vpack.c.bf16 %v14533_v4, %v3162_v2  ;;  %vm14535_vm13 = vnez %v14534_v52  ;;  %vm14544_vm15 = vnez %v14543_v38  ;;  %v5664_v10 = vunpack.i.h.bf16 %v10647_v35  ;;  %v14585_v4 = vld [vmem:[#allocation190_spill] sm:$0xff]  ;;  %v14597_v38 = vld [vmem:[#allocation231_spill] sm:$0xff] }
 0x387   : > { %5235 = vmatmul.mubr.msk.bf16.vlgmr.msra.gmra.mxu0 %vm14525_vm12, %v10340_v63  ;;  %vm14526_vm1 = vmmov %vm14516_vm4  ;;  %vm14537_vm4 = vnez %v14536_v17  ;;  %vm14547_vm12 = vnez %v14546_v49  ;;  %v5276_v55 = vpack.c.bf16 %v3162_v2, %v10867_v8  ;;  %v5305_v8 = vpack.c.bf16 %v3161_v36, %v11048_v37  ;;  %v14563_v2 = vld [vmem:[#allocation195_spill] sm:$0xff]  ;;  %v14604_v49 = vld [vmem:[#allocation240_spill] sm:$0xff] }
 0x388   : > { %v3767_v33 = vsel %vm14526_vm1, %v3684_v12, 0  ;;  %4244 = vmatprep.mubr.bf16.mxu0 %v13431_v23  ;;  %vm14532_vm3 = vmpackc.low %vm14529_vm0, %vm14531_vm11  ;;  %vm14549_vm1 = vnez %v14548_v43  ;;  %vm14550_vm0 = vcmp.lt.s32.totalorder %v5967_v16, 127  ;;  %v14557_v12 = vld [vmem:[#allocation113_spill] sm:$0xff]  ;;  %v5679_v37 = vunpack.i.h.bf16 %v11181_v54  ;;  %v14587_v17 = vld [vmem:[#allocation239_spill] sm:$0xff] }
 0x389   : > { %4219 = vmatpush1.bf16.msra.mxu0 %v3767_v33  ;;  %vm14538_vm10 = vmpackc.low %vm14535_vm13, %vm14537_vm4  ;;  %v11179_v25 = vsel %vm14550_vm0, %v5664_v10, %v5668_v1  ;;  %vm14555_vm13 = vnez %v14554_v13  ;;  %v5678_v36 = vunpack.i.l.bf16 %v11181_v54  ;;  %v14577_v33 = vld [vmem:[#allocation157_spill] sm:$0xff]  ;;  %v5674_v45 = vunpack.i.h.bf16 %v10678_v9  ;;  %v14608_v43 = vld [vmem:[#allocation46_spill] sm:$0xff] }
 0x38a   : > { %5265 = vmatprep.subr.msk.bf16.mxu0 %vm14532_vm3, %v5264_v62  ;;  %5294 = vmatpush1.bf16.msk.msra.mxu1 %vm14538_vm10, %v11137_v19  ;;  %vm14545_vm7 = vmpackc.low %vm14542_vm2, %vm14544_vm15  ;;  %vm14553_vm3 = vnez %v14552_v24  ;;  %vm14558_vm10 = vnez %v14557_v12  ;;  %vm14562_vm15 = vnez %v14561_v21  ;;  %v14613_v24 = vld [vmem:[#allocation256_spill] sm:$0xff]  ;;  %v14616_v12 = vld [vmem:[#allocation71_spill] sm:$0xff] }
 0x38b   : > { %5297 = vmatprep.subr.msk.bf16.mxu1 %vm14540_vm8, %v5296_v42  ;;  %vm14551_vm11 = vmmov %vm14550_vm0  ;;  %v5673_v42 = vunpack.i.l.bf16 %v10678_v9  ;;  %v14621_v21 = vld [vmem:[#allocation257_spill] sm:$0xff]  ;;  %v14711_v54 = vld [vmem:[#allocation199_spill] sm:$0xff] }
 0x38c   : > { %v11187_v35 = vsel %vm14551_vm11, %v5668_v1, %v5669_v3  ;;  %vm14556_vm4 = vmpackc.low %vm14553_vm3, %vm14555_vm13  ;;  %vm14571_vm11 = vnez %v14570_v44  ;;  %v5348_v50 = vpack.c.bf16 %v11179_v25, %v14621_v21  ;;  %v14630_v44 = vld [vmem:[#allocation187_spill] sm:$0xff] }
 0x38d   : > { %5268 = vmatpush1.bf16.msk.msra.mxu0 %vm14545_vm7, %v5267_v51  ;;  %vm14559_vm8 = vmmov %vm14550_vm0  ;;  %vm14564_vm7 = vnez %v14563_v2 }
 0x38e   : > { %5271 = vmatprep.subr.msk.bf16.mxu0 %vm14547_vm12, %v5270_v58  ;;  %5300 = vmatpush1.bf16.msk.msra.mxu1 %vm14549_vm1, %v5299_v61  ;;  %v3316_v41 = vsel %vm14559_vm8, %v5663_v31, %v5664_v10  ;;  %vm14560_vm2 = vmmov %vm14550_vm0  ;;  %vm14567_vm1 = vnez %v14566_v14  ;;  %vm14569_vm0 = vnez %v14568_v28  ;;  %v14589_v58 = vld [vmem:[#allocation15_spill] sm:$0xff]  ;;  %v14628_v28 = vld [vmem:[#allocation121_spill] sm:$0xff] }
 0x38f   : > { %5303 = vmatprep.subr.msk.bf16.mxu1 %vm14556_vm4, %v5302_v11  ;;  %v3317_v47 = vsel %vm14560_vm2, %v5649_v40, %v5663_v31  ;;  %vm14565_vm12 = vmpackc.low %vm14562_vm15, %vm14564_vm7  ;;  %v3531_v59 = vsel %vm14567_vm1, %v11187_v35, 0.0  ;;  %v14573_v40 = vld [vmem:[#allocation233_spill] sm:$0xff]  ;;  %vm14576_vm4 = vnez %v14575_v48  ;;  %vm14581_vm2 = vnez %v14580_v32  ;;  %v14627_v14 = vld [vmem:[#allocation255_spill] sm:$0xff] }
 0x390   : > { %vm14572_vm3 = vmpackc.low %vm14569_vm0, %vm14571_vm11  ;;  %vm14574_vm13 = vnez %v14573_v40  ;;  %vm14583_vm15 = vnez %v14582_v29  ;;  %vm14588_vm1 = vnez %v14587_v17  ;;  %v3691_v22 = vpack.c.bf16 %v3531_v59, %v3531_v59  ;;  %v14602_v11 = vld [vmem:[#allocation241_spill] sm:$0xff]  ;;  %v14633_v40 = vld [vmem:[#allocation107_spill] sm:$0xff] }
 0x391   : > { %5274 = vmatpush1.bf16.msk.msra.mxu0 %vm14558_vm10, %v5273_v39  ;;  %v3530_v18 = vsel %vm14574_vm13, %v11179_v25, 0.0  ;;  %vm14578_vm10 = vnez %v14577_v33  ;;  %vm14584_vm7 = vmpackc.low %vm14581_vm2, %vm14583_vm15  ;;  %v3528_v1 = vsel %vm14588_vm1, %v3317_v47, 0.0  ;;  %vm14590_vm0 = vnez %v14589_v58  ;;  %v14635_v33 = vld [vmem:[#allocation67_spill] sm:$0xff]  ;;  %v14640_v32 = vld [vmem:[#allocation14_spill] sm:$0xff] }
 0x392   : > { %5277 = vmatprep.subr.msk.bf16.mxu0 %vm14565_vm12, %v5276_v55  ;;  %5306 = vmatpush1.bf16.msk.msra.mxu1 %vm14572_vm3, %v5305_v8  ;;  %vm14579_vm8 = vmpackc.low %vm14576_vm4, %vm14578_vm10  ;;  %vm14586_vm12 = vnez %v14585_v4  ;;  %v3690_v9 = vpack.c.bf16 %v3530_v18, %v3530_v18  ;;  %vm14594_vm13 = vcmp.lt.s32.totalorder %v5967_v16, 1  ;;  %vm14596_vm4 = vnez %v14595_v60  ;;  %v14614_v8 = vld [vmem:[#allocation156_spill] sm:$0xff]  ;;  %v14642_v4 = vld [vmem:[#allocation59_spill] sm:$0xff] }
 0x393   : > { %5309 = vmatprep.subr.msk.bf16.mxu1 %vm14579_vm8, %v5264_v62  ;;  %v3529_v52 = vsel %vm14586_vm12, %v3316_v41, 0.0  ;;  %v14591_v62 = vld [vmem:[#allocation28_spill] sm:$0xff]  ;;  %v11249_v61 = vsel %vm14594_vm13, %v5678_v36, %v5679_v37  ;;  %vm14598_vm10 = vnez %v14597_v38  ;;  %vm14600_vm2 = vcmask 1043456   ;;  %vm14601_vm15 = vmmov %vm14594_vm13  ;;  %v14644_v17 = vld [vmem:[#allocation7_spill] sm:$0xff] }
 0x394   : > { %vm14592_vm11 = vnez %v14591_v62  ;;  %vm14599_vm8 = vmpackc.low %vm14596_vm4, %vm14598_vm10  ;;  %v3689_v10 = vpack.c.bf16 %v3529_v52, %v3529_v52  ;;  %v3688_v31 = vpack.c.bf16 %v3528_v1, %v3528_v1  ;;  %vm14605_vm12 = vnez %v14604_v49  ;;  %v14646_v1 = vld [vmem:[#allocation24_spill] sm:$0xff]  ;;  %v14649_v58 = vld [vmem:[#allocation2_spill] sm:$0xff] }
 0x395   : > { %5280 = vmatpush1.bf16.msk.msra.mxu0 %vm14584_vm7, %v5279_v26  ;;  %vm14593_vm3 = vmpackc.low %vm14590_vm0, %vm14592_vm11  ;;  %vm14603_vm7 = vnez %v14602_v11  ;;  %vm14609_vm11 = vcmask 588800   ;;  %vm14615_vm10 = vnez %v14614_v8  ;;  %v5322_v18 = vpack.c.bf16 %v3317_v47, %v14627_v14  ;;  %v14660_v60 = vld [vmem:[#allocation36_spill] sm:$0xff]  ;;  %v14672_v11 = vld [vmem:[#allocation87_spill] sm:$0xff] }
 0x396   : > { %5283 = vmatprep.subr.msk.bf16.mxu0 %vm14593_vm3, %v10958_v57  ;;  %5312 = vmatpush1.bf16.msk.msra.mxu1 %vm14599_vm8, %v5267_v51  ;;  %v3157_v57 = vsel %vm14601_vm15, %v5673_v42, %v5674_v45  ;;  %vm14606_vm1 = vmpackc.low %vm14603_vm7, %vm14605_vm12  ;;  %v11269_v51 = vpack.c.bf16 %v14608_v43, %v11249_v61  ;;  %vm14617_vm8 = vnez %v14616_v12  ;;  %v5351_v48 = vpack.c.bf16 %v3316_v41, %v14613_v24  ;;  %v14674_v49 = vld [vmem:[#allocation20_spill] sm:$0xff]  ;;  %v14679_v8 = vld [vmem:[#allocation49_spill] sm:$0xff] }
 0x397   : > { %5340 = vmatprep.subr.msk.bf16.mxu1 %vm14600_vm2, %v3691_v22  ;;  %vm14607_vm0 = vmmov %vm14594_vm13  ;;  %v5316_v13 = vpack.c.bf16 %v14613_v24, %v3157_v57  ;;  %v5325_v29 = vpack.c.bf16 %v11024_v34, %v14514_v56  ;;  %v5357_v22 = vpack.c.bf16 %v3157_v57, %v3317_v47  ;;  %v14657_v47 = vld [vmem:[#allocation200_spill] sm:$0xff]  ;;  %v14668_v57 = vld [vmem:[#allocation237_spill] sm:$0xff] }
 0x398   : > { %v3156_v39 = vsel %vm14607_vm0, %v5674_v45, %v5678_v36  ;;  %vm14610_vm3 = vmmov %vm14600_vm2  ;;  %v14624_v36 = vld [vmem:[#allocation144_spill] sm:$0xff]  ;;  %v14637_v45 = vld [vmem:[#allocation210_spill] sm:$0xff] }
 0x399   : > { %5286 = vmatpush1.bf16.msk.msra.mxu0 %vm14606_vm1, %v10980_v46  ;;  %5313 = vmatmul.mubr.msk.bf16.vlgmr.msra.gmra.mxu1 %vm14609_vm11, %v10340_v63  ;;  %v3785_v55 = vsel %vm14610_vm3, %v3690_v9, 0  ;;  %vm14611_vm13 = vmmov %vm14600_vm2  ;;  %v11291_v2 = vpack.c.bf16 %v14621_v21, %v3156_v39  ;;  %vm14625_vm1 = vnez %v14624_v36  ;;  %v14655_v9 = vld [vmem:[#allocation234_spill] sm:$0xff]  ;;  %v14681_v12 = vld [vmem:[#allocation19_spill] sm:$0xff] }
 0x39a   : > { %5314 = vmatprep.subr.msk.bf16.mxu0 %vm14611_vm13, %v3689_v10  ;;  %4342 = vmatpush1.bf16.msra.mxu1 %v3785_v55  ;;  %vm14612_vm4 = vmmov %vm14607_vm0  ;;  %v14686_v21 = vld [vmem:[#allocation161_spill] sm:$0xff]  ;;  %v14690_v36 = vld [vmem:[#allocation40_spill] sm:$0xff] }
 0x39b   : > { %4367 = vmatprep.mubr.bf16.mxu1 %v13431_v23  ;;  %v3158_v46 = vsel %vm14612_vm4, %v5659_v5, %v5673_v42  ;;  %vm14618_vm2 = vmpackc.low %vm14615_vm10, %vm14617_vm8  ;;  %v14622_v5 = vld [vmem:[#allocation140_spill] sm:$0xff]  ;;  %vm14634_vm4 = vnez %v14633_v40  ;;  %vm14636_vm10 = vnez %v14635_v33  ;;  %vm14638_vm8 = vnez %v14637_v45  ;;  %v14703_v33 = vld [vmem:[#allocation47_spill] sm:$0xff] }
 0x39c   : > { %5343 = vmatprep.subr.msk.bf16.mxu1 %vm14618_vm2, %v11269_v51  ;;  %vm14619_vm15 = vmmov %vm14609_vm11  ;;  %vm14623_vm12 = vnez %v14622_v5  ;;  %v5319_v59 = vpack.c.bf16 %v14627_v14, %v3158_v46  ;;  %vm14629_vm11 = vnez %v14628_v28  ;;  %v5354_v42 = vpack.c.bf16 %v3156_v39, %v3316_v41  ;;  %v14677_v39 = vld [vmem:[#allocation3_spill] sm:$0xff]  ;;  %v14704_v45 = vld [vmem:[#allocation64_spill] sm:$0xff] }
 0x39d   : > { %5287 = vmatmul.mubr.msk.bf16.vlgmr.msra.gmra.mxu0 %vm14619_vm15, %v10340_v63  ;;  %vm14620_vm7 = vmmov %vm14610_vm3  ;;  %vm14631_vm3 = vnez %v14630_v44  ;;  %vm14641_vm15 = vnez %v14640_v32  ;;  %v5328_v52 = vpack.c.bf16 %v3158_v46, %v11024_v34  ;;  %v5331_v34 = vpack.c.bf16 %v11095_v15, %v11028_v6  ;;  %v3147_v46 = vpop.permute.xlu1 %3146  ;;  %v14693_v44 = vld [vmem:[#allocation244_spill] sm:$0xff]  ;;  %v14726_v41 = vld [vmem:[#allocation118_spill] sm:$0xff] }
 0x39e   : > { %v3779_v26 = vsel %vm14620_vm7, %v3688_v31, 0  ;;  %4326 = vmatprep.mubr.bf16.mxu0 %v13431_v23  ;;  %vm14626_vm0 = vmpackc.low %vm14623_vm12, %vm14625_vm1  ;;  %vm14643_vm7 = vnez %v14642_v4  ;;  %vm14645_vm12 = vnez %v14644_v17  ;;  %vm14647_vm1 = vnez %v14646_v1  ;;  %v14666_v31 = vld [vmem:[#allocation238_spill] sm:$0xff]  ;;  %v14714_v32 = vld [vmem:[#allocation172_spill] sm:$0xff] }
 0x39f   : > { %4301 = vmatpush1.bf16.msra.mxu0 %v3779_v26  ;;  %vm14632_vm13 = vmpackc.low %vm14629_vm11, %vm14631_vm3  ;;  %vm14650_vm11 = vnez %v14649_v58  ;;  %vm14651_vm3 = vcmp.lt.s32.totalorder %v5967_v16, 127  ;;  %v3533_v15 = vsel %vm9765_vm5, %v10734_v7, 0.0  ;;  %v14684_v26 = vld [vmem:[#allocation138_spill] sm:$0xff]  ;;  %v14691_v14 = vunpack.i.l.bf16 %v14690_v36  ;;  %v14719_v17 = vld [vmem:[#allocation125_spill] sm:$0xff] }
 0x3a0   : > { %5317 = vmatprep.subr.msk.bf16.mxu0 %vm14626_vm0, %v5316_v13  ;;  %5346 = vmatpush1.bf16.msk.msra.mxu1 %vm14632_vm13, %v11291_v2  ;;  %vm14639_vm2 = vmpackc.low %vm14636_vm10, %vm14638_vm8  ;;  %v3313_v56 = vsel %vm14651_vm3, %v5669_v3, %v10710_v27  ;;  %vm14658_vm10 = vnez %v14657_v47  ;;  %v14663_v27 = vld [vmem:[#allocation48_spill] sm:$0xff]  ;;  %v14664_v3 = vld [vmem:[#allocation170_spill] sm:$0xff]  ;;  %vm14680_vm3 = vnez %v14679_v8  ;;  %vm14685_vm5 = vnez %v14684_v26 }
 0x3a1   : > { %5349 = vmatprep.subr.msk.bf16.mxu1 %vm14634_vm4, %v5348_v50  ;;  %vm14648_vm0 = vmpackc.low %vm14645_vm12, %vm14647_vm1  ;;  %vm14656_vm4 = vnez %v14655_v9  ;;  %vm14673_vm12 = vnez %v14672_v11  ;;  %vm14675_vm1 = vnez %v14674_v49  ;;  %v3693_v50 = vpack.c.bf16 %v3533_v15, %v3533_v15  ;;  %v14721_v1 = vld [vmem:[#allocation162_spill] sm:$0xff]  ;;  %v14733_v47 = vld [vmem:[#allocation29_spill] sm:$0xff] }
 0x3a2   : > { %vm14654_vm13 = vmpackc.low %vm9706_vm9, %vm9702_vm6  ;;  %vm14667_vm6 = vnez %v14666_v31  ;;  %vm14669_vm9 = vnez %v14668_v57  ;;  %v14728_v62 = vld [vmem:[#allocation126_spill] sm:$0xff]  ;;  %v5377_v9 = vpack.c.bf16 %v11187_v35, %v14608_v43  ;;  %v14756_v31 = vld [vmem:[#allocation248_spill] sm:$0xff] }
 0x3a3   : > { %5320 = vmatpush1.bf16.msk.msra.mxu0 %vm14639_vm2, %v5319_v59  ;;  %vm14659_vm8 = vmpackc.low %vm14656_vm4, %vm14658_vm10  ;;  %vm14662_vm2 = vnez %v14661_v0  ;;  %vm14687_vm10 = vnez %v14686_v21  ;;  %v14735_v0 = vld [vmem:[#allocation148_spill] sm:$0xff]  ;;  %v14758_v57 = vld [vmem:[#allocation101_spill] sm:$0xff] }
 0x3a4   : > { %5323 = vmatprep.subr.msk.bf16.mxu0 %vm14641_vm15, %v5322_v18  ;;  %5352 = vmatpush1.bf16.msk.msra.mxu1 %vm14643_vm7, %v5351_v48  ;;  %v3535_v38 = vsel %vm14662_vm2, %v14660_v60, 0.0  ;;  %vm14665_vm15 = vnez %v14664_v3  ;;  %vm14670_vm7 = vmpackc.low %vm14667_vm6, %vm14669_vm9  ;;  %vm14689_vm2 = vcmask 1043456   ;;  %vm14694_vm6 = vnez %v14693_v44  ;;  %v14702_v18 = vld [vmem:[#allocation194_spill] sm:$0xff]  ;;  %v14740_v3 = vld [vmem:[#allocation25_spill] sm:$0xff] }
 0x3a5   : > { %5355 = vmatprep.subr.msk.bf16.mxu1 %vm14648_vm0, %v5354_v42  ;;  %v3534_v10 = vsel %vm14665_vm15, %v14663_v27, 0.0  ;;  %vm14676_vm0 = vmpackc.low %vm14673_vm12, %vm14675_vm1  ;;  %v3695_v24 = vpack.c.bf16 %v3535_v38, %v3535_v38  ;;  %vm14692_vm15 = vcmp.lt.s32.totalorder %v5967_v16, 1  ;;  %vm14698_vm12 = vcmask 588800   ;;  %v14737_v38 = vld [vmem:[#allocation11_spill] sm:$0xff]  ;;  %v14766_v6 = vld [vmem:[#allocation22_spill] sm:$0xff] }
 0x3a6   : > { %v3153_v28 = vsel %vm14692_vm15, %v3147_v46, %v14691_v14  ;;  %vm14699_vm1 = vmmov %vm14689_vm2  ;;  %v5400_v16 = vpack.c.bf16 %v14663_v27, %v14711_v54  ;;  %v5403_v58 = vpack.c.bf16 %v10734_v7, %v14702_v18  ;;  %v14748_v7 = vld [vmem:[#allocation188_spill] sm:$0xff]  ;;  %v14773_v49 = vld [vmem:[#allocation251_spill] sm:$0xff] }
 0x3a7   : > { %5326 = vmatpush1.bf16.msk.msra.mxu0 %vm14650_vm11, %v5325_v29  ;;  %vm14678_vm11 = vnez %v14677_v39  ;;  %v5368_v48 = vpack.c.bf16 %v14702_v18, %v3153_v28  ;;  %v14717_v29 = vld [vmem:[#allocation35_spill] sm:$0xff]  ;;  %v5409_v27 = vpack.c.bf16 %v3153_v28, %v3313_v56  ;;  %v14768_v15 = vld [vmem:[#allocation116_spill] sm:$0xff] }
 0x3a8   : > { %5329 = vmatprep.subr.msk.bf16.mxu0 %vm14654_vm13, %v5328_v52  ;;  %5358 = vmatpush1.bf16.msk.msra.mxu1 %vm14659_vm8, %v5357_v22  ;;  %v3532_v55 = vsel %vm14678_vm11, %v3313_v56, 0.0  ;;  %vm14682_vm13 = vnez %v14681_v12  ;;  %vm14688_vm8 = vmpackc.low %vm14685_vm5, %vm14687_vm10  ;;  %v14718_v52 = vld [vmem:[#allocation39_spill] sm:$0xff]  ;;  %v14771_v11 = vld [vmem:[#allocation252_spill] sm:$0xff] }
 0x3a9   : > { %5361 = vmatprep.subr.msk.bf16.mxu1 %vm14670_vm7, %v5316_v13  ;;  %vm14683_vm4 = vmpackc.low %vm14680_vm3, %vm14682_vm13  ;;  %v3694_v13 = vpack.c.bf16 %v3534_v10, %v3534_v10  ;;  %v3692_v5 = vpack.c.bf16 %v3532_v55, %v3532_v55  ;;  %vm14705_vm3 = vnez %v14704_v45  ;;  %v14724_v22 = vld [vmem:[#allocation131_spill] sm:$0xff]  ;;  %v14743_v10 = vld [vmem:[#allocation246_spill] sm:$0xff] }
 0x3aa   : > { %vm14701_vm11 = vmmov %vm14692_vm15 }
 0x3ab   : > { %5332 = vmatpush1.bf16.msk.msra.mxu0 %vm14676_vm0, %v5331_v34  ;;  %vm14700_vm0 = vmmov %vm14699_vm1  ;;  %v3154_v40 = vsel %vm14701_vm11, %v5679_v37, %v3147_v46  ;;  %v14712_v37 = vld [vmem:[#allocation165_spill] sm:$0xff] }
 0x3ac   : > { %5335 = vmatprep.subr.msk.bf16.mxu0 %vm14683_vm4, %v11115_v20  ;;  %5364 = vmatpush1.bf16.msk.msra.mxu1 %vm14688_vm8, %v5319_v59  ;;  %v14695_v20 = vld [vmem:[#allocation243_spill] sm:$0xff]  ;;  %v3797_v59 = vsel %vm14699_vm1, %v3694_v13, 0  ;;  %vm14709_vm5 = vmmov %vm14698_vm12  ;;  %vm14713_vm8 = vnez %v14712_v37  ;;  %v5371_v4 = vpack.c.bf16 %v14717_v29, %v3154_v40  ;;  %vm14727_vm1 = vnez %v14726_v41  ;;  %v14731_v34 = vld [vmem:[#allocation245_spill] sm:$0xff] }
 0x3ad   : > { %5392 = vmatprep.subr.msk.bf16.mxu1 %vm14689_vm2, %v3695_v24  ;;  %vm14696_vm9 = vnez %v14695_v20  ;;  %vm14710_vm10 = vmmov %vm14700_vm0  ;;  %vm14715_vm2 = vnez %v14714_v32  ;;  %v5380_v60 = vpack.c.bf16 %v3154_v40, %v11187_v35  ;;  %v5383_v35 = vpack.c.bf16 %v11249_v61, %v11179_v25  ;;  %v14761_v25 = vld [vmem:[#allocation250_spill] sm:$0xff]  ;;  %v14763_v61 = vld [vmem:[#allocation249_spill] sm:$0xff] }
 0x3ae   : > { %vm14697_vm7 = vmpackc.low %vm14694_vm6, %vm14696_vm9  ;;  %v3791_v42 = vsel %vm14710_vm10, %v3692_v5, 0  ;;  %vm14720_vm6 = vnez %v14719_v17  ;;  %vm14722_vm9 = vnez %v14721_v1 }
 0x3af   : > { %5338 = vmatpush1.bf16.msk.msra.mxu0 %vm14697_vm7, %v11137_v19  ;;  %5365 = vmatmul.mubr.msk.bf16.vlgmr.msra.gmra.mxu1 %vm14698_vm12, %v10340_v63  ;;  %v14706_v19 = vld [vmem:[#allocation91_spill] sm:$0xff]  ;;  %vm14716_vm15 = vmpackc.low %vm14713_vm8, %vm14715_vm2  ;;  %vm14725_vm12 = vnez %v14724_v22  ;;  %vm14741_vm8 = vnez %v14740_v3  ;;  %vm14744_vm2 = vnez %v14743_v10 }
 0x3b0   : > { %5366 = vmatprep.subr.msk.bf16.mxu0 %vm14700_vm0, %v3693_v50  ;;  %4424 = vmatpush1.bf16.msra.mxu1 %v3797_v59  ;;  %vm14707_vm13 = vnez %v14706_v19  ;;  %vm14723_vm7 = vmpackc.low %vm14720_vm6, %vm14722_vm9  ;;  %vm14729_vm0 = vnez %v14728_v62  ;;  %vm14747_vm6 = vnez %v14746_v53  ;;  %vm14749_vm9 = vnez %v14748_v7 }
 0x3b1   : > { %4449 = vmatprep.mubr.bf16.mxu1 %v13431_v23  ;;  %vm14708_vm4 = vmpackc.low %vm14705_vm3, %vm14707_vm13  ;;  %vm14732_vm3 = vnez %v14731_v34  ;;  %vm14734_vm13 = vnez %v14733_v47 }
 0x3b2   : > { %5395 = vmatprep.subr.msk.bf16.mxu1 %vm14708_vm4, %v14703_v33  ;;  %5339 = vmatmul.mubr.msk.bf16.vlgmr.msra.gmra.mxu0 %vm14709_vm5, %v10340_v63  ;;  %vm14730_vm11 = vmpackc.low %vm14727_vm1, %vm14729_vm0  ;;  %vm14736_vm4 = vnez %v14735_v0  ;;  %vm14738_vm5 = vnez %v14737_v38 }
 0x3b3   : > { %4383 = vmatpush1.bf16.msra.mxu0 %v3791_v42  ;;  %4408 = vmatprep.mubr.bf16.mxu0 %v13431_v23  ;;  %v5374_v23 = vpack.c.bf16 %v3313_v56, %v14717_v29  ;;  %vm14739_vm10 = vmpackc.low %vm14736_vm4, %vm14738_vm5  ;;  %v14753_v56 = vld [vmem:[#allocation202_spill] sm:$0xff]  ;;  %vm14764_vm4 = vnez %v14763_v61 }
 0x3b4   : > { %5369 = vmatprep.subr.msk.bf16.mxu0 %vm14716_vm15, %v5368_v48  ;;  %5398 = vmatpush1.bf16.msk.msra.mxu1 %vm14723_vm7, %v14718_v52  ;;  %vm14745_vm15 = vmpackc.low %vm9886_vm14, %vm14744_vm2  ;;  %vm14754_vm1 = vnez %v14753_v56  ;;  %vm14759_vm14 = vnez %v14758_v57 }
 0x3b5   : > { %5401 = vmatprep.subr.msk.bf16.mxu1 %vm14725_vm12, %v5400_v16  ;;  %vm14750_vm7 = vmpackc.low %vm14747_vm6, %vm14749_vm9  ;;  %vm14774_vm6 = vnez %v14773_v49 }
 0x3b7   : > { %5372 = vmatpush1.bf16.msk.msra.mxu0 %vm14730_vm11, %v5371_v4  ;;  %vm14757_vm11 = vnez %v14756_v31 }
 0x3b8   : > { %5375 = vmatprep.subr.msk.bf16.mxu0 %vm14732_vm3, %v5374_v23  ;;  %5404 = vmatpush1.bf16.msk.msra.mxu1 %vm14734_vm13, %v5403_v58  ;;  %vm14760_vm3 = vmpackc.low %vm14757_vm11, %vm14759_vm14  ;;  %vm14762_vm13 = vnez %v14761_v25 }
 0x3b9   : > { %5407 = vmatprep.subr.msk.bf16.mxu1 %vm14739_vm10, %v5406_v30  ;;  %v14751_v30 = vld [vmem:[#allocation23_spill] sm:$0xff]  ;;  %vm14765_vm5 = vmpackc.low %vm14762_vm13, %vm14764_vm4  ;;  %vm14767_vm10 = vnez %v14766_v6 }
 0x3ba   : > { %vm14752_vm12 = vnez %v14751_v30 }
 0x3bb   : > { %5378 = vmatpush1.bf16.msk.msra.mxu0 %vm14741_vm8, %v5377_v9  ;;  %vm14755_vm0 = vmpackc.low %vm14752_vm12, %vm14754_vm1  ;;  %vm14769_vm8 = vnez %v14768_v15 }
 0x3bc   : > { %5381 = vmatprep.subr.msk.bf16.mxu0 %vm14745_vm15, %v5380_v60  ;;  %5410 = vmatpush1.bf16.msk.msra.mxu1 %vm14750_vm7, %v5409_v27  ;;  %vm14770_vm2 = vmpackc.low %vm14767_vm10, %vm14769_vm8  ;;  %vm14772_vm15 = vnez %v14771_v11  ;;  %vm14776_vm7 = vcmask 588800  }
 0x3bd   : > { %5413 = vmatprep.subr.msk.bf16.mxu1 %vm14755_vm0, %v5368_v48  ;;  %vm14775_vm9 = vmpackc.low %vm14772_vm15, %vm14774_vm6 }
 0x3be   : > { %vm14777_vm12 = vmmov %vm14776_vm7 }
 0x3bf   : > { %5384 = vmatpush1.bf16.msk.msra.mxu0 %vm14760_vm3, %v5383_v35 }
 0x3c0   : > { %5387 = vmatprep.subr.msk.bf16.mxu0 %vm14765_vm5, %v11269_v51  ;;  %5416 = vmatpush1.bf16.msk.msra.mxu1 %vm14770_vm2, %v5371_v4  ;;  %v11495_v51 = vpop.permute.xlu0 %3700 }
 0x3c3   : > { %5390 = vmatpush1.bf16.msk.msra.mxu0 %vm14775_vm9, %v11291_v2  ;;  %5417 = vmatmul.mubr.msk.bf16.vlgmr.msra.gmra.mxu1 %vm14776_vm7, %v10340_v63 }
 0x3c6   : > { %5391 = vmatmul.mubr.msk.bf16.vlgmr.msra.gmra.mxu0 %vm14777_vm12, %v10340_v63 }
 0x3da   : > { %v3877_v39 = vpop.f32.mrf.mxu1 }
 0x3db   : > { %v3878_v55 = vadd.f32 %v3877_v39, %v11495_v51 }
 0x3dc   : > { %v3879_v2 = vpop.f32.mrf.mxu1 }
 0x3dd   : > { %v3880_v46 = vadd.f32 %v3879_v2, %v11495_v51  ;;  %v4460_v24 = vmax.f32 %v3878_v55, 0.0 }
 0x3de   : > { %v3881_v63 = vpop.f32.mrf.mxu1 }
 0x3df   : > { %v4461_v8 = vmax.f32 %v3880_v46, 0.0  ;;  %4492 = vst [vmem:[%s11502_s19 + $0x10] sm:$0xff] %v4460_v24 }
 0x3e0   : > { %v3882_v12 = vpop.f32.mrf.mxu1 }
 0x3e1   : > { %4493 = vst [vmem:[%s11502_s19 + $0x18] sm:$0xff] %v4461_v8 }
 0x3e6   : > { %v3836_v13 = vpop.f32.mrf.mxu0 }
 0x3e7   : > { %v3837_v26 = vadd.f32 %v3836_v13, %v11495_v51 }
 0x3e8   : > { %v3838_v21 = vpop.f32.mrf.mxu0 }
 0x3e9   : > { %v4458_v50 = vmax.f32 %v3837_v26, 0.0  ;;  %v3839_v5 = vadd.f32 %v3838_v21, %v11495_v51 }
 0x3ea   : > { %v3840_v36 = vpop.f32.mrf.mxu0 }
 0x3eb   : > { %4490 = vst [vmem:[%s11502_s19] sm:$0xff] %v4458_v50  ;;  %v4459_v14 = vmax.f32 %v3839_v5, 0.0 }
 0x3ec   : > { %v3841_v28 = vpop.f32.mrf.mxu0 }
 0x3ed   : > { %4491 = vst [vmem:[%s11502_s19 + $0x8] sm:$0xff] %v4459_v14 }
 0x3fc   : > { %v3959_v44 = vpop.f32.mrf.mxu1 }
 0x3fd   : > { %v3960_v20 = vadd.f32 %v3959_v44, %v11495_v51 }
 0x3fe   : > { %v3961_v40 = vpop.f32.mrf.mxu1 }
 0x3ff   : > { %v3918_v59 = vpop.f32.mrf.mxu0  ;;  %v4464_v48 = vmax.f32 %v3960_v20, 0.0  ;;  %v3962_v33 = vadd.f32 %v3961_v40, %v11495_v51 }
 0x400   : > { %v3919_v18 = vadd.f32 %v3918_v59, %v11495_v51  ;;  %v3963_v19 = vpop.f32.mrf.mxu1 }
 0x401   : > { %v3920_v45 = vpop.f32.mrf.mxu0  ;;  %4496 = vst [vmem:[%s11502_s19 + $0x30] sm:$0xff] %v4464_v48  ;;  %v4465_v16 = vmax.f32 %v3962_v33, 0.0 }
 0x402   : > { %v4462_v42 = vmax.f32 %v3919_v18, 0.0  ;;  %v3921_v54 = vadd.f32 %v3920_v45, %v11495_v51  ;;  %v3964_v32 = vpop.f32.mrf.mxu1 }
 0x403   : > { %v3922_v37 = vpop.f32.mrf.mxu0  ;;  %4497 = vst [vmem:[%s11502_s19 + $0x38] sm:$0xff] %v4465_v16 }
 0x404   : > { %4494 = vst [vmem:[%s11502_s19 + $0x20] sm:$0xff] %v4462_v42  ;;  %v4463_v29 = vmax.f32 %v3921_v54, 0.0 }
 0x405   : > { %v3923_v4 = vpop.f32.mrf.mxu0 }
 0x406   : > { %4495 = vst [vmem:[%s11502_s19 + $0x28] sm:$0xff] %v4463_v29 }
 0x414   : > { %v4041_v52 = vpop.f32.mrf.mxu1 }
 0x415   : > { %v4042_v17 = vadd.f32 %v4041_v52, %v11495_v51 }
 0x416   : > { %v4043_v1 = vpop.f32.mrf.mxu1 }
 0x417   : > { %v4468_v22 = vmax.f32 %v4042_v17, 0.0  ;;  %v4044_v58 = vadd.f32 %v4043_v1, %v11495_v51 }
 0x418   : > { %v4045_v62 = vpop.f32.mrf.mxu1 }
 0x419   : > { %v4000_v23 = vpop.f32.mrf.mxu0  ;;  %4500 = vst [vmem:[%s11502_s19 + $0x50] sm:$0xff] %v4468_v22  ;;  %v4469_v9 = vmax.f32 %v4044_v58, 0.0 }
 0x41a   : > { %v4001_v41 = vadd.f32 %v4000_v23, %v11495_v51  ;;  %v4046_v0 = vpop.f32.mrf.mxu1 }
 0x41b   : > { %v4002_v34 = vpop.f32.mrf.mxu0  ;;  %4501 = vst [vmem:[%s11502_s19 + $0x58] sm:$0xff] %v4469_v9 }
 0x41c   : > { %v4466_v47 = vmax.f32 %v4001_v41, 0.0  ;;  %v4003_v60 = vadd.f32 %v4002_v34, %v11495_v51 }
 0x41d   : > { %v4004_v38 = vpop.f32.mrf.mxu0 }
 0x41e   : > { %4498 = vst [vmem:[%s11502_s19 + $0x40] sm:$0xff] %v4466_v47  ;;  %v4467_v27 = vmax.f32 %v4003_v60, 0.0 }
 0x41f   : > { %v4005_v3 = vpop.f32.mrf.mxu0 }
 0x420   : > { %4499 = vst [vmem:[%s11502_s19 + $0x48] sm:$0xff] %v4467_v27 }
 0x42d   : > { %v4123_v43 = vpop.f32.mrf.mxu1 }
 0x42e   : > { %v4124_v10 = vadd.f32 %v4123_v43, %v11495_v51 }
 0x42f   : > { %v4125_v35 = vpop.f32.mrf.mxu1 }
 0x430   : > { %v4472_v7 = vmax.f32 %v4124_v10, 0.0  ;;  %v4126_v30 = vadd.f32 %v4125_v35, %v11495_v51 }
 0x431   : > { %v4082_v53 = vpop.f32.mrf.mxu0  ;;  %v4127_v31 = vpop.f32.mrf.mxu1 }
 0x432   : > { %v4083_v56 = vadd.f32 %v4082_v53, %v11495_v51  ;;  %4504 = vst [vmem:[%s11502_s19 + $0x70] sm:$0xff] %v4472_v7  ;;  %v4473_v25 = vmax.f32 %v4126_v30, 0.0 }
 0x433   : > { %v4084_v57 = vpop.f32.mrf.mxu0  ;;  %v4128_v15 = vpop.f32.mrf.mxu1 }
 0x434   : > { %v4470_v61 = vmax.f32 %v4083_v56, 0.0  ;;  %v4085_v6 = vadd.f32 %v4084_v57, %v11495_v51  ;;  %4505 = vst [vmem:[%s11502_s19 + $0x78] sm:$0xff] %v4473_v25 }
 0x435   : > { %v4086_v11 = vpop.f32.mrf.mxu0 }
 0x436   : > { %4502 = vst [vmem:[%s11502_s19 + $0x60] sm:$0xff] %v4470_v61  ;;  %v4471_v49 = vmax.f32 %v4085_v6, 0.0 }
 0x437   : > { %v4087_v39 = vpop.f32.mrf.mxu0 }
 0x438   : > { %4503 = vst [vmem:[%s11502_s19 + $0x68] sm:$0xff] %v4471_v49 }
 0x443   : > { %v4205_v55 = vpop.f32.mrf.mxu1 }
 0x444   : > { %v4206_v2 = vadd.f32 %v4205_v55, %v11495_v51 }
 0x445   : > { %v4207_v46 = vpop.f32.mrf.mxu1 }
 0x446   : > { %v4476_v63 = vmax.f32 %v4206_v2, 0.0  ;;  %v4208_v8 = vadd.f32 %v4207_v46, %v11495_v51 }
 0x447   : > { %v4164_v24 = vpop.f32.mrf.mxu0  ;;  %v4209_v13 = vpop.f32.mrf.mxu1 }
 0x448   : > { %v4165_v12 = vadd.f32 %v4164_v24, %v11495_v51  ;;  %4508 = vst [vmem:[%s11502_s19 + $0x90] sm:$0xff] %v4476_v63  ;;  %v4477_v21 = vmax.f32 %v4208_v8, 0.0 }
 0x449   : > { %v4166_v26 = vpop.f32.mrf.mxu0  ;;  %v4210_v36 = vpop.f32.mrf.mxu1 }
 0x44a   : > { %v4474_v50 = vmax.f32 %v4165_v12, 0.0  ;;  %v4167_v5 = vadd.f32 %v4166_v26, %v11495_v51  ;;  %4509 = vst [vmem:[%s11502_s19 + $0x98] sm:$0xff] %v4477_v21 }
 0x44b   : > { %v4168_v14 = vpop.f32.mrf.mxu0 }
 0x44c   : > { %4506 = vst [vmem:[%s11502_s19 + $0x80] sm:$0xff] %v4474_v50  ;;  %v4475_v28 = vmax.f32 %v4167_v5, 0.0 }
 0x44d   : > { %v4169_v44 = vpop.f32.mrf.mxu0 }
 0x44e   : > { %4507 = vst [vmem:[%s11502_s19 + $0x88] sm:$0xff] %v4475_v28 }
 0x459   : > { %v4287_v20 = vpop.f32.mrf.mxu1 }
 0x45a   : > { %v4288_v59 = vadd.f32 %v4287_v20, %v11495_v51 }
 0x45b   : > { %v4289_v40 = vpop.f32.mrf.mxu1 }
 0x45c   : > { %v4480_v48 = vmax.f32 %v4288_v59, 0.0  ;;  %v4290_v33 = vadd.f32 %v4289_v40, %v11495_v51 }
 0x45d   : > { %v4246_v18 = vpop.f32.mrf.mxu0  ;;  %v4291_v19 = vpop.f32.mrf.mxu1 }
 0x45e   : > { %v4247_v45 = vadd.f32 %v4246_v18, %v11495_v51  ;;  %4512 = vst [vmem:[%s11502_s19 + $0xb0] sm:$0xff] %v4480_v48  ;;  %v4481_v54 = vmax.f32 %v4290_v33, 0.0 }
 0x45f   : > { %v4248_v42 = vpop.f32.mrf.mxu0  ;;  %v4292_v32 = vpop.f32.mrf.mxu1 }
 0x460   : > { %v4478_v16 = vmax.f32 %v4247_v45, 0.0  ;;  %v4249_v37 = vadd.f32 %v4248_v42, %v11495_v51  ;;  %4513 = vst [vmem:[%s11502_s19 + $0xb8] sm:$0xff] %v4481_v54 }
 0x461   : > { %v4250_v29 = vpop.f32.mrf.mxu0 }
 0x462   : > { %4510 = vst [vmem:[%s11502_s19 + $0xa0] sm:$0xff] %v4478_v16  ;;  %v4479_v4 = vmax.f32 %v4249_v37, 0.0 }
 0x463   : > { %v4251_v52 = vpop.f32.mrf.mxu0 }
 0x464   : > { %4511 = vst [vmem:[%s11502_s19 + $0xa8] sm:$0xff] %v4479_v4 }
 0x46f   : > { %v4369_v17 = vpop.f32.mrf.mxu1 }
 0x470   : > { %v4370_v1 = vadd.f32 %v4369_v17, %v11495_v51 }
 0x471   : > { %v4371_v23 = vpop.f32.mrf.mxu1 }
 0x472   : > { %v4328_v22 = vpop.f32.mrf.mxu0  ;;  %v4484_v58 = vmax.f32 %v4370_v1, 0.0  ;;  %v4372_v41 = vadd.f32 %v4371_v23, %v11495_v51 }
 0x473   : > { %v4329_v62 = vadd.f32 %v4328_v22, %v11495_v51  ;;  %v4373_v34 = vpop.f32.mrf.mxu1 }
 0x474   : > { %v4330_v9 = vpop.f32.mrf.mxu0  ;;  %4516 = vst [vmem:[%s11502_s19 + $0xd0] sm:$0xff] %v4484_v58  ;;  %v4485_v47 = vmax.f32 %v4372_v41, 0.0 }
 0x475   : > { %v4482_v60 = vmax.f32 %v4329_v62, 0.0  ;;  %v4331_v0 = vadd.f32 %v4330_v9, %v11495_v51  ;;  %v4374_v38 = vpop.f32.mrf.mxu1 }
 0x476   : > { %v4332_v27 = vpop.f32.mrf.mxu0  ;;  %4517 = vst [vmem:[%s11502_s19 + $0xd8] sm:$0xff] %v4485_v47 }
 0x477   : > { %4514 = vst [vmem:[%s11502_s19 + $0xc0] sm:$0xff] %v4482_v60  ;;  %v4483_v3 = vmax.f32 %v4331_v0, 0.0 }
 0x478   : > { %v4333_v43 = vpop.f32.mrf.mxu0 }
 0x479   : > { %4515 = vst [vmem:[%s11502_s19 + $0xc8] sm:$0xff] %v4483_v3 }
 0x483   : > { %v4451_v10 = vpop.f32.mrf.mxu1 }
 0x484   : > { %v4452_v35 = vadd.f32 %v4451_v10, %v11495_v51 }
 0x485   : > { %v4453_v53 = vpop.f32.mrf.mxu1 }
 0x486   : > { %v4410_v7 = vpop.f32.mrf.mxu0  ;;  %v4488_v30 = vmax.f32 %v4452_v35, 0.0  ;;  %v4454_v56 = vadd.f32 %v4453_v53, %v11495_v51 }
 0x487   : > { %v4411_v31 = vadd.f32 %v4410_v7, %v11495_v51  ;;  %v4455_v57 = vpop.f32.mrf.mxu1 }
 0x488   : > { %v4412_v25 = vpop.f32.mrf.mxu0  ;;  %4520 = vst [vmem:[%s11502_s19 + $0xf0] sm:$0xff] %v4488_v30  ;;  %v4489_v61 = vmax.f32 %v4454_v56, 0.0 }
 0x489   : > { %v4486_v6 = vmax.f32 %v4411_v31, 0.0  ;;  %v4413_v15 = vadd.f32 %v4412_v25, %v11495_v51  ;;  %v4456_v11 = vpop.f32.mrf.mxu1 }
 0x48a   : > { %v4414_v49 = vpop.f32.mrf.mxu0  ;;  %4521 = vst [vmem:[%s11502_s19 + $0xf8] sm:$0xff] %v4489_v61 }
 0x48b   : > { %4518 = vst [vmem:[%s11502_s19 + $0xe0] sm:$0xff] %v4486_v6  ;;  %v4487_v39 = vmax.f32 %v4413_v15, 0.0 }
 0x48c   : > { %v4415_v55 = vpop.f32.mrf.mxu0 }
 0x48d   : > { %4519 = vst [vmem:[%s11502_s19 + $0xe8] sm:$0xff] %v4487_v39 }
 0x48e PF: > { %s17_s24 = sadd.s32 1, %s5689_s24  }
 0x48f   : > { %p14_p4 = scmp.ge.s32.totalorder %s17_s24, 4  }
 0x491   :  { %16 = sbr.rel (!%p14_p4) target bundleno = 1 (0x1), region = 78 }

</bundles_post_ra>
